<compile_context>
chip_gen: v7x
topology: tpu7x:2x2x1
jax: 0.10.0
libtpu: 0.0.40
codegen_flags: <defaults>
</compile_context>

<pallas_src>
import numpy as np
import jax
import jax.numpy as jnp
from jax import lax
from jax.experimental import pallas as pl
from jax.experimental.pallas import tpu as pltpu

# ------------------------- small, module-consistent config -------------------------
IMG_SIZE   = (8, 8, 8)     # (i, j, z)
PATCH      = 4             # patch_size (=> decoder k_size = 4)
IN_CHANS   = 1
EMBED_DIM  = 32
DEPTH      = 2
N_HEADS    = 4
MLP_RATIO  = 4.0
TIMEPOINTS = 6             # n_timepoints
BATCH      = 2

LN_EPS           = 1e-6                           # nn.LayerNorm(dim, eps=1e-06) in the module
MLP_RRELU_SLOPE  = (0.1 + 0.7) / 2.0              # nn.RReLU(0.1, 0.7), eval mode
HEAD_RRELU_SLOPE = (1.0 / 8.0 + 1.0 / 3.0) / 2.0  # nn.RReLU() defaults, eval mode

_VMEM = pl.BlockSpec(memory_space=pltpu.MemorySpace.VMEM)   # whole array resident in VMEM


def _ln(x, g, b):
    """Row-wise LayerNorm over the last dim (biased variance, like torch)."""
    mu = jnp.mean(x, axis=-1, keepdims=True)
    xc = x - mu
    var = jnp.mean(xc * xc, axis=-1, keepdims=True)
    return xc * lax.rsqrt(var + LN_EPS) * g + b


# ====================== kernel 1: patch embedding + pos embed =======================
def _patch_embed_kernel(x_ref, w_ref, b_ref, pos_ref, o_ref):
    B = x_ref.shape[0]
    w = w_ref[...]
    bias = b_ref[...]
    pos = pos_ref[...]
    for bb in range(B):                                   # unrolled, B is tiny
        o_ref[bb] = jnp.dot(x_ref[bb], w, preferred_element_type=jnp.float32) + bias + pos


def patch_embed_pallas(patches, w, b, pos):
    B, NT, _ = patches.shape
    D = w.shape[1]
    return pl.pallas_call(
        _patch_embed_kernel,
        out_shape=jax.ShapeDtypeStruct((B, NT, D), jnp.float32),
        in_specs=[_VMEM] * 4,
        out_specs=_VMEM,
    )(patches, w, b, pos)


# ====================== kernel 2: fully fused encoder block =========================
def _encoder_block_kernel(x_ref, ln1g, ln1b, qw, qb, kw, kb, vw, vb, pw, pb,
                          ln2g, ln2b, fc1w, fc1b, fc2w, fc2b, o_ref):
    B, N, D = x_ref.shape
    H = qw.shape[0]
    for bb in range(B):                                   # unrolled over batch
        x = x_ref[bb]                                     # (N, D)
        h = _ln(x, ln1g[...], ln1b[...])                  # LN1 fused with qkv consumers
        attn = None
        for hh in range(H):                               # unrolled over heads (no per-head grid)
            # per-head weights pre-split at prep time -> only leading-dim ref indexing,
            # no narrow lane slicing, no wrapper reshapes/transposes
            q = jnp.dot(h, qw[hh], preferred_element_type=jnp.float32) + qb[hh]   # scale folded
            k = jnp.dot(h, kw[hh], preferred_element_type=jnp.float32) + kb[hh]
            v = jnp.dot(h, vw[hh], preferred_element_type=jnp.float32) + vb[hh]
            s = lax.dot_general(q, k, (((1,), (1,)), ((), ())),
                                preferred_element_type=jnp.float32)               # (N, N)
            s = s - jnp.max(s, axis=-1, keepdims=True)
            p = jnp.exp(s)
            p = p * pl.reciprocal(jnp.sum(p, axis=-1, keepdims=True), approx=True)
            ho = jnp.dot(p, v, preferred_element_type=jnp.float32)                # (N, hd)
            # fold the head straight into its proj block: no (N, hd) tensor ever leaves VMEM
            contrib = jnp.dot(ho, pw[hh], preferred_element_type=jnp.float32)     # (N, D)
            attn = contrib if attn is None else attn + contrib
        x1 = x + attn + pb[...]                           # residual 1 (+ proj bias)
        h2 = _ln(x1, ln2g[...], ln2b[...])                # LN2 fused with MLP
        mid = jnp.dot(h2, fc1w[...], preferred_element_type=jnp.float32) + fc1b[...]
        mid = jnp.where(mid >= 0.0, mid, mid * MLP_RRELU_SLOPE)
        mlp = jnp.dot(mid, fc2w[...], preferred_element_type=jnp.float32) + fc2b[...]
        o_ref[bb] = x1 + mlp                              # residual 2


def encoder_block_pallas(x, p):
    return pl.pallas_call(
        _encoder_block_kernel,
        out_shape=jax.ShapeDtypeStruct(x.shape, jnp.float32),
        in_specs=[_VMEM] * 17,
        out_specs=_VMEM,
    )(x, p["ln1_g"], p["ln1_b"],
      p["q_w"], p["q_b"], p["k_w"], p["k_b"], p["v_w"], p["v_b"],
      p["p_w"], p["p_b"], p["ln2_g"], p["ln2_b"],
      p["fc1_w"], p["fc1_b"], p["fc2_w"], p["fc2_b"])


# ========= kernel 3: final norm + decoder fc + center + PE + decoder + head =========
def _decoder_kernel(x_ref, ng, nb, fcw, fcb, pe_ref, dw_ref, db_ref, o_ref):
    M = x_ref.shape[0]                                    # B*T*P tokens
    T, P, _ = pe_ref.shape
    B = M // (T * P)
    h = _ln(x_ref[...], ng[...], nb[...])                 # final LayerNorm, (M, D)
    # fc(EMBED -> 1) as multiply + lane reduce (bias cancels in the time-mean subtraction,
    # kept anyway for exact parity with the module)
    y = jnp.sum(h * fcw[...], axis=-1, keepdims=True) + fcb[...]          # (M, 1)
    for bb in range(B):
        ys = [y[(bb * T + tt) * P:(bb * T + tt + 1) * P, :] for tt in range(T)]   # (P,1) each
        mean = ys[0]
        for tt in range(1, T):
            mean = mean + ys[tt]
        mean = mean * (1.0 / T)                           # x.mean(dim=time)
        for tt in range(T):
            z = ys[tt] - mean + pe_ref[tt]                # center + PositionalEncoding, (P,1)
            # whole decoder (3 transposed convs + nearest interp + 1x1 head conv) folded into
            # a per-channel affine map: broadcast-mul + sublane reduce, lane-dense 512-wide out
            r = jnp.sum(z * dw_ref[tt], axis=0, keepdims=True) + db_ref[tt]       # (1, S)
            r = jnp.where(r >= 0.0, r, r * HEAD_RRELU_SLOPE)                      # head RReLU
            o_ref[pl.ds(bb * T + tt, 1), :] = r


def decoder_pallas(x2d, p):
    T, P, _ = p["pe"].shape
    S = p["dec_w"].shape[-1]
    BT = x2d.shape[0] // P
    return pl.pallas_call(
        _decoder_kernel,
        out_shape=jax.ShapeDtypeStruct((BT, S), jnp.float32),
        in_specs=[_VMEM] * 8,
        out_specs=_VMEM,
    )(x2d, p["norm_g"], p["norm_b"], p["fc_w"], p["fc_b"], p["pe"], p["dec_w"], p["dec_b"])


# ================================ forward (jitted) ===================================
@jax.jit
def scepter_vit_forward(x, params):
    b, c, t, di, hj, wz = x.shape
    ps = PATCH
    gd, gh, gw = di // ps, hj // ps, wz // ps
    n_patches = gd * gh * gw

    # pure-layout glue: time into the sample axis + non-overlapping patch extraction
    xt = jnp.transpose(x, (0, 2, 1, 3, 4, 5)).reshape(b * t, c, di, hj, wz)
    pxt = xt.reshape(b * t, c, gd, ps, gh, ps, gw, ps)
    pxt = jnp.transpose(pxt, (0, 2, 4, 6, 1, 3, 5, 7)).reshape(b, t * n_patches, c * ps ** 3)

    # PatchEmbed (+ spatial_pos_embed add; Dropout(0) = identity)
    xs = patch_embed_pallas(pxt, params["patch_w"], params["patch_b"], params["pos_embed"])

    # space_time attention: time merged into the token axis; fused encoder blocks
    for blk in params["blocks"]:
        xs = encoder_block_pallas(xs, blk)

    # fused decoder tail -> (b*t, D*H*W) lane-dense slab
    y = decoder_pallas(xs.reshape(b * t * n_patches, EMBED_DIM), params)

    y = y.reshape(b, t, di, hj, wz)
    y = y[:, None]                                    # unsqueeze(1) -> (b, 1, t, D, H, W)
    return jnp.transpose(y, (0, 1, 3, 4, 5, 2))       # (b, 1, D, H, W, t)


# ====================== prep: fold / reshape params for the kernels =================
def _conv_transpose3d_depthwise(x, w, b, *, stride=1, dilation=1):
    # TODO(synk): tiny grouped ConvTranspose3d has no clean Pallas tiling; it is only run here,
    # once, at prep time (lax.conv_general_dilated with lhs_dilation + flipped kernel).
    k = w.shape[-1]
    pad = dilation * (k - 1)
    w_flip = w[:, :, ::-1, ::-1, ::-1]                   # (C_out, 1, k, k, k) depthwise
    y = lax.conv_general_dilated(
        x, w_flip,
        window_strides=(1, 1, 1),
        padding=[(pad, pad)] * 3,
        lhs_dilation=(stride,) * 3,
        rhs_dilation=(dilation,) * 3,
        dimension_numbers=("NCDHW", "OIDHW", "NCDHW"),
        feature_group_count=x.shape[1],
    )
    return y + b.reshape(1, -1, 1, 1, 1)


def _decoder_affine_map(p):
    """Fold ConvTranspose3d x3 + nearest-interpolate + grouped 1x1 head conv into a per-channel
    affine map: out[b,t,:] = x[b,t,:] @ dec_w[t] + dec_b[t]  (RReLU applied in-kernel)."""
    T = TIMEPOINTS
    gd, gh, gw = (s // PATCH for s in IMG_SIZE)
    P = gd * gh * gw
    basis = jnp.concatenate([jnp.zeros((1, P), jnp.float32), jnp.eye(P, dtype=jnp.float32)], 0)
    x = jnp.broadcast_to(basis[:, None, :], (P + 1, T, P)).reshape(P + 1, T, gd, gh, gw)
    y = _conv_transpose3d_depthwise(x, p["ct1_w"], p["ct1_b"], stride=1, dilation=1)
    y = _conv_transpose3d_depthwise(y, p["ct2_w"], p["ct2_b"], stride=2, dilation=1)
    y = _conv_transpose3d_depthwise(y, p["ct3_w"], p["ct3_b"], stride=1, dilation=2)
    # F.interpolate(..., mode='nearest'): pure index gather
    for ax, out_s in enumerate(IMG_SIZE):
        in_s = y.shape[2 + ax]
        idx = (jnp.arange(out_s) * in_s) // out_s
        y = jnp.take(y, idx, axis=2 + ax)
    S = IMG_SIZE[0] * IMG_SIZE[1] * IMG_SIZE[2]
    y = y.reshape(P + 1, T, S)
    bias = y[0]                                            # response to zero input: (T, S)
    mat = y[1:] - bias[None]                               # per-voxel basis responses: (P, T, S)
    hw = p["head_w"]
    hb = p["head_b"]
    mat = jnp.transpose(mat, (1, 0, 2)) * hw.reshape(T, 1, 1)       # fold head 1x1 conv scale
    bias = bias * hw.reshape(T, 1) + hb.reshape(T, 1)               # fold head 1x1 conv bias
    return mat, bias.reshape(T, 1, S)


def prepare_params(p):
    """One-time reshape/fold of module-layout params into kernel-friendly layouts."""
    D, H = EMBED_DIM, N_HEADS
    hd = D // H
    scale = hd ** -0.5
    hidden = int(EMBED_DIM * MLP_RATIO)

    blocks = []
    for blk in p["blocks"]:
        qkv_w, qkv_b = blk["qkv_w"], blk["qkv_b"]

        def w_heads(wp, s=1.0):
            return jnp.transpose(wp.reshape(D, H, hd) * s, (1, 0, 2))   # (H, D, hd)

        def b_heads(bp, s=1.0):
            return (bp * s).reshape(H, 1, hd)                           # (H, 1, hd)

        blocks.append(dict(
            ln1_g=blk["ln1_g"].reshape(1, D), ln1_b=blk["ln1_b"].reshape(1, D),
            q_w=w_heads(qkv_w[:, :D], scale),       q_b=b_heads(qkv_b[:D], scale),   # scale folded
            k_w=w_heads(qkv_w[:, D:2 * D]),         k_b=b_heads(qkv_b[D:2 * D]),
            v_w=w_heads(qkv_w[:, 2 * D:]),          v_b=b_heads(qkv_b[2 * D:]),
            p_w=blk["proj_w"].reshape(H, hd, D),    p_b=blk["proj_b"].reshape(1, D),
            ln2_g=blk["ln2_g"].reshape(1, D), ln2_b=blk["ln2_b"].reshape(1, D),
            fc1_w=blk["fc1_w"], fc1_b=blk["fc1_b"].reshape(1, hidden),
            fc2_w=blk["fc2_w"], fc2_b=blk["fc2_b"].reshape(1, D),
        ))

    dec_w, dec_b = _decoder_affine_map(p)
    T = TIMEPOINTS
    P = dec_w.shape[1]
    return dict(
        patch_w=p["patch_w"], patch_b=p["patch_b"].reshape(1, D),
        pos_embed=p["spatial_pos_embed"].reshape(T * P, D),
        blocks=blocks,
        norm_g=p["norm_g"].reshape(1, D), norm_b=p["norm_b"].reshape(1, D),
        fc_w=p["fc_w"].reshape(1, D), fc_b=p["fc_b"].reshape(1, 1),
        pe=p["pe"].reshape(T, P, 1),
        dec_w=dec_w, dec_b=dec_b,
    )


# ============================== deterministic params ================================
def init_params(seed=0):
    gd, gh, gw = (s // PATCH for s in IMG_SIZE)
    n_patches = gd * gh * gw
    hidden = int(EMBED_DIM * MLP_RATIO)

    key = jax.random.PRNGKey(seed + 1)
    keys = iter(jax.random.split(key, 64))

    def nrm(shape, s=0.02):
        return s * jax.random.normal(next(keys), shape, jnp.float32)

    blocks = []
    for _ in range(DEPTH):
        blocks.append(dict(
            ln1_g=jnp.ones((EMBED_DIM,), jnp.float32), ln1_b=jnp.zeros((EMBED_DIM,), jnp.float32),
            qkv_w=nrm((EMBED_DIM, 3 * EMBED_DIM)),     qkv_b=nrm((3 * EMBED_DIM,)),
            proj_w=nrm((EMBED_DIM, EMBED_DIM)),        proj_b=nrm((EMBED_DIM,)),
            ln2_g=jnp.ones((EMBED_DIM,), jnp.float32), ln2_b=jnp.zeros((EMBED_DIM,), jnp.float32),
            fc1_w=nrm((EMBED_DIM, hidden)),            fc1_b=nrm((hidden,)),
            fc2_w=nrm((hidden, EMBED_DIM)),            fc2_b=nrm((EMBED_DIM,)),
        ))

    # PositionalEncoding buffer: embed_dim = prod(patch grid) == n_patches, max_len = TIMEPOINTS
    pos = np.arange(TIMEPOINTS, dtype=np.float32)[:, None]
    div = 1.0 / (10000.0 ** (np.arange(0, n_patches, 2, dtype=np.float32) / n_patches))
    pe = np.zeros((TIMEPOINTS, n_patches), np.float32)
    pe[:, 0::2] = np.sin(pos * div)
    pe[:, 1::2] = np.cos(pos * div)

    k1, k2, k3 = PATCH + 2, PATCH, PATCH + 4                   # decoder transposed-conv kernels

    return dict(
        patch_w=nrm((IN_CHANS * PATCH ** 3, EMBED_DIM)),       # Conv3d(k=s=patch) as matmul
        patch_b=nrm((EMBED_DIM,)),
        spatial_pos_embed=jnp.zeros((1, n_patches * TIMEPOINTS, EMBED_DIM), jnp.float32),
        blocks=blocks,
        norm_g=jnp.ones((EMBED_DIM,), jnp.float32),
        norm_b=jnp.zeros((EMBED_DIM,), jnp.float32),
        fc_w=nrm((EMBED_DIM, 1)),
        fc_b=nrm((1,)),
        pe=jnp.asarray(pe),
        ct1_w=nrm((TIMEPOINTS, 1, k1, k1, k1), 0.05), ct1_b=nrm((TIMEPOINTS,), 0.05),
        ct2_w=nrm((TIMEPOINTS, 1, k2, k2, k2), 0.05), ct2_b=nrm((TIMEPOINTS,), 0.05),
        ct3_w=nrm((TIMEPOINTS, 1, k3, k3, k3), 0.05), ct3_b=nrm((TIMEPOINTS,), 0.05),
        head_w=nrm((TIMEPOINTS,), 0.5),               head_b=nrm((TIMEPOINTS,), 0.5),
    )


# ===================================== main =========================================
if __name__ == "__main__":
    raw_params = init_params(0)
    params = prepare_params(raw_params)          # one-time fold (attention scale, decoder map)

    k_in, _ = jax.random.split(jax.random.PRNGKey(0))
    x = jax.random.normal(k_in, (BATCH, IN_CHANS, TIMEPOINTS) + IMG_SIZE, jnp.float32)

    out = scepter_vit_forward(x, params)
    out = jax.block_until_ready(out)

    expected = (BATCH, 1) + IMG_SIZE + (TIMEPOINTS,)
    assert out.shape == expected, (out.shape, expected)
    assert bool(jnp.all(jnp.isfinite(out)))
    print("KERNEL_OK")
</pallas_src>

<mosaic_0001>
module attributes {stable_mosaic.version = 11 : i64} {
  func.func @_patch_embed_kernel(%arg0: memref<2x48x64xf32, #tpu.memory_space<vmem>>, %arg1: memref<64x32xf32, #tpu.memory_space<vmem>>, %arg2: memref<1x32xf32, #tpu.memory_space<vmem>>, %arg3: memref<48x32xf32, #tpu.memory_space<vmem>>, %arg4: memref<2x48x32xf32, #tpu.memory_space<vmem>>) attributes {dimension_semantics = [], scalar_prefetch = 0 : i64, scratch_operands = 0 : i64, tpu.core_type = #tpu.core_type<tc>} {
    %c0 = arith.constant 0 : index
    %c0_0 = arith.constant 0 : index
    %0 = vector.load %arg1[%c0, %c0_0] : memref<64x32xf32, #tpu.memory_space<vmem>>, vector<64x32xf32>
    %c0_1 = arith.constant 0 : index
    %c0_2 = arith.constant 0 : index
    %1 = vector.load %arg2[%c0_1, %c0_2] : memref<1x32xf32, #tpu.memory_space<vmem>>, vector<1x32xf32>
    %c0_3 = arith.constant 0 : index
    %c0_4 = arith.constant 0 : index
    %2 = vector.load %arg3[%c0_3, %c0_4] : memref<48x32xf32, #tpu.memory_space<vmem>>, vector<48x32xf32>
    %c0_5 = arith.constant 0 : index
    %c0_6 = arith.constant 0 : index
    %c0_7 = arith.constant 0 : index
    %3 = vector.load %arg0[%c0_5, %c0_6, %c0_7] : memref<2x48x64xf32, #tpu.memory_space<vmem>>, vector<1x48x64xf32>
    %4 = vector.shape_cast %3 : vector<1x48x64xf32> to vector<48x64xf32>
    %cst = arith.constant dense<0.000000e+00> : vector<48x32xf32>
    %5 = tpu.matmul %4, %0, %cst {dimension_numbers = #tpu.dot_dimension_numbers<[1], [0], [0], [1], [0, 0, 1, 1], [], []>} : vector<48x64xf32>, vector<64x32xf32>, vector<48x32xf32> -> vector<48x32xf32>
    %6 = vector.broadcast %1 : vector<1x32xf32> to vector<48x32xf32>
    %7 = arith.addf %5, %6 : vector<48x32xf32>
    %8 = arith.addf %7, %2 : vector<48x32xf32>
    %c0_8 = arith.constant 0 : index
    %c0_9 = arith.constant 0 : index
    %c0_10 = arith.constant 0 : index
    %9 = vector.load %arg4[%c0_8, %c0_9, %c0_10] : memref<2x48x32xf32, #tpu.memory_space<vmem>>, vector<1x48x32xf32>
    %10 = vector.shape_cast %9 : vector<1x48x32xf32> to vector<48x32xf32>
    %11 = vector.shape_cast %8 : vector<48x32xf32> to vector<1x48x32xf32>
    tpu.vector_store %arg4[%c0_8, %c0_9, %c0_10], %11 {strides = array<i32>} : memref<2x48x32xf32, #tpu.memory_space<vmem>>, vector<1x48x32xf32>,
    %c1 = arith.constant 1 : index
    %c0_11 = arith.constant 0 : index
    %c0_12 = arith.constant 0 : index
    %12 = vector.load %arg0[%c1, %c0_11, %c0_12] : memref<2x48x64xf32, #tpu.memory_space<vmem>>, vector<1x48x64xf32>
    %13 = vector.shape_cast %12 : vector<1x48x64xf32> to vector<48x64xf32>
    %cst_13 = arith.constant dense<0.000000e+00> : vector<48x32xf32>
    %14 = tpu.matmul %13, %0, %cst_13 {dimension_numbers = #tpu.dot_dimension_numbers<[1], [0], [0], [1], [0, 0, 1, 1], [], []>} : vector<48x64xf32>, vector<64x32xf32>, vector<48x32xf32> -> vector<48x32xf32>
    %15 = vector.broadcast %1 : vector<1x32xf32> to vector<48x32xf32>
    %16 = arith.addf %14, %15 : vector<48x32xf32>
    %17 = arith.addf %16, %2 : vector<48x32xf32>
    %c1_14 = arith.constant 1 : index
    %c0_15 = arith.constant 0 : index
    %c0_16 = arith.constant 0 : index
    %18 = vector.load %arg4[%c1_14, %c0_15, %c0_16] : memref<2x48x32xf32, #tpu.memory_space<vmem>>, vector<1x48x32xf32>
    %19 = vector.shape_cast %18 : vector<1x48x32xf32> to vector<48x32xf32>
    %20 = vector.shape_cast %17 : vector<48x32xf32> to vector<1x48x32xf32>
    tpu.vector_store %arg4[%c1_14, %c0_15, %c0_16], %20 {strides = array<i32>} : memref<2x48x32xf32, #tpu.memory_space<vmem>>, vector<1x48x32xf32>,
    return
  }
}

module attributes {stable_mosaic.version = 11 : i64} {
  func.func @_encoder_block_kernel(%arg0: memref<2x48x32xf32, #tpu.memory_space<vmem>>, %arg1: memref<1x32xf32, #tpu.memory_space<vmem>>, %arg2: memref<1x32xf32, #tpu.memory_space<vmem>>, %arg3: memref<4x32x8xf32, #tpu.memory_space<vmem>>, %arg4: memref<4x1x8xf32, #tpu.memory_space<vmem>>, %arg5: memref<4x32x8xf32, #tpu.memory_space<vmem>>, %arg6: memref<4x1x8xf32, #tpu.memory_space<vmem>>, %arg7: memref<4x32x8xf32, #tpu.memory_space<vmem>>, %arg8: memref<4x1x8xf32, #tpu.memory_space<vmem>>, %arg9: memref<4x8x32xf32, #tpu.memory_space<vmem>>, %arg10: memref<1x32xf32, #tpu.memory_space<vmem>>, %arg11: memref<1x32xf32, #tpu.memory_space<vmem>>, %arg12: memref<1x32xf32, #tpu.memory_space<vmem>>, %arg13: memref<32x128xf32, #tpu.memory_space<vmem>>, %arg14: memref<1x128xf32, #tpu.memory_space<vmem>>, %arg15: memref<128x32xf32, #tpu.memory_space<vmem>>, %arg16: memref<1x32xf32, #tpu.memory_space<vmem>>, %arg17: memref<2x48x32xf32, #tpu.memory_space<vmem>>) attributes {dimension_semantics = [], scalar_prefetch = 0 : i64, scratch_operands = 0 : i64, tpu.core_type = #tpu.core_type<tc>} {
    %c0 = arith.constant 0 : index
    %c0_0 = arith.constant 0 : index
    %c0_1 = arith.constant 0 : index
    %0 = vector.load %arg0[%c0, %c0_0, %c0_1] : memref<2x48x32xf32, #tpu.memory_space<vmem>>, vector<1x48x32xf32>
    %1 = vector.shape_cast %0 : vector<1x48x32xf32> to vector<48x32xf32>
    %c0_2 = arith.constant 0 : index
    %c0_3 = arith.constant 0 : index
    %2 = vector.load %arg1[%c0_2, %c0_3] : memref<1x32xf32, #tpu.memory_space<vmem>>, vector<1x32xf32>
    %c0_4 = arith.constant 0 : index
    %c0_5 = arith.constant 0 : index
    %3 = vector.load %arg2[%c0_4, %c0_5] : memref<1x32xf32, #tpu.memory_space<vmem>>, vector<1x32xf32>
    %cst = arith.constant dense<0.000000e+00> : vector<48xf32>
    %4 = vector.multi_reduction <add>, %1, %cst [1] : vector<48x32xf32> to vector<48xf32>
    %5 = vector.shape_cast %4 : vector<48xf32> to vector<48x1xf32>
    %cst_6 = arith.constant 3.200000e+01 : f32
    %6 = vector.broadcast %cst_6 : f32 to vector<48x1xf32>
    %7 = arith.divf %5, %6 : vector<48x1xf32>
    %8 = vector.broadcast %7 : vector<48x1xf32> to vector<48x32xf32>
    %9 = arith.subf %1, %8 : vector<48x32xf32>
    %10 = arith.mulf %9, %9 : vector<48x32xf32>
    %cst_7 = arith.constant dense<0.000000e+00> : vector<48xf32>
    %11 = vector.multi_reduction <add>, %10, %cst_7 [1] : vector<48x32xf32> to vector<48xf32>
    %12 = vector.shape_cast %11 : vector<48xf32> to vector<48x1xf32>
    %cst_8 = arith.constant 3.200000e+01 : f32
    %13 = vector.broadcast %cst_8 : f32 to vector<48x1xf32>
    %14 = arith.divf %12, %13 : vector<48x1xf32>
    %cst_9 = arith.constant 9.99999997E-7 : f32
    %15 = vector.broadcast %cst_9 : f32 to vector<48x1xf32>
    %16 = arith.addf %14, %15 : vector<48x1xf32>
    %17 = math.rsqrt %16 : vector<48x1xf32>
    %18 = vector.broadcast %17 : vector<48x1xf32> to vector<48x32xf32>
    %19 = arith.mulf %9, %18 : vector<48x32xf32>
    %20 = vector.broadcast %2 : vector<1x32xf32> to vector<48x32xf32>
    %21 = arith.mulf %19, %20 : vector<48x32xf32>
    %22 = vector.broadcast %3 : vector<1x32xf32> to vector<48x32xf32>
    %23 = arith.addf %21, %22 : vector<48x32xf32>
    %c0_10 = arith.constant 0 : index
    %c0_11 = arith.constant 0 : index
    %c0_12 = arith.constant 0 : index
    %24 = vector.load %arg3[%c0_10, %c0_11, %c0_12] : memref<4x32x8xf32, #tpu.memory_space<vmem>>, vector<1x32x8xf32>
    %25 = vector.shape_cast %24 : vector<1x32x8xf32> to vector<32x8xf32>
    %cst_13 = arith.constant dense<0.000000e+00> : vector<48x8xf32>
    %26 = tpu.matmul %23, %25, %cst_13 {dimension_numbers = #tpu.dot_dimension_numbers<[1], [0], [0], [1], [0, 0, 1, 1], [], []>} : vector<48x32xf32>, vector<32x8xf32>, vector<48x8xf32> -> vector<48x8xf32>
    %c0_14 = arith.constant 0 : index
    %c0_15 = arith.constant 0 : index
    %c0_16 = arith.constant 0 : index
    %27 = vector.load %arg4[%c0_14, %c0_15, %c0_16] : memref<4x1x8xf32, #tpu.memory_space<vmem>>, vector<1x1x8xf32>
    %28 = vector.shape_cast %27 : vector<1x1x8xf32> to vector<1x8xf32>
    %29 = vector.broadcast %28 : vector<1x8xf32> to vector<48x8xf32>
    %30 = arith.addf %26, %29 : vector<48x8xf32>
    %c0_17 = arith.constant 0 : index
    %c0_18 = arith.constant 0 : index
    %c0_19 = arith.constant 0 : index
    %31 = vector.load %arg5[%c0_17, %c0_18, %c0_19] : memref<4x32x8xf32, #tpu.memory_space<vmem>>, vector<1x32x8xf32>
    %32 = vector.shape_cast %31 : vector<1x32x8xf32> to vector<32x8xf32>
    %cst_20 = arith.constant dense<0.000000e+00> : vector<48x8xf32>
    %33 = tpu.matmul %23, %32, %cst_20 {dimension_numbers = #tpu.dot_dimension_numbers<[1], [0], [0], [1], [0, 0, 1, 1], [], []>} : vector<48x32xf32>, vector<32x8xf32>, vector<48x8xf32> -> vector<48x8xf32>
    %c0_21 = arith.constant 0 : index
    %c0_22 = arith.constant 0 : index
    %c0_23 = arith.constant 0 : index
    %34 = vector.load %arg6[%c0_21, %c0_22, %c0_23] : memref<4x1x8xf32, #tpu.memory_space<vmem>>, vector<1x1x8xf32>
    %35 = vector.shape_cast %34 : vector<1x1x8xf32> to vector<1x8xf32>
    %36 = vector.broadcast %35 : vector<1x8xf32> to vector<48x8xf32>
    %37 = arith.addf %33, %36 : vector<48x8xf32>
    %c0_24 = arith.constant 0 : index
    %c0_25 = arith.constant 0 : index
    %c0_26 = arith.constant 0 : index
    %38 = vector.load %arg7[%c0_24, %c0_25, %c0_26] : memref<4x32x8xf32, #tpu.memory_space<vmem>>, vector<1x32x8xf32>
    %39 = vector.shape_cast %38 : vector<1x32x8xf32> to vector<32x8xf32>
    %cst_27 = arith.constant dense<0.000000e+00> : vector<48x8xf32>
    %40 = tpu.matmul %23, %39, %cst_27 {dimension_numbers = #tpu.dot_dimension_numbers<[1], [0], [0], [1], [0, 0, 1, 1], [], []>} : vector<48x32xf32>, vector<32x8xf32>, vector<48x8xf32> -> vector<48x8xf32>
    %c0_28 = arith.constant 0 : index
    %c0_29 = arith.constant 0 : index
    %c0_30 = arith.constant 0 : index
    %41 = vector.load %arg8[%c0_28, %c0_29, %c0_30] : memref<4x1x8xf32, #tpu.memory_space<vmem>>, vector<1x1x8xf32>
    %42 = vector.shape_cast %41 : vector<1x1x8xf32> to vector<1x8xf32>
    %43 = vector.broadcast %42 : vector<1x8xf32> to vector<48x8xf32>
    %44 = arith.addf %40, %43 : vector<48x8xf32>
    %cst_31 = arith.constant dense<0.000000e+00> : vector<48x48xf32>
    %45 = tpu.matmul %30, %37, %cst_31 {dimension_numbers = #tpu.dot_dimension_numbers<[1], [1], [0], [0], [0, 0, 1, 0], [], []>} : vector<48x8xf32>, vector<48x8xf32>, vector<48x48xf32> -> vector<48x48xf32>
    %cst_32 = arith.constant dense<0xFF800000> : vector<48xf32>
    %46 = vector.multi_reduction <maximumf>, %45, %cst_32 [1] : vector<48x48xf32> to vector<48xf32>
    %47 = vector.shape_cast %46 : vector<48xf32> to vector<48x1xf32>
    %48 = vector.broadcast %47 : vector<48x1xf32> to vector<48x48xf32>
    %49 = arith.subf %45, %48 : vector<48x48xf32>
    %50 = math.exp %49 : vector<48x48xf32>
    %cst_33 = arith.constant dense<0.000000e+00> : vector<48xf32>
    %51 = vector.multi_reduction <add>, %50, %cst_33 [1] : vector<48x48xf32> to vector<48xf32>
    %52 = vector.shape_cast %51 : vector<48xf32> to vector<48x1xf32>
    %53 = tpu.reciprocal %52 {approx = true} : vector<48x1xf32> -> vector<48x1xf32>
    %54 = vector.broadcast %53 : vector<48x1xf32> to vector<48x48xf32>
    %55 = arith.mulf %50, %54 : vector<48x48xf32>
    %cst_34 = arith.constant dense<0.000000e+00> : vector<48x8xf32>
    %56 = tpu.matmul %55, %44, %cst_34 {dimension_numbers = #tpu.dot_dimension_numbers<[1], [0], [0], [1], [0, 0, 1, 1], [], []>} : vector<48x48xf32>, vector<48x8xf32>, vector<48x8xf32> -> vector<48x8xf32>
    %c0_35 = arith.constant 0 : index
    %c0_36 = arith.constant 0 : index
    %c0_37 = arith.constant 0 : index
    %57 = vector.load %arg9[%c0_35, %c0_36, %c0_37] : memref<4x8x32xf32, #tpu.memory_space<vmem>>, vector<1x8x32xf32>
    %58 = vector.shape_cast %57 : vector<1x8x32xf32> to vector<8x32xf32>
    %cst_38 = arith.constant dense<0.000000e+00> : vector<48x32xf32>
    %59 = tpu.matmul %56, %58, %cst_38 {dimension_numbers = #tpu.dot_dimension_numbers<[1], [0], [0], [1], [0, 0, 1, 1], [], []>} : vector<48x8xf32>, vector<8x32xf32>, vector<48x32xf32> -> vector<48x32xf32>
    %c1 = arith.constant 1 : index
    %c0_39 = arith.constant 0 : index
    %c0_40 = arith.constant 0 : index
    %60 = vector.load %arg3[%c1, %c0_39, %c0_40] : memref<4x32x8xf32, #tpu.memory_space<vmem>>, vector<1x32x8xf32>
    %61 = vector.shape_cast %60 : vector<1x32x8xf32> to vector<32x8xf32>
    %cst_41 = arith.constant dense<0.000000e+00> : vector<48x8xf32>
    %62 = tpu.matmul %23, %61, %cst_41 {dimension_numbers = #tpu.dot_dimension_numbers<[1], [0], [0], [1], [0, 0, 1, 1], [], []>} : vector<48x32xf32>, vector<32x8xf32>, vector<48x8xf32> -> vector<48x8xf32>
    %c1_42 = arith.constant 1 : index
    %c0_43 = arith.constant 0 : index
    %c0_44 = arith.constant 0 : index
    %63 = vector.load %arg4[%c1_42, %c0_43, %c0_44] : memref<4x1x8xf32, #tpu.memory_space<vmem>>, vector<1x1x8xf32>
    %64 = vector.shape_cast %63 : vector<1x1x8xf32> to vector<1x8xf32>
    %65 = vector.broadcast %64 : vector<1x8xf32> to vector<48x8xf32>
    %66 = arith.addf %62, %65 : vector<48x8xf32>
    %c1_45 = arith.constant 1 : index
    %c0_46 = arith.constant 0 : index
    %c0_47 = arith.constant 0 : index
    %67 = vector.load %arg5[%c1_45, %c0_46, %c0_47] : memref<4x32x8xf32, #tpu.memory_space<vmem>>, vector<1x32x8xf32>
    %68 = vector.shape_cast %67 : vector<1x32x8xf32> to vector<32x8xf32>
    %cst_48 = arith.constant dense<0.000000e+00> : vector<48x8xf32>
    %69 = tpu.matmul %23, %68, %cst_48 {dimension_numbers = #tpu.dot_dimension_numbers<[1], [0], [0], [1], [0, 0, 1, 1], [], []>} : vector<48x32xf32>, vector<32x8xf32>, vector<48x8xf32> -> vector<48x8xf32>
    %c1_49 = arith.constant 1 : index
    %c0_50 = arith.constant 0 : index
    %c0_51 = arith.constant 0 : index
    %70 = vector.load %arg6[%c1_49, %c0_50, %c0_51] : memref<4x1x8xf32, #tpu.memory_space<vmem>>, vector<1x1x8xf32>
    %71 = vector.shape_cast %70 : vector<1x1x8xf32> to vector<1x8xf32>
    %72 = vector.broadcast %71 : vector<1x8xf32> to vector<48x8xf32>
    %73 = arith.addf %69, %72 : vector<48x8xf32>
    %c1_52 = arith.constant 1 : index
    %c0_53 = arith.constant 0 : index
    %c0_54 = arith.constant 0 : index
    %74 = vector.load %arg7[%c1_52, %c0_53, %c0_54] : memref<4x32x8xf32, #tpu.memory_space<vmem>>, vector<1x32x8xf32>
    %75 = vector.shape_cast %74 : vector<1x32x8xf32> to vector<32x8xf32>
    %cst_55 = arith.constant dense<0.000000e+00> : vector<48x8xf32>
    %76 = tpu.matmul %23, %75, %cst_55 {dimension_numbers = #tpu.dot_dimension_numbers<[1], [0], [0], [1], [0, 0, 1, 1], [], []>} : vector<48x32xf32>, vector<32x8xf32>, vector<48x8xf32> -> vector<48x8xf32>
    %c1_56 = arith.constant 1 : index
    %c0_57 = arith.constant 0 : index
    %c0_58 = arith.constant 0 : index
    %77 = vector.load %arg8[%c1_56, %c0_57, %c0_58] : memref<4x1x8xf32, #tpu.memory_space<vmem>>, vector<1x1x8xf32>
    %78 = vector.shape_cast %77 : vector<1x1x8xf32> to vector<1x8xf32>
    %79 = vector.broadcast %78 : vector<1x8xf32> to vector<48x8xf32>
    %80 = arith.addf %76, %79 : vector<48x8xf32>
    %cst_59 = arith.constant dense<0.000000e+00> : vector<48x48xf32>
    %81 = tpu.matmul %66, %73, %cst_59 {dimension_numbers = #tpu.dot_dimension_numbers<[1], [1], [0], [0], [0, 0, 1, 0], [], []>} : vector<48x8xf32>, vector<48x8xf32>, vector<48x48xf32> -> vector<48x48xf32>
    %cst_60 = arith.constant dense<0xFF800000> : vector<48xf32>
    %82 = vector.multi_reduction <maximumf>, %81, %cst_60 [1] : vector<48x48xf32> to vector<48xf32>
    %83 = vector.shape_cast %82 : vector<48xf32> to vector<48x1xf32>
    %84 = vector.broadcast %83 : vector<48x1xf32> to vector<48x48xf32>
    %85 = arith.subf %81, %84 : vector<48x48xf32>
    %86 = math.exp %85 : vector<48x48xf32>
    %cst_61 = arith.constant dense<0.000000e+00> : vector<48xf32>
    %87 = vector.multi_reduction <add>, %86, %cst_61 [1] : vector<48x48xf32> to vector<48xf32>
    %88 = vector.shape_cast %87 : vector<48xf32> to vector<48x1xf32>
    %89 = tpu.reciprocal %88 {approx = true} : vector<48x1xf32> -> vector<48x1xf32>
    %90 = vector.broadcast %89 : vector<48x1xf32> to vector<48x48xf32>
    %91 = arith.mulf %86, %90 : vector<48x48xf32>
    %cst_62 = arith.constant dense<0.000000e+00> : vector<48x8xf32>
    %92 = tpu.matmul %91, %80, %cst_62 {dimension_numbers = #tpu.dot_dimension_numbers<[1], [0], [0], [1], [0, 0, 1, 1], [], []>} : vector<48x48xf32>, vector<48x8xf32>, vector<48x8xf32> -> vector<48x8xf32>
    %c1_63 = arith.constant 1 : index
    %c0_64 = arith.constant 0 : index
    %c0_65 = arith.constant 0 : index
    %93 = vector.load %arg9[%c1_63, %c0_64, %c0_65] : memref<4x8x32xf32, #tpu.memory_space<vmem>>, vector<1x8x32xf32>
    %94 = vector.shape_cast %93 : vector<1x8x32xf32> to vector<8x32xf32>
    %cst_66 = arith.constant dense<0.000000e+00> : vector<48x32xf32>
    %95 = tpu.matmul %92, %94, %cst_66 {dimension_numbers = #tpu.dot_dimension_numbers<[1], [0], [0], [1], [0, 0, 1, 1], [], []>} : vector<48x8xf32>, vector<8x32xf32>, vector<48x32xf32> -> vector<48x32xf32>
    %96 = arith.addf %59, %95 : vector<48x32xf32>
    %c2 = arith.constant 2 : index
    %c0_67 = arith.constant 0 : index
    %c0_68 = arith.constant 0 : index
    %97 = vector.load %arg3[%c2, %c0_67, %c0_68] : memref<4x32x8xf32, #tpu.memory_space<vmem>>, vector<1x32x8xf32>
    %98 = vector.shape_cast %97 : vector<1x32x8xf32> to vector<32x8xf32>
    %cst_69 = arith.constant dense<0.000000e+00> : vector<48x8xf32>
    %99 = tpu.matmul %23, %98, %cst_69 {dimension_numbers = #tpu.dot_dimension_numbers<[1], [0], [0], [1], [0, 0, 1, 1], [], []>} : vector<48x32xf32>, vector<32x8xf32>, vector<48x8xf32> -> vector<48x8xf32>
    %c2_70 = arith.constant 2 : index
    %c0_71 = arith.constant 0 : index
    %c0_72 = arith.constant 0 : index
    %100 = vector.load %arg4[%c2_70, %c0_71, %c0_72] : memref<4x1x8xf32, #tpu.memory_space<vmem>>, vector<1x1x8xf32>
    %101 = vector.shape_cast %100 : vector<1x1x8xf32> to vector<1x8xf32>
    %102 = vector.broadcast %101 : vector<1x8xf32> to vector<48x8xf32>
    %103 = arith.addf %99, %102 : vector<48x8xf32>
    %c2_73 = arith.constant 2 : index
    %c0_74 = arith.constant 0 : index
    %c0_75 = arith.constant 0 : index
    %104 = vector.load %arg5[%c2_73, %c0_74, %c0_75] : memref<4x32x8xf32, #tpu.memory_space<vmem>>, vector<1x32x8xf32>
    %105 = vector.shape_cast %104 : vector<1x32x8xf32> to vector<32x8xf32>
    %cst_76 = arith.constant dense<0.000000e+00> : vector<48x8xf32>
    %106 = tpu.matmul %23, %105, %cst_76 {dimension_numbers = #tpu.dot_dimension_numbers<[1], [0], [0], [1], [0, 0, 1, 1], [], []>} : vector<48x32xf32>, vector<32x8xf32>, vector<48x8xf32> -> vector<48x8xf32>
    %c2_77 = arith.constant 2 : index
    %c0_78 = arith.constant 0 : index
    %c0_79 = arith.constant 0 : index
    %107 = vector.load %arg6[%c2_77, %c0_78, %c0_79] : memref<4x1x8xf32, #tpu.memory_space<vmem>>, vector<1x1x8xf32>
    %108 = vector.shape_cast %107 : vector<1x1x8xf32> to vector<1x8xf32>
    %109 = vector.broadcast %108 : vector<1x8xf32> to vector<48x8xf32>
    %110 = arith.addf %106, %109 : vector<48x8xf32>
    %c2_80 = arith.constant 2 : index
    %c0_81 = arith.constant 0 : index
    %c0_82 = arith.constant 0 : index
    %111 = vector.load %arg7[%c2_80, %c0_81, %c0_82] : memref<4x32x8xf32, #tpu.memory_space<vmem>>, vector<1x32x8xf32>
    %112 = vector.shape_cast %111 : vector<1x32x8xf32> to vector<32x8xf32>
    %cst_83 = arith.constant dense<0.000000e+00> : vector<48x8xf32>
    %113 = tpu.matmul %23, %112, %cst_83 {dimension_numbers = #tpu.dot_dimension_numbers<[1], [0], [0], [1], [0, 0, 1, 1], [], []>} : vector<48x32xf32>, vector<32x8xf32>, vector<48x8xf32> -> vector<48x8xf32>
    %c2_84 = arith.constant 2 : index
    %c0_85 = arith.constant 0 : index
    %c0_86 = arith.constant 0 : index
    %114 = vector.load %arg8[%c2_84, %c0_85, %c0_86] : memref<4x1x8xf32, #tpu.memory_space<vmem>>, vector<1x1x8xf32>
    %115 = vector.shape_cast %114 : vector<1x1x8xf32> to vector<1x8xf32>
    %116 = vector.broadcast %115 : vector<1x8xf32> to vector<48x8xf32>
    %117 = arith.addf %113, %116 : vector<48x8xf32>
    %cst_87 = arith.constant dense<0.000000e+00> : vector<48x48xf32>
    %118 = tpu.matmul %103, %110, %cst_87 {dimension_numbers = #tpu.dot_dimension_numbers<[1], [1], [0], [0], [0, 0, 1, 0], [], []>} : vector<48x8xf32>, vector<48x8xf32>, vector<48x48xf32> -> vector<48x48xf32>
    %cst_88 = arith.constant dense<0xFF800000> : vector<48xf32>
    %119 = vector.multi_reduction <maximumf>, %118, %cst_88 [1] : vector<48x48xf32> to vector<48xf32>
    %120 = vector.shape_cast %119 : vector<48xf32> to vector<48x1xf32>
    %121 = vector.broadcast %120 : vector<48x1xf32> to vector<48x48xf32>
    %122 = arith.subf %118, %121 : vector<48x48xf32>
    %123 = math.exp %122 : vector<48x48xf32>
    %cst_89 = arith.constant dense<0.000000e+00> : vector<48xf32>
    %124 = vector.multi_reduction <add>, %123, %cst_89 [1] : vector<48x48xf32> to vector<48xf32>
    %125 = vector.shape_cast %124 : vector<48xf32> to vector<48x1xf32>
    %126 = tpu.reciprocal %125 {approx = true} : vector<48x1xf32> -> vector<48x1xf32>
    %127 = vector.broadcast %126 : vector<48x1xf32> to vector<48x48xf32>
    %128 = arith.mulf %123, %127 : vector<48x48xf32>
    %cst_90 = arith.constant dense<0.000000e+00> : vector<48x8xf32>
    %129 = tpu.matmul %128, %117, %cst_90 {dimension_numbers = #tpu.dot_dimension_numbers<[1], [0], [0], [1], [0, 0, 1, 1], [], []>} : vector<48x48xf32>, vector<48x8xf32>, vector<48x8xf32> -> vector<48x8xf32>
    %c2_91 = arith.constant 2 : index
    %c0_92 = arith.constant 0 : index
    %c0_93 = arith.constant 0 : index
    %130 = vector.load %arg9[%c2_91, %c0_92, %c0_93] : memref<4x8x32xf32, #tpu.memory_space<vmem>>, vector<1x8x32xf32>
    %131 = vector.shape_cast %130 : vector<1x8x32xf32> to vector<8x32xf32>
    %cst_94 = arith.constant dense<0.000000e+00> : vector<48x32xf32>
    %132 = tpu.matmul %129, %131, %cst_94 {dimension_numbers = #tpu.dot_dimension_numbers<[1], [0], [0], [1], [0, 0, 1, 1], [], []>} : vector<48x8xf32>, vector<8x32xf32>, vector<48x32xf32> -> vector<48x32xf32>
    %133 = arith.addf %96, %132 : vector<48x32xf32>
    %c3 = arith.constant 3 : index
    %c0_95 = arith.constant 0 : index
    %c0_96 = arith.constant 0 : index
    %134 = vector.load %arg3[%c3, %c0_95, %c0_96] : memref<4x32x8xf32, #tpu.memory_space<vmem>>, vector<1x32x8xf32>
    %135 = vector.shape_cast %134 : vector<1x32x8xf32> to vector<32x8xf32>
    %cst_97 = arith.constant dense<0.000000e+00> : vector<48x8xf32>
    %136 = tpu.matmul %23, %135, %cst_97 {dimension_numbers = #tpu.dot_dimension_numbers<[1], [0], [0], [1], [0, 0, 1, 1], [], []>} : vector<48x32xf32>, vector<32x8xf32>, vector<48x8xf32> -> vector<48x8xf32>
    %c3_98 = arith.constant 3 : index
    %c0_99 = arith.constant 0 : index
    %c0_100 = arith.constant 0 : index
    %137 = vector.load %arg4[%c3_98, %c0_99, %c0_100] : memref<4x1x8xf32, #tpu.memory_space<vmem>>, vector<1x1x8xf32>
    %138 = vector.shape_cast %137 : vector<1x1x8xf32> to vector<1x8xf32>
    %139 = vector.broadcast %138 : vector<1x8xf32> to vector<48x8xf32>
    %140 = arith.addf %136, %139 : vector<48x8xf32>
    %c3_101 = arith.constant 3 : index
    %c0_102 = arith.constant 0 : index
    %c0_103 = arith.constant 0 : index
    %141 = vector.load %arg5[%c3_101, %c0_102, %c0_103] : memref<4x32x8xf32, #tpu.memory_space<vmem>>, vector<1x32x8xf32>
    %142 = vector.shape_cast %141 : vector<1x32x8xf32> to vector<32x8xf32>
    %cst_104 = arith.constant dense<0.000000e+00> : vector<48x8xf32>
    %143 = tpu.matmul %23, %142, %cst_104 {dimension_numbers = #tpu.dot_dimension_numbers<[1], [0], [0], [1], [0, 0, 1, 1], [], []>} : vector<48x32xf32>, vector<32x8xf32>, vector<48x8xf32> -> vector<48x8xf32>
    %c3_105 = arith.constant 3 : index
    %c0_106 = arith.constant 0 : index
    %c0_107 = arith.constant 0 : index
    %144 = vector.load %arg6[%c3_105, %c0_106, %c0_107] : memref<4x1x8xf32, #tpu.memory_space<vmem>>, vector<1x1x8xf32>
    %145 = vector.shape_cast %144 : vector<1x1x8xf32> to vector<1x8xf32>
    %146 = vector.broadcast %145 : vector<1x8xf32> to vector<48x8xf32>
    %147 = arith.addf %143, %146 : vector<48x8xf32>
    %c3_108 = arith.constant 3 : index
    %c0_109 = arith.constant 0 : index
    %c0_110 = arith.constant 0 : index
    %148 = vector.load %arg7[%c3_108, %c0_109, %c0_110] : memref<4x32x8xf32, #tpu.memory_space<vmem>>, vector<1x32x8xf32>
    %149 = vector.shape_cast %148 : vector<1x32x8xf32> to vector<32x8xf32>
    %cst_111 = arith.constant dense<0.000000e+00> : vector<48x8xf32>
    %150 = tpu.matmul %23, %149, %cst_111 {dimension_numbers = #tpu.dot_dimension_numbers<[1], [0], [0], [1], [0, 0, 1, 1], [], []>} : vector<48x32xf32>, vector<32x8xf32>, vector<48x8xf32> -> vector<48x8xf32>
    %c3_112 = arith.constant 3 : index
    %c0_113 = arith.constant 0 : index
    %c0_114 = arith.constant 0 : index
    %151 = vector.load %arg8[%c3_112, %c0_113, %c0_114] : memref<4x1x8xf32, #tpu.memory_space<vmem>>, vector<1x1x8xf32>
    %152 = vector.shape_cast %151 : vector<1x1x8xf32> to vector<1x8xf32>
    %153 = vector.broadcast %152 : vector<1x8xf32> to vector<48x8xf32>
    %154 = arith.addf %150, %153 : vector<48x8xf32>
    %cst_115 = arith.constant dense<0.000000e+00> : vector<48x48xf32>
    %155 = tpu.matmul %140, %147, %cst_115 {dimension_numbers = #tpu.dot_dimension_numbers<[1], [1], [0], [0], [0, 0, 1, 0], [], []>} : vector<48x8xf32>, vector<48x8xf32>, vector<48x48xf32> -> vector<48x48xf32>
    %cst_116 = arith.constant dense<0xFF800000> : vector<48xf32>
    %156 = vector.multi_reduction <maximumf>, %155, %cst_116 [1] : vector<48x48xf32> to vector<48xf32>
    %157 = vector.shape_cast %156 : vector<48xf32> to vector<48x1xf32>
    %158 = vector.broadcast %157 : vector<48x1xf32> to vector<48x48xf32>
    %159 = arith.subf %155, %158 : vector<48x48xf32>
    %160 = math.exp %159 : vector<48x48xf32>
    %cst_117 = arith.constant dense<0.000000e+00> : vector<48xf32>
    %161 = vector.multi_reduction <add>, %160, %cst_117 [1] : vector<48x48xf32> to vector<48xf32>
    %162 = vector.shape_cast %161 : vector<48xf32> to vector<48x1xf32>
    %163 = tpu.reciprocal %162 {approx = true} : vector<48x1xf32> -> vector<48x1xf32>
    %164 = vector.broadcast %163 : vector<48x1xf32> to vector<48x48xf32>
    %165 = arith.mulf %160, %164 : vector<48x48xf32>
    %cst_118 = arith.constant dense<0.000000e+00> : vector<48x8xf32>
    %166 = tpu.matmul %165, %154, %cst_118 {dimension_numbers = #tpu.dot_dimension_numbers<[1], [0], [0], [1], [0, 0, 1, 1], [], []>} : vector<48x48xf32>, vector<48x8xf32>, vector<48x8xf32> -> vector<48x8xf32>
    %c3_119 = arith.constant 3 : index
    %c0_120 = arith.constant 0 : index
    %c0_121 = arith.constant 0 : index
    %167 = vector.load %arg9[%c3_119, %c0_120, %c0_121] : memref<4x8x32xf32, #tpu.memory_space<vmem>>, vector<1x8x32xf32>
    %168 = vector.shape_cast %167 : vector<1x8x32xf32> to vector<8x32xf32>
    %cst_122 = arith.constant dense<0.000000e+00> : vector<48x32xf32>
    %169 = tpu.matmul %166, %168, %cst_122 {dimension_numbers = #tpu.dot_dimension_numbers<[1], [0], [0], [1], [0, 0, 1, 1], [], []>} : vector<48x8xf32>, vector<8x32xf32>, vector<48x32xf32> -> vector<48x32xf32>
    %170 = arith.addf %133, %169 : vector<48x32xf32>
    %171 = arith.addf %1, %170 : vector<48x32xf32>
    %c0_123 = arith.constant 0 : index
    %c0_124 = arith.constant 0 : index
    %172 = vector.load %arg10[%c0_123, %c0_124] : memref<1x32xf32, #tpu.memory_space<vmem>>, vector<1x32xf32>
    %173 = vector.broadcast %172 : vector<1x32xf32> to vector<48x32xf32>
    %174 = arith.addf %171, %173 : vector<48x32xf32>
    %c0_125 = arith.constant 0 : index
    %c0_126 = arith.constant 0 : index
    %175 = vector.load %arg11[%c0_125, %c0_126] : memref<1x32xf32, #tpu.memory_space<vmem>>, vector<1x32xf32>
    %c0_127 = arith.constant 0 : index
    %c0_128 = arith.constant 0 : index
    %176 = vector.load %arg12[%c0_127, %c0_128] : memref<1x32xf32, #tpu.memory_space<vmem>>, vector<1x32xf32>
    %cst_129 = arith.constant dense<0.000000e+00> : vector<48xf32>
    %177 = vector.multi_reduction <add>, %174, %cst_129 [1] : vector<48x32xf32> to vector<48xf32>
    %178 = vector.shape_cast %177 : vector<48xf32> to vector<48x1xf32>
    %cst_130 = arith.constant 3.200000e+01 : f32
    %179 = vector.broadcast %cst_130 : f32 to vector<48x1xf32>
    %180 = arith.divf %178, %179 : vector<48x1xf32>
    %181 = vector.broadcast %180 : vector<48x1xf32> to vector<48x32xf32>
    %182 = arith.subf %174, %181 : vector<48x32xf32>
    %183 = arith.mulf %182, %182 : vector<48x32xf32>
    %cst_131 = arith.constant dense<0.000000e+00> : vector<48xf32>
    %184 = vector.multi_reduction <add>, %183, %cst_131 [1] : vector<48x32xf32> to vector<48xf32>
    %185 = vector.shape_cast %184 : vector<48xf32> to vector<48x1xf32>
    %cst_132 = arith.constant 3.200000e+01 : f32
    %186 = vector.broadcast %cst_132 : f32 to vector<48x1xf32>
    %187 = arith.divf %185, %186 : vector<48x1xf32>
    %cst_133 = arith.constant 9.99999997E-7 : f32
    %188 = vector.broadcast %cst_133 : f32 to vector<48x1xf32>
    %189 = arith.addf %187, %188 : vector<48x1xf32>
    %190 = math.rsqrt %189 : vector<48x1xf32>
    %191 = vector.broadcast %190 : vector<48x1xf32> to vector<48x32xf32>
    %192 = arith.mulf %182, %191 : vector<48x32xf32>
    %193 = vector.broadcast %175 : vector<1x32xf32> to vector<48x32xf32>
    %194 = arith.mulf %192, %193 : vector<48x32xf32>
    %195 = vector.broadcast %176 : vector<1x32xf32> to vector<48x32xf32>
    %196 = arith.addf %194, %195 : vector<48x32xf32>
    %c0_134 = arith.constant 0 : index
    %c0_135 = arith.constant 0 : index
    %197 = vector.load %arg13[%c0_134, %c0_135] : memref<32x128xf32, #tpu.memory_space<vmem>>, vector<32x128xf32>
    %cst_136 = arith.constant dense<0.000000e+00> : vector<48x128xf32>
    %198 = tpu.matmul %196, %197, %cst_136 {dimension_numbers = #tpu.dot_dimension_numbers<[1], [0], [0], [1], [0, 0, 1, 1], [], []>} : vector<48x32xf32>, vector<32x128xf32>, vector<48x128xf32> -> vector<48x128xf32>
    %c0_137 = arith.constant 0 : index
    %c0_138 = arith.constant 0 : index
    %199 = vector.load %arg14[%c0_137, %c0_138] : memref<1x128xf32, #tpu.memory_space<vmem>>, vector<1x128xf32>
    %200 = vector.broadcast %199 : vector<1x128xf32> to vector<48x128xf32>
    %201 = arith.addf %198, %200 : vector<48x128xf32>
    %cst_139 = arith.constant 0.000000e+00 : f32
    %202 = vector.broadcast %cst_139 : f32 to vector<48x128xf32>
    %203 = arith.cmpf oge, %201, %202 : vector<48x128xf32>
    %cst_140 = arith.constant 4.000000e-01 : f32
    %204 = vector.broadcast %cst_140 : f32 to vector<48x128xf32>
    %205 = arith.mulf %201, %204 : vector<48x128xf32>
    %206 = arith.select %203, %201, %205 : vector<48x128xi1>, vector<48x128xf32>
    %c0_141 = arith.constant 0 : index
    %c0_142 = arith.constant 0 : index
    %207 = vector.load %arg15[%c0_141, %c0_142] : memref<128x32xf32, #tpu.memory_space<vmem>>, vector<128x32xf32>
    %cst_143 = arith.constant dense<0.000000e+00> : vector<48x32xf32>
    %208 = tpu.matmul %206, %207, %cst_143 {dimension_numbers = #tpu.dot_dimension_numbers<[1], [0], [0], [1], [0, 0, 1, 1], [], []>} : vector<48x128xf32>, vector<128x32xf32>, vector<48x32xf32> -> vector<48x32xf32>
    %c0_144 = arith.constant 0 : index
    %c0_145 = arith.constant 0 : index
    %209 = vector.load %arg16[%c0_144, %c0_145] : memref<1x32xf32, #tpu.memory_space<vmem>>, vector<1x32xf32>
    %210 = vector.broadcast %209 : vector<1x32xf32> to vector<48x32xf32>
    %211 = arith.addf %208, %210 : vector<48x32xf32>
    %212 = arith.addf %174, %211 : vector<48x32xf32>
    %c0_146 = arith.constant 0 : index
    %c0_147 = arith.constant 0 : index
    %c0_148 = arith.constant 0 : index
    %213 = vector.load %arg17[%c0_146, %c0_147, %c0_148] : memref<2x48x32xf32, #tpu.memory_space<vmem>>, vector<1x48x32xf32>
    %214 = vector.shape_cast %213 : vector<1x48x32xf32> to vector<48x32xf32>
    %215 = vector.shape_cast %212 : vector<48x32xf32> to vector<1x48x32xf32>
    tpu.vector_store %arg17[%c0_146, %c0_147, %c0_148], %215 {strides = array<i32>} : memref<2x48x32xf32, #tpu.memory_space<vmem>>, vector<1x48x32xf32>,
    %c1_149 = arith.constant 1 : index
    %c0_150 = arith.constant 0 : index
    %c0_151 = arith.constant 0 : index
    %216 = vector.load %arg0[%c1_149, %c0_150, %c0_151] : memref<2x48x32xf32, #tpu.memory_space<vmem>>, vector<1x48x32xf32>
    %217 = vector.shape_cast %216 : vector<1x48x32xf32> to vector<48x32xf32>
    %c0_152 = arith.constant 0 : index
    %c0_153 = arith.constant 0 : index
    %218 = vector.load %arg1[%c0_152, %c0_153] : memref<1x32xf32, #tpu.memory_space<vmem>>, vector<1x32xf32>
    %c0_154 = arith.constant 0 : index
    %c0_155 = arith.constant 0 : index
    %219 = vector.load %arg2[%c0_154, %c0_155] : memref<1x32xf32, #tpu.memory_space<vmem>>, vector<1x32xf32>
    %cst_156 = arith.constant dense<0.000000e+00> : vector<48xf32>
    %220 = vector.multi_reduction <add>, %217, %cst_156 [1] : vector<48x32xf32> to vector<48xf32>
    %221 = vector.shape_cast %220 : vector<48xf32> to vector<48x1xf32>
    %cst_157 = arith.constant 3.200000e+01 : f32
    %222 = vector.broadcast %cst_157 : f32 to vector<48x1xf32>
    %223 = arith.divf %221, %222 : vector<48x1xf32>
    %224 = vector.broadcast %223 : vector<48x1xf32> to vector<48x32xf32>
    %225 = arith.subf %217, %224 : vector<48x32xf32>
    %226 = arith.mulf %225, %225 : vector<48x32xf32>
    %cst_158 = arith.constant dense<0.000000e+00> : vector<48xf32>
    %227 = vector.multi_reduction <add>, %226, %cst_158 [1] : vector<48x32xf32> to vector<48xf32>
    %228 = vector.shape_cast %227 : vector<48xf32> to vector<48x1xf32>
    %cst_159 = arith.constant 3.200000e+01 : f32
    %229 = vector.broadcast %cst_159 : f32 to vector<48x1xf32>
    %230 = arith.divf %228, %229 : vector<48x1xf32>
    %cst_160 = arith.constant 9.99999997E-7 : f32
    %231 = vector.broadcast %cst_160 : f32 to vector<48x1xf32>
    %232 = arith.addf %230, %231 : vector<48x1xf32>
    %233 = math.rsqrt %232 : vector<48x1xf32>
    %234 = vector.broadcast %233 : vector<48x1xf32> to vector<48x32xf32>
    %235 = arith.mulf %225, %234 : vector<48x32xf32>
    %236 = vector.broadcast %218 : vector<1x32xf32> to vector<48x32xf32>
    %237 = arith.mulf %235, %236 : vector<48x32xf32>
    %238 = vector.broadcast %219 : vector<1x32xf32> to vector<48x32xf32>
    %239 = arith.addf %237, %238 : vector<48x32xf32>
    %c0_161 = arith.constant 0 : index
    %c0_162 = arith.constant 0 : index
    %c0_163 = arith.constant 0 : index
    %240 = vector.load %arg3[%c0_161, %c0_162, %c0_163] : memref<4x32x8xf32, #tpu.memory_space<vmem>>, vector<1x32x8xf32>
    %241 = vector.shape_cast %240 : vector<1x32x8xf32> to vector<32x8xf32>
    %cst_164 = arith.constant dense<0.000000e+00> : vector<48x8xf32>
    %242 = tpu.matmul %239, %241, %cst_164 {dimension_numbers = #tpu.dot_dimension_numbers<[1], [0], [0], [1], [0, 0, 1, 1], [], []>} : vector<48x32xf32>, vector<32x8xf32>, vector<48x8xf32> -> vector<48x8xf32>
    %c0_165 = arith.constant 0 : index
    %c0_166 = arith.constant 0 : index
    %c0_167 = arith.constant 0 : index
    %243 = vector.load %arg4[%c0_165, %c0_166, %c0_167] : memref<4x1x8xf32, #tpu.memory_space<vmem>>, vector<1x1x8xf32>
    %244 = vector.shape_cast %243 : vector<1x1x8xf32> to vector<1x8xf32>
    %245 = vector.broadcast %244 : vector<1x8xf32> to vector<48x8xf32>
    %246 = arith.addf %242, %245 : vector<48x8xf32>
    %c0_168 = arith.constant 0 : index
    %c0_169 = arith.constant 0 : index
    %c0_170 = arith.constant 0 : index
    %247 = vector.load %arg5[%c0_168, %c0_169, %c0_170] : memref<4x32x8xf32, #tpu.memory_space<vmem>>, vector<1x32x8xf32>
    %248 = vector.shape_cast %247 : vector<1x32x8xf32> to vector<32x8xf32>
    %cst_171 = arith.constant dense<0.000000e+00> : vector<48x8xf32>
    %249 = tpu.matmul %239, %248, %cst_171 {dimension_numbers = #tpu.dot_dimension_numbers<[1], [0], [0], [1], [0, 0, 1, 1], [], []>} : vector<48x32xf32>, vector<32x8xf32>, vector<48x8xf32> -> vector<48x8xf32>
    %c0_172 = arith.constant 0 : index
    %c0_173 = arith.constant 0 : index
    %c0_174 = arith.constant 0 : index
    %250 = vector.load %arg6[%c0_172, %c0_173, %c0_174] : memref<4x1x8xf32, #tpu.memory_space<vmem>>, vector<1x1x8xf32>
    %251 = vector.shape_cast %250 : vector<1x1x8xf32> to vector<1x8xf32>
    %252 = vector.broadcast %251 : vector<1x8xf32> to vector<48x8xf32>
    %253 = arith.addf %249, %252 : vector<48x8xf32>
    %c0_175 = arith.constant 0 : index
    %c0_176 = arith.constant 0 : index
    %c0_177 = arith.constant 0 : index
    %254 = vector.load %arg7[%c0_175, %c0_176, %c0_177] : memref<4x32x8xf32, #tpu.memory_space<vmem>>, vector<1x32x8xf32>
    %255 = vector.shape_cast %254 : vector<1x32x8xf32> to vector<32x8xf32>
    %cst_178 = arith.constant dense<0.000000e+00> : vector<48x8xf32>
    %256 = tpu.matmul %239, %255, %cst_178 {dimension_numbers = #tpu.dot_dimension_numbers<[1], [0], [0], [1], [0, 0, 1, 1], [], []>} : vector<48x32xf32>, vector<32x8xf32>, vector<48x8xf32> -> vector<48x8xf32>
    %c0_179 = arith.constant 0 : index
    %c0_180 = arith.constant 0 : index
    %c0_181 = arith.constant 0 : index
    %257 = vector.load %arg8[%c0_179, %c0_180, %c0_181] : memref<4x1x8xf32, #tpu.memory_space<vmem>>, vector<1x1x8xf32>
    %258 = vector.shape_cast %257 : vector<1x1x8xf32> to vector<1x8xf32>
    %259 = vector.broadcast %258 : vector<1x8xf32> to vector<48x8xf32>
    %260 = arith.addf %256, %259 : vector<48x8xf32>
    %cst_182 = arith.constant dense<0.000000e+00> : vector<48x48xf32>
    %261 = tpu.matmul %246, %253, %cst_182 {dimension_numbers = #tpu.dot_dimension_numbers<[1], [1], [0], [0], [0, 0, 1, 0], [], []>} : vector<48x8xf32>, vector<48x8xf32>, vector<48x48xf32> -> vector<48x48xf32>
    %cst_183 = arith.constant dense<0xFF800000> : vector<48xf32>
    %262 = vector.multi_reduction <maximumf>, %261, %cst_183 [1] : vector<48x48xf32> to vector<48xf32>
    %263 = vector.shape_cast %262 : vector<48xf32> to vector<48x1xf32>
    %264 = vector.broadcast %263 : vector<48x1xf32> to vector<48x48xf32>
    %265 = arith.subf %261, %264 : vector<48x48xf32>
    %266 = math.exp %265 : vector<48x48xf32>
    %cst_184 = arith.constant dense<0.000000e+00> : vector<48xf32>
    %267 = vector.multi_reduction <add>, %266, %cst_184 [1] : vector<48x48xf32> to vector<48xf32>
    %268 = vector.shape_cast %267 : vector<48xf32> to vector<48x1xf32>
    %269 = tpu.reciprocal %268 {approx = true} : vector<48x1xf32> -> vector<48x1xf32>
    %270 = vector.broadcast %269 : vector<48x1xf32> to vector<48x48xf32>
    %271 = arith.mulf %266, %270 : vector<48x48xf32>
    %cst_185 = arith.constant dense<0.000000e+00> : vector<48x8xf32>
    %272 = tpu.matmul %271, %260, %cst_185 {dimension_numbers = #tpu.dot_dimension_numbers<[1], [0], [0], [1], [0, 0, 1, 1], [], []>} : vector<48x48xf32>, vector<48x8xf32>, vector<48x8xf32> -> vector<48x8xf32>
    %c0_186 = arith.constant 0 : index
    %c0_187 = arith.constant 0 : index
    %c0_188 = arith.constant 0 : index
    %273 = vector.load %arg9[%c0_186, %c0_187, %c0_188] : memref<4x8x32xf32, #tpu.memory_space<vmem>>, vector<1x8x32xf32>
    %274 = vector.shape_cast %273 : vector<1x8x32xf32> to vector<8x32xf32>
    %cst_189 = arith.constant dense<0.000000e+00> : vector<48x32xf32>
    %275 = tpu.matmul %272, %274, %cst_189 {dimension_numbers = #tpu.dot_dimension_numbers<[1], [0], [0], [1], [0, 0, 1, 1], [], []>} : vector<48x8xf32>, vector<8x32xf32>, vector<48x32xf32> -> vector<48x32xf32>
    %c1_190 = arith.constant 1 : index
    %c0_191 = arith.constant 0 : index
    %c0_192 = arith.constant 0 : index
    %276 = vector.load %arg3[%c1_190, %c0_191, %c0_192] : memref<4x32x8xf32, #tpu.memory_space<vmem>>, vector<1x32x8xf32>
    %277 = vector.shape_cast %276 : vector<1x32x8xf32> to vector<32x8xf32>
    %cst_193 = arith.constant dense<0.000000e+00> : vector<48x8xf32>
    %278 = tpu.matmul %239, %277, %cst_193 {dimension_numbers = #tpu.dot_dimension_numbers<[1], [0], [0], [1], [0, 0, 1, 1], [], []>} : vector<48x32xf32>, vector<32x8xf32>, vector<48x8xf32> -> vector<48x8xf32>
    %c1_194 = arith.constant 1 : index
    %c0_195 = arith.constant 0 : index
    %c0_196 = arith.constant 0 : index
    %279 = vector.load %arg4[%c1_194, %c0_195, %c0_196] : memref<4x1x8xf32, #tpu.memory_space<vmem>>, vector<1x1x8xf32>
    %280 = vector.shape_cast %279 : vector<1x1x8xf32> to vector<1x8xf32>
    %281 = vector.broadcast %280 : vector<1x8xf32> to vector<48x8xf32>
    %282 = arith.addf %278, %281 : vector<48x8xf32>
    %c1_197 = arith.constant 1 : index
    %c0_198 = arith.constant 0 : index
    %c0_199 = arith.constant 0 : index
    %283 = vector.load %arg5[%c1_197, %c0_198, %c0_199] : memref<4x32x8xf32, #tpu.memory_space<vmem>>, vector<1x32x8xf32>
    %284 = vector.shape_cast %283 : vector<1x32x8xf32> to vector<32x8xf32>
    %cst_200 = arith.constant dense<0.000000e+00> : vector<48x8xf32>
    %285 = tpu.matmul %239, %284, %cst_200 {dimension_numbers = #tpu.dot_dimension_numbers<[1], [0], [0], [1], [0, 0, 1, 1], [], []>} : vector<48x32xf32>, vector<32x8xf32>, vector<48x8xf32> -> vector<48x8xf32>
    %c1_201 = arith.constant 1 : index
    %c0_202 = arith.constant 0 : index
    %c0_203 = arith.constant 0 : index
    %286 = vector.load %arg6[%c1_201, %c0_202, %c0_203] : memref<4x1x8xf32, #tpu.memory_space<vmem>>, vector<1x1x8xf32>
    %287 = vector.shape_cast %286 : vector<1x1x8xf32> to vector<1x8xf32>
    %288 = vector.broadcast %287 : vector<1x8xf32> to vector<48x8xf32>
    %289 = arith.addf %285, %288 : vector<48x8xf32>
    %c1_204 = arith.constant 1 : index
    %c0_205 = arith.constant 0 : index
    %c0_206 = arith.constant 0 : index
    %290 = vector.load %arg7[%c1_204, %c0_205, %c0_206] : memref<4x32x8xf32, #tpu.memory_space<vmem>>, vector<1x32x8xf32>
    %291 = vector.shape_cast %290 : vector<1x32x8xf32> to vector<32x8xf32>
    %cst_207 = arith.constant dense<0.000000e+00> : vector<48x8xf32>
    %292 = tpu.matmul %239, %291, %cst_207 {dimension_numbers = #tpu.dot_dimension_numbers<[1], [0], [0], [1], [0, 0, 1, 1], [], []>} : vector<48x32xf32>, vector<32x8xf32>, vector<48x8xf32> -> vector<48x8xf32>
    %c1_208 = arith.constant 1 : index
    %c0_209 = arith.constant 0 : index
    %c0_210 = arith.constant 0 : index
    %293 = vector.load %arg8[%c1_208, %c0_209, %c0_210] : memref<4x1x8xf32, #tpu.memory_space<vmem>>, vector<1x1x8xf32>
    %294 = vector.shape_cast %293 : vector<1x1x8xf32> to vector<1x8xf32>
    %295 = vector.broadcast %294 : vector<1x8xf32> to vector<48x8xf32>
    %296 = arith.addf %292, %295 : vector<48x8xf32>
    %cst_211 = arith.constant dense<0.000000e+00> : vector<48x48xf32>
    %297 = tpu.matmul %282, %289, %cst_211 {dimension_numbers = #tpu.dot_dimension_numbers<[1], [1], [0], [0], [0, 0, 1, 0], [], []>} : vector<48x8xf32>, vector<48x8xf32>, vector<48x48xf32> -> vector<48x48xf32>
    %cst_212 = arith.constant dense<0xFF800000> : vector<48xf32>
    %298 = vector.multi_reduction <maximumf>, %297, %cst_212 [1] : vector<48x48xf32> to vector<48xf32>
    %299 = vector.shape_cast %298 : vector<48xf32> to vector<48x1xf32>
    %300 = vector.broadcast %299 : vector<48x1xf32> to vector<48x48xf32>
    %301 = arith.subf %297, %300 : vector<48x48xf32>
    %302 = math.exp %301 : vector<48x48xf32>
    %cst_213 = arith.constant dense<0.000000e+00> : vector<48xf32>
    %303 = vector.multi_reduction <add>, %302, %cst_213 [1] : vector<48x48xf32> to vector<48xf32>
    %304 = vector.shape_cast %303 : vector<48xf32> to vector<48x1xf32>
    %305 = tpu.reciprocal %304 {approx = true} : vector<48x1xf32> -> vector<48x1xf32>
    %306 = vector.broadcast %305 : vector<48x1xf32> to vector<48x48xf32>
    %307 = arith.mulf %302, %306 : vector<48x48xf32>
    %cst_214 = arith.constant dense<0.000000e+00> : vector<48x8xf32>
    %308 = tpu.matmul %307, %296, %cst_214 {dimension_numbers = #tpu.dot_dimension_numbers<[1], [0], [0], [1], [0, 0, 1, 1], [], []>} : vector<48x48xf32>, vector<48x8xf32>, vector<48x8xf32> -> vector<48x8xf32>
    %c1_215 = arith.constant 1 : index
    %c0_216 = arith.constant 0 : index
    %c0_217 = arith.constant 0 : index
    %309 = vector.load %arg9[%c1_215, %c0_216, %c0_217] : memref<4x8x32xf32, #tpu.memory_space<vmem>>, vector<1x8x32xf32>
    %310 = vector.shape_cast %309 : vector<1x8x32xf32> to vector<8x32xf32>
    %cst_218 = arith.constant dense<0.000000e+00> : vector<48x32xf32>
    %311 = tpu.matmul %308, %310, %cst_218 {dimension_numbers = #tpu.dot_dimension_numbers<[1], [0], [0], [1], [0, 0, 1, 1], [], []>} : vector<48x8xf32>, vector<8x32xf32>, vector<48x32xf32> -> vector<48x32xf32>
    %312 = arith.addf %275, %311 : vector<48x32xf32>
    %c2_219 = arith.constant 2 : index
    %c0_220 = arith.constant 0 : index
    %c0_221 = arith.constant 0 : index
    %313 = vector.load %arg3[%c2_219, %c0_220, %c0_221] : memref<4x32x8xf32, #tpu.memory_space<vmem>>, vector<1x32x8xf32>
    %314 = vector.shape_cast %313 : vector<1x32x8xf32> to vector<32x8xf32>
    %cst_222 = arith.constant dense<0.000000e+00> : vector<48x8xf32>
    %315 = tpu.matmul %239, %314, %cst_222 {dimension_numbers = #tpu.dot_dimension_numbers<[1], [0], [0], [1], [0, 0, 1, 1], [], []>} : vector<48x32xf32>, vector<32x8xf32>, vector<48x8xf32> -> vector<48x8xf32>
    %c2_223 = arith.constant 2 : index
    %c0_224 = arith.constant 0 : index
    %c0_225 = arith.constant 0 : index
    %316 = vector.load %arg4[%c2_223, %c0_224, %c0_225] : memref<4x1x8xf32, #tpu.memory_space<vmem>>, vector<1x1x8xf32>
    %317 = vector.shape_cast %316 : vector<1x1x8xf32> to vector<1x8xf32>
    %318 = vector.broadcast %317 : vector<1x8xf32> to vector<48x8xf32>
    %319 = arith.addf %315, %318 : vector<48x8xf32>
    %c2_226 = arith.constant 2 : index
    %c0_227 = arith.constant 0 : index
    %c0_228 = arith.constant 0 : index
    %320 = vector.load %arg5[%c2_226, %c0_227, %c0_228] : memref<4x32x8xf32, #tpu.memory_space<vmem>>, vector<1x32x8xf32>
    %321 = vector.shape_cast %320 : vector<1x32x8xf32> to vector<32x8xf32>
    %cst_229 = arith.constant dense<0.000000e+00> : vector<48x8xf32>
    %322 = tpu.matmul %239, %321, %cst_229 {dimension_numbers = #tpu.dot_dimension_numbers<[1], [0], [0], [1], [0, 0, 1, 1], [], []>} : vector<48x32xf32>, vector<32x8xf32>, vector<48x8xf32> -> vector<48x8xf32>
    %c2_230 = arith.constant 2 : index
    %c0_231 = arith.constant 0 : index
    %c0_232 = arith.constant 0 : index
    %323 = vector.load %arg6[%c2_230, %c0_231, %c0_232] : memref<4x1x8xf32, #tpu.memory_space<vmem>>, vector<1x1x8xf32>
    %324 = vector.shape_cast %323 : vector<1x1x8xf32> to vector<1x8xf32>
    %325 = vector.broadcast %324 : vector<1x8xf32> to vector<48x8xf32>
    %326 = arith.addf %322, %325 : vector<48x8xf32>
    %c2_233 = arith.constant 2 : index
    %c0_234 = arith.constant 0 : index
    %c0_235 = arith.constant 0 : index
    %327 = vector.load %arg7[%c2_233, %c0_234, %c0_235] : memref<4x32x8xf32, #tpu.memory_space<vmem>>, vector<1x32x8xf32>
    %328 = vector.shape_cast %327 : vector<1x32x8xf32> to vector<32x8xf32>
    %cst_236 = arith.constant dense<0.000000e+00> : vector<48x8xf32>
    %329 = tpu.matmul %239, %328, %cst_236 {dimension_numbers = #tpu.dot_dimension_numbers<[1], [0], [0], [1], [0, 0, 1, 1], [], []>} : vector<48x32xf32>, vector<32x8xf32>, vector<48x8xf32> -> vector<48x8xf32>
    %c2_237 = arith.constant 2 : index
    %c0_238 = arith.constant 0 : index
    %c0_239 = arith.constant 0 : index
    %330 = vector.load %arg8[%c2_237, %c0_238, %c0_239] : memref<4x1x8xf32, #tpu.memory_space<vmem>>, vector<1x1x8xf32>
    %331 = vector.shape_cast %330 : vector<1x1x8xf32> to vector<1x8xf32>
    %332 = vector.broadcast %331 : vector<1x8xf32> to vector<48x8xf32>
    %333 = arith.addf %329, %332 : vector<48x8xf32>
    %cst_240 = arith.constant dense<0.000000e+00> : vector<48x48xf32>
    %334 = tpu.matmul %319, %326, %cst_240 {dimension_numbers = #tpu.dot_dimension_numbers<[1], [1], [0], [0], [0, 0, 1, 0], [], []>} : vector<48x8xf32>, vector<48x8xf32>, vector<48x48xf32> -> vector<48x48xf32>
    %cst_241 = arith.constant dense<0xFF800000> : vector<48xf32>
    %335 = vector.multi_reduction <maximumf>, %334, %cst_241 [1] : vector<48x48xf32> to vector<48xf32>
    %336 = vector.shape_cast %335 : vector<48xf32> to vector<48x1xf32>
    %337 = vector.broadcast %336 : vector<48x1xf32> to vector<48x48xf32>
    %338 = arith.subf %334, %337 : vector<48x48xf32>
    %339 = math.exp %338 : vector<48x48xf32>
    %cst_242 = arith.constant dense<0.000000e+00> : vector<48xf32>
    %340 = vector.multi_reduction <add>, %339, %cst_242 [1] : vector<48x48xf32> to vector<48xf32>
    %341 = vector.shape_cast %340 : vector<48xf32> to vector<48x1xf32>
    %342 = tpu.reciprocal %341 {approx = true} : vector<48x1xf32> -> vector<48x1xf32>
    %343 = vector.broadcast %342 : vector<48x1xf32> to vector<48x48xf32>
    %344 = arith.mulf %339, %343 : vector<48x48xf32>
    %cst_243 = arith.constant dense<0.000000e+00> : vector<48x8xf32>
    %345 = tpu.matmul %344, %333, %cst_243 {dimension_numbers = #tpu.dot_dimension_numbers<[1], [0], [0], [1], [0, 0, 1, 1], [], []>} : vector<48x48xf32>, vector<48x8xf32>, vector<48x8xf32> -> vector<48x8xf32>
    %c2_244 = arith.constant 2 : index
    %c0_245 = arith.constant 0 : index
    %c0_246 = arith.constant 0 : index
    %346 = vector.load %arg9[%c2_244, %c0_245, %c0_246] : memref<4x8x32xf32, #tpu.memory_space<vmem>>, vector<1x8x32xf32>
    %347 = vector.shape_cast %346 : vector<1x8x32xf32> to vector<8x32xf32>
    %cst_247 = arith.constant dense<0.000000e+00> : vector<48x32xf32>
    %348 = tpu.matmul %345, %347, %cst_247 {dimension_numbers = #tpu.dot_dimension_numbers<[1], [0], [0], [1], [0, 0, 1, 1], [], []>} : vector<48x8xf32>, vector<8x32xf32>, vector<48x32xf32> -> vector<48x32xf32>
    %349 = arith.addf %312, %348 : vector<48x32xf32>
    %c3_248 = arith.constant 3 : index
    %c0_249 = arith.constant 0 : index
    %c0_250 = arith.constant 0 : index
    %350 = vector.load %arg3[%c3_248, %c0_249, %c0_250] : memref<4x32x8xf32, #tpu.memory_space<vmem>>, vector<1x32x8xf32>
    %351 = vector.shape_cast %350 : vector<1x32x8xf32> to vector<32x8xf32>
    %cst_251 = arith.constant dense<0.000000e+00> : vector<48x8xf32>
    %352 = tpu.matmul %239, %351, %cst_251 {dimension_numbers = #tpu.dot_dimension_numbers<[1], [0], [0], [1], [0, 0, 1, 1], [], []>} : vector<48x32xf32>, vector<32x8xf32>, vector<48x8xf32> -> vector<48x8xf32>
    %c3_252 = arith.constant 3 : index
    %c0_253 = arith.constant 0 : index
    %c0_254 = arith.constant 0 : index
    %353 = vector.load %arg4[%c3_252, %c0_253, %c0_254] : memref<4x1x8xf32, #tpu.memory_space<vmem>>, vector<1x1x8xf32>
    %354 = vector.shape_cast %353 : vector<1x1x8xf32> to vector<1x8xf32>
    %355 = vector.broadcast %354 : vector<1x8xf32> to vector<48x8xf32>
    %356 = arith.addf %352, %355 : vector<48x8xf32>
    %c3_255 = arith.constant 3 : index
    %c0_256 = arith.constant 0 : index
    %c0_257 = arith.constant 0 : index
    %357 = vector.load %arg5[%c3_255, %c0_256, %c0_257] : memref<4x32x8xf32, #tpu.memory_space<vmem>>, vector<1x32x8xf32>
    %358 = vector.shape_cast %357 : vector<1x32x8xf32> to vector<32x8xf32>
    %cst_258 = arith.constant dense<0.000000e+00> : vector<48x8xf32>
    %359 = tpu.matmul %239, %358, %cst_258 {dimension_numbers = #tpu.dot_dimension_numbers<[1], [0], [0], [1], [0, 0, 1, 1], [], []>} : vector<48x32xf32>, vector<32x8xf32>, vector<48x8xf32> -> vector<48x8xf32>
    %c3_259 = arith.constant 3 : index
    %c0_260 = arith.constant 0 : index
    %c0_261 = arith.constant 0 : index
    %360 = vector.load %arg6[%c3_259, %c0_260, %c0_261] : memref<4x1x8xf32, #tpu.memory_space<vmem>>, vector<1x1x8xf32>
    %361 = vector.shape_cast %360 : vector<1x1x8xf32> to vector<1x8xf32>
    %362 = vector.broadcast %361 : vector<1x8xf32> to vector<48x8xf32>
    %363 = arith.addf %359, %362 : vector<48x8xf32>
    %c3_262 = arith.constant 3 : index
    %c0_263 = arith.constant 0 : index
    %c0_264 = arith.constant 0 : index
    %364 = vector.load %arg7[%c3_262, %c0_263, %c0_264] : memref<4x32x8xf32, #tpu.memory_space<vmem>>, vector<1x32x8xf32>
    %365 = vector.shape_cast %364 : vector<1x32x8xf32> to vector<32x8xf32>
    %cst_265 = arith.constant dense<0.000000e+00> : vector<48x8xf32>
    %366 = tpu.matmul %239, %365, %cst_265 {dimension_numbers = #tpu.dot_dimension_numbers<[1], [0], [0], [1], [0, 0, 1, 1], [], []>} : vector<48x32xf32>, vector<32x8xf32>, vector<48x8xf32> -> vector<48x8xf32>
    %c3_266 = arith.constant 3 : index
    %c0_267 = arith.constant 0 : index
    %c0_268 = arith.constant 0 : index
    %367 = vector.load %arg8[%c3_266, %c0_267, %c0_268] : memref<4x1x8xf32, #tpu.memory_space<vmem>>, vector<1x1x8xf32>
    %368 = vector.shape_cast %367 : vector<1x1x8xf32> to vector<1x8xf32>
    %369 = vector.broadcast %368 : vector<1x8xf32> to vector<48x8xf32>
    %370 = arith.addf %366, %369 : vector<48x8xf32>
    %cst_269 = arith.constant dense<0.000000e+00> : vector<48x48xf32>
    %371 = tpu.matmul %356, %363, %cst_269 {dimension_numbers = #tpu.dot_dimension_numbers<[1], [1], [0], [0], [0, 0, 1, 0], [], []>} : vector<48x8xf32>, vector<48x8xf32>, vector<48x48xf32> -> vector<48x48xf32>
    %cst_270 = arith.constant dense<0xFF800000> : vector<48xf32>
    %372 = vector.multi_reduction <maximumf>, %371, %cst_270 [1] : vector<48x48xf32> to vector<48xf32>
    %373 = vector.shape_cast %372 : vector<48xf32> to vector<48x1xf32>
    %374 = vector.broadcast %373 : vector<48x1xf32> to vector<48x48xf32>
    %375 = arith.subf %371, %374 : vector<48x48xf32>
    %376 = math.exp %375 : vector<48x48xf32>
    %cst_271 = arith.constant dense<0.000000e+00> : vector<48xf32>
    %377 = vector.multi_reduction <add>, %376, %cst_271 [1] : vector<48x48xf32> to vector<48xf32>
    %378 = vector.shape_cast %377 : vector<48xf32> to vector<48x1xf32>
    %379 = tpu.reciprocal %378 {approx = true} : vector<48x1xf32> -> vector<48x1xf32>
    %380 = vector.broadcast %379 : vector<48x1xf32> to vector<48x48xf32>
    %381 = arith.mulf %376, %380 : vector<48x48xf32>
    %cst_272 = arith.constant dense<0.000000e+00> : vector<48x8xf32>
    %382 = tpu.matmul %381, %370, %cst_272 {dimension_numbers = #tpu.dot_dimension_numbers<[1], [0], [0], [1], [0, 0, 1, 1], [], []>} : vector<48x48xf32>, vector<48x8xf32>, vector<48x8xf32> -> vector<48x8xf32>
    %c3_273 = arith.constant 3 : index
    %c0_274 = arith.constant 0 : index
    %c0_275 = arith.constant 0 : index
    %383 = vector.load %arg9[%c3_273, %c0_274, %c0_275] : memref<4x8x32xf32, #tpu.memory_space<vmem>>, vector<1x8x32xf32>
    %384 = vector.shape_cast %383 : vector<1x8x32xf32> to vector<8x32xf32>
    %cst_276 = arith.constant dense<0.000000e+00> : vector<48x32xf32>
    %385 = tpu.matmul %382, %384, %cst_276 {dimension_numbers = #tpu.dot_dimension_numbers<[1], [0], [0], [1], [0, 0, 1, 1], [], []>} : vector<48x8xf32>, vector<8x32xf32>, vector<48x32xf32> -> vector<48x32xf32>
    %386 = arith.addf %349, %385 : vector<48x32xf32>
    %387 = arith.addf %217, %386 : vector<48x32xf32>
    %c0_277 = arith.constant 0 : index
    %c0_278 = arith.constant 0 : index
    %388 = vector.load %arg10[%c0_277, %c0_278] : memref<1x32xf32, #tpu.memory_space<vmem>>, vector<1x32xf32>
    %389 = vector.broadcast %388 : vector<1x32xf32> to vector<48x32xf32>
    %390 = arith.addf %387, %389 : vector<48x32xf32>
    %c0_279 = arith.constant 0 : index
    %c0_280 = arith.constant 0 : index
    %391 = vector.load %arg11[%c0_279, %c0_280] : memref<1x32xf32, #tpu.memory_space<vmem>>, vector<1x32xf32>
    %c0_281 = arith.constant 0 : index
    %c0_282 = arith.constant 0 : index
    %392 = vector.load %arg12[%c0_281, %c0_282] : memref<1x32xf32, #tpu.memory_space<vmem>>, vector<1x32xf32>
    %cst_283 = arith.constant dense<0.000000e+00> : vector<48xf32>
    %393 = vector.multi_reduction <add>, %390, %cst_283 [1] : vector<48x32xf32> to vector<48xf32>
    %394 = vector.shape_cast %393 : vector<48xf32> to vector<48x1xf32>
    %cst_284 = arith.constant 3.200000e+01 : f32
    %395 = vector.broadcast %cst_284 : f32 to vector<48x1xf32>
    %396 = arith.divf %394, %395 : vector<48x1xf32>
    %397 = vector.broadcast %396 : vector<48x1xf32> to vector<48x32xf32>
    %398 = arith.subf %390, %397 : vector<48x32xf32>
    %399 = arith.mulf %398, %398 : vector<48x32xf32>
    %cst_285 = arith.constant dense<0.000000e+00> : vector<48xf32>
    %400 = vector.multi_reduction <add>, %399, %cst_285 [1] : vector<48x32xf32> to vector<48xf32>
    %401 = vector.shape_cast %400 : vector<48xf32> to vector<48x1xf32>
    %cst_286 = arith.constant 3.200000e+01 : f32
    %402 = vector.broadcast %cst_286 : f32 to vector<48x1xf32>
    %403 = arith.divf %401, %402 : vector<48x1xf32>
    %cst_287 = arith.constant 9.99999997E-7 : f32
    %404 = vector.broadcast %cst_287 : f32 to vector<48x1xf32>
    %405 = arith.addf %403, %404 : vector<48x1xf32>
    %406 = math.rsqrt %405 : vector<48x1xf32>
    %407 = vector.broadcast %406 : vector<48x1xf32> to vector<48x32xf32>
    %408 = arith.mulf %398, %407 : vector<48x32xf32>
    %409 = vector.broadcast %391 : vector<1x32xf32> to vector<48x32xf32>
    %410 = arith.mulf %408, %409 : vector<48x32xf32>
    %411 = vector.broadcast %392 : vector<1x32xf32> to vector<48x32xf32>
    %412 = arith.addf %410, %411 : vector<48x32xf32>
    %c0_288 = arith.constant 0 : index
    %c0_289 = arith.constant 0 : index
    %413 = vector.load %arg13[%c0_288, %c0_289] : memref<32x128xf32, #tpu.memory_space<vmem>>, vector<32x128xf32>
    %cst_290 = arith.constant dense<0.000000e+00> : vector<48x128xf32>
    %414 = tpu.matmul %412, %413, %cst_290 {dimension_numbers = #tpu.dot_dimension_numbers<[1], [0], [0], [1], [0, 0, 1, 1], [], []>} : vector<48x32xf32>, vector<32x128xf32>, vector<48x128xf32> -> vector<48x128xf32>
    %c0_291 = arith.constant 0 : index
    %c0_292 = arith.constant 0 : index
    %415 = vector.load %arg14[%c0_291, %c0_292] : memref<1x128xf32, #tpu.memory_space<vmem>>, vector<1x128xf32>
    %416 = vector.broadcast %415 : vector<1x128xf32> to vector<48x128xf32>
    %417 = arith.addf %414, %416 : vector<48x128xf32>
    %cst_293 = arith.constant 0.000000e+00 : f32
    %418 = vector.broadcast %cst_293 : f32 to vector<48x128xf32>
    %419 = arith.cmpf oge, %417, %418 : vector<48x128xf32>
    %cst_294 = arith.constant 4.000000e-01 : f32
    %420 = vector.broadcast %cst_294 : f32 to vector<48x128xf32>
    %421 = arith.mulf %417, %420 : vector<48x128xf32>
    %422 = arith.select %419, %417, %421 : vector<48x128xi1>, vector<48x128xf32>
    %c0_295 = arith.constant 0 : index
    %c0_296 = arith.constant 0 : index
    %423 = vector.load %arg15[%c0_295, %c0_296] : memref<128x32xf32, #tpu.memory_space<vmem>>, vector<128x32xf32>
    %cst_297 = arith.constant dense<0.000000e+00> : vector<48x32xf32>
    %424 = tpu.matmul %422, %423, %cst_297 {dimension_numbers = #tpu.dot_dimension_numbers<[1], [0], [0], [1], [0, 0, 1, 1], [], []>} : vector<48x128xf32>, vector<128x32xf32>, vector<48x32xf32> -> vector<48x32xf32>
    %c0_298 = arith.constant 0 : index
    %c0_299 = arith.constant 0 : index
    %425 = vector.load %arg16[%c0_298, %c0_299] : memref<1x32xf32, #tpu.memory_space<vmem>>, vector<1x32xf32>
    %426 = vector.broadcast %425 : vector<1x32xf32> to vector<48x32xf32>
    %427 = arith.addf %424, %426 : vector<48x32xf32>
    %428 = arith.addf %390, %427 : vector<48x32xf32>
    %c1_300 = arith.constant 1 : index
    %c0_301 = arith.constant 0 : index
    %c0_302 = arith.constant 0 : index
    %429 = vector.load %arg17[%c1_300, %c0_301, %c0_302] : memref<2x48x32xf32, #tpu.memory_space<vmem>>, vector<1x48x32xf32>
    %430 = vector.shape_cast %429 : vector<1x48x32xf32> to vector<48x32xf32>
    %431 = vector.shape_cast %428 : vector<48x32xf32> to vector<1x48x32xf32>
    tpu.vector_store %arg17[%c1_300, %c0_301, %c0_302], %431 {strides = array<i32>} : memref<2x48x32xf32, #tpu.memory_space<vmem>>, vector<1x48x32xf32>,
    return
  }
}

module attributes {stable_mosaic.version = 11 : i64} {
  func.func @_decoder_kernel(%arg0: memref<96x32xf32, #tpu.memory_space<vmem>>, %arg1: memref<1x32xf32, #tpu.memory_space<vmem>>, %arg2: memref<1x32xf32, #tpu.memory_space<vmem>>, %arg3: memref<1x32xf32, #tpu.memory_space<vmem>>, %arg4: memref<1x1xf32, #tpu.memory_space<vmem>>, %arg5: memref<6x8x1xf32, #tpu.memory_space<vmem>>, %arg6: memref<6x8x512xf32, #tpu.memory_space<vmem>>, %arg7: memref<6x1x512xf32, #tpu.memory_space<vmem>>, %arg8: memref<12x512xf32, #tpu.memory_space<vmem>>) attributes {dimension_semantics = [], scalar_prefetch = 0 : i64, scratch_operands = 0 : i64, tpu.core_type = #tpu.core_type<tc>} {
    %c0 = arith.constant 0 : index
    %c0_0 = arith.constant 0 : index
    %0 = vector.load %arg0[%c0, %c0_0] : memref<96x32xf32, #tpu.memory_space<vmem>>, vector<96x32xf32>
    %c0_1 = arith.constant 0 : index
    %c0_2 = arith.constant 0 : index
    %1 = vector.load %arg1[%c0_1, %c0_2] : memref<1x32xf32, #tpu.memory_space<vmem>>, vector<1x32xf32>
    %c0_3 = arith.constant 0 : index
    %c0_4 = arith.constant 0 : index
    %2 = vector.load %arg2[%c0_3, %c0_4] : memref<1x32xf32, #tpu.memory_space<vmem>>, vector<1x32xf32>
    %cst = arith.constant dense<0.000000e+00> : vector<96xf32>
    %3 = vector.multi_reduction <add>, %0, %cst [1] : vector<96x32xf32> to vector<96xf32>
    %4 = vector.shape_cast %3 : vector<96xf32> to vector<96x1xf32>
    %cst_5 = arith.constant 3.200000e+01 : f32
    %5 = vector.broadcast %cst_5 : f32 to vector<96x1xf32>
    %6 = arith.divf %4, %5 : vector<96x1xf32>
    %7 = vector.broadcast %6 : vector<96x1xf32> to vector<96x32xf32>
    %8 = arith.subf %0, %7 : vector<96x32xf32>
    %9 = arith.mulf %8, %8 : vector<96x32xf32>
    %cst_6 = arith.constant dense<0.000000e+00> : vector<96xf32>
    %10 = vector.multi_reduction <add>, %9, %cst_6 [1] : vector<96x32xf32> to vector<96xf32>
    %11 = vector.shape_cast %10 : vector<96xf32> to vector<96x1xf32>
    %cst_7 = arith.constant 3.200000e+01 : f32
    %12 = vector.broadcast %cst_7 : f32 to vector<96x1xf32>
    %13 = arith.divf %11, %12 : vector<96x1xf32>
    %cst_8 = arith.constant 9.99999997E-7 : f32
    %14 = vector.broadcast %cst_8 : f32 to vector<96x1xf32>
    %15 = arith.addf %13, %14 : vector<96x1xf32>
    %16 = math.rsqrt %15 : vector<96x1xf32>
    %17 = vector.broadcast %16 : vector<96x1xf32> to vector<96x32xf32>
    %18 = arith.mulf %8, %17 : vector<96x32xf32>
    %19 = vector.broadcast %1 : vector<1x32xf32> to vector<96x32xf32>
    %20 = arith.mulf %18, %19 : vector<96x32xf32>
    %21 = vector.broadcast %2 : vector<1x32xf32> to vector<96x32xf32>
    %22 = arith.addf %20, %21 : vector<96x32xf32>
    %c0_9 = arith.constant 0 : index
    %c0_10 = arith.constant 0 : index
    %23 = vector.load %arg3[%c0_9, %c0_10] : memref<1x32xf32, #tpu.memory_space<vmem>>, vector<1x32xf32>
    %24 = vector.broadcast %23 : vector<1x32xf32> to vector<96x32xf32>
    %25 = arith.mulf %22, %24 : vector<96x32xf32>
    %cst_11 = arith.constant dense<0.000000e+00> : vector<96xf32>
    %26 = vector.multi_reduction <add>, %25, %cst_11 [1] : vector<96x32xf32> to vector<96xf32>
    %27 = vector.shape_cast %26 : vector<96xf32> to vector<96x1xf32>
    %c0_12 = arith.constant 0 : index
    %c0_13 = arith.constant 0 : index
    %28 = vector.load %arg4[%c0_12, %c0_13] : memref<1x1xf32, #tpu.memory_space<vmem>>, vector<1x1xf32>
    %29 = vector.broadcast %28 : vector<1x1xf32> to vector<96x1xf32>
    %30 = arith.addf %27, %29 : vector<96x1xf32>
    %31 = vector.extract_strided_slice %30 {offsets = [0, 0], sizes = [8, 1], strides = [1, 1]} : vector<96x1xf32> to vector<8x1xf32>
    %32 = vector.extract_strided_slice %30 {offsets = [8, 0], sizes = [8, 1], strides = [1, 1]} : vector<96x1xf32> to vector<8x1xf32>
    %33 = vector.extract_strided_slice %30 {offsets = [16, 0], sizes = [8, 1], strides = [1, 1]} : vector<96x1xf32> to vector<8x1xf32>
    %34 = vector.extract_strided_slice %30 {offsets = [24, 0], sizes = [8, 1], strides = [1, 1]} : vector<96x1xf32> to vector<8x1xf32>
    %35 = vector.extract_strided_slice %30 {offsets = [32, 0], sizes = [8, 1], strides = [1, 1]} : vector<96x1xf32> to vector<8x1xf32>
    %36 = vector.extract_strided_slice %30 {offsets = [40, 0], sizes = [8, 1], strides = [1, 1]} : vector<96x1xf32> to vector<8x1xf32>
    %37 = arith.addf %31, %32 : vector<8x1xf32>
    %38 = arith.addf %37, %33 : vector<8x1xf32>
    %39 = arith.addf %38, %34 : vector<8x1xf32>
    %40 = arith.addf %39, %35 : vector<8x1xf32>
    %41 = arith.addf %40, %36 : vector<8x1xf32>
    %cst_14 = arith.constant 0.166666672 : f32
    %42 = vector.broadcast %cst_14 : f32 to vector<8x1xf32>
    %43 = arith.mulf %41, %42 : vector<8x1xf32>
    %44 = arith.subf %31, %43 : vector<8x1xf32>
    %c0_15 = arith.constant 0 : index
    %c0_16 = arith.constant 0 : index
    %c0_17 = arith.constant 0 : index
    %45 = vector.load %arg5[%c0_15, %c0_16, %c0_17] : memref<6x8x1xf32, #tpu.memory_space<vmem>>, vector<1x8x1xf32>
    %46 = vector.shape_cast %45 : vector<1x8x1xf32> to vector<8x1xf32>
    %47 = arith.addf %44, %46 : vector<8x1xf32>
    %c0_18 = arith.constant 0 : index
    %c0_19 = arith.constant 0 : index
    %c0_20 = arith.constant 0 : index
    %48 = vector.load %arg6[%c0_18, %c0_19, %c0_20] : memref<6x8x512xf32, #tpu.memory_space<vmem>>, vector<1x8x512xf32>
    %49 = vector.shape_cast %48 : vector<1x8x512xf32> to vector<8x512xf32>
    %50 = vector.broadcast %47 : vector<8x1xf32> to vector<8x512xf32>
    %51 = arith.mulf %50, %49 : vector<8x512xf32>
    %cst_21 = arith.constant dense<0.000000e+00> : vector<512xf32>
    %52 = vector.multi_reduction <add>, %51, %cst_21 [0] : vector<8x512xf32> to vector<512xf32>
    %53 = vector.shape_cast %52 : vector<512xf32> to vector<1x512xf32>
    %c0_22 = arith.constant 0 : index
    %c0_23 = arith.constant 0 : index
    %c0_24 = arith.constant 0 : index
    %54 = vector.load %arg7[%c0_22, %c0_23, %c0_24] : memref<6x1x512xf32, #tpu.memory_space<vmem>>, vector<1x1x512xf32>
    %55 = vector.shape_cast %54 : vector<1x1x512xf32> to vector<1x512xf32>
    %56 = arith.addf %53, %55 : vector<1x512xf32>
    %cst_25 = arith.constant 0.000000e+00 : f32
    %57 = vector.broadcast %cst_25 : f32 to vector<1x512xf32>
    %58 = arith.cmpf oge, %56, %57 : vector<1x512xf32>
    %cst_26 = arith.constant 0.229166672 : f32
    %59 = vector.broadcast %cst_26 : f32 to vector<1x512xf32>
    %60 = arith.mulf %56, %59 : vector<1x512xf32>
    %61 = arith.select %58, %56, %60 : vector<1x512xi1>, vector<1x512xf32>
    %c0_27 = arith.constant 0 : index
    %c0_28 = arith.constant 0 : index
    %62 = vector.load %arg8[%c0_27, %c0_28] : memref<12x512xf32, #tpu.memory_space<vmem>>, vector<1x512xf32>
    tpu.vector_store %arg8[%c0_27, %c0_28], %61 {strides = array<i32>} : memref<12x512xf32, #tpu.memory_space<vmem>>, vector<1x512xf32>,
    %63 = arith.subf %32, %43 : vector<8x1xf32>
    %c1 = arith.constant 1 : index
    %c0_29 = arith.constant 0 : index
    %c0_30 = arith.constant 0 : index
    %64 = vector.load %arg5[%c1, %c0_29, %c0_30] : memref<6x8x1xf32, #tpu.memory_space<vmem>>, vector<1x8x1xf32>
    %65 = vector.shape_cast %64 : vector<1x8x1xf32> to vector<8x1xf32>
    %66 = arith.addf %63, %65 : vector<8x1xf32>
    %c1_31 = arith.constant 1 : index
    %c0_32 = arith.constant 0 : index
    %c0_33 = arith.constant 0 : index
    %67 = vector.load %arg6[%c1_31, %c0_32, %c0_33] : memref<6x8x512xf32, #tpu.memory_space<vmem>>, vector<1x8x512xf32>
    %68 = vector.shape_cast %67 : vector<1x8x512xf32> to vector<8x512xf32>
    %69 = vector.broadcast %66 : vector<8x1xf32> to vector<8x512xf32>
    %70 = arith.mulf %69, %68 : vector<8x512xf32>
    %cst_34 = arith.constant dense<0.000000e+00> : vector<512xf32>
    %71 = vector.multi_reduction <add>, %70, %cst_34 [0] : vector<8x512xf32> to vector<512xf32>
    %72 = vector.shape_cast %71 : vector<512xf32> to vector<1x512xf32>
    %c1_35 = arith.constant 1 : index
    %c0_36 = arith.constant 0 : index
    %c0_37 = arith.constant 0 : index
    %73 = vector.load %arg7[%c1_35, %c0_36, %c0_37] : memref<6x1x512xf32, #tpu.memory_space<vmem>>, vector<1x1x512xf32>
    %74 = vector.shape_cast %73 : vector<1x1x512xf32> to vector<1x512xf32>
    %75 = arith.addf %72, %74 : vector<1x512xf32>
    %cst_38 = arith.constant 0.000000e+00 : f32
    %76 = vector.broadcast %cst_38 : f32 to vector<1x512xf32>
    %77 = arith.cmpf oge, %75, %76 : vector<1x512xf32>
    %cst_39 = arith.constant 0.229166672 : f32
    %78 = vector.broadcast %cst_39 : f32 to vector<1x512xf32>
    %79 = arith.mulf %75, %78 : vector<1x512xf32>
    %80 = arith.select %77, %75, %79 : vector<1x512xi1>, vector<1x512xf32>
    %c1_40 = arith.constant 1 : index
    %c0_41 = arith.constant 0 : index
    %81 = vector.load %arg8[%c1_40, %c0_41] : memref<12x512xf32, #tpu.memory_space<vmem>>, vector<1x512xf32>
    tpu.vector_store %arg8[%c1_40, %c0_41], %80 {strides = array<i32>} : memref<12x512xf32, #tpu.memory_space<vmem>>, vector<1x512xf32>,
    %82 = arith.subf %33, %43 : vector<8x1xf32>
    %c2 = arith.constant 2 : index
    %c0_42 = arith.constant 0 : index
    %c0_43 = arith.constant 0 : index
    %83 = vector.load %arg5[%c2, %c0_42, %c0_43] : memref<6x8x1xf32, #tpu.memory_space<vmem>>, vector<1x8x1xf32>
    %84 = vector.shape_cast %83 : vector<1x8x1xf32> to vector<8x1xf32>
    %85 = arith.addf %82, %84 : vector<8x1xf32>
    %c2_44 = arith.constant 2 : index
    %c0_45 = arith.constant 0 : index
    %c0_46 = arith.constant 0 : index
    %86 = vector.load %arg6[%c2_44, %c0_45, %c0_46] : memref<6x8x512xf32, #tpu.memory_space<vmem>>, vector<1x8x512xf32>
    %87 = vector.shape_cast %86 : vector<1x8x512xf32> to vector<8x512xf32>
    %88 = vector.broadcast %85 : vector<8x1xf32> to vector<8x512xf32>
    %89 = arith.mulf %88, %87 : vector<8x512xf32>
    %cst_47 = arith.constant dense<0.000000e+00> : vector<512xf32>
    %90 = vector.multi_reduction <add>, %89, %cst_47 [0] : vector<8x512xf32> to vector<512xf32>
    %91 = vector.shape_cast %90 : vector<512xf32> to vector<1x512xf32>
    %c2_48 = arith.constant 2 : index
    %c0_49 = arith.constant 0 : index
    %c0_50 = arith.constant 0 : index
    %92 = vector.load %arg7[%c2_48, %c0_49, %c0_50] : memref<6x1x512xf32, #tpu.memory_space<vmem>>, vector<1x1x512xf32>
    %93 = vector.shape_cast %92 : vector<1x1x512xf32> to vector<1x512xf32>
    %94 = arith.addf %91, %93 : vector<1x512xf32>
    %cst_51 = arith.constant 0.000000e+00 : f32
    %95 = vector.broadcast %cst_51 : f32 to vector<1x512xf32>
    %96 = arith.cmpf oge, %94, %95 : vector<1x512xf32>
    %cst_52 = arith.constant 0.229166672 : f32
    %97 = vector.broadcast %cst_52 : f32 to vector<1x512xf32>
    %98 = arith.mulf %94, %97 : vector<1x512xf32>
    %99 = arith.select %96, %94, %98 : vector<1x512xi1>, vector<1x512xf32>
    %c2_53 = arith.constant 2 : index
    %c0_54 = arith.constant 0 : index
    %100 = vector.load %arg8[%c2_53, %c0_54] : memref<12x512xf32, #tpu.memory_space<vmem>>, vector<1x512xf32>
    tpu.vector_store %arg8[%c2_53, %c0_54], %99 {strides = array<i32>} : memref<12x512xf32, #tpu.memory_space<vmem>>, vector<1x512xf32>,
    %101 = arith.subf %34, %43 : vector<8x1xf32>
    %c3 = arith.constant 3 : index
    %c0_55 = arith.constant 0 : index
    %c0_56 = arith.constant 0 : index
    %102 = vector.load %arg5[%c3, %c0_55, %c0_56] : memref<6x8x1xf32, #tpu.memory_space<vmem>>, vector<1x8x1xf32>
    %103 = vector.shape_cast %102 : vector<1x8x1xf32> to vector<8x1xf32>
    %104 = arith.addf %101, %103 : vector<8x1xf32>
    %c3_57 = arith.constant 3 : index
    %c0_58 = arith.constant 0 : index
    %c0_59 = arith.constant 0 : index
    %105 = vector.load %arg6[%c3_57, %c0_58, %c0_59] : memref<6x8x512xf32, #tpu.memory_space<vmem>>, vector<1x8x512xf32>
    %106 = vector.shape_cast %105 : vector<1x8x512xf32> to vector<8x512xf32>
    %107 = vector.broadcast %104 : vector<8x1xf32> to vector<8x512xf32>
    %108 = arith.mulf %107, %106 : vector<8x512xf32>
    %cst_60 = arith.constant dense<0.000000e+00> : vector<512xf32>
    %109 = vector.multi_reduction <add>, %108, %cst_60 [0] : vector<8x512xf32> to vector<512xf32>
    %110 = vector.shape_cast %109 : vector<512xf32> to vector<1x512xf32>
    %c3_61 = arith.constant 3 : index
    %c0_62 = arith.constant 0 : index
    %c0_63 = arith.constant 0 : index
    %111 = vector.load %arg7[%c3_61, %c0_62, %c0_63] : memref<6x1x512xf32, #tpu.memory_space<vmem>>, vector<1x1x512xf32>
    %112 = vector.shape_cast %111 : vector<1x1x512xf32> to vector<1x512xf32>
    %113 = arith.addf %110, %112 : vector<1x512xf32>
    %cst_64 = arith.constant 0.000000e+00 : f32
    %114 = vector.broadcast %cst_64 : f32 to vector<1x512xf32>
    %115 = arith.cmpf oge, %113, %114 : vector<1x512xf32>
    %cst_65 = arith.constant 0.229166672 : f32
    %116 = vector.broadcast %cst_65 : f32 to vector<1x512xf32>
    %117 = arith.mulf %113, %116 : vector<1x512xf32>
    %118 = arith.select %115, %113, %117 : vector<1x512xi1>, vector<1x512xf32>
    %c3_66 = arith.constant 3 : index
    %c0_67 = arith.constant 0 : index
    %119 = vector.load %arg8[%c3_66, %c0_67] : memref<12x512xf32, #tpu.memory_space<vmem>>, vector<1x512xf32>
    tpu.vector_store %arg8[%c3_66, %c0_67], %118 {strides = array<i32>} : memref<12x512xf32, #tpu.memory_space<vmem>>, vector<1x512xf32>,
    %120 = arith.subf %35, %43 : vector<8x1xf32>
    %c4 = arith.constant 4 : index
    %c0_68 = arith.constant 0 : index
    %c0_69 = arith.constant 0 : index
    %121 = vector.load %arg5[%c4, %c0_68, %c0_69] : memref<6x8x1xf32, #tpu.memory_space<vmem>>, vector<1x8x1xf32>
    %122 = vector.shape_cast %121 : vector<1x8x1xf32> to vector<8x1xf32>
    %123 = arith.addf %120, %122 : vector<8x1xf32>
    %c4_70 = arith.constant 4 : index
    %c0_71 = arith.constant 0 : index
    %c0_72 = arith.constant 0 : index
    %124 = vector.load %arg6[%c4_70, %c0_71, %c0_72] : memref<6x8x512xf32, #tpu.memory_space<vmem>>, vector<1x8x512xf32>
    %125 = vector.shape_cast %124 : vector<1x8x512xf32> to vector<8x512xf32>
    %126 = vector.broadcast %123 : vector<8x1xf32> to vector<8x512xf32>
    %127 = arith.mulf %126, %125 : vector<8x512xf32>
    %cst_73 = arith.constant dense<0.000000e+00> : vector<512xf32>
    %128 = vector.multi_reduction <add>, %127, %cst_73 [0] : vector<8x512xf32> to vector<512xf32>
    %129 = vector.shape_cast %128 : vector<512xf32> to vector<1x512xf32>
    %c4_74 = arith.constant 4 : index
    %c0_75 = arith.constant 0 : index
    %c0_76 = arith.constant 0 : index
    %130 = vector.load %arg7[%c4_74, %c0_75, %c0_76] : memref<6x1x512xf32, #tpu.memory_space<vmem>>, vector<1x1x512xf32>
    %131 = vector.shape_cast %130 : vector<1x1x512xf32> to vector<1x512xf32>
    %132 = arith.addf %129, %131 : vector<1x512xf32>
    %cst_77 = arith.constant 0.000000e+00 : f32
    %133 = vector.broadcast %cst_77 : f32 to vector<1x512xf32>
    %134 = arith.cmpf oge, %132, %133 : vector<1x512xf32>
    %cst_78 = arith.constant 0.229166672 : f32
    %135 = vector.broadcast %cst_78 : f32 to vector<1x512xf32>
    %136 = arith.mulf %132, %135 : vector<1x512xf32>
    %137 = arith.select %134, %132, %136 : vector<1x512xi1>, vector<1x512xf32>
    %c4_79 = arith.constant 4 : index
    %c0_80 = arith.constant 0 : index
    %138 = vector.load %arg8[%c4_79, %c0_80] : memref<12x512xf32, #tpu.memory_space<vmem>>, vector<1x512xf32>
    tpu.vector_store %arg8[%c4_79, %c0_80], %137 {strides = array<i32>} : memref<12x512xf32, #tpu.memory_space<vmem>>, vector<1x512xf32>,
    %139 = arith.subf %36, %43 : vector<8x1xf32>
    %c5 = arith.constant 5 : index
    %c0_81 = arith.constant 0 : index
    %c0_82 = arith.constant 0 : index
    %140 = vector.load %arg5[%c5, %c0_81, %c0_82] : memref<6x8x1xf32, #tpu.memory_space<vmem>>, vector<1x8x1xf32>
    %141 = vector.shape_cast %140 : vector<1x8x1xf32> to vector<8x1xf32>
    %142 = arith.addf %139, %141 : vector<8x1xf32>
    %c5_83 = arith.constant 5 : index
    %c0_84 = arith.constant 0 : index
    %c0_85 = arith.constant 0 : index
    %143 = vector.load %arg6[%c5_83, %c0_84, %c0_85] : memref<6x8x512xf32, #tpu.memory_space<vmem>>, vector<1x8x512xf32>
    %144 = vector.shape_cast %143 : vector<1x8x512xf32> to vector<8x512xf32>
    %145 = vector.broadcast %142 : vector<8x1xf32> to vector<8x512xf32>
    %146 = arith.mulf %145, %144 : vector<8x512xf32>
    %cst_86 = arith.constant dense<0.000000e+00> : vector<512xf32>
    %147 = vector.multi_reduction <add>, %146, %cst_86 [0] : vector<8x512xf32> to vector<512xf32>
    %148 = vector.shape_cast %147 : vector<512xf32> to vector<1x512xf32>
    %c5_87 = arith.constant 5 : index
    %c0_88 = arith.constant 0 : index
    %c0_89 = arith.constant 0 : index
    %149 = vector.load %arg7[%c5_87, %c0_88, %c0_89] : memref<6x1x512xf32, #tpu.memory_space<vmem>>, vector<1x1x512xf32>
    %150 = vector.shape_cast %149 : vector<1x1x512xf32> to vector<1x512xf32>
    %151 = arith.addf %148, %150 : vector<1x512xf32>
    %cst_90 = arith.constant 0.000000e+00 : f32
    %152 = vector.broadcast %cst_90 : f32 to vector<1x512xf32>
    %153 = arith.cmpf oge, %151, %152 : vector<1x512xf32>
    %cst_91 = arith.constant 0.229166672 : f32
    %154 = vector.broadcast %cst_91 : f32 to vector<1x512xf32>
    %155 = arith.mulf %151, %154 : vector<1x512xf32>
    %156 = arith.select %153, %151, %155 : vector<1x512xi1>, vector<1x512xf32>
    %c5_92 = arith.constant 5 : index
    %c0_93 = arith.constant 0 : index
    %157 = vector.load %arg8[%c5_92, %c0_93] : memref<12x512xf32, #tpu.memory_space<vmem>>, vector<1x512xf32>
    tpu.vector_store %arg8[%c5_92, %c0_93], %156 {strides = array<i32>} : memref<12x512xf32, #tpu.memory_space<vmem>>, vector<1x512xf32>,
    %158 = vector.extract_strided_slice %30 {offsets = [48, 0], sizes = [8, 1], strides = [1, 1]} : vector<96x1xf32> to vector<8x1xf32>
    %159 = vector.extract_strided_slice %30 {offsets = [56, 0], sizes = [8, 1], strides = [1, 1]} : vector<96x1xf32> to vector<8x1xf32>
    %160 = vector.extract_strided_slice %30 {offsets = [64, 0], sizes = [8, 1], strides = [1, 1]} : vector<96x1xf32> to vector<8x1xf32>
    %161 = vector.extract_strided_slice %30 {offsets = [72, 0], sizes = [8, 1], strides = [1, 1]} : vector<96x1xf32> to vector<8x1xf32>
    %162 = vector.extract_strided_slice %30 {offsets = [80, 0], sizes = [8, 1], strides = [1, 1]} : vector<96x1xf32> to vector<8x1xf32>
    %163 = vector.extract_strided_slice %30 {offsets = [88, 0], sizes = [8, 1], strides = [1, 1]} : vector<96x1xf32> to vector<8x1xf32>
    %164 = arith.addf %158, %159 : vector<8x1xf32>
    %165 = arith.addf %164, %160 : vector<8x1xf32>
    %166 = arith.addf %165, %161 : vector<8x1xf32>
    %167 = arith.addf %166, %162 : vector<8x1xf32>
    %168 = arith.addf %167, %163 : vector<8x1xf32>
    %cst_94 = arith.constant 0.166666672 : f32
    %169 = vector.broadcast %cst_94 : f32 to vector<8x1xf32>
    %170 = arith.mulf %168, %169 : vector<8x1xf32>
    %171 = arith.subf %158, %170 : vector<8x1xf32>
    %c0_95 = arith.constant 0 : index
    %c0_96 = arith.constant 0 : index
    %c0_97 = arith.constant 0 : index
    %172 = vector.load %arg5[%c0_95, %c0_96, %c0_97] : memref<6x8x1xf32, #tpu.memory_space<vmem>>, vector<1x8x1xf32>
    %173 = vector.shape_cast %172 : vector<1x8x1xf32> to vector<8x1xf32>
    %174 = arith.addf %171, %173 : vector<8x1xf32>
    %c0_98 = arith.constant 0 : index
    %c0_99 = arith.constant 0 : index
    %c0_100 = arith.constant 0 : index
    %175 = vector.load %arg6[%c0_98, %c0_99, %c0_100] : memref<6x8x512xf32, #tpu.memory_space<vmem>>, vector<1x8x512xf32>
    %176 = vector.shape_cast %175 : vector<1x8x512xf32> to vector<8x512xf32>
    %177 = vector.broadcast %174 : vector<8x1xf32> to vector<8x512xf32>
    %178 = arith.mulf %177, %176 : vector<8x512xf32>
    %cst_101 = arith.constant dense<0.000000e+00> : vector<512xf32>
    %179 = vector.multi_reduction <add>, %178, %cst_101 [0] : vector<8x512xf32> to vector<512xf32>
    %180 = vector.shape_cast %179 : vector<512xf32> to vector<1x512xf32>
    %c0_102 = arith.constant 0 : index
    %c0_103 = arith.constant 0 : index
    %c0_104 = arith.constant 0 : index
    %181 = vector.load %arg7[%c0_102, %c0_103, %c0_104] : memref<6x1x512xf32, #tpu.memory_space<vmem>>, vector<1x1x512xf32>
    %182 = vector.shape_cast %181 : vector<1x1x512xf32> to vector<1x512xf32>
    %183 = arith.addf %180, %182 : vector<1x512xf32>
    %cst_105 = arith.constant 0.000000e+00 : f32
    %184 = vector.broadcast %cst_105 : f32 to vector<1x512xf32>
    %185 = arith.cmpf oge, %183, %184 : vector<1x512xf32>
    %cst_106 = arith.constant 0.229166672 : f32
    %186 = vector.broadcast %cst_106 : f32 to vector<1x512xf32>
    %187 = arith.mulf %183, %186 : vector<1x512xf32>
    %188 = arith.select %185, %183, %187 : vector<1x512xi1>, vector<1x512xf32>
    %c6 = arith.constant 6 : index
    %c0_107 = arith.constant 0 : index
    %189 = vector.load %arg8[%c6, %c0_107] : memref<12x512xf32, #tpu.memory_space<vmem>>, vector<1x512xf32>
    tpu.vector_store %arg8[%c6, %c0_107], %188 {strides = array<i32>} : memref<12x512xf32, #tpu.memory_space<vmem>>, vector<1x512xf32>,
    %190 = arith.subf %159, %170 : vector<8x1xf32>
    %c1_108 = arith.constant 1 : index
    %c0_109 = arith.constant 0 : index
    %c0_110 = arith.constant 0 : index
    %191 = vector.load %arg5[%c1_108, %c0_109, %c0_110] : memref<6x8x1xf32, #tpu.memory_space<vmem>>, vector<1x8x1xf32>
    %192 = vector.shape_cast %191 : vector<1x8x1xf32> to vector<8x1xf32>
    %193 = arith.addf %190, %192 : vector<8x1xf32>
    %c1_111 = arith.constant 1 : index
    %c0_112 = arith.constant 0 : index
    %c0_113 = arith.constant 0 : index
    %194 = vector.load %arg6[%c1_111, %c0_112, %c0_113] : memref<6x8x512xf32, #tpu.memory_space<vmem>>, vector<1x8x512xf32>
    %195 = vector.shape_cast %194 : vector<1x8x512xf32> to vector<8x512xf32>
    %196 = vector.broadcast %193 : vector<8x1xf32> to vector<8x512xf32>
    %197 = arith.mulf %196, %195 : vector<8x512xf32>
    %cst_114 = arith.constant dense<0.000000e+00> : vector<512xf32>
    %198 = vector.multi_reduction <add>, %197, %cst_114 [0] : vector<8x512xf32> to vector<512xf32>
    %199 = vector.shape_cast %198 : vector<512xf32> to vector<1x512xf32>
    %c1_115 = arith.constant 1 : index
    %c0_116 = arith.constant 0 : index
    %c0_117 = arith.constant 0 : index
    %200 = vector.load %arg7[%c1_115, %c0_116, %c0_117] : memref<6x1x512xf32, #tpu.memory_space<vmem>>, vector<1x1x512xf32>
    %201 = vector.shape_cast %200 : vector<1x1x512xf32> to vector<1x512xf32>
    %202 = arith.addf %199, %201 : vector<1x512xf32>
    %cst_118 = arith.constant 0.000000e+00 : f32
    %203 = vector.broadcast %cst_118 : f32 to vector<1x512xf32>
    %204 = arith.cmpf oge, %202, %203 : vector<1x512xf32>
    %cst_119 = arith.constant 0.229166672 : f32
    %205 = vector.broadcast %cst_119 : f32 to vector<1x512xf32>
    %206 = arith.mulf %202, %205 : vector<1x512xf32>
    %207 = arith.select %204, %202, %206 : vector<1x512xi1>, vector<1x512xf32>
    %c7 = arith.constant 7 : index
    %c0_120 = arith.constant 0 : index
    %208 = vector.load %arg8[%c7, %c0_120] : memref<12x512xf32, #tpu.memory_space<vmem>>, vector<1x512xf32>
    tpu.vector_store %arg8[%c7, %c0_120], %207 {strides = array<i32>} : memref<12x512xf32, #tpu.memory_space<vmem>>, vector<1x512xf32>,
    %209 = arith.subf %160, %170 : vector<8x1xf32>
    %c2_121 = arith.constant 2 : index
    %c0_122 = arith.constant 0 : index
    %c0_123 = arith.constant 0 : index
    %210 = vector.load %arg5[%c2_121, %c0_122, %c0_123] : memref<6x8x1xf32, #tpu.memory_space<vmem>>, vector<1x8x1xf32>
    %211 = vector.shape_cast %210 : vector<1x8x1xf32> to vector<8x1xf32>
    %212 = arith.addf %209, %211 : vector<8x1xf32>
    %c2_124 = arith.constant 2 : index
    %c0_125 = arith.constant 0 : index
    %c0_126 = arith.constant 0 : index
    %213 = vector.load %arg6[%c2_124, %c0_125, %c0_126] : memref<6x8x512xf32, #tpu.memory_space<vmem>>, vector<1x8x512xf32>
    %214 = vector.shape_cast %213 : vector<1x8x512xf32> to vector<8x512xf32>
    %215 = vector.broadcast %212 : vector<8x1xf32> to vector<8x512xf32>
    %216 = arith.mulf %215, %214 : vector<8x512xf32>
    %cst_127 = arith.constant dense<0.000000e+00> : vector<512xf32>
    %217 = vector.multi_reduction <add>, %216, %cst_127 [0] : vector<8x512xf32> to vector<512xf32>
    %218 = vector.shape_cast %217 : vector<512xf32> to vector<1x512xf32>
    %c2_128 = arith.constant 2 : index
    %c0_129 = arith.constant 0 : index
    %c0_130 = arith.constant 0 : index
    %219 = vector.load %arg7[%c2_128, %c0_129, %c0_130] : memref<6x1x512xf32, #tpu.memory_space<vmem>>, vector<1x1x512xf32>
    %220 = vector.shape_cast %219 : vector<1x1x512xf32> to vector<1x512xf32>
    %221 = arith.addf %218, %220 : vector<1x512xf32>
    %cst_131 = arith.constant 0.000000e+00 : f32
    %222 = vector.broadcast %cst_131 : f32 to vector<1x512xf32>
    %223 = arith.cmpf oge, %221, %222 : vector<1x512xf32>
    %cst_132 = arith.constant 0.229166672 : f32
    %224 = vector.broadcast %cst_132 : f32 to vector<1x512xf32>
    %225 = arith.mulf %221, %224 : vector<1x512xf32>
    %226 = arith.select %223, %221, %225 : vector<1x512xi1>, vector<1x512xf32>
    %c8 = arith.constant 8 : index
    %c0_133 = arith.constant 0 : index
    %227 = vector.load %arg8[%c8, %c0_133] : memref<12x512xf32, #tpu.memory_space<vmem>>, vector<1x512xf32>
    tpu.vector_store %arg8[%c8, %c0_133], %226 {strides = array<i32>} : memref<12x512xf32, #tpu.memory_space<vmem>>, vector<1x512xf32>,
    %228 = arith.subf %161, %170 : vector<8x1xf32>
    %c3_134 = arith.constant 3 : index
    %c0_135 = arith.constant 0 : index
    %c0_136 = arith.constant 0 : index
    %229 = vector.load %arg5[%c3_134, %c0_135, %c0_136] : memref<6x8x1xf32, #tpu.memory_space<vmem>>, vector<1x8x1xf32>
    %230 = vector.shape_cast %229 : vector<1x8x1xf32> to vector<8x1xf32>
    %231 = arith.addf %228, %230 : vector<8x1xf32>
    %c3_137 = arith.constant 3 : index
    %c0_138 = arith.constant 0 : index
    %c0_139 = arith.constant 0 : index
    %232 = vector.load %arg6[%c3_137, %c0_138, %c0_139] : memref<6x8x512xf32, #tpu.memory_space<vmem>>, vector<1x8x512xf32>
    %233 = vector.shape_cast %232 : vector<1x8x512xf32> to vector<8x512xf32>
    %234 = vector.broadcast %231 : vector<8x1xf32> to vector<8x512xf32>
    %235 = arith.mulf %234, %233 : vector<8x512xf32>
    %cst_140 = arith.constant dense<0.000000e+00> : vector<512xf32>
    %236 = vector.multi_reduction <add>, %235, %cst_140 [0] : vector<8x512xf32> to vector<512xf32>
    %237 = vector.shape_cast %236 : vector<512xf32> to vector<1x512xf32>
    %c3_141 = arith.constant 3 : index
    %c0_142 = arith.constant 0 : index
    %c0_143 = arith.constant 0 : index
    %238 = vector.load %arg7[%c3_141, %c0_142, %c0_143] : memref<6x1x512xf32, #tpu.memory_space<vmem>>, vector<1x1x512xf32>
    %239 = vector.shape_cast %238 : vector<1x1x512xf32> to vector<1x512xf32>
    %240 = arith.addf %237, %239 : vector<1x512xf32>
    %cst_144 = arith.constant 0.000000e+00 : f32
    %241 = vector.broadcast %cst_144 : f32 to vector<1x512xf32>
    %242 = arith.cmpf oge, %240, %241 : vector<1x512xf32>
    %cst_145 = arith.constant 0.229166672 : f32
    %243 = vector.broadcast %cst_145 : f32 to vector<1x512xf32>
    %244 = arith.mulf %240, %243 : vector<1x512xf32>
    %245 = arith.select %242, %240, %244 : vector<1x512xi1>, vector<1x512xf32>
    %c9 = arith.constant 9 : index
    %c0_146 = arith.constant 0 : index
    %246 = vector.load %arg8[%c9, %c0_146] : memref<12x512xf32, #tpu.memory_space<vmem>>, vector<1x512xf32>
    tpu.vector_store %arg8[%c9, %c0_146], %245 {strides = array<i32>} : memref<12x512xf32, #tpu.memory_space<vmem>>, vector<1x512xf32>,
    %247 = arith.subf %162, %170 : vector<8x1xf32>
    %c4_147 = arith.constant 4 : index
    %c0_148 = arith.constant 0 : index
    %c0_149 = arith.constant 0 : index
    %248 = vector.load %arg5[%c4_147, %c0_148, %c0_149] : memref<6x8x1xf32, #tpu.memory_space<vmem>>, vector<1x8x1xf32>
    %249 = vector.shape_cast %248 : vector<1x8x1xf32> to vector<8x1xf32>
    %250 = arith.addf %247, %249 : vector<8x1xf32>
    %c4_150 = arith.constant 4 : index
    %c0_151 = arith.constant 0 : index
    %c0_152 = arith.constant 0 : index
    %251 = vector.load %arg6[%c4_150, %c0_151, %c0_152] : memref<6x8x512xf32, #tpu.memory_space<vmem>>, vector<1x8x512xf32>
    %252 = vector.shape_cast %251 : vector<1x8x512xf32> to vector<8x512xf32>
    %253 = vector.broadcast %250 : vector<8x1xf32> to vector<8x512xf32>
    %254 = arith.mulf %253, %252 : vector<8x512xf32>
    %cst_153 = arith.constant dense<0.000000e+00> : vector<512xf32>
    %255 = vector.multi_reduction <add>, %254, %cst_153 [0] : vector<8x512xf32> to vector<512xf32>
    %256 = vector.shape_cast %255 : vector<512xf32> to vector<1x512xf32>
    %c4_154 = arith.constant 4 : index
    %c0_155 = arith.constant 0 : index
    %c0_156 = arith.constant 0 : index
    %257 = vector.load %arg7[%c4_154, %c0_155, %c0_156] : memref<6x1x512xf32, #tpu.memory_space<vmem>>, vector<1x1x512xf32>
    %258 = vector.shape_cast %257 : vector<1x1x512xf32> to vector<1x512xf32>
    %259 = arith.addf %256, %258 : vector<1x512xf32>
    %cst_157 = arith.constant 0.000000e+00 : f32
    %260 = vector.broadcast %cst_157 : f32 to vector<1x512xf32>
    %261 = arith.cmpf oge, %259, %260 : vector<1x512xf32>
    %cst_158 = arith.constant 0.229166672 : f32
    %262 = vector.broadcast %cst_158 : f32 to vector<1x512xf32>
    %263 = arith.mulf %259, %262 : vector<1x512xf32>
    %264 = arith.select %261, %259, %263 : vector<1x512xi1>, vector<1x512xf32>
    %c10 = arith.constant 10 : index
    %c0_159 = arith.constant 0 : index
    %265 = vector.load %arg8[%c10, %c0_159] : memref<12x512xf32, #tpu.memory_space<vmem>>, vector<1x512xf32>
    tpu.vector_store %arg8[%c10, %c0_159], %264 {strides = array<i32>} : memref<12x512xf32, #tpu.memory_space<vmem>>, vector<1x512xf32>,
    %266 = arith.subf %163, %170 : vector<8x1xf32>
    %c5_160 = arith.constant 5 : index
    %c0_161 = arith.constant 0 : index
    %c0_162 = arith.constant 0 : index
    %267 = vector.load %arg5[%c5_160, %c0_161, %c0_162] : memref<6x8x1xf32, #tpu.memory_space<vmem>>, vector<1x8x1xf32>
    %268 = vector.shape_cast %267 : vector<1x8x1xf32> to vector<8x1xf32>
    %269 = arith.addf %266, %268 : vector<8x1xf32>
    %c5_163 = arith.constant 5 : index
    %c0_164 = arith.constant 0 : index
    %c0_165 = arith.constant 0 : index
    %270 = vector.load %arg6[%c5_163, %c0_164, %c0_165] : memref<6x8x512xf32, #tpu.memory_space<vmem>>, vector<1x8x512xf32>
    %271 = vector.shape_cast %270 : vector<1x8x512xf32> to vector<8x512xf32>
    %272 = vector.broadcast %269 : vector<8x1xf32> to vector<8x512xf32>
    %273 = arith.mulf %272, %271 : vector<8x512xf32>
    %cst_166 = arith.constant dense<0.000000e+00> : vector<512xf32>
    %274 = vector.multi_reduction <add>, %273, %cst_166 [0] : vector<8x512xf32> to vector<512xf32>
    %275 = vector.shape_cast %274 : vector<512xf32> to vector<1x512xf32>
    %c5_167 = arith.constant 5 : index
    %c0_168 = arith.constant 0 : index
    %c0_169 = arith.constant 0 : index
    %276 = vector.load %arg7[%c5_167, %c0_168, %c0_169] : memref<6x1x512xf32, #tpu.memory_space<vmem>>, vector<1x1x512xf32>
    %277 = vector.shape_cast %276 : vector<1x1x512xf32> to vector<1x512xf32>
    %278 = arith.addf %275, %277 : vector<1x512xf32>
    %cst_170 = arith.constant 0.000000e+00 : f32
    %279 = vector.broadcast %cst_170 : f32 to vector<1x512xf32>
    %280 = arith.cmpf oge, %278, %279 : vector<1x512xf32>
    %cst_171 = arith.constant 0.229166672 : f32
    %281 = vector.broadcast %cst_171 : f32 to vector<1x512xf32>
    %282 = arith.mulf %278, %281 : vector<1x512xf32>
    %283 = arith.select %280, %278, %282 : vector<1x512xi1>, vector<1x512xf32>
    %c11 = arith.constant 11 : index
    %c0_172 = arith.constant 0 : index
    %284 = vector.load %arg8[%c11, %c0_172] : memref<12x512xf32, #tpu.memory_space<vmem>>, vector<1x512xf32>
    tpu.vector_store %arg8[%c11, %c0_172], %283 {strides = array<i32>} : memref<12x512xf32, #tpu.memory_space<vmem>>, vector<1x512xf32>,
    return
  }
}

</mosaic_0001>

<bundles_post_ra>
// kernel: scepter_vit_forward.4
= control target key start
LH: loop header
LB: loop body
LE: loop exit
PB: predicated region body
PF: predicated region fallthrough
CT: control target
= control target key end

     0   :  { %vm44_vm0 = vcmask 523264   ;;  %vm164_vm1 = vcmask 261120   ;;  %s609_s1 = inlined_call_operand.vmem [shape: f32[64,32], index: 1, kind: input, shape index: {}]   ;;  %s610_s0 = inlined_call_operand.vmem [shape: f32[2,48,64], index: 0, kind: input, shape index: {}]   ;;  %s611_s2 = inlined_call_operand.vmem [shape: f32[1,32], index: 2, kind: input, shape index: {}]   ;;  %s612_s3 = inlined_call_operand.vmem [shape: f32[48,32], index: 3, kind: input, shape index: {}]   ;;  %s613_s4 = inlined_call_operand.vmem [shape: f32[2,48,32], index: 4, kind: output, shape index: {}]  }
   0x1   :  { %v17_v0 = vld [vmem:[%s609_s1] sm:$0xff]  ;;  %v18_v1 = vld [vmem:[%s609_s1 + $0x8] sm:$0xff]  ;;  %v19_v2 = vld [vmem:[%s609_s1 + $0x10] sm:$0xff] }
   0x2   :  { %v411_v3 = vpack.c.bf16 %v18_v1, %v17_v0  ;;  %v20_v4 = vld [vmem:[%s609_s1 + $0x18] sm:$0xff]  ;;  %v21_v6 = vld [vmem:[%s609_s1 + $0x20] sm:$0xff]  ;;  %v22_v7 = vld [vmem:[%s609_s1 + $0x28] sm:$0xff] }
   0x3   :  { %v415_v5 = vpack.c.bf16 %v20_v4, %v19_v2  ;;  %v32_v8 = vld [vmem:[%s610_s0] sm:$0xff]  ;;  %v315_v9 = vld [vmem:[%s610_s0 + $0x30] sm:$0xff]  ;;  %v419_v10 = vpack.c.bf16 %v22_v7, %v21_v6  ;;  %v24_v12 = vld [vmem:[%s609_s1 + $0x38] sm:$0xff] }
   0x4   :  { %412 = vmatprep.subr.bf16.mxu0 %v411_v3  ;;  %428 = vmatprep.subr.bf16.mxu1 %v411_v3  ;;  %v23_v11 = vld [vmem:[%s609_s1 + $0x30] sm:$0xff]  ;;  %v33_v14 = vld [vmem:[%s610_s0 + $0x8] sm:$0xff]  ;;  %v316_v15 = vld [vmem:[%s610_s0 + $0x38] sm:$0xff] }
   0x5   :  { %414 = vmatpush3.bf16.msra.mxu0 %v411_v3  ;;  %430 = vmatpush3.bf16.msra.mxu1 %v411_v3  ;;  %v423_v13 = vpack.c.bf16 %v24_v12, %v23_v11  ;;  %v34_v16 = vld [vmem:[%s610_s0 + $0x10] sm:$0xff]  ;;  %v317_v17 = vld [vmem:[%s610_s0 + $0x40] sm:$0xff]  ;;  %v35_v18 = vld [vmem:[%s610_s0 + $0x18] sm:$0xff] }
   0x6   :  { %416 = vmatprep.subr.bf16.mxu0 %v415_v5  ;;  %432 = vmatprep.subr.bf16.mxu1 %v415_v5  ;;  %v318_v19 = vld [vmem:[%s610_s0 + $0x48] sm:$0xff]  ;;  %v36_v20 = vld [vmem:[%s610_s0 + $0x20] sm:$0xff]  ;;  %v319_v21 = vld [vmem:[%s610_s0 + $0x50] sm:$0xff] }
   0x7   :  { %377 = vmatprep.mubr.msk.f32.mxu0 %vm44_vm0, %v32_v8  ;;  %402 = vmatprep.mubr.msk.f32.mxu1 %vm44_vm0, %v315_v9  ;;  %v37_v22 = vld [vmem:[%s610_s0 + $0x28] sm:$0xff]  ;;  %v320_v23 = vld [vmem:[%s610_s0 + $0x58] sm:$0xff]  ;;  %v308_v24 = vld [vmem:[%s611_s2] ss:$0 sm:$0xff] }
   0x8   :  { %v27_v25 = vld [vmem:[%s612_s3 + $0x8] sm:$0xff]  ;;  %v26_v30 = vld [vmem:[%s612_s3] sm:$0xff]  ;;  %v29_v39 = vld [vmem:[%s612_s3 + $0x18] sm:$0xff] }
   0x9   :  { %418 = vmatpush3.bf16.msra.mxu0 %v415_v5  ;;  %434 = vmatpush3.bf16.msra.mxu1 %v415_v5  ;;  %v28_v44 = vld [vmem:[%s612_s3 + $0x10] sm:$0xff]  ;;  %v31_v53 = vld [vmem:[%s612_s3 + $0x28] sm:$0xff]  ;;  %v30_v58 = vld [vmem:[%s612_s3 + $0x20] sm:$0xff] }
   0xa   :  { %420 = vmatprep.subr.bf16.mxu0 %v419_v10  ;;  %436 = vmatprep.subr.bf16.mxu1 %v419_v10 }
   0xd   :  { %422 = vmatpush3.bf16.msra.mxu0 %v419_v10  ;;  %438 = vmatpush3.bf16.msra.mxu1 %v419_v10 }
   0xe   :  { %424 = vmatprep.subr.bf16.mxu0 %v423_v13  ;;  %440 = vmatprep.subr.bf16.mxu1 %v423_v13 }
  0x11   :  { %426 = vmatpush3.bf16.msra.mxu0 %v423_v13  ;;  %442 = vmatpush3.bf16.msra.mxu1 %v423_v13 }
  0x14   :  { %378 = vmatmul.mubr.msk.f32.vlgmr.msra.gmra.mrb[0].mxu0 %vm44_vm0, %v33_v14  ;;  %403 = vmatmul.mubr.msk.f32.vlgmr.msra.gmra.mrb[0].mxu1 %vm44_vm0, %v316_v15 }
  0x15   :  { %380 = vmatprep.mubr.msk.f32.mxu0 %vm44_vm0, %v34_v16  ;;  %405 = vmatprep.mubr.msk.f32.mxu1 %vm44_vm0, %v317_v17 }
  0x18   :  { %381 = vmatmul.mubr.msk.f32.gmra.mrb[2].mxu0 %vm44_vm0, %v35_v18  ;;  %406 = vmatmul.mubr.msk.f32.gmra.mrb[2].mxu1 %vm44_vm0, %v318_v19 }
  0x19   :  { %383 = vmatprep.mubr.msk.f32.mxu0 %vm44_vm0, %v36_v20  ;;  %408 = vmatprep.mubr.msk.f32.mxu1 %vm44_vm0, %v319_v21 }
  0x1c   :  { %384 = vmatmul.mubr.msk.f32.gmra.mrb[4].mxu0 %vm44_vm0, %v37_v22  ;;  %409 = vmatmul.mubr.msk.f32.gmra.mrb[4].mxu1 %vm44_vm0, %v320_v23 }
  0xe7   :  { %v379_v26 = vpop.f32.mrb[0].mxu0  ;;  %v404_v27 = vpop.f32.mrb[0].mxu1 }
  0xe8   :  { %v135_v28 = vadd.f32 %v379_v26, %v308_v24  ;;  %v268_v29 = vadd.f32 %v404_v27, %v308_v24  ;;  %v129_v31 = vpop.f32.mrb[1].mxu0  ;;  %v262_v32 = vpop.f32.mrb[1].mxu1 }
  0xe9   :  { %v130_v33 = vadd.f32 %v308_v24, %v129_v31  ;;  %v263_v34 = vadd.f32 %v308_v24, %v262_v32 }
  0xea   :  { %v159_v35 = vadd.f32 %v135_v28, %v27_v25  ;;  %v292_v36 = vadd.f32 %v268_v29, %v27_v25 }
  0xeb   :  { %v158_v37 = vadd.f32 %v130_v33, %v26_v30  ;;  %v291_v38 = vadd.f32 %v263_v34, %v26_v30  ;;  %v382_v40 = vpop.f32.mrb[2].mxu0  ;;  %v407_v41 = vpop.f32.mrb[2].mxu1 }
  0xec   :  { %166 = vst.msk [vmem:[%s613_s4 + $0x8] sm:$0xff] %vm164_vm1, %v159_v35  ;;  %328 = vst.msk [vmem:[%s613_s4 + $0x38] sm:$0xff] %vm164_vm1, %v292_v36  ;;  %v145_v42 = vadd.f32 %v382_v40, %v308_v24  ;;  %v278_v43 = vadd.f32 %v407_v41, %v308_v24  ;;  %v139_v45 = vpop.f32.mrb[3].mxu0  ;;  %v272_v46 = vpop.f32.mrb[3].mxu1 }
  0xed   :  { %165 = vst.msk [vmem:[%s613_s4] sm:$0xff] %vm164_vm1, %v158_v37  ;;  %327 = vst.msk [vmem:[%s613_s4 + $0x30] sm:$0xff] %vm164_vm1, %v291_v38  ;;  %v140_v47 = vadd.f32 %v308_v24, %v139_v45  ;;  %v273_v48 = vadd.f32 %v308_v24, %v272_v46 }
  0xee   :  { %v161_v49 = vadd.f32 %v145_v42, %v29_v39  ;;  %v294_v50 = vadd.f32 %v278_v43, %v29_v39 }
  0xef   :  { %v160_v51 = vadd.f32 %v140_v47, %v28_v44  ;;  %v293_v52 = vadd.f32 %v273_v48, %v28_v44  ;;  %v385_v54 = vpop.f32.mrb[4].mxu0  ;;  %v410_v55 = vpop.f32.mrb[4].mxu1 }
  0xf0   :  { %168 = vst.msk [vmem:[%s613_s4 + $0x18] sm:$0xff] %vm164_vm1, %v161_v49  ;;  %330 = vst.msk [vmem:[%s613_s4 + $0x48] sm:$0xff] %vm164_vm1, %v294_v50  ;;  %v155_v56 = vadd.f32 %v385_v54, %v308_v24  ;;  %v288_v57 = vadd.f32 %v410_v55, %v308_v24  ;;  %v149_v59 = vpop.f32.mrb[5].mxu0  ;;  %v282_v60 = vpop.f32.mrb[5].mxu1 }
  0xf1   :  { %167 = vst.msk [vmem:[%s613_s4 + $0x10] sm:$0xff] %vm164_vm1, %v160_v51  ;;  %329 = vst.msk [vmem:[%s613_s4 + $0x40] sm:$0xff] %vm164_vm1, %v293_v52  ;;  %v150_v61 = vadd.f32 %v308_v24, %v149_v59  ;;  %v283_v62 = vadd.f32 %v308_v24, %v282_v60 }
  0xf2   :  { %v163_v63 = vadd.f32 %v155_v56, %v31_v53  ;;  %v296_v0 = vadd.f32 %v288_v57, %v31_v53 }
  0xf3   :  { %v162_v1 = vadd.f32 %v150_v61, %v30_v58  ;;  %v295_v2 = vadd.f32 %v283_v62, %v30_v58 }
  0xf4   :  { %170 = vst.msk [vmem:[%s613_s4 + $0x28] sm:$0xff] %vm164_vm1, %v163_v63  ;;  %332 = vst.msk [vmem:[%s613_s4 + $0x58] sm:$0xff] %vm164_vm1, %v296_v0 }
  0xf5   :  { %169 = vst.msk [vmem:[%s613_s4 + $0x20] sm:$0xff] %vm164_vm1, %v162_v1  ;;  %331 = vst.msk [vmem:[%s613_s4 + $0x50] sm:$0xff] %vm164_vm1, %v295_v2 }

// kernel: scepter_vit_forward.7
= control target key start
LH: loop header
LB: loop body
LE: loop exit
PB: predicated region body
PF: predicated region fallthrough
CT: control target
= control target key end

     0   :  { %vm45_vm0 = vcmask 261120   ;;  %s2603_s0 = inlined_call_operand.vmem [shape: f32[96,32], index: 0, kind: input, shape index: {}]   ;;  %s2604_s4 = inlined_call_operand.<no memory space> [shape: f32[1,1], index: 4, kind: input, shape index: {}]   ;;  %s2605_s1 = inlined_call_operand.vmem [shape: f32[1,32], index: 1, kind: input, shape index: {}]   ;;  %s2606_s2 = inlined_call_operand.vmem [shape: f32[1,32], index: 2, kind: input, shape index: {}]   ;;  %s2607_s3 = inlined_call_operand.vmem [shape: f32[1,32], index: 3, kind: input, shape index: {}]   ;;  %s2608_s5 = inlined_call_operand.vmem [shape: f32[6,8,1], index: 5, kind: input, shape index: {}]   ;;  %s2609_s7 = inlined_call_operand.vmem [shape: f32[6,1,512], index: 7, kind: input, shape index: {}]   ;;  %s2610_s6 = inlined_call_operand.vmem [shape: f32[6,8,512], index: 6, kind: input, shape index: {}]   ;;  %s2611_s8 = inlined_call_operand.vmem [shape: f32[12,512], index: 8, kind: output, shape index: {}]  }
   0x1   :  { %v31_v0 = vld [vmem:[%s2603_s0] sm:$0xff]  ;;  %v37_v1 = vld [vmem:[%s2603_s0 + $0x30] sm:$0xff]  ;;  %v32_v2 = vld [vmem:[%s2603_s0 + $0x8] sm:$0xff] }
   0x2   :  { %v46_v3 = vsel %vm45_vm0, %v31_v0, 0.0  ;;  %v64_v4 = vsel %vm45_vm0, %v37_v1, 0.0  ;;  %v38_v5 = vld [vmem:[%s2603_s0 + $0x38] sm:$0xff]  ;;  %v49_v6 = vsel %vm45_vm0, %v32_v2, 0.0  ;;  %v33_v8 = vld [vmem:[%s2603_s0 + $0x10] sm:$0xff]  ;;  %v39_v9 = vld [vmem:[%s2603_s0 + $0x40] sm:$0xff] }
   0x3   :  { %47 = vadd.xlane.f32.xlu0 %v46_v3  ;;  %65 = vadd.xlane.f32.xlu1 %v64_v4  ;;  %v67_v7 = vsel %vm45_vm0, %v38_v5, 0.0  ;;  %v52_v10 = vsel %vm45_vm0, %v33_v8, 0.0  ;;  %v70_v11 = vsel %vm45_vm0, %v39_v9, 0.0  ;;  %v34_v12 = vld [vmem:[%s2603_s0 + $0x18] sm:$0xff]  ;;  %v40_v13 = vld [vmem:[%s2603_s0 + $0x48] sm:$0xff]  ;;  %v35_v16 = vld [vmem:[%s2603_s0 + $0x20] sm:$0xff] }
   0x4   :  { %v55_v14 = vsel %vm45_vm0, %v34_v12, 0.0  ;;  %v73_v15 = vsel %vm45_vm0, %v40_v13, 0.0  ;;  %v41_v17 = vld [vmem:[%s2603_s0 + $0x50] sm:$0xff]  ;;  %v58_v18 = vsel %vm45_vm0, %v35_v16, 0.0  ;;  %v1861_v20 = vld [vmem:[%s2603_s0 + $0x28] sm:$0xff]  ;;  %v1866_v21 = vld [vmem:[%s2603_s0 + $0x58] sm:$0xff] }
   0x5   :  { %v76_v19 = vsel %vm45_vm0, %v41_v17, 0.0  ;;  %v61_v22 = vsel %vm45_vm0, %v1861_v20, 0.0  ;;  %v79_v23 = vsel %vm45_vm0, %v1866_v21, 0.0 }
   0x7   :  { %50 = vadd.xlane.f32.xlu0 %v49_v6  ;;  %68 = vadd.xlane.f32.xlu1 %v67_v7 }
   0xb   :  { %53 = vadd.xlane.f32.xlu0 %v52_v10  ;;  %71 = vadd.xlane.f32.xlu1 %v70_v11 }
   0xf   :  { %56 = vadd.xlane.f32.xlu0 %v55_v14  ;;  %74 = vadd.xlane.f32.xlu1 %v73_v15 }
  0x13   :  { %59 = vadd.xlane.f32.xlu0 %v58_v18  ;;  %77 = vadd.xlane.f32.xlu1 %v76_v19 }
  0x17   :  { %62 = vadd.xlane.f32.xlu0 %v61_v22  ;;  %80 = vadd.xlane.f32.xlu1 %v79_v23 }
  0x90   :  { %v48_v24 = vpop.xlane.xlu0 %47  ;;  %v66_v25 = vpop.xlane.xlu1 %65 }
  0x91   :  { %v83_v26 = vmul.f32 0.03125, %v48_v24  ;;  %v89_v27 = vmul.f32 0.03125, %v66_v25 }
  0x93   :  { %v1872_v28 = vsub.f32 %v31_v0, %v83_v26  ;;  %v1874_v29 = vsub.f32 %v37_v1, %v89_v27 }
  0x94   :  { %v51_v30 = vpop.xlane.xlu0 %50  ;;  %v69_v31 = vpop.xlane.xlu1 %68 }
  0x95   :  { %v84_v32 = vmul.f32 0.03125, %v51_v30  ;;  %v90_v33 = vmul.f32 0.03125, %v69_v31  ;;  %v107_v34 = vmul.f32 %v1872_v28, %v1872_v28  ;;  %v113_v35 = vmul.f32 %v1874_v29, %v1874_v29 }
  0x97   :  { %v1880_v36 = vsub.f32 %v32_v2, %v84_v32  ;;  %v1882_v37 = vsub.f32 %v38_v5, %v90_v33  ;;  %v119_v38 = vsel %vm45_vm0, %v107_v34, 0.0  ;;  %v137_v41 = vsel %vm45_vm0, %v113_v35, 0.0 }
  0x98   :  { %120 = vadd.xlane.f32.xlu0 %v119_v38  ;;  %v54_v39 = vpop.xlane.xlu0 %53  ;;  %v72_v40 = vpop.xlane.xlu1 %71 }
  0x99   :  { %v85_v42 = vmul.f32 0.03125, %v54_v39  ;;  %v91_v43 = vmul.f32 0.03125, %v72_v40  ;;  %v108_v44 = vmul.f32 %v1880_v36, %v1880_v36  ;;  %v114_v45 = vmul.f32 %v1882_v37, %v1882_v37 }
  0x9b   :  { %v1890_v46 = vsub.f32 %v33_v8, %v85_v42  ;;  %v1892_v47 = vsub.f32 %v39_v9, %v91_v43  ;;  %v122_v48 = vsel %vm45_vm0, %v108_v44, 0.0  ;;  %v140_v51 = vsel %vm45_vm0, %v114_v45, 0.0 }
  0x9c   :  { %138 = vadd.xlane.f32.xlu0 %v137_v41  ;;  %123 = vadd.xlane.f32.xlu1 %v122_v48  ;;  %v57_v49 = vpop.xlane.xlu0 %56  ;;  %v75_v50 = vpop.xlane.xlu1 %74 }
  0x9d   :  { %v86_v52 = vmul.f32 0.03125, %v57_v49  ;;  %v92_v53 = vmul.f32 0.03125, %v75_v50  ;;  %v109_v54 = vmul.f32 %v1890_v46, %v1890_v46  ;;  %v115_v55 = vmul.f32 %v1892_v47, %v1892_v47  ;;  %v1940_v49 = vld [vmem:[%s2605_s1] ss:$0 sm:$0xff] }
  0x9f   :  { %v1900_v56 = vsub.f32 %v34_v12, %v86_v52  ;;  %v1902_v57 = vsub.f32 %v40_v13, %v92_v53  ;;  %v125_v58 = vsel %vm45_vm0, %v109_v54, 0.0  ;;  %v143_v61 = vsel %vm45_vm0, %v115_v55, 0.0  ;;  %v1946_v55 = vld [vmem:[%s2606_s2] ss:$0 sm:$0xff] }
  0xa0   :  { %141 = vadd.xlane.f32.xlu1 %v140_v51  ;;  %126 = vadd.xlane.f32.xlu0 %v125_v58  ;;  %v60_v59 = vpop.xlane.xlu0 %59  ;;  %v78_v60 = vpop.xlane.xlu1 %77 }
  0xa1   :  { %v87_v62 = vmul.f32 0.03125, %v60_v59  ;;  %v93_v63 = vmul.f32 0.03125, %v78_v60  ;;  %v110_v0 = vmul.f32 %v1900_v56, %v1900_v56  ;;  %v116_v1 = vmul.f32 %v1902_v57, %v1902_v57 }
  0xa3   :  { %v1910_v2 = vsub.f32 %v35_v16, %v87_v62  ;;  %v1912_v3 = vsub.f32 %v41_v17, %v93_v63  ;;  %v128_v4 = vsel %vm45_vm0, %v110_v0, 0.0  ;;  %v146_v7 = vsel %vm45_vm0, %v116_v1, 0.0  ;;  %v1952_v62 = vld [vmem:[%s2607_s3] ss:$0 sm:$0xff] }
  0xa4   :  { %144 = vadd.xlane.f32.xlu1 %v143_v61  ;;  %129 = vadd.xlane.f32.xlu0 %v128_v4  ;;  %v63_v5 = vpop.xlane.xlu0 %62  ;;  %v81_v6 = vpop.xlane.xlu1 %80 }
  0xa5   :  { %v88_v8 = vmul.f32 0.03125, %v63_v5  ;;  %v94_v9 = vmul.f32 0.03125, %v81_v6  ;;  %v111_v10 = vmul.f32 %v1910_v2, %v1910_v2  ;;  %v117_v11 = vmul.f32 %v1912_v3, %v1912_v3 }
  0xa7   :  { %v1921_v12 = vsub.f32 %v1861_v20, %v88_v8  ;;  %v1924_v13 = vsub.f32 %v1866_v21, %v94_v9  ;;  %v131_v14 = vsel %vm45_vm0, %v111_v10, 0.0  ;;  %v149_v15 = vsel %vm45_vm0, %v117_v11, 0.0 }
  0xa8   :  { %147 = vadd.xlane.f32.xlu1 %v146_v7  ;;  %132 = vadd.xlane.f32.xlu0 %v131_v14  ;;  %v13_v20 = vstv %s2604_s4 }
  0xa9   :  { %v112_v16 = vmul.f32 %v1921_v12, %v1921_v12  ;;  %v118_v17 = vmul.f32 %v1924_v13, %v1924_v13  ;;  %14 = vst [vmem:[#allocation2] sm:$0x1] %v13_v20 }
  0xab   :  { %v134_v18 = vsel %vm45_vm0, %v112_v16, 0.0  ;;  %v152_v19 = vsel %vm45_vm0, %v118_v17, 0.0 }
  0xac   :  { %150 = vadd.xlane.f32.xlu1 %v149_v15  ;;  %135 = vadd.xlane.f32.xlu0 %v134_v18 }
  0xb0   :  { %153 = vadd.xlane.f32.xlu1 %v152_v19 }
 0x125   :  { %v121_v21 = vpop.xlane.xlu0 %120 }
 0x126   :  { %v155_v22 = vmul.f32 0.03125, %v121_v21 }
 0x128   :  { %v167_v23 = vadd.f32 1e-06, %v155_v22 }
 0x129   :  { %v124_v24 = vpop.xlane.xlu1 %123  ;;  %v139_v25 = vpop.xlane.xlu0 %138 }
 0x12a   :  { %1746 = vrsqrt.f32 %v167_v23  ;;  %v156_v26 = vmul.f32 0.03125, %v124_v24  ;;  %v161_v27 = vmul.f32 0.03125, %v139_v25 }
 0x12c   :  { %v168_v30 = vadd.f32 1e-06, %v156_v26  ;;  %v173_v31 = vadd.f32 1e-06, %v161_v27 }
 0x12d   :  { %v142_v32 = vpop.xlane.xlu1 %141  ;;  %v127_v33 = vpop.xlane.xlu0 %126 }
 0x12e   :  { %1748 = vrsqrt.f32 %v168_v30  ;;  %v162_v34 = vmul.f32 0.03125, %v142_v32  ;;  %v157_v35 = vmul.f32 0.03125, %v127_v33 }
 0x12f   :  { %1750 = vrsqrt.f32 %v173_v31 }
 0x130   :  { %v174_v38 = vadd.f32 1e-06, %v162_v34  ;;  %v169_v39 = vadd.f32 1e-06, %v157_v35 }
 0x131   :  { %v145_v40 = vpop.xlane.xlu1 %144  ;;  %v130_v41 = vpop.xlane.xlu0 %129 }
 0x132   :  { %1752 = vrsqrt.f32 %v174_v38  ;;  %v163_v42 = vmul.f32 0.03125, %v145_v40  ;;  %v158_v43 = vmul.f32 0.03125, %v130_v41 }
 0x133   :  { %1754 = vrsqrt.f32 %v169_v39 }
 0x134   :  { %v1747_v44 = vpop.eup %1746  ;;  %v175_v45 = vadd.f32 1e-06, %v163_v42  ;;  %v170_v48 = vadd.f32 1e-06, %v158_v43 }
 0x135   :  { %v148_v50 = vpop.xlane.xlu1 %147  ;;  %v133_v51 = vpop.xlane.xlu0 %132  ;;  %v191_v52 = vmul.f32 %v1747_v44, %v1872_v28 }
 0x136   :  { %1756 = vrsqrt.f32 %v175_v45  ;;  %v164_v53 = vmul.f32 0.03125, %v148_v50  ;;  %v159_v54 = vmul.f32 0.03125, %v133_v51 }
 0x137   :  { %1758 = vrsqrt.f32 %v170_v48  ;;  %v209_v58 = vmul.f32 %v1940_v49, %v191_v52 }
 0x138   :  { %v1749_v59 = vpop.eup %1748  ;;  %v176_v60 = vadd.f32 1e-06, %v164_v53  ;;  %v171_v61 = vadd.f32 1e-06, %v159_v54 }
 0x139   :  { %v1751_v28 = vpop.eup %1750  ;;  %v151_v63 = vpop.xlane.xlu1 %150  ;;  %v227_v1 = vadd.f32 %v1946_v55, %v209_v58  ;;  %v192_v4 = vmul.f32 %v1749_v59, %v1880_v36 }
 0x13a   :  { %v136_v0 = vpop.xlane.xlu0 %135  ;;  %1760 = vrsqrt.f32 %v176_v60  ;;  %v165_v5 = vmul.f32 0.03125, %v151_v63  ;;  %v197_v7 = vmul.f32 %v1751_v28, %v1874_v29 }
 0x13b   :  { %v160_v6 = vmul.f32 0.03125, %v136_v0  ;;  %1762 = vrsqrt.f32 %v171_v61  ;;  %v246_v8 = vmul.f32 %v1952_v62, %v227_v1  ;;  %v210_v9 = vmul.f32 %v1940_v49, %v192_v4 }
 0x13c   :  { %v1753_v10 = vpop.eup %1752  ;;  %v177_v11 = vadd.f32 1e-06, %v165_v5  ;;  %v215_v15 = vmul.f32 %v1940_v49, %v197_v7 }
 0x13d   :  { %v172_v14 = vadd.f32 1e-06, %v160_v6  ;;  %v1755_v16 = vpop.eup %1754  ;;  %v154_v17 = vpop.xlane.xlu1 %153  ;;  %v258_v18 = vsel %vm45_vm0, %v246_v8, 0.0  ;;  %v228_v36 = vadd.f32 %v1946_v55, %v210_v9  ;;  %v198_v19 = vmul.f32 %v1753_v10, %v1882_v37 }
 0x13e   :  { %1764 = vrsqrt.f32 %v177_v11  ;;  %v166_v29 = vmul.f32 0.03125, %v154_v17  ;;  %259 = vadd.xlane.f32.xlu0 %v258_v18  ;;  %v233_v20 = vadd.f32 %v1946_v55, %v215_v15  ;;  %v193_v21 = vmul.f32 %v1755_v16, %v1890_v46 }
 0x13f   :  { %1766 = vrsqrt.f32 %v172_v14  ;;  %v247_v22 = vmul.f32 %v1952_v62, %v228_v36  ;;  %v216_v23 = vmul.f32 %v1940_v49, %v198_v19  ;;  %v1771_v18 = vmov 0  }
 0x140   :  { %v1757_v24 = vpop.eup %1756  ;;  %v178_v25 = vadd.f32 1e-06, %v166_v29  ;;  %v252_v26 = vmul.f32 %v1952_v62, %v233_v20  ;;  %v211_v27 = vmul.f32 %v1940_v49, %v193_v21  ;;  %1745 = vset.pattern.permute.xlu1 %v1771_v18  ;;  %1744 = vset.pattern.permute.xlu0 %v1771_v18  ;;  %v1670_v21 = vld [vmem:[#allocation2] ss:$0 sm:$0xff] }
 0x141   :  { %v1759_v30 = vpop.eup %1758  ;;  %v261_v37 = vsel %vm45_vm0, %v247_v22, 0.0  ;;  %v234_v31 = vadd.f32 %v1946_v55, %v216_v23  ;;  %v199_v32 = vmul.f32 %v1757_v24, %v1892_v47 }
 0x142   :  { %1768 = vrsqrt.f32 %v178_v25  ;;  %262 = vadd.xlane.f32.xlu1 %v261_v37  ;;  %v276_v46 = vsel %vm45_vm0, %v252_v26, 0.0  ;;  %v229_v33 = vadd.f32 %v1946_v55, %v211_v27  ;;  %v194_v34 = vmul.f32 %v1759_v30, %v1900_v56 }
 0x143   :  { %277 = vadd.xlane.f32.xlu0 %v276_v46  ;;  %v253_v35 = vmul.f32 %v1952_v62, %v234_v31  ;;  %v217_v38 = vmul.f32 %v1940_v49, %v199_v32 }
 0x144   :  { %v1761_v39 = vpop.eup %1760  ;;  %v248_v40 = vmul.f32 %v1952_v62, %v229_v33  ;;  %v212_v41 = vmul.f32 %v1940_v49, %v194_v34 }
 0x145   :  { %v1763_v42 = vpop.eup %1762  ;;  %v279_v47 = vsel %vm45_vm0, %v253_v35, 0.0  ;;  %v235_v43 = vadd.f32 %v1946_v55, %v217_v38  ;;  %v200_v44 = vmul.f32 %v1761_v39, %v1902_v57 }
 0x146   :  { %280 = vadd.xlane.f32.xlu1 %v279_v47  ;;  %v264_v56 = vsel %vm45_vm0, %v248_v40, 0.0  ;;  %v230_v45 = vadd.f32 %v1946_v55, %v212_v41  ;;  %v195_v48 = vmul.f32 %v1763_v42, %v1910_v2 }
 0x147   :  { %265 = vadd.xlane.f32.xlu0 %v264_v56  ;;  %v254_v50 = vmul.f32 %v1952_v62, %v235_v43  ;;  %v218_v51 = vmul.f32 %v1940_v49, %v200_v44 }
 0x148   :  { %v1765_v52 = vpop.eup %1764  ;;  %v249_v53 = vmul.f32 %v1952_v62, %v230_v45  ;;  %v213_v54 = vmul.f32 %v1940_v49, %v195_v48 }
 0x149   :  { %v1767_v58 = vpop.eup %1766  ;;  %v282_v57 = vsel %vm45_vm0, %v254_v50, 0.0  ;;  %v236_v59 = vadd.f32 %v1946_v55, %v218_v51  ;;  %v201_v60 = vmul.f32 %v1765_v52, %v1912_v3 }
 0x14a   :  { %283 = vadd.xlane.f32.xlu1 %v282_v57  ;;  %v267_v2 = vsel %vm45_vm0, %v249_v53, 0.0  ;;  %v231_v61 = vadd.f32 %v1946_v55, %v213_v54  ;;  %v196_v28 = vmul.f32 %v1767_v58, %v1921_v12  ;;  %v1671_v53 = vld [vmem:[%s2608_s5 + $0x8] sm:$0xff]  ;;  %v320_v54 = vld [vmem:[%s2608_s5] sm:$0xff] }
 0x14b   :  { %268 = vadd.xlane.f32.xlu0 %v267_v2  ;;  %v255_v63 = vmul.f32 %v1952_v62, %v236_v59  ;;  %v219_v0 = vmul.f32 %v1940_v49, %v201_v60 }
 0x14c   :  { %v1769_v1 = vpop.eup %1768  ;;  %v250_v4 = vmul.f32 %v1952_v62, %v231_v61  ;;  %v214_v5 = vmul.f32 %v1940_v49, %v196_v28  ;;  %v1678_v28 = vld [vmem:[%s2608_s5 + $0x10] sm:$0xff] }
 0x14d   :  { %v285_v6 = vsel %vm45_vm0, %v255_v63, 0.0  ;;  %v237_v3 = vadd.f32 %v1946_v55, %v219_v0  ;;  %v202_v7 = vmul.f32 %v1769_v1, %v1924_v13  ;;  %v1721_v0 = vld [vmem:[%s2608_s5 + $0x18] sm:$0xff] }
 0x14e   :  { %286 = vadd.xlane.f32.xlu1 %v285_v6  ;;  %v270_v8 = vsel %vm45_vm0, %v250_v4, 0.0  ;;  %v232_v12 = vadd.f32 %v1946_v55, %v214_v5 }
 0x14f   :  { %271 = vadd.xlane.f32.xlu0 %v270_v8  ;;  %v256_v9 = vmul.f32 %v1952_v62, %v237_v3  ;;  %v220_v10 = vmul.f32 %v1940_v49, %v202_v7  ;;  %v1735_v3 = vld [vmem:[%s2608_s5 + $0x28] sm:$0xff] }
 0x150   :  { %v251_v11 = vmul.f32 %v1952_v62, %v232_v12 }
 0x151   :  { %v288_v14 = vsel %vm45_vm0, %v256_v9, 0.0  ;;  %v238_v15 = vadd.f32 %v1946_v55, %v220_v10  ;;  %v1692_v9 = vld [vmem:[%s2608_s5 + $0x20] sm:$0xff] }
 0x152   :  { %289 = vadd.xlane.f32.xlu1 %v288_v14  ;;  %v273_v16 = vsel %vm45_vm0, %v251_v11, 0.0 }
 0x153   :  { %274 = vadd.xlane.f32.xlu0 %v273_v16  ;;  %v257_v13 = vmul.f32 %v1952_v62, %v238_v15 }
 0x155   :  { %v291_v17 = vsel %vm45_vm0, %v257_v13, 0.0 }
 0x156   :  { %292 = vadd.xlane.f32.xlu1 %v291_v17 }
 0x1cb   :  { %v260_v36 = vpop.xlane.xlu0 %259 }
 0x1cc   :  { %v301_v24 = vadd.f32 %v1670_v21, %v260_v36 }
 0x1cf   :  { %v263_v49 = vpop.xlane.xlu1 %262 }
 0x1d0   :  { %v278_v19 = vpop.xlane.xlu0 %277  ;;  %v302_v22 = vadd.f32 %v1670_v21, %v263_v49 }
 0x1d1   :  { %v307_v37 = vadd.f32 %v1670_v21, %v278_v19 }
 0x1d2   :  { %v313_v27 = vadd.f32 %v302_v22, %v301_v24 }
 0x1d3   :  { %v281_v29 = vpop.xlane.xlu1 %280 }
 0x1d4   :  { %v266_v20 = vpop.xlane.xlu0 %265  ;;  %v308_v26 = vadd.f32 %v1670_v21, %v281_v29  ;;  %v361_v29 = vlaneseq }
 0x1d5   :  { %v303_v25 = vadd.f32 %v1670_v21, %v266_v20 }
 0x1d6   :  { %v997_v34 = vadd.f32 %v308_v26, %v307_v37  ;;  %v362_v20 = vshrl.u32 %v361_v29, 7  ;;  %vm2236_vm5 = vcmp.lt.s32.totalorder %v361_v29, 512  ;;  %v2248_v29 = vld [vmem:[%s2610_s6 + $0x50] sm:$0xff] }
 0x1d7   :  { %v284_v55 = vpop.xlane.xlu1 %283  ;;  %v314_v46 = vadd.f32 %v313_v27, %v303_v25  ;;  %v2042_v27 = vld [vmem:[%s2609_s7 + $0x4] sm:$0xf] }
 0x1d8   :  { %v269_v23 = vpop.xlane.xlu0 %268  ;;  %v309_v31 = vadd.f32 %v1670_v21, %v284_v55  ;;  %v2031_v55 = vsub.s32 0, %v362_v20 }
 0x1d9   :  { %v304_v62 = vadd.f32 %v1670_v21, %v269_v23  ;;  %v2033_v23 = vsub.s32 1, %v362_v20 }
 0x1da   :  { %v998_v40 = vadd.f32 %v997_v34, %v309_v31 }
 0x1db   :  { %v287_v30 = vpop.xlane.xlu1 %286  ;;  %v315_v38 = vadd.f32 %v314_v46, %v304_v62 }
 0x1dc   :  { %v272_v32 = vpop.xlane.xlu0 %271  ;;  %v310_v35 = vadd.f32 %v1670_v21, %v287_v30  ;;  %v2052_v30 = vld [vmem:[%s2609_s7 + $0x8] sm:$0xf] }
 0x1dd   :  { %v305_v33 = vadd.f32 %v1670_v21, %v272_v32  ;;  %v484_v32 = vrot.slane %v2042_v27, %v2033_v23 }
 0x1de   :  { %v999_v44 = vadd.f32 %v998_v40, %v310_v35  ;;  %v2078_v40 = vld [vmem:[%s2609_s7 + $0xc] sm:$0xf] }
 0x1df   :  { %v290_v39 = vpop.xlane.xlu1 %289  ;;  %v316_v47 = vadd.f32 %v315_v38, %v305_v33 }
 0x1e0   :  { %v311_v41 = vadd.f32 %v1670_v21, %v290_v39  ;;  %v275_v42 = vpop.xlane.xlu0 %274 }
 0x1e1   :  { %v306_v43 = vadd.f32 %v1670_v21, %v275_v42 }
 0x1e2   :  { %v1000_v48 = vadd.f32 %v999_v44, %v311_v41  ;;  %v2091_v44 = vld [vmem:[%s2609_s7 + $0x14] sm:$0xf] }
 0x1e3   :  { %v317_v56 = vadd.f32 %v316_v47, %v306_v43  ;;  %v293_v45 = vpop.xlane.xlu1 %292 }
 0x1e4   :  { %v312_v50 = vadd.f32 %v1670_v21, %v293_v45  ;;  %v1772_v21 = vmov 1966171168  }
 0x1e5   :  { %v318_v51 = vmul.f32 0.16666667, %v317_v56 }
 0x1e6   :  { %v1001_v52 = vadd.f32 %v1000_v48, %v312_v50 }
 0x1e7   :  { %v432_v58 = vsub.f32 %v302_v22, %v318_v51  ;;  %v319_v57 = vsub.f32 %v301_v24, %v318_v51  ;;  %v545_v61 = vsub.f32 %v303_v25, %v318_v51  ;;  %v658_v6 = vsub.f32 %v304_v62, %v318_v51  ;;  %v2047_v62 = vld [vmem:[%s2609_s7] sm:$0xf] }
 0x1e8   :  { %v1002_v59 = vmul.f32 0.16666667, %v1001_v52  ;;  %v771_v12 = vsub.f32 %v305_v33, %v318_v51  ;;  %v884_v10 = vsub.f32 %v306_v43, %v318_v51  ;;  %v404_v22 = vunpack.c.l.s4 %v1772_v21  ;;  %v2065_v33 = vld [vmem:[%s2609_s7 + $0xc] sm:$0xf]  ;;  %v2104_v51 = vld [vmem:[%s2609_s7 + $0x10] sm:$0xf] }
 0x1e9   :  { %v435_v60 = vadd.f32 %v1671_v53, %v432_v58  ;;  %v321_v2 = vadd.f32 %v320_v54, %v319_v57  ;;  %v548_v5 = vadd.f32 %v1678_v28, %v545_v61  ;;  %v661_v7 = vadd.f32 %v1721_v0, %v658_v6  ;;  %v2117_v57 = vld [vmem:[%s2609_s7 + $0x14] sm:$0xf] }
 0x1ea   :  { %v1333_v63 = vsub.f32 %v310_v35, %v1002_v59  ;;  %v1553_v4 = vsub.f32 %v312_v50, %v1002_v59  ;;  %v774_v11 = vadd.f32 %v1692_v9, %v771_v12  ;;  %v887_v14 = vadd.f32 %v1735_v3, %v884_v10  ;;  %v2160_v12 = vld [vmem:[%s2610_s6] sm:$0xff] }
 0x1eb   :  { %443 = vperm.xlu1 %1745, %v435_v60   ;;  %328 = vperm.xlu0 %1744, %v321_v2   ;;  %v1003_v15 = vsub.f32 %v307_v37, %v1002_v59  ;;  %v1113_v13 = vsub.f32 %v308_v26, %v1002_v59  ;;  %v1223_v18 = vsub.f32 %v309_v31, %v1002_v59  ;;  %v2035_v24 = vsub.s32 2, %v362_v20 }
 0x1ec   :  { %v1335_v1 = vadd.f32 %v1721_v0, %v1333_v63  ;;  %v1555_v8 = vadd.f32 %v1735_v3, %v1553_v4  ;;  %v1443_v49 = vsub.f32 %v311_v41, %v1002_v59  ;;  %v405_v25 = vunpack.c.0.s8 %v404_v22  ;;  %v1672_v63 = vld [vmem:[%s2610_s6 + $0x20] sm:$0xff]  ;;  %v1673_v0 = vld [vmem:[%s2610_s6 + $0x28] sm:$0xff] }
 0x1ed   :  { %v1005_v16 = vadd.f32 %v1003_v15, %v320_v54  ;;  %v1115_v17 = vadd.f32 %v1671_v53, %v1113_v13  ;;  %v1225_v36 = vadd.f32 %v1678_v28, %v1223_v18  ;;  %v2037_v26 = vsub.s32 3, %v362_v20  ;;  %v2130_v28 = vld [vmem:[%s2609_s7] sm:$0xf]  ;;  %v2149_v3 = vld [vmem:[%s2609_s7 + $0x4] sm:$0xf]  ;;  %v2173_v15 = vld [vmem:[%s2610_s6 + $0x8] sm:$0xff] }
 0x1ee   :  { %v1445_v19 = vadd.f32 %v1692_v9, %v1443_v49  ;;  %v2054_v37 = vsub.s32 %v405_v25, %v362_v20  ;;  %v480_v31 = vrot.slane %v2042_v27, %v2031_v55  ;;  %v488_v46 = vrot.slane %v2042_v27, %v2035_v24  ;;  %v2183_v13 = vld [vmem:[%s2610_s6 + $0x18] sm:$0xff] }
 0x1ef   :  { %556 = vperm.xlu1 %1745, %v548_v5   ;;  %1342 = vperm.xlu0 %1744, %v1335_v1   ;;  %v492_v34 = vrot.slane %v2042_v27, %v2037_v26  ;;  %v364_v35 = vrot.slane %v2047_v62, %v2031_v55  ;;  %v368_v38 = vrot.slane %v2047_v62, %v2033_v23 }
 0x1f0   :  { %v372_v39 = vrot.slane %v2047_v62, %v2035_v24  ;;  %v376_v41 = vrot.slane %v2047_v62, %v2037_v26  ;;  %v2243_v62 = vld [vmem:[%s2610_s6 + $0x48] sm:$0xff] }
 0x1f3   :  { %669 = vperm.xlu1 %1745, %v661_v7   ;;  %1562 = vperm.xlu0 %1744, %v1555_v8   ;;  %v1674_v7 = vld [vmem:[%s2610_s6 + $0x30] sm:$0xff]  ;;  %v1675_v8 = vld [vmem:[%s2610_s6 + $0x38] sm:$0xff] }
 0x1f7   :  { %782 = vperm.xlu1 %1745, %v774_v11  }
 0x1fb   :  { %895 = vperm.xlu1 %1745, %v887_v14  }
 0x1ff   :  { %1012 = vperm.xlu1 %1745, %v1005_v16   ;;  %v2178_v16 = vld [vmem:[%s2610_s6 + $0x10] sm:$0xff] }
 0x203   :  { %1122 = vperm.xlu1 %1745, %v1115_v17  }
 0x207   :  { %1232 = vperm.xlu1 %1745, %v1225_v36  }
 0x20b   :  { %1452 = vperm.xlu1 %1745, %v1445_v19  }
 0x26a   :  { %v444_v19 = vpop.permute.xlu1 %443  ;;  %v329_v20 = vpop.permute.xlu0 %328 }
 0x26b   :  { %v446_v17 = vmul.f32 %v1672_v63, %v444_v19  ;;  %v447_v14 = vmul.f32 %v1673_v0, %v444_v19  ;;  %v448_v36 = vmul.f32 %v1674_v7, %v444_v19  ;;  %v449_v11 = vmul.f32 %v1675_v8, %v444_v19 }
 0x26c   :  { %v331_v49 = vmul.f32 %v329_v20, %v2160_v12  ;;  %v332_v10 = vmul.f32 %v329_v20, %v2173_v15  ;;  %v333_v9 = vmul.f32 %v329_v20, %v2178_v16  ;;  %v334_v21 = vmul.f32 %v329_v20, %v2183_v13 }
 0x26d   :  { %v450_v6 = vrot.slane %v446_v17, 4  ;;  %v456_v22 = vrot.slane %v447_v14, 4  ;;  %v462_v5 = vrot.slane %v448_v36, 4  ;;  %v468_v4 = vrot.slane %v449_v11, 4 }
 0x26e   :  { %v335_v25 = vrot.slane %v331_v49, 4  ;;  %v341_v1 = vrot.slane %v332_v10, 4  ;;  %v347_v61 = vrot.slane %v333_v9, 4  ;;  %v353_v18 = vrot.slane %v334_v21, 4 }
 0x26f   :  { %v451_v63 = vadd.f32 %v450_v6, %v446_v17  ;;  %v457_v0 = vadd.f32 %v456_v22, %v447_v14  ;;  %v463_v7 = vadd.f32 %v462_v5, %v448_v36  ;;  %v469_v8 = vadd.f32 %v468_v4, %v449_v11 }
 0x270   :  { %v336_v19 = vadd.f32 %v335_v25, %v331_v49  ;;  %v342_v2 = vadd.f32 %v341_v1, %v332_v10  ;;  %v348_v60 = vadd.f32 %v347_v61, %v333_v9  ;;  %v354_v59 = vadd.f32 %v353_v18, %v334_v21 }
 0x271   :  { %v452_v58 = vrot.slane %v451_v63, 2  ;;  %v458_v54 = vrot.slane %v457_v0, 2  ;;  %v464_v53 = vrot.slane %v463_v7, 2  ;;  %v470_v20 = vrot.slane %v469_v8, 2 }
 0x272   :  { %v337_v52 = vrot.slane %v336_v19, 2  ;;  %v343_v50 = vrot.slane %v342_v2, 2  ;;  %v349_v48 = vrot.slane %v348_v60, 2  ;;  %v355_v45 = vrot.slane %v354_v59, 2 }
 0x273   :  { %v453_v56 = vadd.f32 %v452_v58, %v451_v63  ;;  %v459_v43 = vadd.f32 %v458_v54, %v457_v0  ;;  %v465_v47 = vadd.f32 %v464_v53, %v463_v7  ;;  %v471_v42 = vadd.f32 %v470_v20, %v469_v8 }
 0x274   :  { %v338_v6 = vadd.f32 %v337_v52, %v336_v19  ;;  %v344_v14 = vadd.f32 %v343_v50, %v342_v2  ;;  %v350_v5 = vadd.f32 %v349_v48, %v348_v60  ;;  %v356_v4 = vadd.f32 %v355_v45, %v354_v59 }
 0x275   :  { %v454_v11 = vrot.slane %v453_v56, 1  ;;  %v460_v1 = vrot.slane %v459_v43, 1  ;;  %v466_v61 = vrot.slane %v465_v47, 1  ;;  %v472_v9 = vrot.slane %v471_v42, 1 }
 0x276   :  { %v339_v10 = vrot.slane %v338_v6, 1  ;;  %v345_v17 = vrot.slane %v344_v14, 1  ;;  %v351_v18 = vrot.slane %v350_v5, 1  ;;  %v357_v36 = vrot.slane %v356_v4, 1 }
 0x277   :  { %v455_v49 = vadd.f32 %v454_v11, %v453_v56  ;;  %v461_v21 = vadd.f32 %v460_v1, %v459_v43  ;;  %v467_v22 = vadd.f32 %v466_v61, %v465_v47  ;;  %v473_v25 = vadd.f32 %v472_v9, %v471_v42  ;;  %v2220_v47 = vld [vmem:[%s2610_s6 + $0x40] sm:$0xff]  ;;  %v557_v43 = vpop.permute.xlu1 %556 }
 0x278   :  { %v340_v58 = vadd.f32 %v339_v10, %v338_v6  ;;  %v346_v54 = vadd.f32 %v345_v17, %v344_v14  ;;  %v352_v53 = vadd.f32 %v351_v18, %v350_v5  ;;  %v358_v63 = vadd.f32 %v357_v36, %v356_v4  ;;  %v2254_v14 = vld [vmem:[%s2610_s6 + $0x58] sm:$0xff]  ;;  %v2264_v9 = vld [vmem:[%s2610_s6 + $0x60] sm:$0xff]  ;;  %v1343_v10 = vpop.permute.xlu0 %1342 }
 0x279   :  { %v497_v45 = vadd.f32 %v480_v31, %v455_v49  ;;  %v498_v48 = vadd.f32 %v484_v32, %v461_v21  ;;  %v499_v50 = vadd.f32 %v488_v46, %v467_v22  ;;  %v500_v42 = vadd.f32 %v492_v34, %v473_v25 }
 0x27a   :  { %v381_v31 = vadd.f32 %v364_v35, %v340_v58  ;;  %v382_v32 = vadd.f32 %v368_v38, %v346_v54  ;;  %v383_v46 = vadd.f32 %v372_v39, %v352_v53  ;;  %v384_v27 = vadd.f32 %v376_v41, %v358_v63  ;;  %v2273_v54 = vld [vmem:[%s2610_s6 + $0x68] sm:$0xff]  ;;  %v2278_v53 = vld [vmem:[%s2610_s6 + $0x70] sm:$0xff] }
 0x27b   :  { %vm501_vm1 = vcmp.ge.f32.partialorder %v497_v45, 0.0  ;;  %vm502_vm2 = vcmp.ge.f32.partialorder %v498_v48, 0.0  ;;  %vm503_vm3 = vcmp.ge.f32.partialorder %v499_v50, 0.0  ;;  %vm504_vm4 = vcmp.ge.f32.partialorder %v500_v42, 0.0 }
 0x27c   :  { %v505_v34 = vmul.f32 0.22916667, %v497_v45  ;;  %v506_v56 = vmul.f32 0.22916667, %v498_v48  ;;  %v507_v52 = vmul.f32 0.22916667, %v499_v50  ;;  %v559_v35 = vmul.f32 %v2220_v47, %v557_v43 }
 0x27d   :  { %v508_v59 = vmul.f32 0.22916667, %v500_v42  ;;  %vm385_vm6 = vcmp.ge.f32.partialorder %v381_v31, 0.0  ;;  %vm386_vm7 = vcmp.ge.f32.partialorder %v382_v32, 0.0  ;;  %vm387_vm8 = vcmp.ge.f32.partialorder %v383_v46, 0.0 }
 0x27e   :  { %v509_v39 = vsel %vm501_vm1, %v497_v45, %v505_v34  ;;  %v510_v41 = vsel %vm502_vm2, %v498_v48, %v506_v56  ;;  %v511_v60 = vsel %vm503_vm3, %v499_v50, %v507_v52  ;;  %vm388_vm9 = vcmp.ge.f32.partialorder %v384_v27, 0.0 }
 0x27f   :  { %v512_v2 = vsel %vm504_vm4, %v500_v42, %v508_v59  ;;  %v517_v0 = vcombine.low %v509_v39, %v510_v41  ;;  %v389_v7 = vmul.f32 0.22916667, %v381_v31  ;;  %v390_v8 = vmul.f32 0.22916667, %v382_v32 }
 0x280   :  { %v518_v19 = vcombine.low %v511_v60, %v512_v2  ;;  %v391_v20 = vmul.f32 0.22916667, %v383_v46  ;;  %v392_v6 = vmul.f32 0.22916667, %v384_v27  ;;  %v560_v5 = vmul.f32 %v2243_v62, %v557_v43 }
 0x281   :  { %v525_v4 = vrot.slane %v517_v0, %v2054_v37  ;;  %v393_v11 = vsel %vm385_vm6, %v381_v31, %v389_v7  ;;  %v394_v1 = vsel %vm386_vm7, %v382_v32, %v390_v8  ;;  %v561_v61 = vmul.f32 %v2248_v29, %v557_v43 }
 0x282   :  { %v532_v17 = vrot.slane %v518_v19, %v2054_v37  ;;  %v395_v18 = vsel %vm387_vm8, %v383_v46, %v391_v20  ;;  %v396_v36 = vsel %vm388_vm9, %v384_v27, %v392_v6  ;;  %v401_v49 = vcombine.low %v393_v11, %v394_v1  ;;  %v2286_v46 = vld [vmem:[%s2610_s6 + $0x78] sm:$0xff] }
 0x283   :  { %v402_v21 = vcombine.low %v395_v18, %v396_v36  ;;  %v562_v22 = vmul.f32 %v2254_v14, %v557_v43  ;;  %v563_v25 = vrot.slane %v559_v35, 4  ;;  %v569_v58 = vrot.slane %v560_v5, 4 }
 0x284   :  { %v533_v63 = vcombine.low %v525_v4, %v532_v17  ;;  %v409_v45 = vrot.slane %v401_v49, %v2054_v37  ;;  %v575_v48 = vrot.slane %v561_v61, 4  ;;  %v1345_v50 = vmul.f32 %v2264_v9, %v1343_v10 }
 0x285   :  { %v416_v42 = vrot.slane %v402_v21, %v2054_v37  ;;  %v564_v43 = vadd.f32 %v563_v25, %v559_v35  ;;  %v570_v31 = vadd.f32 %v569_v58, %v560_v5  ;;  %v581_v32 = vrot.slane %v562_v22, 4 }
 0x286   :  { %v540_v27 = vrot.slane %v533_v63, %v2054_v37  ;;  %v576_v34 = vadd.f32 %v575_v48, %v561_v61  ;;  %v1346_v56 = vmul.f32 %v2273_v54, %v1343_v10  ;;  %v1347_v52 = vmul.f32 %v2278_v53, %v1343_v10 }
 0x287   :  { %v417_v59 = vcombine.low %v409_v45, %v416_v42  ;;  %v565_v39 = vrot.slane %v564_v43, 2  ;;  %v571_v41 = vrot.slane %v570_v31, 2  ;;  %v582_v60 = vadd.f32 %v581_v32, %v562_v22 }
 0x288   :  { %1677 = vst.msk [vmem:[%s2611_s8 + $0x1] ss:$8 sm:$0xf] %vm2236_vm5, %v540_v27  ;;  %v577_v35 = vrot.slane %v576_v34, 2  ;;  %v1348_v2 = vmul.f32 %v2286_v46, %v1343_v10  ;;  %v1349_v0 = vrot.slane %v1345_v50, 4  ;;  %v1355_v7 = vrot.slane %v1346_v56, 4 }
 0x289   :  { %v424_v8 = vrot.slane %v417_v59, %v2054_v37  ;;  %v566_v19 = vadd.f32 %v565_v39, %v564_v43  ;;  %v572_v20 = vadd.f32 %v571_v41, %v570_v31  ;;  %v583_v6 = vrot.slane %v582_v60, 2 }
 0x28a   :  { %v578_v5 = vadd.f32 %v577_v35, %v576_v34  ;;  %v1350_v4 = vadd.f32 %v1349_v0, %v1345_v50  ;;  %v1356_v11 = vadd.f32 %v1355_v7, %v1346_v56  ;;  %v1361_v1 = vrot.slane %v1347_v52, 4 }
 0x28b   :  { %430 = vst.msk [vmem:[%s2611_s8] ss:$8 sm:$0xf] %vm2236_vm5, %v424_v8  ;;  %v567_v61 = vrot.slane %v566_v19, 1  ;;  %v573_v17 = vrot.slane %v572_v20, 1  ;;  %v584_v10 = vadd.f32 %v583_v6, %v582_v60  ;;  %v1367_v18 = vrot.slane %v1348_v2, 4 }
 0x28c   :  { %v579_v36 = vrot.slane %v578_v5, 1  ;;  %v1351_v49 = vrot.slane %v1350_v4, 2  ;;  %v1357_v21 = vrot.slane %v1356_v11, 2  ;;  %v1362_v22 = vadd.f32 %v1361_v1, %v1347_v52 }
 0x28d   :  { %v568_v25 = vadd.f32 %v567_v61, %v566_v19  ;;  %v574_v58 = vadd.f32 %v573_v17, %v572_v20  ;;  %v585_v63 = vrot.slane %v584_v10, 1  ;;  %v1368_v45 = vadd.f32 %v1367_v18, %v1348_v2 }
 0x28e   :  { %v580_v48 = vadd.f32 %v579_v36, %v578_v5  ;;  %v1352_v50 = vadd.f32 %v1351_v49, %v1350_v4  ;;  %v1358_v42 = vadd.f32 %v1357_v21, %v1356_v11  ;;  %v1363_v43 = vrot.slane %v1362_v22, 2  ;;  %v670_v11 = vpop.permute.xlu1 %669 }
 0x28f   :  { %v586_v31 = vadd.f32 %v585_v63, %v584_v10  ;;  %v2614_v32 = vrot.slane %v2052_v30, %v2031_v55  ;;  %v2615_v34 = vrot.slane %v2052_v30, %v2033_v23  ;;  %v1369_v59 = vrot.slane %v1368_v45, 2 }
 0x290   :  { %v2616_v52 = vrot.slane %v2052_v30, %v2035_v24  ;;  %v1353_v41 = vrot.slane %v1352_v50, 1  ;;  %v1359_v60 = vrot.slane %v1358_v42, 1  ;;  %v1364_v35 = vadd.f32 %v1363_v43, %v1362_v22 }
 0x291   :  { %v610_v27 = vadd.f32 %v2614_v32, %v568_v25  ;;  %v611_v56 = vadd.f32 %v2615_v34, %v574_v58  ;;  %v2617_v2 = vrot.slane %v2052_v30, %v2037_v26  ;;  %v1370_v10 = vadd.f32 %v1369_v59, %v1368_v45 }
 0x292   :  { %v612_v39 = vadd.f32 %v2616_v52, %v580_v48  ;;  %v1354_v20 = vadd.f32 %v1353_v41, %v1352_v50  ;;  %v1360_v4 = vadd.f32 %v1359_v60, %v1358_v42  ;;  %v1365_v17 = vrot.slane %v1364_v35, 1 }
 0x293   :  { %v613_v0 = vadd.f32 %v2617_v2, %v586_v31  ;;  %vm614_vm10 = vcmp.ge.f32.partialorder %v610_v27, 0.0  ;;  %vm615_vm11 = vcmp.ge.f32.partialorder %v611_v56, 0.0  ;;  %v618_v7 = vmul.f32 0.22916667, %v610_v27 }
 0x294   :  { %vm616_vm12 = vcmp.ge.f32.partialorder %v612_v39, 0.0  ;;  %v619_v8 = vmul.f32 0.22916667, %v611_v56  ;;  %v620_v19 = vmul.f32 0.22916667, %v612_v39  ;;  %v2618_v30 = vrot.slane %v2065_v33, %v2031_v55 }
 0x295   :  { %vm617_vm13 = vcmp.ge.f32.partialorder %v613_v0, 0.0  ;;  %v621_v6 = vmul.f32 0.22916667, %v613_v0  ;;  %v622_v5 = vsel %vm614_vm10, %v610_v27, %v618_v7  ;;  %v2619_v21 = vrot.slane %v2065_v33, %v2033_v23 }
 0x296   :  { %v623_v1 = vsel %vm615_vm11, %v611_v56, %v619_v8  ;;  %v624_v61 = vsel %vm616_vm12, %v612_v39, %v620_v19  ;;  %v1395_v49 = vadd.f32 %v2618_v30, %v1354_v20  ;;  %v1366_v58 = vadd.f32 %v1365_v17, %v1364_v35  ;;  %v2336_v8 = vld [vmem:[%s2610_s6 + $0xa0] sm:$0xff] }
 0x297   :  { %v625_v18 = vsel %vm617_vm13, %v613_v0, %v621_v6  ;;  %v630_v36 = vcombine.low %v622_v5, %v623_v1  ;;  %v1396_v22 = vadd.f32 %v2619_v21, %v1360_v4  ;;  %v1371_v63 = vrot.slane %v1370_v10, 1  ;;  %v2352_v1 = vld [vmem:[%s2610_s6 + $0xb8] sm:$0xff] }
 0x298   :  { %v631_v25 = vcombine.low %v624_v61, %v625_v18  ;;  %v672_v48 = vmul.f32 %v2264_v9, %v670_v11  ;;  %vm1399_vm14 = vcmp.ge.f32.partialorder %v1395_v49, 0.0  ;;  %v1403_v45 = vmul.f32 0.22916667, %v1395_v49 }
 0x299   :  { %v638_v50 = vrot.slane %v630_v36, %v2054_v37  ;;  %vm1400_vm15 = vcmp.ge.f32.partialorder %v1396_v22, 0.0  ;;  %v1372_v43 = vadd.f32 %v1371_v63, %v1370_v10  ;;  %v2620_v31 = vrot.slane %v2065_v33, %v2035_v24 }
 0x29a   :  { %v645_v42 = vrot.slane %v631_v25, %v2054_v37  ;;  %v1404_v27 = vmul.f32 0.22916667, %v1396_v22  ;;  %v1407_v34 = vsel %vm1399_vm14, %v1395_v49, %v1403_v45  ;;  %v673_v56 = vmul.f32 %v2273_v54, %v670_v11  ;;  %v2341_v54 = vld [vmem:[%s2610_s6 + $0xa8] sm:$0xff] }
 0x29b   :  { %v1397_v32 = vadd.f32 %v2620_v31, %v1366_v58  ;;  %v674_v59 = vmul.f32 %v2278_v53, %v670_v11  ;;  %v675_v9 = vmul.f32 %v2286_v46, %v670_v11  ;;  %v2621_v39 = vrot.slane %v2065_v33, %v2037_v26  ;;  %v1563_v53 = vpop.permute.xlu0 %1562  ;;  %v2347_v11 = vld [vmem:[%s2610_s6 + $0xb0] sm:$0xff] }
 0x29c   :  { %v646_v52 = vcombine.low %v638_v50, %v645_v42  ;;  %v1408_v35 = vsel %vm1400_vm15, %v1396_v22, %v1404_v27  ;;  %v676_v2 = vrot.slane %v672_v48, 4  ;;  %v682_v0 = vrot.slane %v673_v56, 4 }
 0x29d   :  { %v1398_v41 = vadd.f32 %v2621_v39, %v1372_v43  ;;  %vm1401_vm0 = vcmp.ge.f32.partialorder %v1397_v32, 0.0  ;;  %v1405_v60 = vmul.f32 0.22916667, %v1397_v32  ;;  %v688_v7 = vrot.slane %v674_v59, 4 }
 0x29e   :  { %v653_v33 = vrot.slane %v646_v52, %v2054_v37  ;;  %v1415_v20 = vcombine.low %v1407_v34, %v1408_v35  ;;  %v677_v6 = vadd.f32 %v676_v2, %v672_v48  ;;  %v683_v5 = vadd.f32 %v682_v0, %v673_v56 }
 0x29f   :  { %vm1402_vm1 = vcmp.ge.f32.partialorder %v1398_v41, 0.0  ;;  %v1406_v46 = vmul.f32 0.22916667, %v1398_v41  ;;  %v1409_v19 = vsel %vm1401_vm0, %v1397_v32, %v1405_v60  ;;  %v689_v4 = vadd.f32 %v688_v7, %v674_v59 }
 0x2a0   :  { %1684 = vst.msk [vmem:[%s2611_s8 + $0x2] ss:$8 sm:$0xf] %vm2236_vm5, %v653_v33  ;;  %v694_v17 = vrot.slane %v675_v9, 4  ;;  %v1565_v10 = vmul.f32 %v2336_v8, %v1563_v53  ;;  %v1566_v18 = vmul.f32 %v2341_v54, %v1563_v53  ;;  %v1423_v30 = vrot.slane %v1415_v20, %v2054_v37 }
 0x2a1   :  { %v1410_v61 = vsel %vm1402_vm1, %v1398_v41, %v1406_v46  ;;  %v678_v49 = vrot.slane %v677_v6, 2  ;;  %v684_v21 = vrot.slane %v683_v5, 2  ;;  %v690_v22 = vrot.slane %v689_v4, 2 }
 0x2a2   :  { %v1416_v36 = vcombine.low %v1409_v19, %v1410_v61  ;;  %v695_v25 = vadd.f32 %v694_v17, %v675_v9  ;;  %v1567_v58 = vmul.f32 %v2347_v11, %v1563_v53  ;;  %v1568_v63 = vmul.f32 %v2352_v1, %v1563_v53 }
 0x2a3   :  { %v679_v50 = vadd.f32 %v678_v49, %v677_v6  ;;  %v685_v45 = vadd.f32 %v684_v21, %v683_v5  ;;  %v1569_v42 = vrot.slane %v1565_v10, 4  ;;  %v691_v43 = vadd.f32 %v690_v22, %v689_v4 }
 0x2a4   :  { %v1430_v48 = vrot.slane %v1416_v36, %v2054_v37  ;;  %v696_v31 = vrot.slane %v695_v25, 2  ;;  %v1575_v32 = vrot.slane %v1566_v18, 4  ;;  %v1581_v27 = vrot.slane %v1567_v58, 4 }
 0x2a5   :  { %v680_v56 = vrot.slane %v679_v50, 1  ;;  %v686_v59 = vrot.slane %v685_v45, 1  ;;  %v1570_v52 = vadd.f32 %v1569_v42, %v1565_v10  ;;  %v692_v39 = vrot.slane %v691_v43, 1 }
 0x2a6   :  { %v1431_v34 = vcombine.low %v1423_v30, %v1430_v48  ;;  %v697_v41 = vadd.f32 %v696_v31, %v695_v25  ;;  %v1576_v9 = vadd.f32 %v1575_v32, %v1566_v18  ;;  %v1582_v60 = vadd.f32 %v1581_v27, %v1567_v58  ;;  %v2386_v32 = vld [vmem:[%s2610_s6 + $0x80] sm:$0xff]  ;;  %v2391_v27 = vld [vmem:[%s2610_s6 + $0x88] sm:$0xff] }
 0x2a7   :  { %v681_v2 = vadd.f32 %v680_v56, %v679_v50  ;;  %v687_v0 = vadd.f32 %v686_v59, %v685_v45  ;;  %v1571_v7 = vrot.slane %v1570_v52, 2  ;;  %v693_v53 = vadd.f32 %v692_v39, %v691_v43 }
 0x2a8   :  { %v1438_v35 = vrot.slane %v1431_v34, %v2054_v37  ;;  %v698_v33 = vrot.slane %v697_v41, 1  ;;  %v1577_v46 = vrot.slane %v1576_v9, 2  ;;  %v1583_v19 = vrot.slane %v1582_v60, 2  ;;  %v783_v34 = vpop.permute.xlu1 %782 }
 0x2a9   :  { %v2622_v20 = vrot.slane %v2078_v40, %v2031_v55  ;;  %v2623_v5 = vrot.slane %v2078_v40, %v2033_v23  ;;  %v1572_v61 = vadd.f32 %v1571_v7, %v1570_v52  ;;  %v1587_v17 = vrot.slane %v1568_v63, 4 }
 0x2aa   :  { %1727 = vst.msk [vmem:[%s2611_s8 + $0x21] ss:$8 sm:$0xf] %vm2236_vm5, %v1438_v35  ;;  %v699_v10 = vadd.f32 %v698_v33, %v697_v41  ;;  %v2624_v18 = vrot.slane %v2078_v40, %v2035_v24  ;;  %v1578_v30 = vadd.f32 %v1577_v46, %v1576_v9  ;;  %v1584_v49 = vadd.f32 %v1583_v19, %v1582_v60  ;;  %v2396_v60 = vld [vmem:[%s2610_s6 + $0x90] sm:$0xff]  ;;  %v2401_v35 = vld [vmem:[%s2610_s6 + $0x98] sm:$0xff] }
 0x2ab   :  { %v723_v6 = vadd.f32 %v2622_v20, %v681_v2  ;;  %v724_v4 = vadd.f32 %v2623_v5, %v687_v0  ;;  %v2625_v25 = vrot.slane %v2078_v40, %v2037_v26  ;;  %v1573_v50 = vrot.slane %v1572_v61, 1 }
 0x2ac   :  { %v725_v36 = vadd.f32 %v2624_v18, %v693_v53  ;;  %v1579_v43 = vrot.slane %v1578_v30, 1  ;;  %v1585_v31 = vrot.slane %v1584_v49, 1  ;;  %v1588_v9 = vadd.f32 %v1587_v17, %v1568_v63 }
 0x2ad   :  { %vm727_vm2 = vcmp.ge.f32.partialorder %v723_v6, 0.0  ;;  %vm728_vm3 = vcmp.ge.f32.partialorder %v724_v4, 0.0  ;;  %v731_v21 = vmul.f32 0.22916667, %v723_v6  ;;  %v732_v22 = vmul.f32 0.22916667, %v724_v4 }
 0x2ae   :  { %v726_v58 = vadd.f32 %v2625_v25, %v699_v10  ;;  %vm729_vm4 = vcmp.ge.f32.partialorder %v725_v36, 0.0  ;;  %v733_v48 = vmul.f32 0.22916667, %v725_v36  ;;  %v1574_v52 = vadd.f32 %v1573_v50, %v1572_v61 }
 0x2af   :  { %v735_v45 = vsel %vm727_vm2, %v723_v6, %v731_v21  ;;  %v736_v42 = vsel %vm728_vm3, %v724_v4, %v732_v22  ;;  %v1580_v39 = vadd.f32 %v1579_v43, %v1578_v30  ;;  %v1586_v41 = vadd.f32 %v1585_v31, %v1584_v49  ;;  %v896_v31 = vpop.permute.xlu1 %895 }
 0x2b0   :  { %vm730_vm6 = vcmp.ge.f32.partialorder %v726_v58, 0.0  ;;  %v734_v40 = vmul.f32 0.22916667, %v726_v58  ;;  %v737_v56 = vsel %vm729_vm4, %v725_v36, %v733_v48  ;;  %v743_v59 = vcombine.low %v735_v45, %v736_v42 }
 0x2b1   :  { %v785_v7 = vmul.f32 %v2386_v32, %v783_v34  ;;  %v786_v53 = vmul.f32 %v2391_v27, %v783_v34  ;;  %v1589_v46 = vrot.slane %v1588_v9, 2  ;;  %v2626_v63 = vrot.slane %v2091_v44, %v2031_v55 }
 0x2b2   :  { %v738_v2 = vsel %vm730_vm6, %v726_v58, %v734_v40  ;;  %v751_v0 = vrot.slane %v743_v59, %v2054_v37  ;;  %v2627_v20 = vrot.slane %v2091_v44, %v2033_v23  ;;  %v2628_v5 = vrot.slane %v2091_v44, %v2035_v24 }
 0x2b3   :  { %v744_v33 = vcombine.low %v737_v56, %v738_v2  ;;  %v1615_v19 = vadd.f32 %v2626_v63, %v1574_v52  ;;  %v787_v61 = vmul.f32 %v2396_v60, %v783_v34  ;;  %v788_v17 = vmul.f32 %v2401_v35, %v783_v34 }
 0x2b4   :  { %v1616_v6 = vadd.f32 %v2627_v20, %v1580_v39  ;;  %v1617_v4 = vadd.f32 %v2628_v5, %v1586_v41  ;;  %v789_v10 = vrot.slane %v785_v7, 4  ;;  %v1590_v36 = vadd.f32 %v1589_v46, %v1588_v9 }
 0x2b5   :  { %v758_v18 = vrot.slane %v744_v33, %v2054_v37  ;;  %vm1619_vm7 = vcmp.ge.f32.partialorder %v1615_v19, 0.0  ;;  %v1623_v30 = vmul.f32 0.22916667, %v1615_v19  ;;  %v795_v48 = vrot.slane %v786_v53, 4 }
 0x2b6   :  { %vm1620_vm8 = vcmp.ge.f32.partialorder %v1616_v6, 0.0  ;;  %vm1621_vm9 = vcmp.ge.f32.partialorder %v1617_v4, 0.0  ;;  %v1624_v49 = vmul.f32 0.22916667, %v1616_v6  ;;  %v790_v21 = vadd.f32 %v789_v10, %v785_v7 }
 0x2b7   :  { %v759_v22 = vcombine.low %v751_v0, %v758_v18  ;;  %v1591_v25 = vrot.slane %v1590_v36, 1  ;;  %v1625_v58 = vmul.f32 0.22916667, %v1617_v4  ;;  %v1627_v50 = vsel %vm1619_vm7, %v1615_v19, %v1623_v30 }
 0x2b8   :  { %v1628_v45 = vsel %vm1620_vm8, %v1616_v6, %v1624_v49  ;;  %v791_v42 = vrot.slane %v790_v21, 2  ;;  %v801_v43 = vrot.slane %v787_v61, 4  ;;  %v796_v39 = vadd.f32 %v795_v48, %v786_v53 }
 0x2b9   :  { %v766_v34 = vrot.slane %v759_v22, %v2054_v37  ;;  %v1592_v40 = vadd.f32 %v1591_v25, %v1590_v36  ;;  %v1629_v56 = vsel %vm1621_vm9, %v1617_v4, %v1625_v58  ;;  %v1635_v59 = vcombine.low %v1627_v50, %v1628_v45 }
 0x2ba   :  { %v792_v52 = vadd.f32 %v791_v42, %v790_v21  ;;  %v802_v41 = vadd.f32 %v801_v43, %v787_v61  ;;  %v807_v9 = vrot.slane %v788_v17, 4  ;;  %v2629_v2 = vrot.slane %v2091_v44, %v2037_v26 }
 0x2bb   :  { %1691 = vst.msk [vmem:[%s2611_s8 + $0x3] ss:$8 sm:$0xf] %vm2236_vm5, %v766_v34  ;;  %v1643_v7 = vrot.slane %v1635_v59, %v2054_v37  ;;  %v898_v33 = vmul.f32 %v2336_v8, %v896_v31  ;;  %v899_v46 = vmul.f32 %v2341_v54, %v896_v31  ;;  %v797_v53 = vrot.slane %v796_v39, 2 }
 0x2bc   :  { %v1618_v0 = vadd.f32 %v2629_v2, %v1592_v40  ;;  %v793_v63 = vrot.slane %v792_v52, 1  ;;  %v803_v19 = vrot.slane %v802_v41, 2  ;;  %v808_v20 = vadd.f32 %v807_v9, %v788_v17 }
 0x2bd   :  { %v900_v5 = vmul.f32 %v2347_v11, %v896_v31  ;;  %v901_v4 = vmul.f32 %v2352_v1, %v896_v31  ;;  %v798_v10 = vadd.f32 %v797_v53, %v796_v39  ;;  %v902_v30 = vrot.slane %v898_v33, 4 }
 0x2be   :  { %vm1622_vm10 = vcmp.ge.f32.partialorder %v1618_v0, 0.0  ;;  %v1626_v6 = vmul.f32 0.22916667, %v1618_v0  ;;  %v794_v61 = vadd.f32 %v793_v63, %v792_v52  ;;  %v804_v44 = vadd.f32 %v803_v19, %v802_v41 }
 0x2bf   :  { %v809_v18 = vrot.slane %v808_v20, 2  ;;  %v908_v49 = vrot.slane %v899_v46, 4  ;;  %v914_v8 = vrot.slane %v900_v5, 4  ;;  %v799_v54 = vrot.slane %v798_v10, 1 }
 0x2c0   :  { %v1630_v36 = vsel %vm1622_vm10, %v1618_v0, %v1626_v6  ;;  %v805_v22 = vrot.slane %v804_v44, 1  ;;  %v2630_v17 = vrot.slane %v2104_v51, %v2031_v55  ;;  %v903_v48 = vadd.f32 %v902_v30, %v898_v33 }
 0x2c1   :  { %v1636_v21 = vcombine.low %v1629_v56, %v1630_v36  ;;  %v810_v25 = vadd.f32 %v809_v18, %v808_v20  ;;  %v909_v11 = vadd.f32 %v908_v49, %v899_v46  ;;  %v915_v50 = vadd.f32 %v914_v8, %v900_v5  ;;  %v1013_v18 = vpop.permute.xlu1 %1012 }
 0x2c2   :  { %v836_v58 = vadd.f32 %v2630_v17, %v794_v61  ;;  %v800_v45 = vadd.f32 %v799_v54, %v798_v10  ;;  %v806_v42 = vadd.f32 %v805_v22, %v804_v44  ;;  %v904_v34 = vrot.slane %v903_v48, 2 }
 0x2c3   :  { %v1650_v1 = vrot.slane %v1636_v21, %v2054_v37  ;;  %v811_v43 = vrot.slane %v810_v25, 1  ;;  %v910_v40 = vrot.slane %v909_v11, 2  ;;  %v2631_v52 = vrot.slane %v2104_v51, %v2033_v23 }
 0x2c4   :  { %vm840_vm11 = vcmp.ge.f32.partialorder %v836_v58, 0.0  ;;  %v844_v31 = vmul.f32 0.22916667, %v836_v58  ;;  %v2632_v41 = vrot.slane %v2104_v51, %v2035_v24  ;;  %v905_v0 = vadd.f32 %v904_v34, %v903_v48 }
 0x2c5   :  { %v1651_v56 = vcombine.low %v1643_v7, %v1650_v1  ;;  %v812_v59 = vadd.f32 %v811_v43, %v810_v25  ;;  %v837_v39 = vadd.f32 %v2631_v52, %v800_v45  ;;  %v911_v33 = vadd.f32 %v910_v40, %v909_v11 }
 0x2c6   :  { %v838_v9 = vadd.f32 %v2632_v41, %v806_v42  ;;  %v848_v2 = vsel %vm840_vm11, %v836_v58, %v844_v31  ;;  %v916_v46 = vrot.slane %v915_v50, 2  ;;  %v2633_v53 = vrot.slane %v2104_v51, %v2037_v26 }
 0x2c7   :  { %v1658_v63 = vrot.slane %v1651_v56, %v2054_v37  ;;  %vm841_vm12 = vcmp.ge.f32.partialorder %v837_v39, 0.0  ;;  %v845_v7 = vmul.f32 0.22916667, %v837_v39  ;;  %v906_v6 = vrot.slane %v905_v0, 1 }
 0x2c8   :  { %v839_v19 = vadd.f32 %v2633_v53, %v812_v59  ;;  %vm842_vm13 = vcmp.ge.f32.partialorder %v838_v9, 0.0  ;;  %v846_v20 = vmul.f32 0.22916667, %v838_v9  ;;  %v912_v5 = vrot.slane %v911_v33, 1 }
 0x2c9   :  { %1741 = vst.msk [vmem:[%s2611_s8 + $0x23] ss:$8 sm:$0xf] %vm2236_vm5, %v1658_v63  ;;  %v917_v10 = vadd.f32 %v916_v46, %v915_v50  ;;  %v920_v44 = vrot.slane %v901_v4, 4  ;;  %v849_v36 = vsel %vm841_vm12, %v837_v39, %v845_v7  ;;  %v907_v30 = vadd.f32 %v906_v6, %v905_v0  ;;  %v1123_v46 = vpop.permute.xlu1 %1122 }
 0x2ca   :  { %vm843_vm14 = vcmp.ge.f32.partialorder %v839_v19, 0.0  ;;  %v847_v61 = vmul.f32 0.22916667, %v839_v19  ;;  %v850_v51 = vsel %vm842_vm13, %v838_v9, %v846_v20  ;;  %v913_v49 = vadd.f32 %v912_v5, %v911_v33  ;;  %v1708_v33 = vld [vmem:[%s2610_s6 + $0x20] sm:$0xff] }
 0x2cb   :  { %v856_v21 = vcombine.low %v848_v2, %v849_v36  ;;  %v918_v54 = vrot.slane %v917_v10, 1  ;;  %v921_v22 = vadd.f32 %v920_v44, %v901_v4  ;;  %v2634_v17 = vrot.slane %v2117_v57, %v2031_v55 }
 0x2cc   :  { %v851_v8 = vsel %vm843_vm14, %v839_v19, %v847_v61  ;;  %v2635_v48 = vrot.slane %v2117_v57, %v2033_v23  ;;  %v1015_v50 = vmul.f32 %v1013_v18, %v2160_v12  ;;  %v1016_v43 = vmul.f32 %v1013_v18, %v2173_v15  ;;  %v1710_v61 = vld [vmem:[%s2610_s6 + $0x30] sm:$0xff] }
 0x2cd   :  { %v857_v25 = vcombine.low %v850_v51, %v851_v8  ;;  %v949_v58 = vadd.f32 %v2634_v17, %v907_v30  ;;  %v864_v1 = vrot.slane %v856_v21, %v2054_v37  ;;  %v919_v45 = vadd.f32 %v918_v54, %v917_v10  ;;  %v1711_v10 = vld [vmem:[%s2610_s6 + $0x38] sm:$0xff] }
 0x2ce   :  { %v950_v11 = vadd.f32 %v2635_v48, %v913_v49  ;;  %v922_v42 = vrot.slane %v921_v22, 2  ;;  %v2636_v40 = vrot.slane %v2117_v57, %v2035_v24  ;;  %v1017_v52 = vmul.f32 %v1013_v18, %v2178_v16  ;;  %v1709_v16 = vld [vmem:[%s2610_s6 + $0x28] sm:$0xff] }
 0x2cf   :  { %v871_v31 = vrot.slane %v857_v25, %v2054_v37  ;;  %vm953_vm15 = vcmp.ge.f32.partialorder %v949_v58, 0.0  ;;  %v957_v4 = vmul.f32 0.22916667, %v949_v58  ;;  %v1018_v41 = vmul.f32 %v1013_v18, %v2183_v13 }
 0x2d0   :  { %vm954_vm0 = vcmp.ge.f32.partialorder %v950_v11, 0.0  ;;  %v923_v34 = vadd.f32 %v922_v42, %v921_v22  ;;  %v951_v56 = vadd.f32 %v2636_v40, %v919_v45  ;;  %v958_v59 = vmul.f32 0.22916667, %v950_v11 }
 0x2d1   :  { %v872_v12 = vcombine.low %v864_v1, %v871_v31  ;;  %v961_v39 = vsel %vm953_vm15, %v949_v58, %v957_v4  ;;  %v1019_v9 = vrot.slane %v1015_v50, 4  ;;  %v1025_v7 = vrot.slane %v1016_v43, 4 }
 0x2d2   :  { %v924_v2 = vrot.slane %v923_v34, 1  ;;  %vm955_vm1 = vcmp.ge.f32.partialorder %v951_v56, 0.0  ;;  %v959_v15 = vmul.f32 0.22916667, %v951_v56  ;;  %v962_v0 = vsel %vm954_vm0, %v950_v11, %v958_v59 }
 0x2d3   :  { %v879_v63 = vrot.slane %v872_v12, %v2054_v37  ;;  %v969_v53 = vcombine.low %v961_v39, %v962_v0  ;;  %v1020_v19 = vadd.f32 %v1019_v9, %v1015_v50  ;;  %v1031_v6 = vrot.slane %v1017_v52, 4 }
 0x2d4   :  { %v925_v13 = vadd.f32 %v924_v2, %v923_v34  ;;  %v963_v20 = vsel %vm955_vm1, %v951_v56, %v959_v15  ;;  %v1037_v5 = vrot.slane %v1018_v41, 4  ;;  %v1026_v36 = vadd.f32 %v1025_v7, %v1016_v43 }
 0x2d5   :  { %1698 = vst.msk [vmem:[%s2611_s8 + $0x4] ss:$8 sm:$0xf] %vm2236_vm5, %v879_v63  ;;  %v977_v44 = vrot.slane %v969_v53, %v2054_v37  ;;  %v1021_v18 = vrot.slane %v1020_v19, 2  ;;  %v1125_v51 = vmul.f32 %v1708_v33, %v1123_v46  ;;  %v2637_v30 = vrot.slane %v2117_v57, %v2037_v26 }
 0x2d6   :  { %v1032_v8 = vadd.f32 %v1031_v6, %v1017_v52  ;;  %v1038_v21 = vadd.f32 %v1037_v5, %v1018_v41  ;;  %v1126_v54 = vmul.f32 %v1709_v16, %v1123_v46  ;;  %v1027_v25 = vrot.slane %v1026_v36, 2 }
 0x2d7   :  { %v952_v49 = vadd.f32 %v2637_v30, %v925_v13  ;;  %v1022_v22 = vadd.f32 %v1021_v18, %v1020_v19  ;;  %v1127_v17 = vmul.f32 %v1710_v61, %v1123_v46  ;;  %v2488_v58 = vmul.f32 %v1711_v10, %v1123_v46 }
 0x2d8   :  { %v1033_v11 = vrot.slane %v1032_v8, 2  ;;  %v1039_v50 = vrot.slane %v1038_v21, 2  ;;  %v1028_v45 = vadd.f32 %v1027_v25, %v1026_v36  ;;  %v1129_v42 = vrot.slane %v1125_v51, 4 }
 0x2d9   :  { %vm956_vm2 = vcmp.ge.f32.partialorder %v952_v49, 0.0  ;;  %v960_v48 = vmul.f32 0.22916667, %v952_v49  ;;  %v1023_v1 = vrot.slane %v1022_v22, 1  ;;  %v1135_v43 = vrot.slane %v1126_v54, 4 }
 0x2da   :  { %v1034_v4 = vadd.f32 %v1033_v11, %v1032_v8  ;;  %v1040_v57 = vadd.f32 %v1039_v50, %v1038_v21  ;;  %v1141_v34 = vrot.slane %v1127_v17, 4  ;;  %v1029_v59 = vrot.slane %v1028_v45, 1 }
 0x2db   :  { %v964_v31 = vsel %vm956_vm2, %v952_v49, %v960_v48  ;;  %v1024_v56 = vadd.f32 %v1023_v1, %v1022_v22  ;;  %v1130_v52 = vadd.f32 %v1129_v42, %v1125_v51  ;;  %v1136_v41 = vadd.f32 %v1135_v43, %v1126_v54 }
 0x2dc   :  { %v970_v40 = vcombine.low %v963_v20, %v964_v31  ;;  %v1035_v12 = vrot.slane %v1034_v4, 1  ;;  %v1041_v39 = vrot.slane %v1040_v57, 1  ;;  %v1142_v9 = vadd.f32 %v1141_v34, %v1127_v17  ;;  %v2513_v31 = vld [vmem:[%s2609_s7 + $0x8] sm:$0xf]  ;;  %v1770_v34 = vld [vmem:[%s2609_s7 + $0x4] sm:$0xf] }
 0x2dd   :  { %v1030_v15 = vadd.f32 %v1029_v59, %v1028_v45  ;;  %v2638_v0 = vrot.slane %v2130_v28, %v2031_v55  ;;  %v1131_v46 = vrot.slane %v1130_v52, 2  ;;  %v1137_v19 = vrot.slane %v1136_v41, 2 }
 0x2de   :  { %v984_v2 = vrot.slane %v970_v40, %v2054_v37  ;;  %v1036_v63 = vadd.f32 %v1035_v12, %v1034_v4  ;;  %v1042_v53 = vadd.f32 %v1041_v39, %v1040_v57  ;;  %v1143_v7 = vrot.slane %v1142_v9, 2  ;;  %v1233_v4 = vpop.permute.xlu1 %1232 }
 0x2df   :  { %v1065_v33 = vadd.f32 %v2638_v0, %v1024_v56  ;;  %v2639_v13 = vrot.slane %v2130_v28, %v2033_v23  ;;  %v2640_v5 = vrot.slane %v2130_v28, %v2035_v24  ;;  %v2641_v10 = vrot.slane %v2130_v28, %v2037_v26 }
 0x2e0   :  { %v985_v16 = vcombine.low %v977_v44, %v984_v2  ;;  %v1132_v36 = vadd.f32 %v1131_v46, %v1130_v52  ;;  %v1138_v51 = vadd.f32 %v1137_v19, %v1136_v41  ;;  %v1144_v25 = vadd.f32 %v1143_v7, %v1142_v9 }
 0x2e1   :  { %v1066_v20 = vadd.f32 %v2639_v13, %v1030_v15  ;;  %vm1069_vm3 = vcmp.ge.f32.partialorder %v1065_v33, 0.0  ;;  %v1073_v6 = vmul.f32 0.22916667, %v1065_v33  ;;  %v1067_v61 = vadd.f32 %v2640_v5, %v1036_v63 }
 0x2e2   :  { %v1068_v18 = vadd.f32 %v2641_v10, %v1042_v53  ;;  %v992_v30 = vrot.slane %v985_v16, %v2054_v37  ;;  %v1133_v28 = vrot.slane %v1132_v36, 1  ;;  %v1139_v22 = vrot.slane %v1138_v51, 1 }
 0x2e3   :  { %vm1070_vm4 = vcmp.ge.f32.partialorder %v1066_v20, 0.0  ;;  %v1074_v44 = vmul.f32 0.22916667, %v1066_v20  ;;  %v1077_v49 = vsel %vm1069_vm3, %v1065_v33, %v1073_v6  ;;  %vm1071_vm6 = vcmp.ge.f32.partialorder %v1067_v61, 0.0 }
 0x2e4   :  { %vm1072_vm7 = vcmp.ge.f32.partialorder %v1068_v18, 0.0  ;;  %v1075_v8 = vmul.f32 0.22916667, %v1067_v61  ;;  %v1076_v21 = vmul.f32 0.22916667, %v1068_v18  ;;  %v1147_v50 = vrot.slane %v2488_v58, 4 }
 0x2e5   :  { %1705 = vst.msk [vmem:[%s2611_s8 + $0x5] ss:$8 sm:$0xf] %vm2236_vm5, %v992_v30  ;;  %v1078_v54 = vsel %vm1070_vm4, %v1066_v20, %v1074_v44  ;;  %v1134_v45 = vadd.f32 %v1133_v28, %v1132_v36  ;;  %v1140_v42 = vadd.f32 %v1139_v22, %v1138_v51  ;;  %v1145_v43 = vrot.slane %v1144_v25, 1 }
 0x2e6   :  { %v1079_v17 = vsel %vm1071_vm6, %v1067_v61, %v1075_v8  ;;  %v1080_v48 = vsel %vm1072_vm7, %v1068_v18, %v1076_v21  ;;  %v1085_v11 = vcombine.low %v1077_v49, %v1078_v54  ;;  %v1170_v40 = vrot.slane %v1770_v34, %v2037_v26  ;;  %v1453_v49 = vpop.permute.xlu1 %1452 }
 0x2e7   :  { %v1086_v1 = vcombine.low %v1079_v17, %v1080_v48  ;;  %v1148_v56 = vadd.f32 %v1147_v50, %v2488_v58  ;;  %v1146_v52 = vadd.f32 %v1145_v43, %v1144_v25  ;;  %v2642_v12 = vrot.slane %v2149_v3, %v2031_v55 }
 0x2e8   :  { %v1093_v57 = vrot.slane %v1085_v11, %v2054_v37  ;;  %v2643_v41 = vrot.slane %v2149_v3, %v2033_v23  ;;  %v1268_v15 = vrot.slane %v2513_v31, %v2031_v55  ;;  %v1272_v0 = vrot.slane %v2513_v31, %v2033_v23 }
 0x2e9   :  { %v1100_v59 = vrot.slane %v1086_v1, %v2054_v37  ;;  %v1175_v39 = vadd.f32 %v2642_v12, %v1134_v45  ;;  %v1149_v2 = vrot.slane %v1148_v56, 2  ;;  %v1235_v58 = vmul.f32 %v2220_v47, %v1233_v4 }
 0x2ea   :  { %v1176_v9 = vadd.f32 %v2643_v41, %v1140_v42  ;;  %v2644_v46 = vrot.slane %v2149_v3, %v2035_v24  ;;  %v1236_v16 = vmul.f32 %v2243_v62, %v1233_v4  ;;  %v1237_v6 = vmul.f32 %v2248_v29, %v1233_v4  ;;  %v2543_v3 = vld [vmem:[%s2609_s7 + $0x10] sm:$0xf] }
 0x2eb   :  { %v1101_v33 = vcombine.low %v1093_v57, %v1100_v59  ;;  %vm1179_vm8 = vcmp.ge.f32.partialorder %v1175_v39, 0.0  ;;  %v1150_v53 = vadd.f32 %v1149_v2, %v1148_v56  ;;  %v1183_v19 = vmul.f32 0.22916667, %v1175_v39 }
 0x2ec   :  { %v1177_v63 = vadd.f32 %v2644_v46, %v1146_v52  ;;  %vm1180_vm9 = vcmp.ge.f32.partialorder %v1176_v9, 0.0  ;;  %v1184_v7 = vmul.f32 0.22916667, %v1176_v9  ;;  %v1238_v10 = vmul.f32 %v2254_v14, %v1233_v4 }
 0x2ed   :  { %v1108_v13 = vrot.slane %v1101_v33, %v2054_v37  ;;  %v1151_v5 = vrot.slane %v1150_v53, 1  ;;  %v1187_v47 = vsel %vm1179_vm8, %v1175_v39, %v1183_v19  ;;  %v1276_v29 = vrot.slane %v2513_v31, %v2035_v24 }
 0x2ee   :  { %vm1181_vm10 = vcmp.ge.f32.partialorder %v1177_v63, 0.0  ;;  %v1185_v20 = vmul.f32 0.22916667, %v1177_v63  ;;  %v1188_v61 = vsel %vm1180_vm9, %v1176_v9, %v1184_v7  ;;  %v1239_v18 = vrot.slane %v1235_v58, 4 }
 0x2ef   :  { %1706 = vst.msk [vmem:[%s2611_s8 + $0x6] ss:$8 sm:$0xf] %vm2236_vm5, %v1108_v13  ;;  %v1195_v62 = vcombine.low %v1187_v47, %v1188_v61  ;;  %v1245_v36 = vrot.slane %v1236_v16, 4  ;;  %v1152_v51 = vadd.f32 %v1151_v5, %v1150_v53  ;;  %v1280_v14 = vrot.slane %v2513_v31, %v2037_v26 }
 0x2f0   :  { %v1251_v30 = vrot.slane %v1237_v6, 4  ;;  %v1257_v44 = vrot.slane %v1238_v10, 4  ;;  %v1189_v8 = vsel %vm1181_vm10, %v1177_v63, %v1185_v20  ;;  %v1240_v21 = vadd.f32 %v1239_v18, %v1235_v58 }
 0x2f1   :  { %v1246_v54 = vadd.f32 %v1245_v36, %v1236_v16  ;;  %v1488_v28 = vrot.slane %v2543_v3, %v2031_v55  ;;  %v1178_v22 = vadd.f32 %v1170_v40, %v1152_v51  ;;  %v1203_v25 = vrot.slane %v1195_v62, %v2054_v37 }
 0x2f2   :  { %v1252_v17 = vadd.f32 %v1251_v30, %v1237_v6  ;;  %v1258_v48 = vadd.f32 %v1257_v44, %v1238_v10  ;;  %v1241_v11 = vrot.slane %v1240_v21, 2  ;;  %v1492_v1 = vrot.slane %v2543_v3, %v2033_v23 }
 0x2f3   :  { %v1247_v50 = vrot.slane %v1246_v54, 2  ;;  %v1455_v45 = vmul.f32 %v2386_v32, %v1453_v49  ;;  %vm1182_vm11 = vcmp.ge.f32.partialorder %v1178_v22, 0.0  ;;  %v1186_v42 = vmul.f32 0.22916667, %v1178_v22 }
 0x2f4   :  { %v1253_v43 = vrot.slane %v1252_v17, 2  ;;  %v1259_v4 = vrot.slane %v1258_v48, 2  ;;  %v1242_v57 = vadd.f32 %v1241_v11, %v1240_v21  ;;  %v1456_v56 = vmul.f32 %v2391_v27, %v1453_v49 }
 0x2f5   :  { %v1248_v34 = vadd.f32 %v1247_v50, %v1246_v54  ;;  %v1457_v40 = vmul.f32 %v2396_v60, %v1453_v49  ;;  %v1190_v59 = vsel %vm1182_vm11, %v1178_v22, %v1186_v42  ;;  %v1458_v39 = vmul.f32 %v2401_v35, %v1453_v49 }
 0x2f6   :  { %v1254_v52 = vadd.f32 %v1253_v43, %v1252_v17  ;;  %v1260_v12 = vadd.f32 %v1259_v4, %v1258_v48  ;;  %v1196_v41 = vcombine.low %v1189_v8, %v1190_v59  ;;  %v1243_v9 = vrot.slane %v1242_v57, 1 }
 0x2f7   :  { %v1249_v2 = vrot.slane %v1248_v34, 1  ;;  %v1459_v58 = vrot.slane %v1455_v45, 4  ;;  %v1465_v46 = vrot.slane %v1456_v56, 4  ;;  %v1471_v63 = vrot.slane %v1457_v40, 4 }
 0x2f8   :  { %v1255_v32 = vrot.slane %v1254_v52, 1  ;;  %v1261_v33 = vrot.slane %v1260_v12, 1  ;;  %v1210_v53 = vrot.slane %v1196_v41, %v2054_v37  ;;  %v1244_v19 = vadd.f32 %v1243_v9, %v1242_v57 }
 0x2f9   :  { %v1250_v7 = vadd.f32 %v1249_v2, %v1248_v34  ;;  %v1460_v27 = vadd.f32 %v1459_v58, %v1455_v45  ;;  %v1466_v13 = vadd.f32 %v1465_v46, %v1456_v56  ;;  %v1472_v20 = vadd.f32 %v1471_v63, %v1457_v40 }
 0x2fa   :  { %v1256_v16 = vadd.f32 %v1255_v32, %v1254_v52  ;;  %v1262_v60 = vadd.f32 %v1261_v33, %v1260_v12  ;;  %v1211_v6 = vcombine.low %v1203_v25, %v1210_v53  ;;  %v1285_v35 = vadd.f32 %v1268_v15, %v1244_v19 }
 0x2fb   :  { %v1286_v5 = vadd.f32 %v1272_v0, %v1250_v7  ;;  %v1461_v47 = vrot.slane %v1460_v27, 2  ;;  %v1467_v62 = vrot.slane %v1466_v13, 2  ;;  %v1473_v18 = vrot.slane %v1472_v20, 2 }
 0x2fc   :  { %v1287_v61 = vadd.f32 %v1276_v29, %v1256_v16  ;;  %v1288_v10 = vadd.f32 %v1280_v14, %v1262_v60  ;;  %v1218_v36 = vrot.slane %v1211_v6, %v2054_v37  ;;  %vm1289_vm12 = vcmp.ge.f32.partialorder %v1285_v35, 0.0 }
 0x2fd   :  { %vm1290_vm13 = vcmp.ge.f32.partialorder %v1286_v5, 0.0  ;;  %v1293_v51 = vmul.f32 0.22916667, %v1285_v35  ;;  %v1294_v30 = vmul.f32 0.22916667, %v1286_v5  ;;  %v1462_v0 = vadd.f32 %v1461_v47, %v1460_v27 }
 0x2fe   :  { %vm1291_vm14 = vcmp.ge.f32.partialorder %v1287_v61, 0.0  ;;  %vm1292_vm15 = vcmp.ge.f32.partialorder %v1288_v10, 0.0  ;;  %v1295_v44 = vmul.f32 0.22916667, %v1287_v61  ;;  %v1296_v31 = vmul.f32 0.22916667, %v1288_v10 }
 0x2ff   :  { %1713 = vst.msk [vmem:[%s2611_s8 + $0x7] ss:$8 sm:$0xf] %vm2236_vm5, %v1218_v36  ;;  %v1297_v15 = vsel %vm1289_vm12, %v1285_v35, %v1293_v51  ;;  %v1468_v29 = vadd.f32 %v1467_v62, %v1466_v13  ;;  %v1298_v14 = vsel %vm1290_vm13, %v1286_v5, %v1294_v30  ;;  %v1474_v8 = vadd.f32 %v1473_v18, %v1472_v20 }
 0x300   :  { %v1299_v49 = vsel %vm1291_vm14, %v1287_v61, %v1295_v44  ;;  %v1477_v21 = vrot.slane %v1458_v39, 4  ;;  %v1300_v54 = vsel %vm1292_vm15, %v1288_v10, %v1296_v31  ;;  %v1305_v22 = vcombine.low %v1297_v15, %v1298_v14 }
 0x301   :  { %v1463_v25 = vrot.slane %v1462_v0, 1  ;;  %v1469_v17 = vrot.slane %v1468_v29, 1  ;;  %v1306_v48 = vcombine.low %v1299_v49, %v1300_v54  ;;  %v1496_v11 = vrot.slane %v2543_v3, %v2035_v24 }
 0x302   :  { %v1475_v50 = vrot.slane %v1474_v8, 1  ;;  %v1478_v45 = vadd.f32 %v1477_v21, %v1458_v39  ;;  %v1313_v42 = vrot.slane %v1305_v22, %v2054_v37  ;;  %v1500_v2 = vrot.slane %v2543_v3, %v2037_v26 }
 0x303   :  { %v1464_v43 = vadd.f32 %v1463_v25, %v1462_v0  ;;  %v1470_v4 = vadd.f32 %v1469_v17, %v1468_v29  ;;  %v1320_v57 = vrot.slane %v1306_v48, %v2054_v37 }
 0x304   :  { %v1476_v34 = vadd.f32 %v1475_v50, %v1474_v8  ;;  %v1479_v56 = vrot.slane %v1478_v45, 2 }
 0x305   :  { %v1505_v40 = vadd.f32 %v1488_v28, %v1464_v43  ;;  %v1506_v59 = vadd.f32 %v1492_v1, %v1470_v4  ;;  %v1321_v52 = vcombine.low %v1313_v42, %v1320_v57 }
 0x306   :  { %v1480_v24 = vadd.f32 %v1479_v56, %v1478_v45  ;;  %v1507_v12 = vadd.f32 %v1496_v11, %v1476_v34 }
 0x307   :  { %vm1509_vm0 = vcmp.ge.f32.partialorder %v1505_v40, 0.0  ;;  %vm1510_vm1 = vcmp.ge.f32.partialorder %v1506_v59, 0.0  ;;  %v1513_v39 = vmul.f32 0.22916667, %v1505_v40  ;;  %v1514_v41 = vmul.f32 0.22916667, %v1506_v59 }
 0x308   :  { %v1328_v9 = vrot.slane %v1321_v52, %v2054_v37  ;;  %v1481_v58 = vrot.slane %v1480_v24, 1  ;;  %v1515_v28 = vmul.f32 0.22916667, %v1507_v12  ;;  %vm1511_vm2 = vcmp.ge.f32.partialorder %v1507_v12, 0.0 }
 0x309   :  { %v1517_v32 = vsel %vm1509_vm0, %v1505_v40, %v1513_v39  ;;  %v1518_v55 = vsel %vm1510_vm1, %v1506_v59, %v1514_v41 }
 0x30a   :  { %1720 = vst.msk [vmem:[%s2611_s8 + $0x20] ss:$8 sm:$0xf] %vm2236_vm5, %v1328_v9  ;;  %v1482_v23 = vadd.f32 %v1481_v58, %v1480_v24  ;;  %v1525_v1 = vcombine.low %v1517_v32, %v1518_v55  ;;  %v1519_v63 = vsel %vm1511_vm2, %v1507_v12, %v1515_v28 }
 0x30c   :  { %v1508_v33 = vadd.f32 %v1500_v2, %v1482_v23  ;;  %v1533_v26 = vrot.slane %v1525_v1, %v2054_v37 }
 0x30e   :  { %vm1512_vm3 = vcmp.ge.f32.partialorder %v1508_v33, 0.0  ;;  %v1516_v46 = vmul.f32 0.22916667, %v1508_v33 }
 0x310   :  { %v1520_v53 = vsel %vm1512_vm3, %v1508_v33, %v1516_v46 }
 0x311   :  { %v1526_v19 = vcombine.low %v1519_v63, %v1520_v53 }
 0x313   :  { %v1540_v3 = vrot.slane %v1526_v19, %v2054_v37 }
 0x315   :  { %v1541_v7 = vcombine.low %v1533_v26, %v1540_v3 }
 0x317   :  { %v1548_v27 = vrot.slane %v1541_v7, %v2054_v37 }
 0x319   :  { %1734 = vst.msk [vmem:[%s2611_s8 + $0x22] ss:$8 sm:$0xf] %vm2236_vm5, %v1548_v27 }

// kernel: scepter_vit_forward.5
= control target key start
LH: loop header
LB: loop body
LE: loop exit
PB: predicated region body
PF: predicated region fallthrough
CT: control target
= control target key end

     0   :  { %vm64_vm0 = vcmask 261120   ;;  %vm504_vm1 = vcmask 64512   ;;  %vm636_vm3 = vcmask 392192   ;;  %s11885_s0 = inlined_call_operand.vmem [shape: f32[2,48,32], index: 0, kind: input, shape index: {}]   ;;  %s11886_s3 = inlined_call_operand.vmem [shape: f32[4,32,8], index: 3, kind: input, shape index: {}]   ;;  %s11887_s7 = inlined_call_operand.vmem [shape: f32[4,32,8], index: 7, kind: input, shape index: {}]   ;;  %s11888_s5 = inlined_call_operand.vmem [shape: f32[4,32,8], index: 5, kind: input, shape index: {}]   ;;  %s11889_s1 = inlined_call_operand.vmem [shape: f32[1,32], index: 1, kind: input, shape index: {}]   ;;  %s11890_s2 = inlined_call_operand.vmem [shape: f32[1,32], index: 2, kind: input, shape index: {}]   ;;  %s11891_s8 = inlined_call_operand.vmem [shape: f32[4,1,8], index: 8, kind: input, shape index: {}]   ;;  %s11892_s4 = inlined_call_operand.vmem [shape: f32[4,1,8], index: 4, kind: input, shape index: {}]   ;;  %s11893_s6 = inlined_call_operand.vmem [shape: f32[4,1,8], index: 6, kind: input, shape index: {}]   ;;  %s11894_s9 = inlined_call_operand.vmem [shape: f32[4,8,32], index: 9, kind: input, shape index: {}]   ;;  %s11895_s10 = inlined_call_operand.vmem [shape: f32[1,32], index: 10, kind: input, shape index: {}]   ;;  %s11896_s13 = inlined_call_operand.vmem [shape: f32[32,128], index: 13, kind: input, shape index: {}]   ;;  %s11897_s15 = inlined_call_operand.vmem [shape: f32[128,32], index: 15, kind: input, shape index: {}]   ;;  %s11898_s11 = inlined_call_operand.vmem [shape: f32[1,32], index: 11, kind: input, shape index: {}]   ;;  %s11899_s12 = inlined_call_operand.vmem [shape: f32[1,32], index: 12, kind: input, shape index: {}]   ;;  %s11900_s14 = inlined_call_operand.vmem [shape: f32[1,128], index: 14, kind: input, shape index: {}]   ;;  %s11901_s16 = inlined_call_operand.vmem [shape: f32[1,32], index: 16, kind: input, shape index: {}]   ;;  %s11902_s17 = inlined_call_operand.vmem [shape: f32[2,48,32], index: 17, kind: output, shape index: {}]  }
   0x1   :  { %11905 = sst [smem:[#allocation2_spill]] %s11885_s0  ;;  %v398_v44 = vld [vmem:[%s11887_s7] sm:$0xff]  ;;  %v399_v46 = vld [vmem:[%s11887_s7 + $0x8] sm:$0xff]  ;;  %v400_v50 = vld [vmem:[%s11887_s7 + $0x10] sm:$0xff] }
   0x2   :  { %11906 = sst [smem:[#allocation3_spill]] %s11886_s3  ;;  %s11907_s26 = sld [smem:[#allocation2_spill]]  ;;  %v9103_v47 = vpack.c.bf16 %v399_v46, %v398_v44  ;;  %v401_v52 = vld [vmem:[%s11887_s7 + $0x18] sm:$0xff]  ;;  %v292_v54 = vld [vmem:[%s11888_s5] sm:$0xff]  ;;  %v293_v55 = vld [vmem:[%s11888_s5 + $0x8] sm:$0xff] }
   0x3   :  { %s11908_s24 = sld [smem:[#allocation3_spill]]  ;;  %v9107_v53 = vpack.c.bf16 %v401_v52, %v400_v50  ;;  %v9095_v56 = vpack.c.bf16 %v293_v55, %v292_v54  ;;  %vm10142_vm2 = vmpackc.low %vm504_vm1, %vm504_vm1 }
   0x4   :  { %9104 = vmatprep.subr.bf16.mxu0 %v9103_v47 }
   0x5   :  { %9106 = vmatpush3.bf16.msra.mxu0 %v9103_v47 }
   0x6   :  { %9108 = vmatprep.subr.bf16.mxu0 %v9107_v53 }
   0x8   :  { %v56_v0 = vld [vmem:[%s11907_s26] sm:$0xff]  ;;  %v58_v1 = vld [vmem:[%s11907_s26 + $0x10] sm:$0xff]  ;;  %v57_v2 = vld [vmem:[%s11907_s26 + $0x8] sm:$0xff] }
   0x9   :  { %v65_v3 = vsel %vm64_vm0, %v56_v0, 0.0  ;;  %v71_v4 = vsel %vm64_vm0, %v58_v1, 0.0  ;;  %v59_v5 = vld [vmem:[%s11907_s26 + $0x18] sm:$0xff]  ;;  %v68_v6 = vsel %vm64_vm0, %v57_v2, 0.0  ;;  %v60_v8 = vld [vmem:[%s11907_s26 + $0x20] sm:$0xff]  ;;  %v61_v9 = vld [vmem:[%s11907_s26 + $0x28] sm:$0xff]  ;;  %9110 = vmatpush3.bf16.msra.mxu0 %v9107_v53 }
   0xa   :  { %66 = vadd.xlane.f32.xlu0 %v65_v3  ;;  %72 = vadd.xlane.f32.xlu1 %v71_v4  ;;  %v74_v7 = vsel %vm64_vm0, %v59_v5, 0.0  ;;  %v77_v10 = vsel %vm64_vm0, %v60_v8, 0.0  ;;  %v80_v11 = vsel %vm64_vm0, %v61_v9, 0.0  ;;  %v168_v42 = vld [vmem:[%s11908_s24] sm:$0xff]  ;;  %v169_v43 = vld [vmem:[%s11908_s24 + $0x8] sm:$0xff]  ;;  %v170_v48 = vld [vmem:[%s11908_s24 + $0x10] sm:$0xff] }
   0xb   :  { %v9087_v45 = vpack.c.bf16 %v169_v43, %v168_v42  ;;  %v171_v49 = vld [vmem:[%s11908_s24 + $0x18] sm:$0xff] }
   0xc   :  { %v9091_v51 = vpack.c.bf16 %v171_v49, %v170_v48 }
   0xd   :  { %9088 = vmatprep.subr.bf16.mxu1 %v9087_v45 }
   0xe   :  { %69 = vadd.xlane.f32.xlu0 %v68_v6  ;;  %75 = vadd.xlane.f32.xlu1 %v74_v7 }
   0xf   :  { %9090 = vmatpush3.bf16.msra.mxu1 %v9087_v45 }
  0x10   :  { %9092 = vmatprep.subr.bf16.mxu1 %v9091_v51 }
  0x12   :  { %78 = vadd.xlane.f32.xlu0 %v77_v10  ;;  %81 = vadd.xlane.f32.xlu1 %v80_v11  ;;  %v7093_v11 = vld [vmem:[%s11889_s1] ss:$0 sm:$0xff] }
  0x13   :  { %9094 = vmatpush3.bf16.msra.mxu1 %v9091_v51 }
  0x14   :  { %9096 = vmatprep.subr.bf16.mxu1 %v9095_v56 }
  0x97   :  { %v67_v12 = vpop.xlane.xlu0 %66  ;;  %v73_v13 = vpop.xlane.xlu1 %72 }
  0x98   :  { %v84_v14 = vmul.f32 0.03125, %v67_v12  ;;  %v86_v15 = vmul.f32 0.03125, %v73_v13 }
  0x9a   :  { %v10001_v16 = vsub.f32 %v56_v0, %v84_v14  ;;  %v10003_v17 = vsub.f32 %v58_v1, %v86_v15  ;;  %v7094_v14 = vld [vmem:[%s11890_s2] ss:$0 sm:$0xff] }
  0x9b   :  { %v70_v18 = vpop.xlane.xlu0 %69  ;;  %v76_v19 = vpop.xlane.xlu1 %75 }
  0x9c   :  { %v85_v20 = vmul.f32 0.03125, %v70_v18  ;;  %v87_v21 = vmul.f32 0.03125, %v76_v19  ;;  %v96_v22 = vmul.f32 %v10001_v16, %v10001_v16  ;;  %v98_v23 = vmul.f32 %v10003_v17, %v10003_v17 }
  0x9e   :  { %v10009_v24 = vsub.f32 %v57_v2, %v85_v20  ;;  %v10011_v25 = vsub.f32 %v59_v5, %v87_v21  ;;  %v102_v26 = vsel %vm64_vm0, %v96_v22, 0.0  ;;  %v108_v29 = vsel %vm64_vm0, %v98_v23, 0.0  ;;  %v294_v23 = vld [vmem:[%s11888_s5 + $0x10] sm:$0xff] }
  0x9f   :  { %103 = vadd.xlane.f32.xlu0 %v102_v26  ;;  %v79_v27 = vpop.xlane.xlu0 %78  ;;  %v82_v28 = vpop.xlane.xlu1 %81 }
  0xa0   :  { %v88_v30 = vmul.f32 0.03125, %v79_v27  ;;  %v89_v31 = vmul.f32 0.03125, %v82_v28  ;;  %v97_v32 = vmul.f32 %v10009_v24, %v10009_v24  ;;  %v99_v33 = vmul.f32 %v10011_v25, %v10011_v25 }
  0xa2   :  { %v10019_v34 = vsub.f32 %v60_v8, %v88_v30  ;;  %v10021_v35 = vsub.f32 %v61_v9, %v89_v31  ;;  %v105_v36 = vsel %vm64_vm0, %v97_v32, 0.0  ;;  %v111_v37 = vsel %vm64_vm0, %v99_v33, 0.0 }
  0xa3   :  { %109 = vadd.xlane.f32.xlu0 %v108_v29  ;;  %106 = vadd.xlane.f32.xlu1 %v105_v36 }
  0xa4   :  { %v100_v38 = vmul.f32 %v10019_v34, %v10019_v34  ;;  %v101_v39 = vmul.f32 %v10021_v35, %v10021_v35 }
  0xa6   :  { %v114_v40 = vsel %vm64_vm0, %v100_v38, 0.0  ;;  %v117_v41 = vsel %vm64_vm0, %v101_v39, 0.0 }
  0xa7   :  { %112 = vadd.xlane.f32.xlu1 %v111_v37  ;;  %115 = vadd.xlane.f32.xlu0 %v114_v40  ;;  %v7109_v40 = vld [vmem:[%s11891_s8] ss:$0 sm:$0xff] }
  0xab   :  { %118 = vadd.xlane.f32.xlu1 %v117_v41  ;;  %v10133_v41 = vld [vmem:[%s11892_s4] ss:$0 sm:$0xff] }
 0x12c   :  { %v104_v57 = vpop.xlane.xlu0 %103 }
 0x12d   :  { %v120_v58 = vmul.f32 0.03125, %v104_v57 }
 0x12f   :  { %v126_v59 = vadd.f32 1e-06, %v120_v58 }
 0x130   :  { %v107_v60 = vpop.xlane.xlu1 %106  ;;  %v110_v61 = vpop.xlane.xlu0 %109 }
 0x131   :  { %9635 = vrsqrt.f32 %v126_v59  ;;  %v121_v62 = vmul.f32 0.03125, %v107_v60  ;;  %v122_v63 = vmul.f32 0.03125, %v110_v61 }
 0x133   :  { %v127_v0 = vadd.f32 1e-06, %v121_v62  ;;  %v128_v1 = vadd.f32 1e-06, %v122_v63  ;;  %v7102_v63 = vld [vmem:[%s11893_s6] ss:$0 sm:$0xff] }
 0x134   :  { %v113_v2 = vpop.xlane.xlu1 %112  ;;  %v116_v3 = vpop.xlane.xlu0 %115 }
 0x135   :  { %9637 = vrsqrt.f32 %v127_v0  ;;  %v123_v4 = vmul.f32 0.03125, %v113_v2  ;;  %v124_v5 = vmul.f32 0.03125, %v116_v3 }
 0x136   :  { %9639 = vrsqrt.f32 %v128_v1 }
 0x137   :  { %v129_v6 = vadd.f32 1e-06, %v123_v4  ;;  %v130_v7 = vadd.f32 1e-06, %v124_v5 }
 0x138   :  { %v119_v8 = vpop.xlane.xlu1 %118 }
 0x139   :  { %9641 = vrsqrt.f32 %v129_v6  ;;  %v125_v9 = vmul.f32 0.03125, %v119_v8 }
 0x13a   :  { %9643 = vrsqrt.f32 %v130_v7 }
 0x13b   :  { %v9636_v10 = vpop.eup %9635  ;;  %v131_v12 = vadd.f32 1e-06, %v125_v9 }
 0x13c   :  { %v138_v13 = vmul.f32 %v9636_v10, %v10001_v16  ;;  %v295_v16 = vld [vmem:[%s11888_s5 + $0x18] sm:$0xff] }
 0x13d   :  { %9645 = vrsqrt.f32 %v131_v12  ;;  %v9099_v30 = vpack.c.bf16 %v295_v16, %v294_v23  ;;  %v7148_v23 = vld [vmem:[%s11888_s5 + $0x30] sm:$0xff]  ;;  %v7149_v16 = vld [vmem:[%s11888_s5 + $0x38] sm:$0xff] }
 0x13e   :  { %v150_v15 = vmul.f32 %v7093_v11, %v138_v13 }
 0x13f   :  { %v9638_v18 = vpop.eup %9637 }
 0x140   :  { %v9640_v19 = vpop.eup %9639  ;;  %v10068_v20 = vadd.f32 %v7094_v14, %v150_v15  ;;  %v139_v21 = vmul.f32 %v9638_v18, %v10009_v24 }
 0x141   :  { %v140_v22 = vmul.f32 %v9640_v19, %v10003_v17  ;;  %v7146_v19 = vld [vmem:[%s11888_s5 + $0x20] sm:$0xff] }
 0x142   :  { %v151_v26 = vmul.f32 %v7093_v11, %v139_v21  ;;  %8147 = vmatprep.mubr.msk.f32.mxu1 %vm64_vm0, %v10068_v20  ;;  %8181 = vmatprep.mubr.msk.f32.mxu0 %vm64_vm0, %v10068_v20  ;;  %v7147_v21 = vld [vmem:[%s11888_s5 + $0x28] sm:$0xff] }
 0x143   :  { %v9642_v27 = vpop.eup %9641  ;;  %v152_v28 = vmul.f32 %v7093_v11, %v140_v22  ;;  %v9149_v22 = vpack.c.bf16 %v7147_v21, %v7146_v19 }
 0x144   :  { %v9644_v24 = vpop.eup %9643  ;;  %v10082_v29 = vadd.f32 %v7094_v14, %v151_v26  ;;  %v141_v17 = vmul.f32 %v9642_v27, %v10011_v25  ;;  %v9153_v27 = vpack.c.bf16 %v7149_v16, %v7148_v23 }
 0x145   :  { %v10085_v31 = vadd.f32 %v7094_v14, %v152_v28  ;;  %v142_v32 = vmul.f32 %v9644_v24, %v10019_v34 }
 0x146   :  { %v153_v33 = vmul.f32 %v7093_v11, %v141_v17  ;;  %8148 = vmatmul.mubr.msk.f32.vlgmr.msra.gmra.mrb[0].mxu1 %vm64_vm0, %v10082_v29  ;;  %8182 = vmatmul.mubr.msk.f32.vlgmr.msra.gmra.mrb[0].mxu0 %vm64_vm0, %v10082_v29 }
 0x147   :  { %v9646_v36 = vpop.eup %9645  ;;  %v154_v37 = vmul.f32 %v7093_v11, %v142_v32  ;;  %8150 = vmatprep.mubr.msk.f32.mxu1 %vm64_vm0, %v10085_v31  ;;  %9098 = vmatpush3.bf16.msra.mxu1 %v9095_v56 }
 0x148   :  { %v10094_v38 = vadd.f32 %v7094_v14, %v153_v33  ;;  %v143_v25 = vmul.f32 %v9646_v36, %v10021_v35  ;;  %8184 = vmatprep.mubr.msk.f32.mxu0 %vm64_vm0, %v10085_v31  ;;  %9100 = vmatprep.subr.bf16.mxu1 %v9099_v30 }
 0x149   :  { %v10099_v34 = vadd.f32 %v7094_v14, %v154_v37 }
 0x14a   :  { %v155_v39 = vmul.f32 %v7093_v11, %v143_v25  ;;  %8151 = vmatmul.mubr.msk.f32.gmra.mrb[2].mxu1 %vm64_vm0, %v10094_v38  ;;  %8185 = vmatmul.mubr.msk.f32.gmra.mrb[2].mxu0 %vm64_vm0, %v10094_v38 }
 0x14b   :  { %8153 = vmatprep.mubr.msk.f32.mxu1 %vm64_vm0, %v10099_v34  ;;  %8187 = vmatprep.mubr.msk.f32.mxu0 %vm64_vm0, %v10099_v34 }
 0x14c   :  { %v10109_v35 = vadd.f32 %v7094_v14, %v155_v39  ;;  %9102 = vmatpush3.bf16.msra.mxu1 %v9099_v30 }
 0x14e   :  { %8154 = vmatmul.mubr.msk.f32.gmra.mrb[4].mxu1 %vm64_vm0, %v10109_v35  ;;  %8188 = vmatmul.mubr.msk.f32.gmra.mrb[4].mxu0 %vm64_vm0, %v10109_v35 }
 0x14f   :  { %8164 = vmatprep.mubr.msk.f32.mxu1 %vm64_vm0, %v10068_v20 }
 0x152   :  { %8165 = vmatmul.mubr.msk.f32.vlgmr.msra.gmra.mrb[6].mxu1 %vm64_vm0, %v10082_v29 }
 0x153   :  { %8167 = vmatprep.mubr.msk.f32.mxu1 %vm64_vm0, %v10085_v31 }
 0x156   :  { %8168 = vmatmul.mubr.msk.f32.gmra.mrb[8].mxu1 %vm64_vm0, %v10094_v38 }
 0x157   :  { %8170 = vmatprep.mubr.msk.f32.mxu1 %vm64_vm0, %v10099_v34 }
 0x15a   :  { %8171 = vmatmul.mubr.msk.f32.gmra.mrb[10].mxu1 %vm64_vm0, %v10109_v35 }
 0x219   :  { %v8149_v42 = vpop.f32.mrb[0].mxu1  ;;  %v8183_v43 = vpop.f32.mrb[0].mxu0 }
 0x21a   :  { %v481_v44 = vadd.f32 %v8183_v43, %v7109_v40  ;;  %v263_v45 = vpop.f32.mrb[1].mxu1  ;;  %v475_v46 = vpop.f32.mrb[1].mxu0  ;;  %v269_v26 = vadd.f32 %v8149_v42, %v10133_v41 }
 0x21b   :  { %v264_v47 = vadd.f32 %v10133_v41, %v263_v45  ;;  %v476_v48 = vadd.f32 %v7109_v40, %v475_v46  ;;  %v7151_v46 = vld [vmem:[%s11893_s6 + $0x1] ss:$0 sm:$0xff] }
 0x21d   :  { %v9129_v49 = vpack.c.bf16 %v481_v44, %v476_v48  ;;  %v8152_v50 = vpop.f32.mrb[2].mxu1  ;;  %v8186_v51 = vpop.f32.mrb[2].mxu0  ;;  %8202 = vmatprep.mubr.msk.f32.mxu1 %vm504_vm1, %v264_v47 }
 0x21e   :  { %v491_v52 = vadd.f32 %v8186_v51, %v7109_v40  ;;  %v273_v53 = vpop.f32.mrb[3].mxu1  ;;  %v485_v54 = vpop.f32.mrb[3].mxu0  ;;  %v279_v24 = vadd.f32 %v8152_v50, %v10133_v41 }
 0x21f   :  { %v486_v55 = vadd.f32 %v7109_v40, %v485_v54  ;;  %9130 = vmatprep.subr.bf16.mxu0 %v9129_v49  ;;  %v274_v28 = vadd.f32 %v10133_v41, %v273_v53 }
 0x220   :  { %9132 = vmatpush3.bf16.msra.mxu0 %v9129_v49 }
 0x221   :  { %v9133_v56 = vpack.c.bf16 %v491_v52, %v486_v55  ;;  %v8155_v57 = vpop.f32.mrb[4].mxu1  ;;  %v8189_v58 = vpop.f32.mrb[4].mxu0 }
 0x222   :  { %v501_v59 = vadd.f32 %v8189_v58, %v7109_v40  ;;  %v283_v60 = vpop.f32.mrb[5].mxu1  ;;  %v495_v61 = vpop.f32.mrb[5].mxu0  ;;  %v289_v30 = vadd.f32 %v8155_v57, %v10133_v41 }
 0x223   :  { %v496_v62 = vadd.f32 %v7109_v40, %v495_v61  ;;  %9134 = vmatprep.subr.bf16.mxu0 %v9133_v56  ;;  %v284_v17 = vadd.f32 %v10133_v41, %v283_v60 }
 0x224   :  { %9136 = vmatpush3.bf16.msra.mxu0 %v9133_v56 }
 0x225   :  { %v9137_v0 = vpack.c.bf16 %v501_v59, %v496_v62  ;;  %v8166_v1 = vpop.f32.mrb[6].mxu1 }
 0x226   :  { %v375_v2 = vadd.f32 %v8166_v1, %v7102_v63  ;;  %v369_v3 = vpop.f32.mrb[7].mxu1 }
 0x227   :  { %v370_v4 = vadd.f32 %v7102_v63, %v369_v3  ;;  %9138 = vmatprep.subr.bf16.mxu0 %v9137_v0 }
 0x228   :  { %9140 = vmatpush3.bf16.msra.mxu0 %v9137_v0 }
 0x229   :  { %v9111_v6 = vpack.c.bf16 %v375_v2, %v370_v4  ;;  %v8169_v7 = vpop.f32.mrb[8].mxu1 }
 0x22a   :  { %v385_v8 = vadd.f32 %v8169_v7, %v7102_v63  ;;  %v379_v9 = vpop.f32.mrb[9].mxu1 }
 0x22b   :  { %v380_v10 = vadd.f32 %v7102_v63, %v379_v9  ;;  %9113 = vmatprep.subr.msk.bf16.mxu1 %vm10142_vm2, %v9111_v6 }
 0x22c   :  { %9116 = vmatpush3.bf16.xpose.msk.msra.mxu1 %vm10142_vm2, %v9111_v6 }
 0x22d   :  { %v9117_v11 = vpack.c.bf16 %v385_v8, %v380_v10  ;;  %v8172_v12 = vpop.f32.mrb[10].mxu1 }
 0x22e   :  { %v395_v13 = vadd.f32 %v8172_v12, %v7102_v63  ;;  %v389_v14 = vpop.f32.mrb[11].mxu1 }
 0x22f   :  { %v390_v15 = vadd.f32 %v7102_v63, %v389_v14  ;;  %9119 = vmatprep.subr.msk.bf16.mxu1 %vm10142_vm2, %v9117_v11 }
 0x231   :  { %v9123_v18 = vpack.c.bf16 %v395_v13, %v390_v15 }
 0x234   :  { %9122 = vmatpush3.bf16.xpose.msk.msra.mxu1 %vm10142_vm2, %v9117_v11 }
 0x235   :  { %9125 = vmatprep.subr.msk.bf16.mxu1 %vm10142_vm2, %v9123_v18 }
 0x23c   :  { %9128 = vmatpush3.bf16.xpose.msk.msra.mxu1 %vm10142_vm2, %v9123_v18 }
 0x23d   :  { %9150 = vmatprep.subr.bf16.mxu1 %v9149_v22 }
 0x243   :  { %8203 = vmatmul.mubr.msk.f32.vlgmr.msra.gmra.mrb[12].mxu1 %vm504_vm1, %v269_v26 }
 0x244   :  { %8205 = vmatprep.mubr.msk.f32.mxu1 %vm504_vm1, %v274_v28  ;;  %9152 = vmatpush3.bf16.msra.mxu1 %v9149_v22 }
 0x245   :  { %9154 = vmatprep.subr.bf16.mxu1 %v9153_v27 }
 0x247   :  { %8206 = vmatmul.mubr.msk.f32.gmra.mrb[14].mxu1 %vm504_vm1, %v279_v24 }
 0x248   :  { %8208 = vmatprep.mubr.msk.f32.mxu1 %vm504_vm1, %v284_v17  ;;  %9156 = vmatpush3.bf16.msra.mxu1 %v9153_v27 }
 0x24b   :  { %8209 = vmatmul.mubr.msk.f32.gmra.mrb[16].mxu1 %vm504_vm1, %v289_v30 }
 0x24c   :  { %8257 = vmatprep.mubr.msk.f32.mxu1 %vm64_vm0, %v10068_v20 }
 0x24f   :  { %8258 = vmatmul.mubr.msk.f32.vlgmr.msra.gmra.mrb[18].mxu1 %vm64_vm0, %v10082_v29 }
 0x250   :  { %8260 = vmatprep.mubr.msk.f32.mxu1 %vm64_vm0, %v10085_v31 }
 0x253   :  { %8261 = vmatmul.mubr.msk.f32.gmra.mrb[20].mxu1 %vm64_vm0, %v10094_v38 }
 0x254   :  { %8263 = vmatprep.mubr.msk.f32.mxu1 %vm64_vm0, %v10099_v34 }
 0x257   :  { %8264 = vmatmul.mubr.msk.f32.gmra.mrb[22].mxu1 %vm64_vm0, %v10109_v35 }
 0x316   :  { %v8204_v32 = vpop.f32.mrb[12].mxu1 }
 0x317   :  { %v607_v33 = vpop.f32.mrb[13].mxu1  ;;  %v640_v36 = vsel %vm636_vm3, %v8204_v32, -inf }
 0x318   :  { %641 = vmax.xlane.f32.xlu1 %v640_v36  ;;  %v637_v37 = vsel %vm636_vm3, %v607_v33, -inf  ;;  %v7135_v36 = vld [vmem:[%s11908_s24 + $0x28] sm:$0xff] }
 0x319   :  { %638 = vmax.xlane.f32.xlu0 %v637_v37 }
 0x31a   :  { %v8207_v25 = vpop.f32.mrb[14].mxu1 }
 0x31b   :  { %v617_v39 = vpop.f32.mrb[15].mxu1  ;;  %v646_v40 = vsel %vm636_vm3, %v8207_v25, -inf }
 0x31c   :  { %647 = vmax.xlane.f32.xlu1 %v646_v40  ;;  %v643_v41 = vsel %vm636_vm3, %v617_v39, -inf }
 0x31d   :  { %644 = vmax.xlane.f32.xlu0 %v643_v41 }
 0x31e   :  { %v8210_v42 = vpop.f32.mrb[16].mxu1 }
 0x31f   :  { %v627_v43 = vpop.f32.mrb[17].mxu1  ;;  %v652_v44 = vsel %vm636_vm3, %v8210_v42, -inf }
 0x320   :  { %653 = vmax.xlane.f32.xlu1 %v652_v44  ;;  %v649_v45 = vsel %vm636_vm3, %v627_v43, -inf }
 0x321   :  { %650 = vmax.xlane.f32.xlu0 %v649_v45  ;;  %v7136_v45 = vld [vmem:[%s11908_s24 + $0x30] sm:$0xff] }
 0x322   :  { %v8259_v47 = vpop.f32.mrb[18].mxu1 }
 0x323   :  { %v1010_v48 = vadd.f32 %v8259_v47, %v7151_v46  ;;  %v1004_v49 = vpop.f32.mrb[19].mxu1 }
 0x324   :  { %v1005_v50 = vadd.f32 %v7151_v46, %v1004_v49 }
 0x326   :  { %v9165_v51 = vpack.c.bf16 %v1010_v48, %v1005_v50  ;;  %v8262_v52 = vpop.f32.mrb[20].mxu1 }
 0x327   :  { %v1020_v53 = vadd.f32 %v8262_v52, %v7151_v46  ;;  %v1014_v54 = vpop.f32.mrb[21].mxu1  ;;  %v7158_v52 = vld [vmem:[%s11887_s7 + $0x20] sm:$0xff] }
 0x328   :  { %v1015_v55 = vadd.f32 %v7151_v46, %v1014_v54  ;;  %9167 = vmatprep.subr.msk.bf16.mxu1 %vm10142_vm2, %v9165_v51 }
 0x329   :  { %9170 = vmatpush3.bf16.xpose.msk.msra.mxu1 %vm10142_vm2, %v9165_v51 }
 0x32a   :  { %v9171_v56 = vpack.c.bf16 %v1020_v53, %v1015_v55  ;;  %v8265_v57 = vpop.f32.mrb[22].mxu1  ;;  %v7159_v53 = vld [vmem:[%s11887_s7 + $0x28] sm:$0xff] }
 0x32b   :  { %v1030_v58 = vadd.f32 %v8265_v57, %v7151_v46  ;;  %v1024_v59 = vpop.f32.mrb[23].mxu1  ;;  %v9157_v57 = vpack.c.bf16 %v7159_v53, %v7158_v52 }
 0x32c   :  { %v1025_v60 = vadd.f32 %v7151_v46, %v1024_v59  ;;  %9173 = vmatprep.subr.msk.bf16.mxu1 %vm10142_vm2, %v9171_v56  ;;  %v7137_v46 = vld [vmem:[%s11908_s24 + $0x38] sm:$0xff] }
 0x32d   :  { %v9145_v50 = vpack.c.bf16 %v7137_v46, %v7136_v45 }
 0x32e   :  { %v9177_v61 = vpack.c.bf16 %v1030_v58, %v1025_v60 }
 0x331   :  { %9176 = vmatpush3.bf16.xpose.msk.msra.mxu1 %vm10142_vm2, %v9171_v56 }
 0x332   :  { %9179 = vmatprep.subr.msk.bf16.mxu1 %vm10142_vm2, %v9177_v61 }
 0x339   :  { %9182 = vmatpush3.bf16.xpose.msk.msra.mxu1 %vm10142_vm2, %v9177_v61 }
 0x3a5   :  { %v642_v62 = vpop.xlane.xlu1 %641 }
 0x3a6   :  { %v656_v63 = vsub.f32 %v8204_v32, %v642_v62  ;;  %v639_v0 = vpop.xlane.xlu0 %638  ;;  %v7160_v62 = vld [vmem:[%s11887_s7 + $0x30] sm:$0xff] }
 0x3a7   :  { %v655_v1 = vsub.f32 %v607_v33, %v639_v0  ;;  %v7134_v33 = vld [vmem:[%s11908_s24 + $0x20] sm:$0xff] }
 0x3a8   :  { %v663_v2 = vmul.f32 1.442695, %v656_v63  ;;  %v9141_v37 = vpack.c.bf16 %v7135_v36, %v7134_v33  ;;  %v7161_v63 = vld [vmem:[%s11887_s7 + $0x38] sm:$0xff]  ;;  %v7163_v33 = vld [vmem:[%s11891_s8 + $0x1] ss:$0 sm:$0xff] }
 0x3a9   :  { %v661_v3 = vmul.f32 1.442695, %v655_v1  ;;  %v648_v4 = vpop.xlane.xlu1 %647  ;;  %v9161_v0 = vpack.c.bf16 %v7161_v63, %v7160_v62  ;;  %v7201_v1 = vld [vmem:[%s11908_s24 + $0x40] sm:$0xff] }
 0x3aa   :  { %9647 = vpow2.f32 %v663_v2  ;;  %v658_v6 = vsub.f32 %v8207_v25, %v648_v4  ;;  %v645_v7 = vpop.xlane.xlu0 %644  ;;  %9142 = vmatprep.subr.bf16.mxu0 %v9141_v37  ;;  %v7202_v2 = vld [vmem:[%s11908_s24 + $0x48] sm:$0xff] }
 0x3ab   :  { %9649 = vpow2.f32 %v661_v3  ;;  %v657_v8 = vsub.f32 %v617_v39, %v645_v7  ;;  %v9195_v3 = vpack.c.bf16 %v7202_v2, %v7201_v1 }
 0x3ac   :  { %v667_v9 = vmul.f32 1.442695, %v658_v6 }
 0x3ad   :  { %v665_v10 = vmul.f32 1.442695, %v657_v8  ;;  %v654_v11 = vpop.xlane.xlu1 %653  ;;  %9196 = vmatprep.subr.bf16.mxu1 %v9195_v3 }
 0x3ae   :  { %9651 = vpow2.f32 %v667_v9  ;;  %v660_v12 = vsub.f32 %v8210_v42, %v654_v11  ;;  %v651_v13 = vpop.xlane.xlu0 %650  ;;  %v7139_v11 = vld [vmem:[%s11892_s4 + $0x1] ss:$0 sm:$0xff] }
 0x3af   :  { %9653 = vpow2.f32 %v665_v10  ;;  %v659_v14 = vsub.f32 %v627_v43, %v651_v13  ;;  %v7203_v13 = vld [vmem:[%s11908_s24 + $0x50] sm:$0xff] }
 0x3b0   :  { %v671_v15 = vmul.f32 1.442695, %v660_v12 }
 0x3b1   :  { %v669_v18 = vmul.f32 1.442695, %v659_v14  ;;  %v7204_v14 = vld [vmem:[%s11908_s24 + $0x58] sm:$0xff] }
 0x3b2   :  { %9655 = vpow2.f32 %v671_v15 }
 0x3b3   :  { %9657 = vpow2.f32 %v669_v18 }
 0x3b4   :  { %v9648_v19 = vpop.eup %9647 }
 0x3b5   :  { %v9650_v21 = vpop.eup %9649  ;;  %v676_v22 = vsel %vm636_vm3, %v9648_v19, 0.0 }
 0x3b6   :  { %677 = vadd.xlane.f32.xlu1 %v676_v22  ;;  %v673_v23 = vsel %vm636_vm3, %v9650_v21, 0.0 }
 0x3b7   :  { %674 = vadd.xlane.f32.xlu0 %v673_v23  ;;  %v7213_v23 = vld [vmem:[%s11888_s5 + $0x40] sm:$0xff] }
 0x3b8   :  { %v9652_v16 = vpop.eup %9651 }
 0x3b9   :  { %v9654_v26 = vpop.eup %9653  ;;  %v682_v27 = vsel %vm636_vm3, %v9652_v16, 0.0 }
 0x3ba   :  { %683 = vadd.xlane.f32.xlu1 %v682_v27  ;;  %v679_v28 = vsel %vm636_vm3, %v9654_v26, 0.0 }
 0x3bb   :  { %680 = vadd.xlane.f32.xlu0 %v679_v28 }
 0x3bc   :  { %v9656_v24 = vpop.eup %9655 }
 0x3bd   :  { %v9658_v17 = vpop.eup %9657  ;;  %v688_v30 = vsel %vm636_vm3, %v9656_v24, 0.0 }
 0x3be   :  { %689 = vadd.xlane.f32.xlu1 %v688_v30  ;;  %v685_v32 = vsel %vm636_vm3, %v9658_v17, 0.0 }
 0x3bf   :  { %686 = vadd.xlane.f32.xlu0 %v685_v32 }
 0x443   :  { %v678_v25 = vpop.xlane.xlu1 %677 }
 0x444   :  { %9659 = vrcp.f32 %v678_v25  ;;  %v675_v39 = vpop.xlane.xlu0 %674 }
 0x445   :  { %9661 = vrcp.f32 %v675_v39 }
 0x447   :  { %v684_v40 = vpop.xlane.xlu1 %683 }
 0x448   :  { %9663 = vrcp.f32 %v684_v40  ;;  %v681_v41 = vpop.xlane.xlu0 %680  ;;  %v7215_v40 = vld [vmem:[%s11888_s5 + $0x50] sm:$0xff] }
 0x449   :  { %9665 = vrcp.f32 %v681_v41  ;;  %v7216_v41 = vld [vmem:[%s11888_s5 + $0x58] sm:$0xff] }
 0x44a   :  { %v9207_v45 = vpack.c.bf16 %v7216_v41, %v7215_v40  ;;  %v7262_v40 = vld [vmem:[%s11908_s24 + $0x60] sm:$0xff]  ;;  %v7263_v41 = vld [vmem:[%s11908_s24 + $0x68] sm:$0xff] }
 0x44b   :  { %v690_v42 = vpop.xlane.xlu1 %689 }
 0x44c   :  { %9667 = vrcp.f32 %v690_v42  ;;  %v687_v43 = vpop.xlane.xlu0 %686 }
 0x44d   :  { %9669 = vrcp.f32 %v687_v43 }
 0x44e   :  { %v9660_v44 = vpop.eup %9659 }
 0x44f   :  { %v9662_v47 = vpop.eup %9661  ;;  %v698_v49 = vmul.f32 %v9660_v44, %v9648_v19 }
 0x450   :  { %v697_v48 = vmul.f32 %v9662_v47, %v9650_v21  ;;  %v9199_v21 = vpack.c.bf16 %v7204_v14, %v7203_v13 }
 0x452   :  { %v9664_v51 = vpop.eup %9663  ;;  %8223 = vmatprep.mubr.msk.f32.mxu0 %vm636_vm3, %v697_v48 }
 0x453   :  { %v9666_v54 = vpop.eup %9665  ;;  %8224 = vmatmul.mubr.msk.f32.vlgmr.msra.gmra.mrb[6].mxu0 %vm636_vm3, %v698_v49  ;;  %v700_v56 = vmul.f32 %v9664_v51, %v9652_v16  ;;  %v7214_v16 = vld [vmem:[%s11888_s5 + $0x48] sm:$0xff] }
 0x454   :  { %9144 = vmatpush3.bf16.msra.mxu0 %v9141_v37  ;;  %v699_v55 = vmul.f32 %v9666_v54, %v9654_v26 }
 0x455   :  { %9146 = vmatprep.subr.bf16.mxu0 %v9145_v50 }
 0x456   :  { %v9668_v58 = vpop.eup %9667  ;;  %8226 = vmatprep.mubr.msk.f32.mxu0 %vm636_vm3, %v699_v55 }
 0x457   :  { %v9670_v59 = vpop.eup %9669  ;;  %8227 = vmatmul.mubr.msk.f32.gmra.mrb[8].mxu0 %vm636_vm3, %v700_v56  ;;  %v702_v61 = vmul.f32 %v9668_v58, %v9656_v24  ;;  %v9203_v24 = vpack.c.bf16 %v7214_v16, %v7213_v23 }
 0x458   :  { %v701_v60 = vmul.f32 %v9670_v59, %v9658_v17  ;;  %9148 = vmatpush3.bf16.msra.mxu0 %v9145_v50 }
 0x459   :  { %9158 = vmatprep.subr.bf16.mxu0 %v9157_v57 }
 0x45a   :  { %8229 = vmatprep.mubr.msk.f32.mxu0 %vm636_vm3, %v701_v60 }
 0x45b   :  { %8230 = vmatmul.mubr.msk.f32.gmra.mrb[10].mxu0 %vm636_vm3, %v702_v61 }
 0x45c   :  { %8240 = vmatprep.mubr.msk.f32.mxu0 %vm64_vm0, %v10068_v20 }
 0x45f   :  { %8241 = vmatmul.mubr.msk.f32.vlgmr.msra.gmra.mrb[12].mxu0 %vm64_vm0, %v10082_v29 }
 0x460   :  { %8243 = vmatprep.mubr.msk.f32.mxu0 %vm64_vm0, %v10085_v31  ;;  %9160 = vmatpush3.bf16.msra.mxu0 %v9157_v57 }
 0x461   :  { %9162 = vmatprep.subr.bf16.mxu0 %v9161_v0 }
 0x463   :  { %8244 = vmatmul.mubr.msk.f32.gmra.mrb[14].mxu0 %vm64_vm0, %v10094_v38 }
 0x464   :  { %8246 = vmatprep.mubr.msk.f32.mxu0 %vm64_vm0, %v10099_v34  ;;  %9164 = vmatpush3.bf16.msra.mxu0 %v9161_v0 }
 0x467   :  { %8247 = vmatmul.mubr.msk.f32.gmra.mrb[16].mxu0 %vm64_vm0, %v10109_v35 }
 0x468   :  { %8274 = vmatprep.mubr.msk.f32.mxu0 %vm64_vm0, %v10068_v20 }
 0x46b   :  { %8275 = vmatmul.mubr.msk.f32.vlgmr.msra.gmra.mrb[18].mxu0 %vm64_vm0, %v10082_v29 }
 0x46c   :  { %8277 = vmatprep.mubr.msk.f32.mxu0 %vm64_vm0, %v10085_v31 }
 0x46f   :  { %8278 = vmatmul.mubr.msk.f32.gmra.mrb[20].mxu0 %vm64_vm0, %v10094_v38 }
 0x470   :  { %8280 = vmatprep.mubr.msk.f32.mxu0 %vm64_vm0, %v10099_v34 }
 0x473   :  { %8281 = vmatmul.mubr.msk.f32.gmra.mrb[22].mxu0 %vm64_vm0, %v10109_v35 }
 0x526   :  { %v10279_v4 = vpop.f32.mrb[6].mxu0 }
 0x527   :  { %v10281_v6 = vpop.f32.mrb[7].mxu0 }
 0x52a   :  { %v10283_v7 = vpop.f32.mrb[8].mxu0 }
 0x52b   :  { %v10285_v8 = vpop.f32.mrb[9].mxu0 }
 0x52e   :  { %v10287_v9 = vpop.f32.mrb[10].mxu0 }
 0x52f   :  { %v10289_v10 = vpop.f32.mrb[11].mxu0 }
 0x532   :  { %v8242_v12 = vpop.f32.mrb[12].mxu0 }
 0x533   :  { %v896_v15 = vpop.f32.mrb[13].mxu0  ;;  %v902_v19 = vadd.f32 %v8242_v12, %v7139_v11 }
 0x534   :  { %v897_v18 = vadd.f32 %v7139_v11, %v896_v15 }
 0x536   :  { %v8245_v22 = vpop.f32.mrb[14].mxu0  ;;  %8295 = vmatprep.mubr.msk.f32.mxu1 %vm504_vm1, %v897_v18 }
 0x537   :  { %v906_v26 = vpop.f32.mrb[15].mxu0  ;;  %8296 = vmatmul.mubr.msk.f32.vlgmr.msra.gmra.mrb[24].mxu1 %vm504_vm1, %v902_v19  ;;  %v912_v28 = vadd.f32 %v8245_v22, %v7139_v11 }
 0x538   :  { %v907_v27 = vadd.f32 %v7139_v11, %v906_v26  ;;  %9198 = vmatpush3.bf16.msra.mxu1 %v9195_v3  ;;  %v7206_v3 = vld [vmem:[%s11892_s4 + $0x2] ss:$0 sm:$0xff] }
 0x539   :  { %9200 = vmatprep.subr.bf16.mxu1 %v9199_v21 }
 0x53a   :  { %v8248_v17 = vpop.f32.mrb[16].mxu0  ;;  %8298 = vmatprep.mubr.msk.f32.mxu1 %vm504_vm1, %v907_v27 }
 0x53b   :  { %v916_v30 = vpop.f32.mrb[17].mxu0  ;;  %8299 = vmatmul.mubr.msk.f32.gmra.mrb[26].mxu1 %vm504_vm1, %v912_v28  ;;  %v922_v36 = vadd.f32 %v8248_v17, %v7139_v11 }
 0x53c   :  { %v917_v32 = vadd.f32 %v7139_v11, %v916_v30  ;;  %9202 = vmatpush3.bf16.msra.mxu1 %v9199_v21  ;;  %v7218_v21 = vld [vmem:[%s11893_s6 + $0x2] ss:$0 sm:$0xff] }
 0x53d   :  { %9204 = vmatprep.subr.bf16.mxu1 %v9203_v24 }
 0x53e   :  { %v8276_v37 = vpop.f32.mrb[18].mxu0  ;;  %8301 = vmatprep.mubr.msk.f32.mxu1 %vm504_vm1, %v917_v32 }
 0x53f   :  { %v1118_v25 = vadd.f32 %v8276_v37, %v7163_v33  ;;  %v1112_v39 = vpop.f32.mrb[19].mxu0  ;;  %8302 = vmatmul.mubr.msk.f32.gmra.mrb[28].mxu1 %vm504_vm1, %v922_v36 }
 0x540   :  { %v1113_v42 = vadd.f32 %v7163_v33, %v1112_v39  ;;  %8355 = vmatprep.mubr.msk.f32.mxu1 %vm64_vm0, %v10068_v20 }
 0x542   :  { %v9183_v43 = vpack.c.bf16 %v1118_v25, %v1113_v42  ;;  %v8279_v44 = vpop.f32.mrb[20].mxu0  ;;  %v9249_v42 = vpack.c.bf16 %v7263_v41, %v7262_v40 }
 0x543   :  { %v1128_v46 = vadd.f32 %v8279_v44, %v7163_v33  ;;  %v1122_v47 = vpop.f32.mrb[21].mxu0  ;;  %8356 = vmatmul.mubr.msk.f32.vlgmr.msra.gmra.mrb[30].mxu1 %vm64_vm0, %v10082_v29  ;;  %v7265_v44 = vld [vmem:[%s11908_s24 + $0x78] sm:$0xff] }
 0x544   :  { %v1123_v48 = vadd.f32 %v7163_v33, %v1122_v47  ;;  %9184 = vmatprep.subr.bf16.mxu0 %v9183_v43  ;;  %8358 = vmatprep.mubr.msk.f32.mxu1 %vm64_vm0, %v10085_v31 }
 0x545   :  { %9186 = vmatpush3.bf16.msra.mxu0 %v9183_v43  ;;  %9206 = vmatpush3.bf16.msra.mxu1 %v9203_v24  ;;  %v7264_v43 = vld [vmem:[%s11908_s24 + $0x70] sm:$0xff] }
 0x546   :  { %v9187_v49 = vpack.c.bf16 %v1128_v46, %v1123_v48  ;;  %v8282_v50 = vpop.f32.mrb[22].mxu0  ;;  %9208 = vmatprep.subr.bf16.mxu1 %v9207_v45  ;;  %v9253_v46 = vpack.c.bf16 %v7265_v44, %v7264_v43  ;;  %v7286_v48 = vld [vmem:[%s11887_s7 + $0x60] sm:$0xff] }
 0x547   :  { %v1138_v51 = vadd.f32 %v8282_v50, %v7163_v33  ;;  %v1132_v52 = vpop.f32.mrb[23].mxu0  ;;  %8359 = vmatmul.mubr.msk.f32.gmra.mrb[32].mxu1 %vm64_vm0, %v10094_v38 }
 0x548   :  { %v1133_v53 = vadd.f32 %v7163_v33, %v1132_v52  ;;  %9188 = vmatprep.subr.bf16.mxu0 %v9187_v49  ;;  %8361 = vmatprep.mubr.msk.f32.mxu1 %vm64_vm0, %v10099_v34 }
 0x549   :  { %9190 = vmatpush3.bf16.msra.mxu0 %v9187_v49  ;;  %9210 = vmatpush3.bf16.msra.mxu1 %v9207_v45  ;;  %v7287_v49 = vld [vmem:[%s11887_s7 + $0x68] sm:$0xff] }
 0x54a   :  { %v9191_v54 = vpack.c.bf16 %v1138_v51, %v1133_v53  ;;  %v9265_v51 = vpack.c.bf16 %v7287_v49, %v7286_v48  ;;  %v10498_v48 = vld [vmem:[%s11892_s4 + $0x3] ss:$0 sm:$0xff] }
 0x54b   :  { %8362 = vmatmul.mubr.msk.f32.gmra.mrb[34].mxu1 %vm64_vm0, %v10109_v35 }
 0x54c   :  { %9192 = vmatprep.subr.bf16.mxu0 %v9191_v54  ;;  %8372 = vmatprep.mubr.msk.f32.mxu1 %vm64_vm0, %v10068_v20 }
 0x54d   :  { %9194 = vmatpush3.bf16.msra.mxu0 %v9191_v54  ;;  %v7288_v54 = vld [vmem:[%s11887_s7 + $0x70] sm:$0xff] }
 0x54f   :  { %8373 = vmatmul.mubr.msk.f32.vlgmr.msra.gmra.mrb[36].mxu1 %vm64_vm0, %v10082_v29 }
 0x550   :  { %8375 = vmatprep.mubr.msk.f32.mxu1 %vm64_vm0, %v10085_v31 }
 0x553   :  { %8376 = vmatmul.mubr.msk.f32.gmra.mrb[38].mxu1 %vm64_vm0, %v10094_v38 }
 0x554   :  { %8378 = vmatprep.mubr.msk.f32.mxu1 %vm64_vm0, %v10099_v34 }
 0x557   :  { %8379 = vmatmul.mubr.msk.f32.gmra.mrb[40].mxu1 %vm64_vm0, %v10109_v35 }
 0x60a   :  { %v10345_v55 = vpop.f32.mrb[24].mxu1 }
 0x60b   :  { %v10347_v56 = vpop.f32.mrb[25].mxu1  ;;  %v1275_v57 = vsel %vm636_vm3, %v10345_v55, -inf }
 0x60c   :  { %1276 = vmax.xlane.f32.xlu1 %v1275_v57  ;;  %v1272_v58 = vsel %vm636_vm3, %v10347_v56, -inf  ;;  %v7289_v57 = vld [vmem:[%s11887_s7 + $0x78] sm:$0xff] }
 0x60d   :  { %1273 = vmax.xlane.f32.xlu0 %v1272_v58  ;;  %v9269_v58 = vpack.c.bf16 %v7289_v57, %v7288_v54 }
 0x60e   :  { %v10353_v59 = vpop.f32.mrb[26].mxu1 }
 0x60f   :  { %v10355_v60 = vpop.f32.mrb[27].mxu1  ;;  %v1281_v61 = vsel %vm636_vm3, %v10353_v59, -inf }
 0x610   :  { %1282 = vmax.xlane.f32.xlu1 %v1281_v61  ;;  %v1278_v62 = vsel %vm636_vm3, %v10355_v60, -inf }
 0x611   :  { %1279 = vmax.xlane.f32.xlu0 %v1278_v62 }
 0x612   :  { %v10361_v63 = vpop.f32.mrb[28].mxu1 }
 0x613   :  { %v10363_v0 = vpop.f32.mrb[29].mxu1  ;;  %v1287_v1 = vsel %vm636_vm3, %v10361_v63, -inf }
 0x614   :  { %1288 = vmax.xlane.f32.xlu1 %v1287_v1  ;;  %v1284_v2 = vsel %vm636_vm3, %v10363_v0, -inf }
 0x615   :  { %1285 = vmax.xlane.f32.xlu0 %v1284_v2 }
 0x616   :  { %v8357_v11 = vpop.f32.mrb[30].mxu1 }
 0x617   :  { %v1758_v12 = vpop.f32.mrb[31].mxu1  ;;  %v1764_v45 = vadd.f32 %v8357_v11, %v7206_v3 }
 0x618   :  { %v1759_v13 = vadd.f32 %v7206_v3, %v1758_v12 }
 0x61a   :  { %v8360_v14 = vpop.f32.mrb[32].mxu1  ;;  %8410 = vmatprep.mubr.msk.f32.mxu1 %vm504_vm1, %v1759_v13 }
 0x61b   :  { %v1768_v15 = vpop.f32.mrb[33].mxu1  ;;  %v1774_v50 = vadd.f32 %v8360_v14, %v7206_v3 }
 0x61c   :  { %v1769_v47 = vadd.f32 %v7206_v3, %v1768_v15 }
 0x61e   :  { %v8363_v18 = vpop.f32.mrb[34].mxu1 }
 0x61f   :  { %v1778_v19 = vpop.f32.mrb[35].mxu1  ;;  %v1784_v53 = vadd.f32 %v8363_v18, %v7206_v3 }
 0x620   :  { %v1779_v52 = vadd.f32 %v7206_v3, %v1778_v19 }
 0x622   :  { %v8374_v22 = vpop.f32.mrb[36].mxu1 }
 0x623   :  { %v1872_v23 = vadd.f32 %v8374_v22, %v7218_v21  ;;  %v1866_v16 = vpop.f32.mrb[37].mxu1 }
 0x624   :  { %v1867_v26 = vadd.f32 %v7218_v21, %v1866_v16 }
 0x626   :  { %v9219_v27 = vpack.c.bf16 %v1872_v23, %v1867_v26  ;;  %v8377_v28 = vpop.f32.mrb[38].mxu1 }
 0x627   :  { %v1882_v24 = vadd.f32 %v8377_v28, %v7218_v21  ;;  %v1876_v17 = vpop.f32.mrb[39].mxu1 }
 0x628   :  { %v1877_v30 = vadd.f32 %v7218_v21, %v1876_v17  ;;  %9221 = vmatprep.subr.msk.bf16.mxu1 %vm10142_vm2, %v9219_v27 }
 0x629   :  { %9224 = vmatpush3.bf16.xpose.msk.msra.mxu1 %vm10142_vm2, %v9219_v27 }
 0x62a   :  { %v9225_v32 = vpack.c.bf16 %v1882_v24, %v1877_v30  ;;  %v8380_v33 = vpop.f32.mrb[40].mxu1 }
 0x62b   :  { %v1892_v36 = vadd.f32 %v8380_v33, %v7218_v21  ;;  %v1886_v37 = vpop.f32.mrb[41].mxu1 }
 0x62c   :  { %v1887_v25 = vadd.f32 %v7218_v21, %v1886_v37  ;;  %9227 = vmatprep.subr.msk.bf16.mxu1 %vm10142_vm2, %v9225_v32 }
 0x62e   :  { %v9231_v39 = vpack.c.bf16 %v1892_v36, %v1887_v25 }
 0x631   :  { %9230 = vmatpush3.bf16.xpose.msk.msra.mxu1 %vm10142_vm2, %v9225_v32 }
 0x632   :  { %9233 = vmatprep.subr.msk.bf16.mxu1 %vm10142_vm2, %v9231_v39 }
 0x639   :  { %9236 = vmatpush3.bf16.xpose.msk.msra.mxu1 %vm10142_vm2, %v9231_v39 }
 0x63a   :  { %9250 = vmatprep.subr.bf16.mxu1 %v9249_v42 }
 0x640   :  { %8411 = vmatmul.mubr.msk.f32.vlgmr.msra.gmra.mrb[42].mxu1 %vm504_vm1, %v1764_v45 }
 0x641   :  { %8413 = vmatprep.mubr.msk.f32.mxu1 %vm504_vm1, %v1769_v47  ;;  %9252 = vmatpush3.bf16.msra.mxu1 %v9249_v42 }
 0x642   :  { %9254 = vmatprep.subr.bf16.mxu1 %v9253_v46 }
 0x644   :  { %8414 = vmatmul.mubr.msk.f32.gmra.mrb[44].mxu1 %vm504_vm1, %v1774_v50 }
 0x645   :  { %8416 = vmatprep.mubr.msk.f32.mxu1 %vm504_vm1, %v1779_v52  ;;  %9256 = vmatpush3.bf16.msra.mxu1 %v9253_v46 }
 0x646   :  { %9266 = vmatprep.subr.bf16.mxu1 %v9265_v51 }
 0x648   :  { %8417 = vmatmul.mubr.msk.f32.gmra.mrb[46].mxu1 %vm504_vm1, %v1784_v53 }
 0x649   :  { %8459 = vmatprep.mubr.msk.f32.mxu1 %vm64_vm0, %v10068_v20 }
 0x64c   :  { %8460 = vmatmul.mubr.msk.f32.vlgmr.msra.gmra.mrb[48].mxu1 %vm64_vm0, %v10082_v29 }
 0x64d   :  { %8462 = vmatprep.mubr.msk.f32.mxu1 %vm64_vm0, %v10085_v31  ;;  %9268 = vmatpush3.bf16.msra.mxu1 %v9265_v51 }
 0x64e   :  { %9270 = vmatprep.subr.bf16.mxu1 %v9269_v58 }
 0x650   :  { %8463 = vmatmul.mubr.msk.f32.gmra.mrb[50].mxu1 %vm64_vm0, %v10094_v38 }
 0x651   :  { %8465 = vmatprep.mubr.msk.f32.mxu1 %vm64_vm0, %v10099_v34  ;;  %9272 = vmatpush3.bf16.msra.mxu1 %v9269_v58 }
 0x654   :  { %8466 = vmatmul.mubr.msk.f32.gmra.mrb[52].mxu1 %vm64_vm0, %v10109_v35 }
 0x655   :  { %8493 = vmatprep.mubr.msk.f32.mxu1 %vm64_vm0, %v10068_v20 }
 0x658   :  { %8494 = vmatmul.mubr.msk.f32.vlgmr.msra.gmra.mrb[54].mxu1 %vm64_vm0, %v10082_v29 }
 0x659   :  { %8496 = vmatprep.mubr.msk.f32.mxu1 %vm64_vm0, %v10085_v31 }
 0x65c   :  { %8497 = vmatmul.mubr.msk.f32.gmra.mrb[56].mxu1 %vm64_vm0, %v10094_v38 }
 0x65d   :  { %8499 = vmatprep.mubr.msk.f32.mxu1 %vm64_vm0, %v10099_v34 }
 0x660   :  { %8500 = vmatmul.mubr.msk.f32.gmra.mrb[58].mxu1 %vm64_vm0, %v10109_v35 }
 0x699   :  { %v1277_v61 = vpop.xlane.xlu1 %1276 }
 0x69a   :  { %v1291_v62 = vsub.f32 %v10345_v55, %v1277_v61  ;;  %v1274_v1 = vpop.xlane.xlu0 %1273 }
 0x69b   :  { %v1290_v2 = vsub.f32 %v10347_v56, %v1274_v1 }
 0x69c   :  { %v1298_v3 = vmul.f32 1.442695, %v1291_v62 }
 0x69d   :  { %v1296_v11 = vmul.f32 1.442695, %v1290_v2  ;;  %v1283_v12 = vpop.xlane.xlu1 %1282  ;;  %v7291_v2 = vld [vmem:[%s11891_s8 + $0x3] ss:$0 sm:$0xff] }
 0x69e   :  { %9671 = vpow2.f32 %v1298_v3  ;;  %v1293_v13 = vsub.f32 %v10353_v59, %v1283_v12  ;;  %v1280_v14 = vpop.xlane.xlu0 %1279 }
 0x69f   :  { %9673 = vpow2.f32 %v1296_v11  ;;  %v1292_v15 = vsub.f32 %v10355_v60, %v1280_v14 }
 0x6a0   :  { %v1302_v18 = vmul.f32 1.442695, %v1293_v13 }
 0x6a1   :  { %v1300_v19 = vmul.f32 1.442695, %v1292_v15  ;;  %v1289_v21 = vpop.xlane.xlu1 %1288 }
 0x6a2   :  { %9675 = vpow2.f32 %v1302_v18  ;;  %v1295_v22 = vsub.f32 %v10361_v63, %v1289_v21  ;;  %v1286_v55 = vpop.xlane.xlu0 %1285 }
 0x6a3   :  { %9677 = vpow2.f32 %v1300_v19  ;;  %v1294_v56 = vsub.f32 %v10363_v0, %v1286_v55 }
 0x6a4   :  { %v1306_v23 = vmul.f32 1.442695, %v1295_v22 }
 0x6a5   :  { %v1304_v16 = vmul.f32 1.442695, %v1294_v56 }
 0x6a6   :  { %9679 = vpow2.f32 %v1306_v23 }
 0x6a7   :  { %9681 = vpow2.f32 %v1304_v16 }
 0x6a8   :  { %v10447_v26 = vpop.eup %9671 }
 0x6a9   :  { %v10449_v59 = vpop.eup %9673  ;;  %v1311_v60 = vsel %vm636_vm3, %v10447_v26, 0.0 }
 0x6aa   :  { %1312 = vadd.xlane.f32.xlu1 %v1311_v60  ;;  %v1308_v27 = vsel %vm636_vm3, %v10449_v59, 0.0 }
 0x6ab   :  { %1309 = vadd.xlane.f32.xlu0 %v1308_v27 }
 0x6ac   :  { %v10455_v63 = vpop.eup %9675 }
 0x6ad   :  { %v10457_v28 = vpop.eup %9677  ;;  %v1317_v0 = vsel %vm636_vm3, %v10455_v63, 0.0 }
 0x6ae   :  { %1318 = vadd.xlane.f32.xlu1 %v1317_v0  ;;  %v1314_v24 = vsel %vm636_vm3, %v10457_v28, 0.0 }
 0x6af   :  { %1315 = vadd.xlane.f32.xlu0 %v1314_v24 }
 0x6b0   :  { %v10463_v17 = vpop.eup %9679 }
 0x6b1   :  { %v10465_v30 = vpop.eup %9681  ;;  %v1323_v32 = vsel %vm636_vm3, %v10463_v17, 0.0 }
 0x6b2   :  { %1324 = vadd.xlane.f32.xlu1 %v1323_v32  ;;  %v1320_v33 = vsel %vm636_vm3, %v10465_v30, 0.0 }
 0x6b3   :  { %1321 = vadd.xlane.f32.xlu0 %v1320_v33  ;;  %v7188_v33 = vld [vmem:[%s11894_s9 + $0x8] sm:$0xff] }
 0x6b4   :  { %8325 = vmatprep.subr.mxu0 %v7188_v33 }
 0x713   :  { %v10471_v36 = vpop.f32.mrb[42].mxu1 }
 0x714   :  { %v10473_v37 = vpop.f32.mrb[43].mxu1  ;;  %v2137_v25 = vsel %vm636_vm3, %v10471_v36, -inf }
 0x715   :  { %2138 = vmax.xlane.f32.xlu1 %v2137_v25  ;;  %v2134_v39 = vsel %vm636_vm3, %v10473_v37, -inf }
 0x716   :  { %2135 = vmax.xlane.f32.xlu0 %v2134_v39 }
 0x717   :  { %v10479_v40 = vpop.f32.mrb[44].mxu1 }
 0x718   :  { %v10481_v41 = vpop.f32.mrb[45].mxu1  ;;  %v2143_v42 = vsel %vm636_vm3, %v10479_v40, -inf }
 0x719   :  { %2144 = vmax.xlane.f32.xlu1 %v2143_v42  ;;  %v2140_v43 = vsel %vm636_vm3, %v10481_v41, -inf }
 0x71a   :  { %2141 = vmax.xlane.f32.xlu0 %v2140_v43 }
 0x71b   :  { %v10487_v44 = vpop.f32.mrb[46].mxu1 }
 0x71c   :  { %v10489_v45 = vpop.f32.mrb[47].mxu1  ;;  %v2149_v46 = vsel %vm636_vm3, %v10487_v44, -inf }
 0x71d   :  { %2150 = vmax.xlane.f32.xlu1 %v2149_v46  ;;  %v2146_v47 = vsel %vm636_vm3, %v10489_v45, -inf }
 0x71e   :  { %2147 = vmax.xlane.f32.xlu0 %v2146_v47 }
 0x71f   :  { %v8461_v49 = vpop.f32.mrb[48].mxu1 }
 0x720   :  { %v10501_v50 = vadd.f32 %v8461_v49, %v10498_v48  ;;  %v10503_v51 = vpop.f32.mrb[49].mxu1 }
 0x723   :  { %v8464_v52 = vpop.f32.mrb[50].mxu1 }
 0x724   :  { %v10506_v53 = vadd.f32 %v8464_v52, %v10498_v48  ;;  %v2523_v54 = vpop.f32.mrb[51].mxu1 }
 0x725   :  { %v10509_v57 = vadd.f32 %v10498_v48, %v2523_v54 }
 0x727   :  { %v8467_v58 = vpop.f32.mrb[52].mxu1 }
 0x728   :  { %v10512_v61 = vadd.f32 %v8467_v58, %v10498_v48  ;;  %v2533_v62 = vpop.f32.mrb[53].mxu1 }
 0x729   :  { %v10515_v1 = vadd.f32 %v10498_v48, %v2533_v62 }
 0x72b   :  { %v8495_v3 = vpop.f32.mrb[54].mxu1 }
 0x72c   :  { %v2735_v11 = vadd.f32 %v8495_v3, %v7291_v2  ;;  %v2729_v12 = vpop.f32.mrb[55].mxu1 }
 0x72d   :  { %v2730_v13 = vadd.f32 %v7291_v2, %v2729_v12 }
 0x72f   :  { %v9291_v14 = vpack.c.bf16 %v2735_v11, %v2730_v13  ;;  %v8498_v15 = vpop.f32.mrb[56].mxu1 }
 0x730   :  { %v2745_v18 = vadd.f32 %v8498_v15, %v7291_v2  ;;  %v2739_v19 = vpop.f32.mrb[57].mxu1 }
 0x731   :  { %v2740_v21 = vadd.f32 %v7291_v2, %v2739_v19  ;;  %9292 = vmatprep.subr.bf16.mxu1 %v9291_v14 }
 0x732   :  { %9294 = vmatpush3.bf16.msra.mxu1 %v9291_v14 }
 0x733   :  { %v9295_v22 = vpack.c.bf16 %v2745_v18, %v2740_v21  ;;  %v8501_v55 = vpop.f32.mrb[58].mxu1 }
 0x734   :  { %v2755_v56 = vadd.f32 %v8501_v55, %v7291_v2  ;;  %v2749_v23 = vpop.f32.mrb[59].mxu1 }
 0x735   :  { %v2750_v16 = vadd.f32 %v7291_v2, %v2749_v23  ;;  %9296 = vmatprep.subr.bf16.mxu1 %v9295_v22 }
 0x736   :  { %9298 = vmatpush3.bf16.msra.mxu1 %v9295_v22 }
 0x737   :  { %v9299_v60 = vpack.c.bf16 %v2755_v56, %v2750_v16  ;;  %v1313_v27 = vpop.xlane.xlu1 %1312 }
 0x738   :  { %9683 = vrcp.f32 %v1313_v27  ;;  %v1310_v0 = vpop.xlane.xlu0 %1309 }
 0x739   :  { %9685 = vrcp.f32 %v1310_v0  ;;  %9300 = vmatprep.subr.bf16.mxu1 %v9299_v60 }
 0x73a   :  { %9302 = vmatpush3.bf16.msra.mxu1 %v9299_v60 }
 0x73b   :  { %v1319_v24 = vpop.xlane.xlu1 %1318 }
 0x73c   :  { %9687 = vrcp.f32 %v1319_v24  ;;  %v1316_v32 = vpop.xlane.xlu0 %1315 }
 0x73d   :  { %9689 = vrcp.f32 %v1316_v32 }
 0x73f   :  { %v1325_v25 = vpop.xlane.xlu1 %1324 }
 0x740   :  { %9691 = vrcp.f32 %v1325_v25  ;;  %v1322_v39 = vpop.xlane.xlu0 %1321 }
 0x741   :  { %9693 = vrcp.f32 %v1322_v39  ;;  %v7225_v39 = vld [vmem:[%s11887_s7 + $0x40] sm:$0xff] }
 0x742   :  { %v9684_v42 = vpop.eup %9683 }
 0x743   :  { %v9686_v43 = vpop.eup %9685  ;;  %v1333_v47 = vmul.f32 %v9684_v42, %v10447_v26  ;;  %v7226_v42 = vld [vmem:[%s11887_s7 + $0x48] sm:$0xff] }
 0x744   :  { %v1332_v46 = vmul.f32 %v9686_v43, %v10449_v59 }
 0x746   :  { %v9688_v49 = vpop.eup %9687  ;;  %8316 = vmatprep.mubr.msk.f32.mxu0 %vm636_vm3, %v1332_v46 }
 0x747   :  { %v9690_v52 = vpop.eup %9689  ;;  %8317 = vmatmul.mubr.msk.f32.vlgmr.msra.gmra.mrb[24].mxu0 %vm636_vm3, %v1333_v47  ;;  %v1335_v58 = vmul.f32 %v9688_v49, %v10455_v63  ;;  %v9211_v47 = vpack.c.bf16 %v7226_v42, %v7225_v39  ;;  %v7275_v42 = vld [vmem:[%s11888_s5 + $0x68] sm:$0xff] }
 0x748   :  { %v1334_v54 = vmul.f32 %v9690_v52, %v10457_v28  ;;  %8326 = vmatpush3.msra.mxu0 %v7188_v33  ;;  %v816_v28 = vld [vmem:[%s11894_s9] sm:$0xff] }
 0x749   :  { %8336 = vmatprep.subr.mxu0 %v816_v28 }
 0x74a   :  { %v9692_v62 = vpop.eup %9691  ;;  %8319 = vmatprep.mubr.msk.f32.mxu0 %vm636_vm3, %v1334_v54 }
 0x74b   :  { %v9694_v2 = vpop.eup %9693  ;;  %8320 = vmatmul.mubr.msk.f32.gmra.mrb[26].mxu0 %vm636_vm3, %v1335_v58  ;;  %v1337_v26 = vmul.f32 %v9692_v62, %v10463_v17  ;;  %v7227_v62 = vld [vmem:[%s11887_s7 + $0x50] sm:$0xff] }
 0x74c   :  { %v1336_v59 = vmul.f32 %v9694_v2, %v10465_v30  ;;  %v7228_v2 = vld [vmem:[%s11887_s7 + $0x58] sm:$0xff] }
 0x74e   :  { %8322 = vmatprep.mubr.msk.f32.mxu0 %vm636_vm3, %v1336_v59  ;;  %v9215_v59 = vpack.c.bf16 %v7228_v2, %v7227_v62  ;;  %v2514_v62 = vadd.f32 %v10498_v48, %v10503_v51 }
 0x74f   :  { %8323 = vmatmul.mubr.msk.f32.gmra.mrb[28].mxu0 %vm636_vm3, %v1337_v26 }
 0x7a2   :  { %v2139_v63 = vpop.xlane.xlu1 %2138 }
 0x7a3   :  { %v2153_v3 = vsub.f32 %v10471_v36, %v2139_v63  ;;  %v2136_v11 = vpop.xlane.xlu0 %2135 }
 0x7a4   :  { %v2152_v12 = vsub.f32 %v10473_v37, %v2136_v11 }
 0x7a5   :  { %v2160_v13 = vmul.f32 1.442695, %v2153_v3 }
 0x7a6   :  { %v2158_v14 = vmul.f32 1.442695, %v2152_v12  ;;  %v2145_v30 = vpop.xlane.xlu1 %2144 }
 0x7a7   :  { %9695 = vpow2.f32 %v2160_v13  ;;  %v2155_v17 = vsub.f32 %v10479_v40, %v2145_v30  ;;  %v2142_v15 = vpop.xlane.xlu0 %2141 }
 0x7a8   :  { %9697 = vpow2.f32 %v2158_v14  ;;  %v2154_v18 = vsub.f32 %v10481_v41, %v2142_v15 }
 0x7a9   :  { %v2164_v19 = vmul.f32 1.442695, %v2155_v17 }
 0x7aa   :  { %v2162_v21 = vmul.f32 1.442695, %v2154_v18  ;;  %v2151_v22 = vpop.xlane.xlu1 %2150 }
 0x7ab   :  { %9699 = vpow2.f32 %v2164_v19  ;;  %v2157_v55 = vsub.f32 %v10487_v44, %v2151_v22  ;;  %v2148_v36 = vpop.xlane.xlu0 %2147 }
 0x7ac   :  { %9701 = vpow2.f32 %v2162_v21  ;;  %v2156_v37 = vsub.f32 %v10489_v45, %v2148_v36 }
 0x7ad   :  { %v2168_v56 = vmul.f32 1.442695, %v2157_v55 }
 0x7ae   :  { %v2166_v23 = vmul.f32 1.442695, %v2156_v37 }
 0x7af   :  { %9703 = vpow2.f32 %v2168_v56 }
 0x7b0   :  { %9705 = vpow2.f32 %v2166_v23  ;;  %v7255_v23 = vld [vmem:[%s11894_s9 + $0x10] sm:$0xff] }
 0x7b1   :  { %v10544_v16 = vpop.eup %9695 }
 0x7b2   :  { %v9698_v40 = vpop.eup %9697  ;;  %v2173_v41 = vsel %vm636_vm3, %v10544_v16, 0.0 }
 0x7b3   :  { %2174 = vadd.xlane.f32.xlu1 %v2173_v41  ;;  %v2170_v60 = vsel %vm636_vm3, %v9698_v40, 0.0 }
 0x7b4   :  { %2171 = vadd.xlane.f32.xlu0 %v2170_v60 }
 0x7b5   :  { %v10549_v27 = vpop.eup %9699 }
 0x7b6   :  { %v10551_v44 = vpop.eup %9701  ;;  %v2179_v45 = vsel %vm636_vm3, %v10549_v27, 0.0 }
 0x7b7   :  { %2180 = vadd.xlane.f32.xlu1 %v2179_v45  ;;  %v2176_v0 = vsel %vm636_vm3, %v10551_v44, 0.0 }
 0x7b8   :  { %2177 = vadd.xlane.f32.xlu0 %v2176_v0 }
 0x7b9   :  { %v10557_v24 = vpop.eup %9703 }
 0x7ba   :  { %v10559_v32 = vpop.eup %9705  ;;  %v2185_v33 = vsel %vm636_vm3, %v10557_v24, 0.0 }
 0x7bb   :  { %2186 = vadd.xlane.f32.xlu1 %v2185_v33  ;;  %v2182_v25 = vsel %vm636_vm3, %v10559_v32, 0.0 }
 0x7bc   :  { %2183 = vadd.xlane.f32.xlu0 %v2182_v25 }
 0x81a   :  { %v8318_v43 = vpop.f32.mrb[24].mxu0 }
 0x81b   :  { %v1422_v46 = vpop.f32.mrb[25].mxu0 }
 0x81c   :  { %8327 = vmatprep.mubr.msk.f32.mxu0 %vm504_vm1, %v1422_v46 }
 0x81d   :  { %8328 = vmatmul.mubr.msk.f32.vlgmr.msra.gmra.mrb[30].mxu0 %vm504_vm1, %v8318_v43 }
 0x81e   :  { %v8321_v49 = vpop.f32.mrb[26].mxu0  ;;  %8337 = vmatpush3.msra.mxu0 %v816_v28 }
 0x81f   :  { %v1432_v52 = vpop.f32.mrb[27].mxu0  ;;  %9212 = vmatprep.subr.bf16.mxu0 %v9211_v47 }
 0x820   :  { %8330 = vmatprep.mubr.msk.f32.mxu0 %vm504_vm1, %v1432_v52 }
 0x821   :  { %8331 = vmatmul.mubr.msk.f32.gmra.mrb[32].mxu0 %vm504_vm1, %v8321_v49 }
 0x822   :  { %v8324_v54 = vpop.f32.mrb[28].mxu0 }
 0x823   :  { %v1442_v58 = vpop.f32.mrb[29].mxu0 }
 0x824   :  { %8333 = vmatprep.mubr.msk.f32.mxu0 %vm504_vm1, %v1442_v58 }
 0x825   :  { %8334 = vmatmul.mubr.msk.f32.gmra.mrb[34].mxu0 %vm504_vm1, %v8324_v54 }
 0x826   :  { %8338 = vmatprep.mubr.msk.f32.mxu0 %vm504_vm1, %v10281_v6 }
 0x829   :  { %8339 = vmatmul.mubr.msk.f32.vlgmr.msra.gmra.mrb[30].mxu0 %vm504_vm1, %v10279_v4 }
 0x82a   :  { %8341 = vmatprep.mubr.msk.f32.mxu0 %vm504_vm1, %v10285_v8  ;;  %9214 = vmatpush3.bf16.msra.mxu0 %v9211_v47 }
 0x82b   :  { %9216 = vmatprep.subr.bf16.mxu0 %v9215_v59 }
 0x82d   :  { %8342 = vmatmul.mubr.msk.f32.gmra.mrb[32].mxu0 %vm504_vm1, %v10283_v7 }
 0x82e   :  { %8344 = vmatprep.mubr.msk.f32.mxu0 %vm504_vm1, %v10289_v10  ;;  %9218 = vmatpush3.bf16.msra.mxu0 %v9215_v59 }
 0x831   :  { %8345 = vmatmul.mubr.msk.f32.gmra.mrb[34].mxu0 %vm504_vm1, %v10287_v9  ;;  %v7230_v9 = vld [vmem:[%s11891_s8 + $0x2] ss:$0 sm:$0xff] }
 0x832   :  { %8389 = vmatprep.mubr.msk.f32.mxu0 %vm64_vm0, %v10068_v20 }
 0x835   :  { %8390 = vmatmul.mubr.msk.f32.vlgmr.msra.gmra.mrb[36].mxu0 %vm64_vm0, %v10082_v29 }
 0x836   :  { %8392 = vmatprep.mubr.msk.f32.mxu0 %vm64_vm0, %v10085_v31 }
 0x839   :  { %8393 = vmatmul.mubr.msk.f32.gmra.mrb[38].mxu0 %vm64_vm0, %v10094_v38 }
 0x83a   :  { %8395 = vmatprep.mubr.msk.f32.mxu0 %vm64_vm0, %v10099_v34 }
 0x83d   :  { %8396 = vmatmul.mubr.msk.f32.gmra.mrb[40].mxu0 %vm64_vm0, %v10109_v35 }
 0x840   :  { %v2175_v8 = vpop.xlane.xlu1 %2174 }
 0x841   :  { %v2172_v4 = vpop.xlane.xlu0 %2171 }
 0x842   :  { %9707 = vrcp.f32 %v2172_v4 }
 0x843   :  { %9709 = vrcp.f32 %v2175_v8 }
 0x844   :  { %v2181_v3 = vpop.xlane.xlu1 %2180 }
 0x845   :  { %v2178_v10 = vpop.xlane.xlu0 %2177 }
 0x846   :  { %9711 = vrcp.f32 %v2178_v10 }
 0x847   :  { %9713 = vrcp.f32 %v2181_v3 }
 0x848   :  { %v2187_v18 = vpop.xlane.xlu1 %2186 }
 0x849   :  { %v2184_v14 = vpop.xlane.xlu0 %2183 }
 0x84a   :  { %9715 = vrcp.f32 %v2184_v14 }
 0x84b   :  { %9717 = vrcp.f32 %v2187_v18 }
 0x84c   :  { %v9708_v6 = vpop.eup %9707 }
 0x84d   :  { %v2194_v7 = vmul.f32 %v9708_v6, %v9698_v40  ;;  %v9710_v56 = vpop.eup %9709 }
 0x84e   :  { %v2195_v41 = vmul.f32 %v9710_v56, %v10544_v16 }
 0x84f   :  { %8431 = vmatprep.mubr.msk.f32.mxu0 %vm636_vm3, %v2194_v7 }
 0x850   :  { %v9712_v40 = vpop.eup %9711 }
 0x851   :  { %v9714_v60 = vpop.eup %9713  ;;  %v2196_v45 = vmul.f32 %v9712_v40, %v10551_v44  ;;  %v7274_v44 = vld [vmem:[%s11888_s5 + $0x60] sm:$0xff] }
 0x852   :  { %v2197_v33 = vmul.f32 %v9714_v60, %v10549_v27  ;;  %v9257_v27 = vpack.c.bf16 %v7275_v42, %v7274_v44 }
 0x854   :  { %v9716_v0 = vpop.eup %9715 }
 0x855   :  { %v9718_v25 = vpop.eup %9717  ;;  %v2198_v39 = vmul.f32 %v9716_v0, %v10559_v32  ;;  %v7276_v32 = vld [vmem:[%s11888_s5 + $0x70] sm:$0xff] }
 0x856   :  { %v2199_v16 = vmul.f32 %v9718_v25, %v10557_v24  ;;  %v7277_v24 = vld [vmem:[%s11888_s5 + $0x78] sm:$0xff] }
 0x857   :  { %v9261_v47 = vpack.c.bf16 %v7277_v24, %v7276_v32 }
 0x908   :  { %v8391_v26 = vpop.f32.mrb[36].mxu0 }
 0x909   :  { %v1980_v28 = vadd.f32 %v8391_v26, %v7230_v9  ;;  %v1974_v63 = vpop.f32.mrb[37].mxu0 }
 0x90a   :  { %v1975_v11 = vadd.f32 %v7230_v9, %v1974_v63 }
 0x90c   :  { %v9237_v12 = vpack.c.bf16 %v1980_v28, %v1975_v11  ;;  %v8394_v13 = vpop.f32.mrb[38].mxu0 }
 0x90d   :  { %v1990_v30 = vadd.f32 %v8394_v13, %v7230_v9  ;;  %v1984_v17 = vpop.f32.mrb[39].mxu0 }
 0x90e   :  { %v1985_v15 = vadd.f32 %v7230_v9, %v1984_v17  ;;  %9238 = vmatprep.subr.bf16.mxu0 %v9237_v12 }
 0x90f   :  { %9240 = vmatpush3.bf16.msra.mxu0 %v9237_v12 }
 0x910   :  { %v9241_v19 = vpack.c.bf16 %v1990_v30, %v1985_v15  ;;  %v8397_v21 = vpop.f32.mrb[40].mxu0 }
 0x911   :  { %v2000_v22 = vadd.f32 %v8397_v21, %v7230_v9  ;;  %v1994_v55 = vpop.f32.mrb[41].mxu0 }
 0x912   :  { %v1995_v36 = vadd.f32 %v7230_v9, %v1994_v55  ;;  %9242 = vmatprep.subr.bf16.mxu0 %v9241_v19 }
 0x913   :  { %9244 = vmatpush3.bf16.msra.mxu0 %v9241_v19 }
 0x914   :  { %v9245_v37 = vpack.c.bf16 %v2000_v22, %v1995_v36 }
 0x916   :  { %9246 = vmatprep.subr.bf16.mxu0 %v9245_v37 }
 0x917   :  { %9248 = vmatpush3.bf16.msra.mxu0 %v9245_v37 }
 0x918   :  { %8440 = vmatprep.subr.mxu0 %v7255_v23 }
 0x91a   :  { %8432 = vmatmul.mubr.msk.f32.vlgmr.msra.gmra.mrb[42].mxu0 %vm636_vm3, %v2195_v41 }
 0x91b   :  { %8434 = vmatprep.mubr.msk.f32.mxu0 %vm636_vm3, %v2196_v45  ;;  %8441 = vmatpush3.msra.mxu0 %v7255_v23 }
 0x91c   :  { %9258 = vmatprep.subr.bf16.mxu0 %v9257_v27 }
 0x91e   :  { %8435 = vmatmul.mubr.msk.f32.gmra.mrb[44].mxu0 %vm636_vm3, %v2197_v33 }
 0x91f   :  { %8437 = vmatprep.mubr.msk.f32.mxu0 %vm636_vm3, %v2198_v39 }
 0x922   :  { %8438 = vmatmul.mubr.msk.f32.gmra.mrb[46].mxu0 %vm636_vm3, %v2199_v16 }
 0x9ed   :  { %v8433_v43 = vpop.f32.mrb[42].mxu0 }
 0x9ee   :  { %v2284_v46 = vpop.f32.mrb[43].mxu0 }
 0x9ef   :  { %8442 = vmatprep.mubr.msk.f32.mxu0 %vm504_vm1, %v2284_v46 }
 0x9f0   :  { %8443 = vmatmul.mubr.msk.f32.vlgmr.msra.gmra.mrb[30].mxu0 %vm504_vm1, %v8433_v43  ;;  %v7335_v43 = vld [vmem:[%s11907_s26 + $0x38] sm:$0xff] }
 0x9f1   :  { %v8436_v49 = vpop.f32.mrb[44].mxu0  ;;  %9260 = vmatpush3.bf16.msra.mxu0 %v9257_v27 }
 0x9f2   :  { %v2294_v52 = vpop.f32.mrb[45].mxu0  ;;  %9262 = vmatprep.subr.bf16.mxu0 %v9261_v47 }
 0x9f3   :  { %8445 = vmatprep.mubr.msk.f32.mxu0 %vm504_vm1, %v2294_v52 }
 0x9f4   :  { %8446 = vmatmul.mubr.msk.f32.gmra.mrb[32].mxu0 %vm504_vm1, %v8436_v49  ;;  %v7334_v49 = vld [vmem:[%s11907_s26 + $0x30] sm:$0xff] }
 0x9f5   :  { %v8439_v54 = vpop.f32.mrb[46].mxu0  ;;  %9264 = vmatpush3.bf16.msra.mxu0 %v9261_v47 }
 0x9f6   :  { %v2304_v58 = vpop.f32.mrb[47].mxu0 }
 0x9f7   :  { %8448 = vmatprep.mubr.msk.f32.mxu0 %vm504_vm1, %v2304_v58  ;;  %v3593_v58 = vsel %vm64_vm0, %v7334_v49, 0.0 }
 0x9f8   :  { %8449 = vmatmul.mubr.msk.f32.gmra.mrb[34].mxu0 %vm504_vm1, %v8439_v54  ;;  %v3596_v54 = vsel %vm64_vm0, %v7335_v43, 0.0 }
 0x9f9   :  { %8476 = vmatprep.mubr.msk.f32.mxu0 %vm64_vm0, %v10068_v20  ;;  %v7279_v20 = vld [vmem:[%s11893_s6 + $0x3] ss:$0 sm:$0xff] }
 0x9fc   :  { %8477 = vmatmul.mubr.msk.f32.vlgmr.msra.gmra.mrb[48].mxu0 %vm64_vm0, %v10082_v29 }
 0x9fd   :  { %8479 = vmatprep.mubr.msk.f32.mxu0 %vm64_vm0, %v10085_v31 }
 0xa00   :  { %8480 = vmatmul.mubr.msk.f32.gmra.mrb[50].mxu0 %vm64_vm0, %v10094_v38 }
 0xa01   :  { %8482 = vmatprep.mubr.msk.f32.mxu0 %vm64_vm0, %v10099_v34 }
 0xa04   :  { %8483 = vmatmul.mubr.msk.f32.gmra.mrb[52].mxu0 %vm64_vm0, %v10109_v35 }
 0xa05   :  { %8514 = vmatprep.mubr.msk.f32.mxu0 %vm504_vm1, %v2514_v62  ;;  %v7337_v62 = vld [vmem:[%s11907_s26 + $0x48] sm:$0xff] }
 0xacf   :  { %v8478_v29 = vpop.f32.mrb[48].mxu0 }
 0xad0   :  { %v2627_v31 = vadd.f32 %v8478_v29, %v7279_v20  ;;  %v2621_v2 = vpop.f32.mrb[49].mxu0  ;;  %v3602_v29 = vsel %vm64_vm0, %v7337_v62, 0.0 }
 0xad1   :  { %v2622_v59 = vadd.f32 %v7279_v20, %v2621_v2  ;;  %v10722_v2 = vld [vmem:[%s11907_s26 + $0x58] sm:$0xff] }
 0xad3   :  { %v9273_v38 = vpack.c.bf16 %v2627_v31, %v2622_v59  ;;  %v8481_v4 = vpop.f32.mrb[50].mxu0  ;;  %v10727_v59 = vld [vmem:[%s11907_s26 + $0x50] sm:$0xff] }
 0xad4   :  { %v2637_v6 = vadd.f32 %v8481_v4, %v7279_v20  ;;  %v2631_v34 = vpop.f32.mrb[51].mxu0  ;;  %v3605_v4 = vsel %vm64_vm0, %v10727_v59, 0.0 }
 0xad5   :  { %v2632_v7 = vadd.f32 %v7279_v20, %v2631_v34  ;;  %9275 = vmatprep.subr.msk.bf16.mxu0 %vm10142_vm2, %v9273_v38 }
 0xad6   :  { %9278 = vmatpush3.bf16.xpose.msk.msra.mxu0 %vm10142_vm2, %v9273_v38  ;;  %v3608_v38 = vsel %vm64_vm0, %v10722_v2, 0.0 }
 0xad7   :  { %v9279_v35 = vpack.c.bf16 %v2637_v6, %v2632_v7  ;;  %v8484_v48 = vpop.f32.mrb[52].mxu0  ;;  %v7316_v6 = vld [vmem:[%s11894_s9 + $0x18] sm:$0xff] }
 0xad8   :  { %v2647_v51 = vadd.f32 %v8484_v48, %v7279_v20  ;;  %v2641_v8 = vpop.f32.mrb[53].mxu0 }
 0xad9   :  { %v2642_v9 = vadd.f32 %v7279_v20, %v2641_v8  ;;  %9281 = vmatprep.subr.msk.bf16.mxu0 %vm10142_vm2, %v9279_v35  ;;  %v7336_v20 = vld [vmem:[%s11907_s26 + $0x40] sm:$0xff] }
 0xada   :  { %v3599_v31 = vsel %vm64_vm0, %v7336_v20, 0.0 }
 0xadb   :  { %v9285_v10 = vpack.c.bf16 %v2647_v51, %v2642_v9 }
 0xade   :  { %9284 = vmatpush3.bf16.xpose.msk.msra.mxu0 %vm10142_vm2, %v9279_v35 }
 0xadf   :  { %9287 = vmatprep.subr.msk.bf16.mxu0 %vm10142_vm2, %v9285_v10 }
 0xae6   :  { %9290 = vmatpush3.bf16.xpose.msk.msra.mxu0 %vm10142_vm2, %v9285_v10 }
 0xae7   :  { %8544 = vmatprep.subr.mxu0 %v7316_v6 }
 0xaed   :  { %8515 = vmatmul.mubr.msk.f32.vlgmr.msra.gmra.mrb[54].mxu0 %vm504_vm1, %v10501_v50 }
 0xaee   :  { %8517 = vmatprep.mubr.msk.f32.mxu0 %vm504_vm1, %v10509_v57  ;;  %8545 = vmatpush3.msra.mxu0 %v7316_v6 }
 0xaf1   :  { %8518 = vmatmul.mubr.msk.f32.gmra.mrb[56].mxu0 %vm504_vm1, %v10506_v53 }
 0xaf2   :  { %8520 = vmatprep.mubr.msk.f32.mxu0 %vm504_vm1, %v10515_v1 }
 0xaf5   :  { %8521 = vmatmul.mubr.msk.f32.gmra.mrb[58].mxu0 %vm504_vm1, %v10512_v61 }
 0xbc0   :  { %v8516_v26 = vpop.f32.mrb[54].mxu0 }
 0xbc1   :  { %v2860_v28 = vpop.f32.mrb[55].mxu0  ;;  %v2892_v63 = vsel %vm636_vm3, %v8516_v26, -inf }
 0xbc2   :  { %2893 = vmax.xlane.f32.xlu1 %v2892_v63  ;;  %v2889_v3 = vsel %vm636_vm3, %v2860_v28, -inf }
 0xbc3   :  { %2890 = vmax.xlane.f32.xlu0 %v2889_v3 }
 0xbc4   :  { %v8519_v50 = vpop.f32.mrb[56].mxu0 }
 0xbc5   :  { %v2870_v11 = vpop.f32.mrb[57].mxu0  ;;  %v2898_v57 = vsel %vm636_vm3, %v8519_v50, -inf }
 0xbc6   :  { %2899 = vmax.xlane.f32.xlu1 %v2898_v57  ;;  %v2895_v53 = vsel %vm636_vm3, %v2870_v11, -inf }
 0xbc7   :  { %2896 = vmax.xlane.f32.xlu0 %v2895_v53 }
 0xbc8   :  { %v8522_v1 = vpop.f32.mrb[58].mxu0 }
 0xbc9   :  { %v2880_v12 = vpop.f32.mrb[59].mxu0  ;;  %v2904_v61 = vsel %vm636_vm3, %v8522_v1, -inf }
 0xbca   :  { %2905 = vmax.xlane.f32.xlu1 %v2904_v61  ;;  %v2901_v13 = vsel %vm636_vm3, %v2880_v12, -inf }
 0xbcb   :  { %2902 = vmax.xlane.f32.xlu0 %v2901_v13 }
 0xc4f   :  { %v2894_v14 = vpop.xlane.xlu1 %2893 }
 0xc50   :  { %v2908_v30 = vsub.f32 %v8516_v26, %v2894_v14  ;;  %v2891_v17 = vpop.xlane.xlu0 %2890 }
 0xc51   :  { %v2907_v15 = vsub.f32 %v2860_v28, %v2891_v17 }
 0xc52   :  { %v2915_v18 = vmul.f32 1.442695, %v2908_v30 }
 0xc53   :  { %v2913_v19 = vmul.f32 1.442695, %v2907_v15  ;;  %v2900_v21 = vpop.xlane.xlu1 %2899 }
 0xc54   :  { %9719 = vpow2.f32 %v2915_v18  ;;  %v2910_v22 = vsub.f32 %v8519_v50, %v2900_v21  ;;  %v2897_v55 = vpop.xlane.xlu0 %2896 }
 0xc55   :  { %9721 = vpow2.f32 %v2913_v19  ;;  %v2909_v36 = vsub.f32 %v2870_v11, %v2897_v55 }
 0xc56   :  { %v2919_v37 = vmul.f32 1.442695, %v2910_v22 }
 0xc57   :  { %v2917_v56 = vmul.f32 1.442695, %v2909_v36  ;;  %v2906_v23 = vpop.xlane.xlu1 %2905 }
 0xc58   :  { %9723 = vpow2.f32 %v2919_v37  ;;  %v2912_v40 = vsub.f32 %v8522_v1, %v2906_v23  ;;  %v2903_v41 = vpop.xlane.xlu0 %2902 }
 0xc59   :  { %9725 = vpow2.f32 %v2917_v56  ;;  %v2911_v60 = vsub.f32 %v2880_v12, %v2903_v41 }
 0xc5a   :  { %v2923_v45 = vmul.f32 1.442695, %v2912_v40 }
 0xc5b   :  { %v2921_v0 = vmul.f32 1.442695, %v2911_v60 }
 0xc5c   :  { %9727 = vpow2.f32 %v2923_v45 }
 0xc5d   :  { %9729 = vpow2.f32 %v2921_v0 }
 0xc5e   :  { %v9720_v33 = vpop.eup %9719 }
 0xc5f   :  { %v9722_v25 = vpop.eup %9721  ;;  %v2928_v39 = vsel %vm636_vm3, %v9720_v33, 0.0 }
 0xc60   :  { %2929 = vadd.xlane.f32.xlu1 %v2928_v39  ;;  %v2925_v16 = vsel %vm636_vm3, %v9722_v25, 0.0 }
 0xc61   :  { %2926 = vadd.xlane.f32.xlu0 %v2925_v16 }
 0xc62   :  { %v10690_v44 = vpop.eup %9723 }
 0xc63   :  { %v9726_v42 = vpop.eup %9725  ;;  %v2934_v27 = vsel %vm636_vm3, %v10690_v44, 0.0 }
 0xc64   :  { %2935 = vadd.xlane.f32.xlu1 %v2934_v27  ;;  %v2931_v32 = vsel %vm636_vm3, %v9726_v42, 0.0 }
 0xc65   :  { %2932 = vadd.xlane.f32.xlu0 %v2931_v32 }
 0xc66   :  { %v10695_v24 = vpop.eup %9727 }
 0xc67   :  { %v10700_v46 = vpop.eup %9729  ;;  %v2940_v47 = vsel %vm636_vm3, %v10695_v24, 0.0 }
 0xc68   :  { %2941 = vadd.xlane.f32.xlu1 %v2940_v47  ;;  %v2937_v52 = vsel %vm636_vm3, %v10700_v46, 0.0  ;;  %v3696_v47 = vld [vmem:[%s11908_s24 + $0x8] sm:$0xff] }
 0xc69   :  { %2938 = vadd.xlane.f32.xlu0 %v2937_v52 }
 0xc6c   :  { %3597 = vadd.xlane.f32.xlu1 %v3596_v54 }
 0xc6d   :  { %3594 = vadd.xlane.f32.xlu0 %v3593_v58 }
 0xc70   :  { %3603 = vadd.xlane.f32.xlu1 %v3602_v29 }
 0xc71   :  { %3600 = vadd.xlane.f32.xlu0 %v3599_v31 }
 0xc74   :  { %3609 = vadd.xlane.f32.xlu1 %v3608_v38 }
 0xc75   :  { %3606 = vadd.xlane.f32.xlu0 %v3605_v4 }
 0xced   :  { %v2930_v34 = vpop.xlane.xlu1 %2929 }
 0xcee   :  { %9731 = vrcp.f32 %v2930_v34  ;;  %v2927_v7 = vpop.xlane.xlu0 %2926 }
 0xcef   :  { %9733 = vrcp.f32 %v2927_v7 }
 0xcf1   :  { %v2936_v35 = vpop.xlane.xlu1 %2935 }
 0xcf2   :  { %9735 = vrcp.f32 %v2936_v35  ;;  %v2933_v48 = vpop.xlane.xlu0 %2932 }
 0xcf3   :  { %9737 = vrcp.f32 %v2933_v48 }
 0xcf5   :  { %v2942_v51 = vpop.xlane.xlu1 %2941 }
 0xcf6   :  { %9739 = vrcp.f32 %v2942_v51  ;;  %v2939_v8 = vpop.xlane.xlu0 %2938 }
 0xcf7   :  { %9741 = vrcp.f32 %v2939_v8 }
 0xcf8   :  { %v9732_v9 = vpop.eup %9731 }
 0xcf9   :  { %v9734_v10 = vpop.eup %9733  ;;  %v3598_v26 = vpop.xlane.xlu1 %3597  ;;  %v2950_v50 = vmul.f32 %v9732_v9, %v9720_v33 }
 0xcfa   :  { %v2949_v28 = vmul.f32 %v9734_v10, %v9722_v25  ;;  %v3595_v63 = vpop.xlane.xlu0 %3594  ;;  %v3612_v3 = vmul.f32 0.03125, %v3598_v26  ;;  %v3697_v10 = vld [vmem:[%s11908_s24 + $0x10] sm:$0xff]  ;;  %v3698_v26 = vld [vmem:[%s11908_s24 + $0x18] sm:$0xff] }
 0xcfb   :  { %v3611_v11 = vmul.f32 0.03125, %v3595_v63 }
 0xcfc   :  { %v9736_v57 = vpop.eup %9735  ;;  %8535 = vmatprep.mubr.msk.f32.mxu1 %vm636_vm3, %v2949_v28  ;;  %v10737_v53 = vsub.f32 %v7335_v43, %v3612_v3 }
 0xcfd   :  { %v9738_v1 = vpop.eup %9737  ;;  %8536 = vmatmul.mubr.msk.f32.vlgmr.msra.gmra.mrb[60].mxu1 %vm636_vm3, %v2950_v50  ;;  %v10740_v12 = vsub.f32 %v7334_v49, %v3611_v11  ;;  %v3604_v61 = vpop.xlane.xlu1 %3603  ;;  %v2952_v15 = vmul.f32 %v9736_v57, %v10690_v44  ;;  %v7340_v11 = vld [vmem:[%s11889_s1] ss:$0 sm:$0xff] }
 0xcfe   :  { %v2951_v13 = vmul.f32 %v9738_v1, %v9726_v42  ;;  %v3601_v14 = vpop.xlane.xlu0 %3600  ;;  %v3614_v30 = vmul.f32 0.03125, %v3604_v61  ;;  %v3624_v17 = vmul.f32 %v10737_v53, %v10737_v53  ;;  %v9347_v1 = vpack.c.bf16 %v3698_v26, %v3697_v10  ;;  %v3819_v61 = vld [vmem:[%s11888_s5] sm:$0xff] }
 0xcff   :  { %v3613_v18 = vmul.f32 0.03125, %v3601_v14  ;;  %v3623_v19 = vmul.f32 %v10740_v12, %v10740_v12  ;;  %v9880_v26 = vld [vmem:[%s11907_s26 + $0x20] sm:$0xff] }
 0xd00   :  { %v9740_v21 = vpop.eup %9739  ;;  %8538 = vmatprep.mubr.msk.f32.mxu1 %vm636_vm3, %v2951_v13  ;;  %v10748_v22 = vsub.f32 %v7337_v62, %v3614_v30  ;;  %v3632_v55 = vsel %vm64_vm0, %v3624_v17, 0.0  ;;  %v3820_v13 = vld [vmem:[%s11888_s5 + $0x8] sm:$0xff] }
 0xd01   :  { %v9742_v36 = vpop.eup %9741  ;;  %8539 = vmatmul.mubr.msk.f32.gmra.mrb[62].mxu1 %vm636_vm3, %v2952_v15  ;;  %v10752_v37 = vsub.f32 %v7336_v20, %v3613_v18  ;;  %v3629_v56 = vsel %vm64_vm0, %v3623_v19, 0.0  ;;  %3633 = vadd.xlane.f32.xlu1 %v3632_v55  ;;  %v3610_v23 = vpop.xlane.xlu1 %3609  ;;  %v2954_v0 = vmul.f32 %v9740_v21, %v10695_v24  ;;  %v7341_v19 = vld [vmem:[%s11890_s2] ss:$0 sm:$0xff]  ;;  %v9351_v55 = vpack.c.bf16 %v3820_v13, %v3819_v61 }
 0xd02   :  { %v2953_v40 = vmul.f32 %v9742_v36, %v10700_v46  ;;  %3630 = vadd.xlane.f32.xlu0 %v3629_v56  ;;  %v3607_v41 = vpop.xlane.xlu0 %3606  ;;  %v3616_v60 = vmul.f32 0.03125, %v3610_v23  ;;  %v3626_v45 = vmul.f32 %v10748_v22, %v10748_v22  ;;  %v3695_v46 = vld [vmem:[%s11908_s24] sm:$0xff] }
 0xd03   :  { %v3615_v33 = vmul.f32 0.03125, %v3607_v41  ;;  %v3625_v25 = vmul.f32 %v10752_v37, %v10752_v37  ;;  %v9343_v49 = vpack.c.bf16 %v3696_v47, %v3695_v46  ;;  %v7323_v46 = vld [vmem:[%s11895_s10] ss:$0 sm:$0xff]  ;;  %v9875_v47 = vld [vmem:[%s11907_s26 + $0x8] sm:$0xff] }
 0xd04   :  { %8541 = vmatprep.mubr.msk.f32.mxu1 %vm636_vm3, %v2953_v40  ;;  %v10763_v39 = vsub.f32 %v10722_v2, %v3616_v60  ;;  %v3638_v16 = vsel %vm64_vm0, %v3626_v45, 0.0  ;;  %v3821_v45 = vld [vmem:[%s11888_s5 + $0x10] sm:$0xff] }
 0xd05   :  { %8542 = vmatmul.mubr.msk.f32.gmra.mrb[64].mxu1 %vm636_vm3, %v2954_v0  ;;  %v10768_v44 = vsub.f32 %v10727_v59, %v3615_v33  ;;  %v3635_v42 = vsel %vm64_vm0, %v3625_v25, 0.0  ;;  %3639 = vadd.xlane.f32.xlu1 %v3638_v16 }
 0xd06   :  { %3636 = vadd.xlane.f32.xlu0 %v3635_v42  ;;  %v3628_v27 = vmul.f32 %v10763_v39, %v10763_v39  ;;  %9344 = vmatprep.subr.bf16.mxu0 %v9343_v49 }
 0xd07   :  { %v3627_v32 = vmul.f32 %v10768_v44, %v10768_v44 }
 0xd08   :  { %v3644_v24 = vsel %vm64_vm0, %v3628_v27, 0.0 }
 0xd09   :  { %v3641_v43 = vsel %vm64_vm0, %v3627_v32, 0.0  ;;  %3645 = vadd.xlane.f32.xlu1 %v3644_v24 }
 0xd0a   :  { %3642 = vadd.xlane.f32.xlu0 %v3641_v43 }
 0xd8e   :  { %v3634_v54 = vpop.xlane.xlu1 %3633 }
 0xd8f   :  { %v3631_v52 = vpop.xlane.xlu0 %3630  ;;  %v3648_v29 = vmul.f32 0.03125, %v3634_v54  ;;  %v9876_v54 = vld [vmem:[%s11907_s26] sm:$0xff] }
 0xd90   :  { %v3647_v62 = vmul.f32 0.03125, %v3631_v52 }
 0xd91   :  { %v3654_v38 = vadd.f32 1e-06, %v3648_v29 }
 0xd92   :  { %v3640_v20 = vpop.xlane.xlu1 %3639  ;;  %v3653_v31 = vadd.f32 1e-06, %v3647_v62 }
 0xd93   :  { %v3637_v58 = vpop.xlane.xlu0 %3636  ;;  %v3650_v4 = vmul.f32 0.03125, %v3640_v20 }
 0xd94   :  { %v3649_v2 = vmul.f32 0.03125, %v3637_v58  ;;  %9743 = vrsqrt.f32 %v3653_v31  ;;  %v9877_v31 = vld [vmem:[%s11907_s26 + $0x18] sm:$0xff] }
 0xd95   :  { %9745 = vrsqrt.f32 %v3654_v38  ;;  %v3656_v35 = vadd.f32 1e-06, %v3650_v4  ;;  %v9878_v4 = vld [vmem:[%s11907_s26 + $0x10] sm:$0xff] }
 0xd96   :  { %v3655_v6 = vadd.f32 1e-06, %v3649_v2  ;;  %v3646_v7 = vpop.xlane.xlu1 %3645 }
 0xd97   :  { %v3643_v59 = vpop.xlane.xlu0 %3642  ;;  %v3652_v48 = vmul.f32 0.03125, %v3646_v7 }
 0xd98   :  { %v3651_v34 = vmul.f32 0.03125, %v3643_v59  ;;  %9747 = vrsqrt.f32 %v3655_v6 }
 0xd99   :  { %9749 = vrsqrt.f32 %v3656_v35  ;;  %v3658_v8 = vadd.f32 1e-06, %v3652_v48 }
 0xd9a   :  { %v3657_v51 = vadd.f32 1e-06, %v3651_v34 }
 0xd9c   :  { %9751 = vrsqrt.f32 %v3657_v51  ;;  %v9879_v51 = vld [vmem:[%s11907_s26 + $0x28] sm:$0xff] }
 0xd9d   :  { %9753 = vrsqrt.f32 %v3658_v8 }
 0xd9e   :  { %v9744_v9 = vpop.eup %9743 }
 0xd9f   :  { %v9746_v28 = vpop.eup %9745  ;;  %v3665_v63 = vmul.f32 %v9744_v9, %v10740_v12 }
 0xda0   :  { %v3666_v12 = vmul.f32 %v9746_v28, %v10737_v53 }
 0xda1   :  { %v3677_v30 = vmul.f32 %v7340_v11, %v3665_v63 }
 0xda2   :  { %v9748_v50 = vpop.eup %9747  ;;  %v3678_v36 = vmul.f32 %v7340_v11, %v3666_v12 }
 0xda3   :  { %v9750_v14 = vpop.eup %9749  ;;  %v3667_v17 = vmul.f32 %v9748_v50, %v10752_v37  ;;  %v10809_v23 = vadd.f32 %v7341_v19, %v3677_v30  ;;  %v7342_v50 = vld [vmem:[%s11892_s4] ss:$0 sm:$0xff] }
 0xda4   :  { %v3668_v53 = vmul.f32 %v9750_v14, %v10748_v22  ;;  %v3822_v22 = vld [vmem:[%s11888_s5 + $0x18] sm:$0xff]  ;;  %v10819_v0 = vadd.f32 %v7341_v19, %v3678_v36 }
 0xda5   :  { %v3679_v37 = vmul.f32 %v7340_v11, %v3667_v17  ;;  %v9355_v42 = vpack.c.bf16 %v3822_v22, %v3821_v45 }
 0xda6   :  { %v9752_v18 = vpop.eup %9751  ;;  %v3680_v33 = vmul.f32 %v7340_v11, %v3668_v53 }
 0xda7   :  { %v9754_v56 = vpop.eup %9753  ;;  %v3669_v40 = vmul.f32 %v9752_v18, %v10768_v44  ;;  %v10823_v16 = vadd.f32 %v7341_v19, %v3679_v37  ;;  %v7349_v18 = vld [vmem:[%s11893_s6] ss:$0 sm:$0xff] }
 0xda8   :  { %v3670_v25 = vmul.f32 %v9754_v56, %v10763_v39  ;;  %v10827_v27 = vadd.f32 %v7341_v19, %v3680_v33 }
 0xda9   :  { %v3681_v44 = vmul.f32 %v7340_v11, %v3669_v40 }
 0xdaa   :  { %v3682_v32 = vmul.f32 %v7340_v11, %v3670_v25 }
 0xdab   :  { %v10831_v24 = vadd.f32 %v7341_v19, %v3681_v44 }
 0xdac   :  { %v10835_v39 = vadd.f32 %v7341_v19, %v3682_v32  ;;  %v7394_v32 = vld [vmem:[%s11888_s5 + $0x28] sm:$0xff] }
 0xdd0   :  { %v8537_v3 = vpop.f32.mrb[60].mxu1 }
 0xdd1   :  { %v3039_v57 = vpop.f32.mrb[61].mxu1 }
 0xdd2   :  { %8546 = vmatprep.mubr.msk.f32.mxu0 %vm504_vm1, %v3039_v57 }
 0xdd3   :  { %8547 = vmatmul.mubr.msk.f32.vlgmr.msra.gmra.mrb[30].mxu0 %vm504_vm1, %v8537_v3 }
 0xdd4   :  { %v8540_v15 = vpop.f32.mrb[62].mxu1  ;;  %9346 = vmatpush3.bf16.msra.mxu0 %v9343_v49 }
 0xdd5   :  { %v3049_v21 = vpop.f32.mrb[63].mxu1  ;;  %9348 = vmatprep.subr.bf16.mxu0 %v9347_v1 }
 0xdd6   :  { %8549 = vmatprep.mubr.msk.f32.mxu0 %vm504_vm1, %v3049_v21 }
 0xdd7   :  { %8550 = vmatmul.mubr.msk.f32.gmra.mrb[32].mxu0 %vm504_vm1, %v8540_v15 }
 0xdd8   :  { %v8543_v41 = vpop.f32.mrb[64].mxu1  ;;  %9350 = vmatpush3.bf16.msra.mxu0 %v9347_v1 }
 0xdd9   :  { %v3059_v60 = vpop.f32.mrb[65].mxu1  ;;  %9352 = vmatprep.subr.bf16.mxu0 %v9351_v55 }
 0xdda   :  { %8552 = vmatprep.mubr.msk.f32.mxu0 %vm504_vm1, %v3059_v60 }
 0xddb   :  { %8553 = vmatmul.mubr.msk.f32.gmra.mrb[34].mxu0 %vm504_vm1, %v8543_v41 }
 0xddc   :  { %8621 = vmatprep.mubr.msk.f32.mxu0 %vm64_vm0, %v10809_v23 }
 0xddf   :  { %8622 = vmatmul.mubr.msk.f32.vlgmr.msra.gmra.mrb[60].mxu0 %vm64_vm0, %v10819_v0 }
 0xde0   :  { %8624 = vmatprep.mubr.msk.f32.mxu0 %vm64_vm0, %v10823_v16  ;;  %9354 = vmatpush3.bf16.msra.mxu0 %v9351_v55 }
 0xde1   :  { %9356 = vmatprep.subr.bf16.mxu0 %v9355_v42 }
 0xde3   :  { %8625 = vmatmul.mubr.msk.f32.gmra.mrb[62].mxu0 %vm64_vm0, %v10827_v27 }
 0xde4   :  { %8627 = vmatprep.mubr.msk.f32.mxu0 %vm64_vm0, %v10831_v24  ;;  %9358 = vmatpush3.bf16.msra.mxu0 %v9355_v42  ;;  %v7393_v42 = vld [vmem:[%s11888_s5 + $0x20] sm:$0xff] }
 0xde7   :  { %8628 = vmatmul.mubr.msk.f32.gmra.mrb[64].mxu0 %vm64_vm0, %v10835_v39 }
 0xde8   :  { %8638 = vmatprep.mubr.msk.f32.mxu0 %vm64_vm0, %v10809_v23 }
 0xdeb   :  { %8639 = vmatmul.mubr.msk.f32.vlgmr.msra.gmra.mrb[66].mxu0 %vm64_vm0, %v10819_v0 }
 0xdec   :  { %8641 = vmatprep.mubr.msk.f32.mxu0 %vm64_vm0, %v10823_v16 }
 0xdef   :  { %8642 = vmatmul.mubr.msk.f32.gmra.mrb[68].mxu0 %vm64_vm0, %v10827_v27 }
 0xdf0   :  { %8644 = vmatprep.mubr.msk.f32.mxu0 %vm64_vm0, %v10831_v24 }
 0xdf3   :  { %8645 = vmatmul.mubr.msk.f32.gmra.mrb[70].mxu0 %vm64_vm0, %v10835_v39 }
 0xea6   :  { %v8548_v43 = vpop.f32.mrb[30].mxu0 }
 0xea7   :  { %v3190_v49 = vadd.f32 %v9875_v47, %v8548_v43  ;;  %v3154_v52 = vpop.f32.mrb[31].mxu0  ;;  %v9405_v43 = vpack.c.bf16 %v7394_v32, %v7393_v42  ;;  %v7396_v47 = vld [vmem:[%s11888_s5 + $0x38] sm:$0xff] }
 0xea8   :  { %v3189_v58 = vadd.f32 %v9876_v54, %v3154_v52 }
 0xea9   :  { %v10864_v62 = vadd.f32 %v7323_v46, %v3190_v49 }
 0xeaa   :  { %v10866_v20 = vadd.f32 %v7323_v46, %v3189_v58  ;;  %v8551_v29 = vpop.f32.mrb[32].mxu0 }
 0xeab   :  { %v3192_v2 = vadd.f32 %v9877_v31, %v8551_v29  ;;  %v3164_v59 = vpop.f32.mrb[33].mxu0  ;;  %v3213_v38 = vsel %vm64_vm0, %v10864_v62, 0.0 }
 0xeac   :  { %v3191_v6 = vadd.f32 %v9878_v4, %v3164_v59  ;;  %3214 = vadd.xlane.f32.xlu1 %v3213_v38  ;;  %v3210_v34 = vsel %vm64_vm0, %v10866_v20, 0.0 }
 0xead   :  { %v10878_v7 = vadd.f32 %v7323_v46, %v3192_v2  ;;  %3211 = vadd.xlane.f32.xlu0 %v3210_v34 }
 0xeae   :  { %v10880_v35 = vadd.f32 %v7323_v46, %v3191_v6  ;;  %v8554_v48 = vpop.f32.mrb[34].mxu0 }
 0xeaf   :  { %v3194_v8 = vadd.f32 %v9879_v51, %v8554_v48  ;;  %v3174_v9 = vpop.f32.mrb[35].mxu0  ;;  %v3219_v10 = vsel %vm64_vm0, %v10878_v7, 0.0 }
 0xeb0   :  { %v3193_v28 = vadd.f32 %v9880_v26, %v3174_v9  ;;  %3220 = vadd.xlane.f32.xlu1 %v3219_v10  ;;  %v3216_v63 = vsel %vm64_vm0, %v10880_v35, 0.0 }
 0xeb1   :  { %v10892_v3 = vadd.f32 %v7323_v46, %v3194_v8  ;;  %3217 = vadd.xlane.f32.xlu0 %v3216_v63 }
 0xeb2   :  { %v10897_v11 = vadd.f32 %v7323_v46, %v3193_v28  ;;  %v8623_v57 = vpop.f32.mrb[60].mxu0  ;;  %v7395_v46 = vld [vmem:[%s11888_s5 + $0x30] sm:$0xff] }
 0xeb3   :  { %v3225_v1 = vsel %vm64_vm0, %v10892_v3, 0.0  ;;  %v3790_v61 = vpop.f32.mrb[61].mxu0  ;;  %v3796_v49 = vadd.f32 %v8623_v57, %v7342_v50  ;;  %v9409_v54 = vpack.c.bf16 %v7396_v47, %v7395_v46 }
 0xeb4   :  { %3226 = vadd.xlane.f32.xlu1 %v3225_v1  ;;  %v3222_v13 = vsel %vm64_vm0, %v10897_v11, 0.0  ;;  %v3791_v12 = vadd.f32 %v7342_v50, %v3790_v61 }
 0xeb5   :  { %3223 = vadd.xlane.f32.xlu0 %v3222_v13 }
 0xeb6   :  { %v8626_v14 = vpop.f32.mrb[62].mxu0  ;;  %8676 = vmatprep.mubr.msk.f32.mxu0 %vm504_vm1, %v3791_v12 }
 0xeb7   :  { %v3800_v30 = vpop.f32.mrb[63].mxu0  ;;  %v3806_v58 = vadd.f32 %v8626_v14, %v7342_v50 }
 0xeb8   :  { %v3801_v52 = vadd.f32 %v7342_v50, %v3800_v30 }
 0xeba   :  { %v8629_v17 = vpop.f32.mrb[64].mxu0 }
 0xebb   :  { %v3810_v15 = vpop.f32.mrb[65].mxu0  ;;  %v3816_v31 = vadd.f32 %v8629_v17, %v7342_v50 }
 0xebc   :  { %v3811_v29 = vadd.f32 %v7342_v50, %v3810_v15 }
 0xebe   :  { %v8640_v19 = vpop.f32.mrb[66].mxu0 }
 0xebf   :  { %v3902_v21 = vadd.f32 %v8640_v19, %v7349_v18  ;;  %v3896_v55 = vpop.f32.mrb[67].mxu0 }
 0xec0   :  { %v3897_v36 = vadd.f32 %v7349_v18, %v3896_v55 }
 0xec2   :  { %v9367_v53 = vpack.c.bf16 %v3902_v21, %v3897_v36  ;;  %v8643_v56 = vpop.f32.mrb[68].mxu0 }
 0xec3   :  { %v3912_v37 = vadd.f32 %v8643_v56, %v7349_v18  ;;  %v3906_v40 = vpop.f32.mrb[69].mxu0  ;;  %v3312_v56 = vld [vmem:[%s11896_s13] sm:$0xff] }
 0xec4   :  { %9369 = vmatprep.subr.msk.bf16.mxu0 %vm10142_vm2, %v9367_v53  ;;  %v3907_v41 = vadd.f32 %v7349_v18, %v3906_v40 }
 0xec5   :  { %9372 = vmatpush3.bf16.xpose.msk.msra.mxu0 %vm10142_vm2, %v9367_v53 }
 0xec6   :  { %v9373_v60 = vpack.c.bf16 %v3912_v37, %v3907_v41  ;;  %v8646_v45 = vpop.f32.mrb[70].mxu0  ;;  %v3313_v37 = vld [vmem:[%s11896_s13 + $0x8] sm:$0xff]  ;;  %v3314_v41 = vld [vmem:[%s11896_s13 + $0x10] sm:$0xff] }
 0xec7   :  { %v3922_v22 = vadd.f32 %v8646_v45, %v7349_v18  ;;  %v3916_v33 = vpop.f32.mrb[71].mxu0  ;;  %v9303_v40 = vpack.c.bf16 %v3313_v37, %v3312_v56 }
 0xec8   :  { %9375 = vmatprep.subr.msk.bf16.mxu0 %vm10142_vm2, %v9373_v60  ;;  %v3917_v25 = vadd.f32 %v7349_v18, %v3916_v33 }
 0xec9   :  { %9304 = vmatprep.subr.bf16.mxu1 %v9303_v40 }
 0xeca   :  { %v9379_v44 = vpack.c.bf16 %v3922_v22, %v3917_v25  ;;  %9306 = vmatpush3.bf16.msra.mxu1 %v9303_v40 }
 0xecd   :  { %9378 = vmatpush3.bf16.xpose.msk.msra.mxu0 %vm10142_vm2, %v9373_v60  ;;  %v3315_v60 = vld [vmem:[%s11896_s13 + $0x18] sm:$0xff] }
 0xece   :  { %9381 = vmatprep.subr.msk.bf16.mxu0 %vm10142_vm2, %v9379_v44  ;;  %v9307_v45 = vpack.c.bf16 %v3315_v60, %v3314_v41 }
 0xed0   :  { %9308 = vmatprep.subr.bf16.mxu1 %v9307_v45 }
 0xed1   :  { %9310 = vmatpush3.bf16.msra.mxu1 %v9307_v45 }
 0xed5   :  { %9384 = vmatpush3.bf16.xpose.msk.msra.mxu0 %vm10142_vm2, %v9379_v44 }
 0xed6   :  { %9406 = vmatprep.subr.bf16.mxu0 %v9405_v43 }
 0xedc   :  { %8677 = vmatmul.mubr.msk.f32.vlgmr.msra.gmra.mrb[72].mxu0 %vm504_vm1, %v3796_v49 }
 0xedd   :  { %8679 = vmatprep.mubr.msk.f32.mxu0 %vm504_vm1, %v3801_v52  ;;  %9408 = vmatpush3.bf16.msra.mxu0 %v9405_v43 }
 0xede   :  { %9410 = vmatprep.subr.bf16.mxu0 %v9409_v54 }
 0xee0   :  { %8680 = vmatmul.mubr.msk.f32.gmra.mrb[74].mxu0 %vm504_vm1, %v3806_v58  ;;  %v7398_v58 = vld [vmem:[%s11893_s6 + $0x1] ss:$0 sm:$0xff] }
 0xee1   :  { %8682 = vmatprep.mubr.msk.f32.mxu0 %vm504_vm1, %v3811_v29  ;;  %9412 = vmatpush3.bf16.msra.mxu0 %v9409_v54 }
 0xee4   :  { %8683 = vmatmul.mubr.msk.f32.gmra.mrb[76].mxu0 %vm504_vm1, %v3816_v31 }
 0xee5   :  { %8731 = vmatprep.mubr.msk.f32.mxu0 %vm64_vm0, %v10809_v23 }
 0xee8   :  { %8732 = vmatmul.mubr.msk.f32.vlgmr.msra.gmra.mrb[78].mxu0 %vm64_vm0, %v10819_v0 }
 0xee9   :  { %8734 = vmatprep.mubr.msk.f32.mxu0 %vm64_vm0, %v10823_v16 }
 0xeec   :  { %8735 = vmatmul.mubr.msk.f32.gmra.mrb[80].mxu0 %vm64_vm0, %v10827_v27 }
 0xeed   :  { %8737 = vmatprep.mubr.msk.f32.mxu0 %vm64_vm0, %v10831_v24 }
 0xef0   :  { %8738 = vmatmul.mubr.msk.f32.gmra.mrb[82].mxu0 %vm64_vm0, %v10835_v39 }
 0xf39   :  { %v3215_v2 = vpop.xlane.xlu1 %3214 }
 0xf3a   :  { %v3229_v59 = vmul.f32 0.03125, %v3215_v2  ;;  %v3212_v38 = vpop.xlane.xlu0 %3211 }
 0xf3b   :  { %v3228_v4 = vmul.f32 0.03125, %v3212_v38 }
 0xf3c   :  { %v10949_v6 = vsub.f32 %v10864_v62, %v3229_v59 }
 0xf3d   :  { %v10952_v34 = vsub.f32 %v10866_v20, %v3228_v4  ;;  %v3221_v48 = vpop.xlane.xlu1 %3220 }
 0xf3e   :  { %v3231_v51 = vmul.f32 0.03125, %v3221_v48  ;;  %v3218_v8 = vpop.xlane.xlu0 %3217  ;;  %v3241_v9 = vmul.f32 %v10949_v6, %v10949_v6 }
 0xf3f   :  { %v3230_v10 = vmul.f32 0.03125, %v3218_v8  ;;  %v3240_v26 = vmul.f32 %v10952_v34, %v10952_v34 }
 0xf40   :  { %v10959_v28 = vsub.f32 %v10878_v7, %v3231_v51  ;;  %v3249_v63 = vsel %vm64_vm0, %v3241_v9, 0.0 }
 0xf41   :  { %v10963_v50 = vsub.f32 %v10880_v35, %v3230_v10  ;;  %3250 = vadd.xlane.f32.xlu1 %v3249_v63  ;;  %v3227_v57 = vpop.xlane.xlu1 %3226  ;;  %v3246_v1 = vsel %vm64_vm0, %v3240_v26, 0.0 }
 0xf42   :  { %v3233_v61 = vmul.f32 0.03125, %v3227_v57  ;;  %3247 = vadd.xlane.f32.xlu0 %v3246_v1  ;;  %v3224_v13 = vpop.xlane.xlu0 %3223  ;;  %v3243_v12 = vmul.f32 %v10959_v28, %v10959_v28 }
 0xf43   :  { %v3232_v14 = vmul.f32 0.03125, %v3224_v13  ;;  %v3242_v30 = vmul.f32 %v10963_v50, %v10963_v50 }
 0xf44   :  { %v10971_v17 = vsub.f32 %v10892_v3, %v3233_v61  ;;  %v3255_v15 = vsel %vm64_vm0, %v3243_v12, 0.0 }
 0xf45   :  { %v10975_v18 = vsub.f32 %v10897_v11, %v3232_v14  ;;  %3256 = vadd.xlane.f32.xlu1 %v3255_v15  ;;  %v3252_v19 = vsel %vm64_vm0, %v3242_v30, 0.0 }
 0xf46   :  { %3253 = vadd.xlane.f32.xlu0 %v3252_v19  ;;  %v3245_v21 = vmul.f32 %v10971_v17, %v10971_v17 }
 0xf47   :  { %v3244_v55 = vmul.f32 %v10975_v18, %v10975_v18 }
 0xf48   :  { %v3261_v36 = vsel %vm64_vm0, %v3245_v21, 0.0 }
 0xf49   :  { %3262 = vadd.xlane.f32.xlu1 %v3261_v36  ;;  %v3258_v53 = vsel %vm64_vm0, %v3244_v55, 0.0 }
 0xf4a   :  { %3259 = vadd.xlane.f32.xlu0 %v3258_v53 }
 0xfaf   :  { %v10996_v22 = vpop.f32.mrb[72].mxu0 }
 0xfb0   :  { %v10998_v33 = vpop.f32.mrb[73].mxu0  ;;  %v4165_v25 = vsel %vm636_vm3, %v10996_v22, -inf }
 0xfb1   :  { %4166 = vmax.xlane.f32.xlu1 %v4165_v25  ;;  %v4162_v44 = vsel %vm636_vm3, %v10998_v33, -inf  ;;  %v3454_v25 = vld [vmem:[%s11897_s15] sm:$0xff] }
 0xfb2   :  { %4163 = vmax.xlane.f32.xlu0 %v4162_v44  ;;  %v3455_v44 = vld [vmem:[%s11897_s15 + $0x8] sm:$0xff] }
 0xfb3   :  { %v11004_v42 = vpop.f32.mrb[74].mxu0 }
 0xfb4   :  { %v11006_v32 = vpop.f32.mrb[75].mxu0  ;;  %v4171_v43 = vsel %vm636_vm3, %v11004_v42, -inf }
 0xfb5   :  { %4172 = vmax.xlane.f32.xlu1 %v4171_v43  ;;  %v4168_v46 = vsel %vm636_vm3, %v11006_v32, -inf }
 0xfb6   :  { %4169 = vmax.xlane.f32.xlu0 %v4168_v46  ;;  %v9311_v46 = vpack.c.bf16 %v3455_v44, %v3454_v25  ;;  %v3466_v25 = vld [vmem:[%s11897_s15 + $0x60] sm:$0xff]  ;;  %v3467_v44 = vld [vmem:[%s11897_s15 + $0x68] sm:$0xff] }
 0xfb7   :  { %v11012_v47 = vpop.f32.mrb[76].mxu0 }
 0xfb8   :  { %v11014_v49 = vpop.f32.mrb[77].mxu0  ;;  %v4177_v52 = vsel %vm636_vm3, %v11012_v47, -inf  ;;  %9312 = vmatprep.subr.bf16.mxu1 %v9311_v46 }
 0xfb9   :  { %4178 = vmax.xlane.f32.xlu1 %v4177_v52  ;;  %v4174_v54 = vsel %vm636_vm3, %v11014_v49, -inf }
 0xfba   :  { %4175 = vmax.xlane.f32.xlu0 %v4174_v54  ;;  %v7324_v54 = vld [vmem:[%s11898_s11] ss:$0 sm:$0xff] }
 0xfbb   :  { %v8733_v29 = vpop.f32.mrb[78].mxu0 }
 0xfbc   :  { %v4531_v31 = vadd.f32 %v8733_v29, %v7398_v58  ;;  %v4525_v2 = vpop.f32.mrb[79].mxu0 }
 0xfbd   :  { %v4526_v59 = vadd.f32 %v7398_v58, %v4525_v2  ;;  %v7325_v2 = vld [vmem:[%s11899_s12] ss:$0 sm:$0xff] }
 0xfbf   :  { %v9421_v38 = vpack.c.bf16 %v4531_v31, %v4526_v59  ;;  %v8736_v4 = vpop.f32.mrb[80].mxu0 }
 0xfc0   :  { %v4541_v48 = vadd.f32 %v8736_v4, %v7398_v58  ;;  %v4535_v51 = vpop.f32.mrb[81].mxu0 }
 0xfc1   :  { %v4536_v8 = vadd.f32 %v7398_v58, %v4535_v51  ;;  %9423 = vmatprep.subr.msk.bf16.mxu0 %vm10142_vm2, %v9421_v38  ;;  %v3457_v51 = vld [vmem:[%s11897_s15 + $0x18] sm:$0xff] }
 0xfc2   :  { %9426 = vmatpush3.bf16.xpose.msk.msra.mxu0 %vm10142_vm2, %v9421_v38 }
 0xfc3   :  { %v9427_v9 = vpack.c.bf16 %v4541_v48, %v4536_v8  ;;  %v8739_v10 = vpop.f32.mrb[82].mxu0  ;;  %v3456_v48 = vld [vmem:[%s11897_s15 + $0x10] sm:$0xff] }
 0xfc4   :  { %v4551_v26 = vadd.f32 %v8739_v10, %v7398_v58  ;;  %v4545_v63 = vpop.f32.mrb[83].mxu0 }
 0xfc5   :  { %v4546_v57 = vadd.f32 %v7398_v58, %v4545_v63  ;;  %9429 = vmatprep.subr.msk.bf16.mxu0 %vm10142_vm2, %v9427_v9  ;;  %v9315_v63 = vpack.c.bf16 %v3457_v51, %v3456_v48 }
 0xfc7   :  { %v9433_v1 = vpack.c.bf16 %v4551_v26, %v4546_v57 }
 0xfca   :  { %9432 = vmatpush3.bf16.xpose.msk.msra.mxu0 %vm10142_vm2, %v9427_v9 }
 0xfcb   :  { %9435 = vmatprep.subr.msk.bf16.mxu0 %vm10142_vm2, %v9433_v1 }
 0xfce   :  { %v3251_v61 = vpop.xlane.xlu1 %3250 }
 0xfcf   :  { %v3265_v13 = vmul.f32 0.03125, %v3251_v61  ;;  %v3248_v12 = vpop.xlane.xlu0 %3247  ;;  %v3458_v61 = vld [vmem:[%s11897_s15 + $0x20] sm:$0xff] }
 0xfd0   :  { %v3264_v14 = vmul.f32 0.03125, %v3248_v12 }
 0xfd1   :  { %v3271_v30 = vadd.f32 1e-06, %v3265_v13  ;;  %v3459_v13 = vld [vmem:[%s11897_s15 + $0x28] sm:$0xff] }
 0xfd2   :  { %v3270_v15 = vadd.f32 1e-06, %v3264_v14  ;;  %v3257_v19 = vpop.xlane.xlu1 %3256  ;;  %9438 = vmatpush3.bf16.xpose.msk.msra.mxu0 %vm10142_vm2, %v9433_v1 }
 0xfd3   :  { %9755 = vrsqrt.f32 %v3271_v30  ;;  %v3267_v21 = vmul.f32 0.03125, %v3257_v19  ;;  %v3254_v55 = vpop.xlane.xlu0 %3253  ;;  %v9319_v19 = vpack.c.bf16 %v3459_v13, %v3458_v61 }
 0xfd4   :  { %9757 = vrsqrt.f32 %v3270_v15  ;;  %v3266_v36 = vmul.f32 0.03125, %v3254_v55  ;;  %v3460_v55 = vld [vmem:[%s11897_s15 + $0x30] sm:$0xff] }
 0xfd5   :  { %v3273_v53 = vadd.f32 1e-06, %v3267_v21 }
 0xfd6   :  { %v3272_v56 = vadd.f32 1e-06, %v3266_v36  ;;  %v3263_v37 = vpop.xlane.xlu1 %3262  ;;  %v3461_v36 = vld [vmem:[%s11897_s15 + $0x38] sm:$0xff] }
 0xfd7   :  { %9759 = vrsqrt.f32 %v3273_v53  ;;  %v3269_v40 = vmul.f32 0.03125, %v3263_v37  ;;  %v3260_v41 = vpop.xlane.xlu0 %3259  ;;  %v9323_v53 = vpack.c.bf16 %v3461_v36, %v3460_v55  ;;  %v3463_v37 = vld [vmem:[%s11897_s15 + $0x48] sm:$0xff] }
 0xfd8   :  { %9761 = vrsqrt.f32 %v3272_v56  ;;  %v3268_v60 = vmul.f32 0.03125, %v3260_v41  ;;  %v3462_v56 = vld [vmem:[%s11897_s15 + $0x40] sm:$0xff]  ;;  %v3464_v41 = vld [vmem:[%s11897_s15 + $0x50] sm:$0xff] }
 0xfd9   :  { %v3275_v45 = vadd.f32 1e-06, %v3269_v40  ;;  %v9327_v40 = vpack.c.bf16 %v3463_v37, %v3462_v56  ;;  %v3927_v56 = vld [vmem:[%s11887_s7 + $0x10] sm:$0xff]  ;;  %v3928_v37 = vld [vmem:[%s11887_s7 + $0x18] sm:$0xff] }
 0xfda   :  { %v3274_v43 = vadd.f32 1e-06, %v3268_v60  ;;  %v3465_v60 = vld [vmem:[%s11897_s15 + $0x58] sm:$0xff] }
 0xfdb   :  { %9763 = vrsqrt.f32 %v3275_v45  ;;  %v9331_v45 = vpack.c.bf16 %v3465_v60, %v3464_v41 }
 0xfdc   :  { %9765 = vrsqrt.f32 %v3274_v43  ;;  %v9335_v43 = vpack.c.bf16 %v3467_v44, %v3466_v25 }
 0xfdd   :  { %v9756_v52 = vpop.eup %9755 }
 0xfde   :  { %v9758_v58 = vpop.eup %9757  ;;  %v3283_v29 = vmul.f32 %v9756_v52, %v10949_v6  ;;  %v3469_v52 = vld [vmem:[%s11897_s15 + $0x78] sm:$0xff] }
 0xfdf   :  { %v3282_v31 = vmul.f32 %v9758_v58, %v10952_v34 }
 0xfe0   :  { %v3295_v59 = vmul.f32 %v7324_v54, %v3283_v29 }
 0xfe1   :  { %v9760_v38 = vpop.eup %9759  ;;  %v3294_v4 = vmul.f32 %v7324_v54, %v3282_v31 }
 0xfe2   :  { %v9762_v8 = vpop.eup %9761  ;;  %v3285_v6 = vmul.f32 %v9760_v38, %v10959_v28  ;;  %v3307_v10 = vadd.f32 %v7325_v2, %v3295_v59 }
 0xfe3   :  { %v3306_v9 = vadd.f32 %v7325_v2, %v3294_v4  ;;  %v3284_v34 = vmul.f32 %v9762_v8, %v10963_v50  ;;  %v3925_v8 = vld [vmem:[%s11887_s7] sm:$0xff] }
 0xfe4   :  { %v3297_v26 = vmul.f32 %v7324_v54, %v3285_v6  ;;  %v3926_v6 = vld [vmem:[%s11887_s7 + $0x8] sm:$0xff] }
 0xfe5   :  { %v9764_v57 = vpop.eup %9763  ;;  %8563 = vmatprep.mubr.msk.f32.mxu1 %vm64_vm0, %v3306_v9  ;;  %v3296_v1 = vmul.f32 %v7324_v54, %v3284_v34  ;;  %v9359_v9 = vpack.c.bf16 %v3926_v6, %v3925_v8 }
 0xfe6   :  { %v9766_v12 = vpop.eup %9765  ;;  %8564 = vmatmul.mubr.msk.f32.vlgmr.msra.gmra.mrb[66].mxu1 %vm64_vm0, %v3307_v10  ;;  %v3287_v28 = vmul.f32 %v9764_v57, %v10971_v17  ;;  %v3309_v30 = vadd.f32 %v7325_v2, %v3297_v26 }
 0xfe7   :  { %v3308_v50 = vadd.f32 %v7325_v2, %v3296_v1  ;;  %v3286_v14 = vmul.f32 %v9766_v12, %v10975_v18  ;;  %9314 = vmatpush3.bf16.msra.mxu1 %v9311_v46  ;;  %v3468_v46 = vld [vmem:[%s11897_s15 + $0x70] sm:$0xff] }
 0xfe8   :  { %v3299_v15 = vmul.f32 %v7324_v54, %v3287_v28  ;;  %9316 = vmatprep.subr.bf16.mxu1 %v9315_v63 }
 0xfe9   :  { %8566 = vmatprep.mubr.msk.f32.mxu1 %vm64_vm0, %v3308_v50  ;;  %v3298_v21 = vmul.f32 %v7324_v54, %v3286_v14  ;;  %v9339_v54 = vpack.c.bf16 %v3469_v52, %v3468_v46 }
 0xfea   :  { %8567 = vmatmul.mubr.msk.f32.gmra.mrb[68].mxu1 %vm64_vm0, %v3309_v30  ;;  %v3311_v18 = vadd.f32 %v7325_v2, %v3299_v15 }
 0xfeb   :  { %v3310_v17 = vadd.f32 %v7325_v2, %v3298_v21  ;;  %9318 = vmatpush3.bf16.msra.mxu1 %v9315_v63  ;;  %v7326_v21 = vld [vmem:[%s11900_s14] ss:$0 sm:$0xff] }
 0xfec   :  { %9320 = vmatprep.subr.bf16.mxu1 %v9319_v19 }
 0xfed   :  { %8569 = vmatprep.mubr.msk.f32.mxu1 %vm64_vm0, %v3310_v17 }
 0xfee   :  { %8570 = vmatmul.mubr.msk.f32.gmra.mrb[70].mxu1 %vm64_vm0, %v3311_v18 }
 0xfef   :  { %9322 = vmatpush3.bf16.msra.mxu1 %v9319_v19 }
 0xff0   :  { %9324 = vmatprep.subr.bf16.mxu1 %v9323_v53 }
 0xff3   :  { %9326 = vmatpush3.bf16.msra.mxu1 %v9323_v53 }
 0xff4   :  { %9328 = vmatprep.subr.bf16.mxu1 %v9327_v40 }
 0xff7   :  { %9330 = vmatpush3.bf16.msra.mxu1 %v9327_v40 }
 0xff8   :  { %9332 = vmatprep.subr.bf16.mxu1 %v9331_v45 }
 0xffb   :  { %9334 = vmatpush3.bf16.msra.mxu1 %v9331_v45 }
 0xffc   :  { %9336 = vmatprep.subr.bf16.mxu1 %v9335_v43 }
 0xfff   :  { %9338 = vmatpush3.bf16.msra.mxu1 %v9335_v43  ;;  %v9363_v43 = vpack.c.bf16 %v3928_v37, %v3927_v56 }
0x1000   :  { %9340 = vmatprep.subr.bf16.mxu1 %v9339_v54 }
0x1003   :  { %9342 = vmatpush3.bf16.msra.mxu1 %v9339_v54 }
0x1004   :  { %9360 = vmatprep.subr.bf16.mxu1 %v9359_v9 }
0x103e   :  { %v4167_v58 = vpop.xlane.xlu1 %4166 }
0x103f   :  { %v4181_v29 = vsub.f32 %v10996_v22, %v4167_v58  ;;  %v4164_v31 = vpop.xlane.xlu0 %4163 }
0x1040   :  { %v4180_v2 = vsub.f32 %v10998_v33, %v4164_v31 }
0x1041   :  { %v4188_v59 = vmul.f32 1.442695, %v4181_v29 }
0x1042   :  { %v4186_v38 = vmul.f32 1.442695, %v4180_v2  ;;  %v4173_v4 = vpop.xlane.xlu1 %4172 }
0x1043   :  { %9767 = vpow2.f32 %v4188_v59  ;;  %v4183_v48 = vsub.f32 %v11004_v42, %v4173_v4  ;;  %v4170_v51 = vpop.xlane.xlu0 %4169 }
0x1044   :  { %9769 = vpow2.f32 %v4186_v38  ;;  %v4182_v22 = vsub.f32 %v11006_v32, %v4170_v51 }
0x1045   :  { %v4192_v33 = vmul.f32 1.442695, %v4183_v48 }
0x1046   :  { %v4190_v34 = vmul.f32 1.442695, %v4182_v22  ;;  %v4179_v10 = vpop.xlane.xlu1 %4178 }
0x1047   :  { %9771 = vpow2.f32 %v4192_v33  ;;  %v4185_v42 = vsub.f32 %v11012_v47, %v4179_v10  ;;  %v4176_v26 = vpop.xlane.xlu0 %4175  ;;  %v7333_v33 = vld [vmem:[%s11901_s16] ss:$0 sm:$0xff] }
0x1048   :  { %9773 = vpow2.f32 %v4190_v34  ;;  %v4184_v63 = vsub.f32 %v11014_v49, %v4176_v26 }
0x1049   :  { %v4196_v57 = vmul.f32 1.442695, %v4185_v42 }
0x104a   :  { %v4194_v1 = vmul.f32 1.442695, %v4184_v63 }
0x104b   :  { %9775 = vpow2.f32 %v4196_v57 }
0x104c   :  { %9777 = vpow2.f32 %v4194_v1 }
0x104d   :  { %v11113_v61 = vpop.eup %9767 }
0x104e   :  { %v11115_v13 = vpop.eup %9769  ;;  %v4201_v32 = vsel %vm636_vm3, %v11113_v61, 0.0 }
0x104f   :  { %4202 = vadd.xlane.f32.xlu1 %v4201_v32  ;;  %v4198_v12 = vsel %vm636_vm3, %v11115_v13, 0.0 }
0x1050   :  { %4199 = vadd.xlane.f32.xlu0 %v4198_v12 }
0x1051   :  { %v11121_v47 = vpop.eup %9771 }
0x1052   :  { %v11123_v28 = vpop.eup %9773  ;;  %v4207_v49 = vsel %vm636_vm3, %v11121_v47, 0.0 }
0x1053   :  { %4208 = vadd.xlane.f32.xlu1 %v4207_v49  ;;  %v4204_v50 = vsel %vm636_vm3, %v11123_v28, 0.0 }
0x1054   :  { %4205 = vadd.xlane.f32.xlu0 %v4204_v50 }
0x1055   :  { %v11129_v14 = vpop.eup %9775 }
0x1056   :  { %v11131_v30 = vpop.eup %9777  ;;  %v4213_v15 = vsel %vm636_vm3, %v11129_v14, 0.0 }
0x1057   :  { %4214 = vadd.xlane.f32.xlu1 %v4213_v15  ;;  %v4210_v19 = vsel %vm636_vm3, %v11131_v30, 0.0 }
0x1058   :  { %4211 = vadd.xlane.f32.xlu0 %v4210_v19 }
0x10b9   :  { %v8565_v55 = vpop.f32.mrb[66].mxu1 }
0x10ba   :  { %v3413_v36 = vadd.f32 %v8565_v55, %v7326_v21  ;;  %v3407_v17 = vpop.f32.mrb[67].mxu1 }
0x10bb   :  { %v3408_v18 = vadd.f32 %v7326_v21, %v3407_v17 }
0x10bc   :  { %v3443_v53 = vmul.f32 0.4, %v3413_v36  ;;  %vm3437_vm4 = vcmp.ge.f32.partialorder %v3413_v36, 0.0 }
0x10bd   :  { %v3442_v40 = vmul.f32 0.4, %v3408_v18  ;;  %v8568_v41 = vpop.f32.mrb[68].mxu1  ;;  %vm3436_vm5 = vcmp.ge.f32.partialorder %v3408_v18, 0.0 }
0x10be   :  { %v3423_v60 = vadd.f32 %v8568_v41, %v7326_v21  ;;  %v3417_v45 = vpop.f32.mrb[69].mxu1  ;;  %v3449_v46 = vsel %vm3437_vm4, %v3413_v36, %v3443_v53 }
0x10bf   :  { %v3418_v25 = vadd.f32 %v7326_v21, %v3417_v45  ;;  %v3448_v44 = vsel %vm3436_vm5, %v3408_v18, %v3442_v40 }
0x10c0   :  { %v3445_v52 = vmul.f32 0.4, %v3423_v60  ;;  %8604 = vmatprep.mubr.f32.mxu1 %v3448_v44  ;;  %vm3439_vm7 = vcmp.ge.f32.partialorder %v3423_v60, 0.0 }
0x10c1   :  { %v3444_v54 = vmul.f32 0.4, %v3418_v25  ;;  %v8571_v58 = vpop.f32.mrb[70].mxu1  ;;  %8605 = vmatmul.mubr.f32.vlgmr.msra.gmra.mrb[72].mxu1 %v3449_v46  ;;  %vm3438_vm6 = vcmp.ge.f32.partialorder %v3418_v25, 0.0 }
0x10c2   :  { %v3433_v29 = vadd.f32 %v8571_v58, %v7326_v21  ;;  %v3427_v31 = vpop.f32.mrb[71].mxu1  ;;  %9362 = vmatpush3.bf16.msra.mxu1 %v9359_v9  ;;  %v3451_v4 = vsel %vm3439_vm7, %v3423_v60, %v3445_v52  ;;  %v7382_v58 = vld [vmem:[%s11908_s24 + $0x28] sm:$0xff] }
0x10c3   :  { %v3428_v2 = vadd.f32 %v7326_v21, %v3427_v31  ;;  %v3450_v59 = vsel %vm3438_vm6, %v3418_v25, %v3444_v54  ;;  %9364 = vmatprep.subr.bf16.mxu1 %v9363_v43  ;;  %v7381_v54 = vld [vmem:[%s11908_s24 + $0x20] sm:$0xff] }
0x10c4   :  { %v3447_v38 = vmul.f32 0.4, %v3433_v29  ;;  %8607 = vmatprep.mubr.f32.mxu1 %v3450_v59  ;;  %vm3441_vm9 = vcmp.ge.f32.partialorder %v3433_v29, 0.0 }
0x10c5   :  { %v3446_v48 = vmul.f32 0.4, %v3428_v2  ;;  %8608 = vmatmul.mubr.f32.gmra.mrb[74].mxu1 %v3451_v4  ;;  %vm3440_vm8 = vcmp.ge.f32.partialorder %v3428_v2, 0.0  ;;  %v7384_v4 = vld [vmem:[%s11908_s24 + $0x38] sm:$0xff] }
0x10c6   :  { %9366 = vmatpush3.bf16.msra.mxu1 %v9363_v43  ;;  %v3453_v8 = vsel %vm3441_vm9, %v3433_v29, %v3447_v38  ;;  %v7383_v38 = vld [vmem:[%s11908_s24 + $0x30] sm:$0xff] }
0x10c7   :  { %v3452_v51 = vsel %vm3440_vm8, %v3428_v2, %v3446_v48  ;;  %v9397_v2 = vpack.c.bf16 %v7382_v58, %v7381_v54  ;;  %v7463_v54 = vld [vmem:[%s11888_s5 + $0x58] sm:$0xff] }
0x10c8   :  { %8610 = vmatprep.mubr.f32.mxu1 %v3452_v51 }
0x10c9   :  { %8611 = vmatmul.mubr.f32.gmra.mrb[76].mxu1 %v3453_v8  ;;  %v9401_v8 = vpack.c.bf16 %v7384_v4, %v7383_v38 }
0x10ca   :  { %8655 = vmatprep.mubr.msk.f32.mxu1 %vm64_vm0, %v10809_v23 }
0x10cd   :  { %8656 = vmatmul.mubr.msk.f32.vlgmr.msra.gmra.mrb[78].mxu1 %vm64_vm0, %v10819_v0 }
0x10ce   :  { %8658 = vmatprep.mubr.msk.f32.mxu1 %vm64_vm0, %v10823_v16 }
0x10d1   :  { %8659 = vmatmul.mubr.msk.f32.gmra.mrb[80].mxu1 %vm64_vm0, %v10827_v27 }
0x10d2   :  { %8661 = vmatprep.mubr.msk.f32.mxu1 %vm64_vm0, %v10831_v24 }
0x10d5   :  { %8662 = vmatmul.mubr.msk.f32.gmra.mrb[82].mxu1 %vm64_vm0, %v10835_v39 }
0x10dc   :  { %v4203_v50 = vpop.xlane.xlu1 %4202 }
0x10dd   :  { %v4200_v6 = vpop.xlane.xlu0 %4199 }
0x10de   :  { %9779 = vrcp.f32 %v4200_v6 }
0x10df   :  { %9781 = vrcp.f32 %v4203_v50 }
0x10e0   :  { %v4209_v56 = vpop.xlane.xlu1 %4208 }
0x10e1   :  { %v4206_v55 = vpop.xlane.xlu0 %4205 }
0x10e2   :  { %9783 = vrcp.f32 %v4206_v55 }
0x10e3   :  { %9785 = vrcp.f32 %v4209_v56 }
0x10e4   :  { %v4215_v25 = vpop.xlane.xlu1 %4214 }
0x10e8   :  { %v9780_v22 = vpop.eup %9779 }
0x10e9   :  { %v4222_v9 = vmul.f32 %v9780_v22, %v11115_v13  ;;  %v9782_v59 = vpop.eup %9781 }
0x10ea   :  { %v4223_v51 = vmul.f32 %v9782_v59, %v11113_v61 }
0x10eb   :  { %8697 = vmatprep.mubr.msk.f32.mxu1 %vm636_vm3, %v4222_v9  ;;  %v7405_v9 = vld [vmem:[%s11887_s7 + $0x20] sm:$0xff] }
0x10ec   :  { %v9784_v48 = vpop.eup %9783 }
0x10ed   :  { %v9786_v6 = vpop.eup %9785  ;;  %v4224_v22 = vmul.f32 %v9784_v48, %v11123_v28 }
0x10ee   :  { %v4225_v61 = vmul.f32 %v9786_v6, %v11121_v47  ;;  %v7408_v47 = vld [vmem:[%s11887_s7 + $0x38] sm:$0xff] }
0x1194   :  { %v8606_v34 = vpop.f32.mrb[72].mxu1 }
0x1195   :  { %v3549_v10 = vadd.f32 %v8606_v34, %v7333_v33  ;;  %v3543_v42 = vpop.f32.mrb[73].mxu1 }
0x1196   :  { %v3544_v26 = vadd.f32 %v7333_v33, %v3543_v42 }
0x1197   :  { %v3573_v63 = vadd.f32 %v3549_v10, %v10864_v62 }
0x1198   :  { %v3572_v57 = vadd.f32 %v3544_v26, %v10866_v20  ;;  %v8609_v1 = vpop.f32.mrb[74].mxu1 }
0x1199   :  { %3579 = vst.msk [vmem:[%s11902_s17 + $0x8] sm:$0xff] %vm64_vm0, %v3573_v63  ;;  %v3559_v13 = vadd.f32 %v8609_v1, %v7333_v33  ;;  %v3553_v32 = vpop.f32.mrb[75].mxu1  ;;  %v7407_v63 = vld [vmem:[%s11887_s7 + $0x30] sm:$0xff] }
0x119a   :  { %3578 = vst.msk [vmem:[%s11902_s17] sm:$0xff] %vm64_vm0, %v3572_v57  ;;  %v3554_v12 = vadd.f32 %v7333_v33, %v3553_v32  ;;  %v7449_v57 = vld [vmem:[%s11908_s24 + $0x48] sm:$0xff] }
0x119b   :  { %v3575_v49 = vadd.f32 %v3559_v13, %v10878_v7  ;;  %v7356_v7 = vld [vmem:[%s11891_s8] ss:$0 sm:$0xff] }
0x119c   :  { %v3574_v62 = vadd.f32 %v3554_v12, %v10880_v35  ;;  %v8612_v20 = vpop.f32.mrb[76].mxu1 }
0x119d   :  { %3581 = vst.msk [vmem:[%s11902_s17 + $0x18] sm:$0xff] %vm64_vm0, %v3575_v49  ;;  %v3569_v15 = vadd.f32 %v8612_v20, %v7333_v33  ;;  %v3563_v19 = vpop.f32.mrb[77].mxu1  ;;  %v7386_v20 = vld [vmem:[%s11892_s4 + $0x1] ss:$0 sm:$0xff] }
0x119e   :  { %3580 = vst.msk [vmem:[%s11902_s17 + $0x10] sm:$0xff] %vm64_vm0, %v3574_v62  ;;  %v3564_v21 = vadd.f32 %v7333_v33, %v3563_v19  ;;  %v7406_v33 = vld [vmem:[%s11887_s7 + $0x28] sm:$0xff]  ;;  %v7450_v19 = vld [vmem:[%s11908_s24 + $0x50] sm:$0xff] }
0x119f   :  { %v3577_v35 = vadd.f32 %v3569_v15, %v10892_v3  ;;  %v9413_v10 = vpack.c.bf16 %v7406_v33, %v7405_v9 }
0x11a0   :  { %v3576_v36 = vadd.f32 %v3564_v21, %v10897_v11  ;;  %v8657_v17 = vpop.f32.mrb[78].mxu1  ;;  %v4212_v11 = vpop.xlane.xlu0 %4211  ;;  %v7451_v21 = vld [vmem:[%s11908_s24 + $0x58] sm:$0xff] }
0x11a1   :  { %3583 = vst.msk [vmem:[%s11902_s17 + $0x28] sm:$0xff] %vm64_vm0, %v3577_v35  ;;  %v4008_v18 = vadd.f32 %v8657_v17, %v7356_v7  ;;  %v4002_v53 = vpop.f32.mrb[79].mxu1  ;;  %9787 = vrcp.f32 %v4212_v11 }
0x11a2   :  { %3582 = vst.msk [vmem:[%s11902_s17 + $0x20] sm:$0xff] %vm64_vm0, %v3576_v36  ;;  %v4003_v37 = vadd.f32 %v7356_v7, %v4002_v53  ;;  %9789 = vrcp.f32 %v4215_v25  ;;  %v9455_v36 = vpack.c.bf16 %v7451_v21, %v7450_v19  ;;  %v7461_v53 = vld [vmem:[%s11888_s5 + $0x48] sm:$0xff] }
0x11a4   :  { %v9385_v3 = vpack.c.bf16 %v4008_v18, %v4003_v37  ;;  %v8660_v40 = vpop.f32.mrb[80].mxu1  ;;  %v7460_v18 = vld [vmem:[%s11888_s5 + $0x40] sm:$0xff] }
0x11a5   :  { %v4018_v41 = vadd.f32 %v8660_v40, %v7356_v7  ;;  %v4012_v60 = vpop.f32.mrb[81].mxu1  ;;  %v9459_v40 = vpack.c.bf16 %v7461_v53, %v7460_v18 }
0x11a6   :  { %v4013_v45 = vadd.f32 %v7356_v7, %v4012_v60  ;;  %9386 = vmatprep.subr.bf16.mxu1 %v9385_v3 }
0x11a7   :  { %9388 = vmatpush3.bf16.msra.mxu1 %v9385_v3 }
0x11a8   :  { %v9389_v44 = vpack.c.bf16 %v4018_v41, %v4013_v45  ;;  %v8663_v43 = vpop.f32.mrb[82].mxu1  ;;  %v7410_v45 = vld [vmem:[%s11891_s8 + $0x1] ss:$0 sm:$0xff] }
0x11a9   :  { %v4028_v46 = vadd.f32 %v8663_v43, %v7356_v7  ;;  %v4022_v52 = vpop.f32.mrb[83].mxu1 }
0x11aa   :  { %v4023_v29 = vadd.f32 %v7356_v7, %v4022_v52  ;;  %9390 = vmatprep.subr.bf16.mxu1 %v9389_v44  ;;  %v7462_v52 = vld [vmem:[%s11888_s5 + $0x50] sm:$0xff] }
0x11ab   :  { %9392 = vmatpush3.bf16.msra.mxu1 %v9389_v44  ;;  %v9788_v34 = vpop.eup %9787 }
0x11ac   :  { %v9393_v31 = vpack.c.bf16 %v4028_v46, %v4023_v29  ;;  %v9790_v42 = vpop.eup %9789  ;;  %v4226_v28 = vmul.f32 %v9788_v34, %v11131_v30  ;;  %v9417_v30 = vpack.c.bf16 %v7408_v47, %v7407_v63 }
0x11ad   :  { %v4227_v26 = vmul.f32 %v9790_v42, %v11129_v14  ;;  %v7448_v14 = vld [vmem:[%s11908_s24 + $0x40] sm:$0xff] }
0x11ae   :  { %9394 = vmatprep.subr.bf16.mxu1 %v9393_v31  ;;  %v9451_v1 = vpack.c.bf16 %v7449_v57, %v7448_v14 }
0x11af   :  { %9396 = vmatpush3.bf16.msra.mxu1 %v9393_v31 }
0x11b0   :  { %9398 = vmatprep.subr.bf16.mxu1 %v9397_v2  ;;  %9452 = vmatprep.subr.bf16.mxu0 %v9451_v1 }
0x11b2   :  { %8698 = vmatmul.mubr.msk.f32.vlgmr.msra.gmra.mrb[84].mxu1 %vm636_vm3, %v4223_v51 }
0x11b3   :  { %8700 = vmatprep.mubr.msk.f32.mxu1 %vm636_vm3, %v4224_v22  ;;  %9400 = vmatpush3.bf16.msra.mxu1 %v9397_v2  ;;  %v9463_v2 = vpack.c.bf16 %v7463_v54, %v7462_v52  ;;  %v7509_v52 = vld [vmem:[%s11908_s24 + $0x60] sm:$0xff]  ;;  %v7510_v54 = vld [vmem:[%s11908_s24 + $0x68] sm:$0xff] }
0x11b4   :  { %9402 = vmatprep.subr.bf16.mxu1 %v9401_v8 }
0x11b6   :  { %8701 = vmatmul.mubr.msk.f32.gmra.mrb[86].mxu1 %vm636_vm3, %v4225_v61 }
0x11b7   :  { %8703 = vmatprep.mubr.msk.f32.mxu1 %vm636_vm3, %v4226_v28  ;;  %9404 = vmatpush3.bf16.msra.mxu1 %v9401_v8 }
0x11b8   :  { %9414 = vmatprep.subr.bf16.mxu1 %v9413_v10 }
0x11ba   :  { %8704 = vmatmul.mubr.msk.f32.gmra.mrb[88].mxu1 %vm636_vm3, %v4227_v26 }
0x11bb   :  { %8714 = vmatprep.mubr.msk.f32.mxu1 %vm64_vm0, %v10809_v23 }
0x11be   :  { %8715 = vmatmul.mubr.msk.f32.vlgmr.msra.gmra.mrb[90].mxu1 %vm64_vm0, %v10819_v0 }
0x11bf   :  { %8717 = vmatprep.mubr.msk.f32.mxu1 %vm64_vm0, %v10823_v16  ;;  %9416 = vmatpush3.bf16.msra.mxu1 %v9413_v10 }
0x11c0   :  { %9418 = vmatprep.subr.bf16.mxu1 %v9417_v30 }
0x11c2   :  { %8718 = vmatmul.mubr.msk.f32.gmra.mrb[92].mxu1 %vm64_vm0, %v10827_v27 }
0x11c3   :  { %8720 = vmatprep.mubr.msk.f32.mxu1 %vm64_vm0, %v10831_v24  ;;  %9420 = vmatpush3.bf16.msra.mxu1 %v9417_v30 }
0x11c6   :  { %8721 = vmatmul.mubr.msk.f32.gmra.mrb[94].mxu1 %vm64_vm0, %v10835_v39 }
0x11c7   :  { %8748 = vmatprep.mubr.msk.f32.mxu1 %vm64_vm0, %v10809_v23 }
0x11ca   :  { %8749 = vmatmul.mubr.msk.f32.vlgmr.msra.gmra.mrb[96].mxu1 %vm64_vm0, %v10819_v0 }
0x11cb   :  { %8751 = vmatprep.mubr.msk.f32.mxu1 %vm64_vm0, %v10823_v16 }
0x11ce   :  { %8752 = vmatmul.mubr.msk.f32.gmra.mrb[98].mxu1 %vm64_vm0, %v10827_v27 }
0x11cf   :  { %8754 = vmatprep.mubr.msk.f32.mxu1 %vm64_vm0, %v10831_v24 }
0x11d2   :  { %8755 = vmatmul.mubr.msk.f32.gmra.mrb[100].mxu1 %vm64_vm0, %v10835_v39 }
0x1285   :  { %v11260_v13 = vpop.f32.mrb[84].mxu1 }
0x1286   :  { %v11262_v32 = vpop.f32.mrb[85].mxu1 }
0x1289   :  { %v11264_v12 = vpop.f32.mrb[86].mxu1 }
0x128a   :  { %v11266_v49 = vpop.f32.mrb[87].mxu1 }
0x128d   :  { %v11268_v50 = vpop.f32.mrb[88].mxu1 }
0x128e   :  { %v11270_v62 = vpop.f32.mrb[89].mxu1 }
0x1291   :  { %v8716_v15 = vpop.f32.mrb[90].mxu1 }
0x1292   :  { %v4419_v7 = vpop.f32.mrb[91].mxu1  ;;  %v4425_v35 = vadd.f32 %v8716_v15, %v7386_v20 }
0x1293   :  { %v4420_v55 = vadd.f32 %v7386_v20, %v4419_v7 }
0x1295   :  { %v8719_v17 = vpop.f32.mrb[92].mxu1  ;;  %8769 = vmatprep.mubr.msk.f32.mxu0 %vm504_vm1, %v4420_v55 }
0x1296   :  { %v4429_v56 = vpop.f32.mrb[93].mxu1  ;;  %8770 = vmatmul.mubr.msk.f32.vlgmr.msra.gmra.mrb[84].mxu0 %vm504_vm1, %v4425_v35  ;;  %v4435_v3 = vadd.f32 %v8719_v17, %v7386_v20 }
0x1297   :  { %v4430_v37 = vadd.f32 %v7386_v20, %v4429_v56  ;;  %9454 = vmatpush3.bf16.msra.mxu0 %v9451_v1  ;;  %v7453_v1 = vld [vmem:[%s11892_s4 + $0x2] ss:$0 sm:$0xff] }
0x1298   :  { %9456 = vmatprep.subr.bf16.mxu0 %v9455_v36 }
0x1299   :  { %v8722_v11 = vpop.f32.mrb[94].mxu1  ;;  %8772 = vmatprep.mubr.msk.f32.mxu0 %vm504_vm1, %v4430_v37 }
0x129a   :  { %v4439_v41 = vpop.f32.mrb[95].mxu1  ;;  %8773 = vmatmul.mubr.msk.f32.gmra.mrb[86].mxu0 %vm504_vm1, %v4435_v3  ;;  %v4445_v25 = vadd.f32 %v8722_v11, %v7386_v20 }
0x129b   :  { %v4440_v60 = vadd.f32 %v7386_v20, %v4439_v41  ;;  %9458 = vmatpush3.bf16.msra.mxu0 %v9455_v36  ;;  %v7465_v36 = vld [vmem:[%s11893_s6 + $0x2] ss:$0 sm:$0xff] }
0x129c   :  { %9460 = vmatprep.subr.bf16.mxu0 %v9459_v40 }
0x129d   :  { %v8750_v44 = vpop.f32.mrb[96].mxu1  ;;  %8775 = vmatprep.mubr.msk.f32.mxu0 %vm504_vm1, %v4440_v60 }
0x129e   :  { %v4637_v43 = vadd.f32 %v8750_v44, %v7410_v45  ;;  %v4631_v46 = vpop.f32.mrb[97].mxu1  ;;  %8776 = vmatmul.mubr.msk.f32.gmra.mrb[88].mxu0 %vm504_vm1, %v4445_v25 }
0x129f   :  { %v4632_v58 = vadd.f32 %v7410_v45, %v4631_v46  ;;  %8829 = vmatprep.mubr.msk.f32.mxu0 %vm64_vm0, %v10809_v23 }
0x12a1   :  { %v9439_v29 = vpack.c.bf16 %v4637_v43, %v4632_v58  ;;  %v8753_v31 = vpop.f32.mrb[98].mxu1  ;;  %v9505_v58 = vpack.c.bf16 %v7510_v54, %v7509_v52 }
0x12a2   :  { %v4647_v59 = vadd.f32 %v8753_v31, %v7410_v45  ;;  %v4641_v38 = vpop.f32.mrb[99].mxu1  ;;  %8830 = vmatmul.mubr.msk.f32.vlgmr.msra.gmra.mrb[90].mxu0 %vm64_vm0, %v10819_v0  ;;  %v7512_v31 = vld [vmem:[%s11908_s24 + $0x78] sm:$0xff] }
0x12a3   :  { %v4642_v4 = vadd.f32 %v7410_v45, %v4641_v38  ;;  %9440 = vmatprep.subr.bf16.mxu1 %v9439_v29  ;;  %8832 = vmatprep.mubr.msk.f32.mxu0 %vm64_vm0, %v10823_v16 }
0x12a4   :  { %9442 = vmatpush3.bf16.msra.mxu1 %v9439_v29  ;;  %9462 = vmatpush3.bf16.msra.mxu0 %v9459_v40  ;;  %v7511_v29 = vld [vmem:[%s11908_s24 + $0x70] sm:$0xff] }
0x12a5   :  { %v9443_v48 = vpack.c.bf16 %v4647_v59, %v4642_v4  ;;  %v8756_v51 = vpop.f32.mrb[100].mxu1  ;;  %9464 = vmatprep.subr.bf16.mxu0 %v9463_v2  ;;  %v9509_v59 = vpack.c.bf16 %v7512_v31, %v7511_v29  ;;  %v7533_v4 = vld [vmem:[%s11887_s7 + $0x60] sm:$0xff] }
0x12a6   :  { %v4657_v8 = vadd.f32 %v8756_v51, %v7410_v45  ;;  %v4651_v6 = vpop.f32.mrb[101].mxu1  ;;  %8833 = vmatmul.mubr.msk.f32.gmra.mrb[92].mxu0 %vm64_vm0, %v10827_v27 }
0x12a7   :  { %v4652_v22 = vadd.f32 %v7410_v45, %v4651_v6  ;;  %9444 = vmatprep.subr.bf16.mxu1 %v9443_v48  ;;  %8835 = vmatprep.mubr.msk.f32.mxu0 %vm64_vm0, %v10831_v24 }
0x12a8   :  { %9446 = vmatpush3.bf16.msra.mxu1 %v9443_v48  ;;  %9466 = vmatpush3.bf16.msra.mxu0 %v9463_v2  ;;  %v7534_v48 = vld [vmem:[%s11887_s7 + $0x68] sm:$0xff] }
0x12a9   :  { %v9447_v9 = vpack.c.bf16 %v4657_v8, %v4652_v22  ;;  %v9521_v8 = vpack.c.bf16 %v7534_v48, %v7533_v4  ;;  %v11479_v4 = vld [vmem:[%s11892_s4 + $0x3] ss:$0 sm:$0xff] }
0x12aa   :  { %8836 = vmatmul.mubr.msk.f32.gmra.mrb[94].mxu0 %vm64_vm0, %v10835_v39 }
0x12ab   :  { %9448 = vmatprep.subr.bf16.mxu1 %v9447_v9  ;;  %8846 = vmatprep.mubr.msk.f32.mxu0 %vm64_vm0, %v10809_v23 }
0x12ac   :  { %9450 = vmatpush3.bf16.msra.mxu1 %v9447_v9  ;;  %v7535_v9 = vld [vmem:[%s11887_s7 + $0x70] sm:$0xff] }
0x12ae   :  { %8847 = vmatmul.mubr.msk.f32.vlgmr.msra.gmra.mrb[96].mxu0 %vm64_vm0, %v10819_v0 }
0x12af   :  { %8849 = vmatprep.mubr.msk.f32.mxu0 %vm64_vm0, %v10823_v16 }
0x12b2   :  { %8850 = vmatmul.mubr.msk.f32.gmra.mrb[98].mxu0 %vm64_vm0, %v10827_v27 }
0x12b3   :  { %8852 = vmatprep.mubr.msk.f32.mxu0 %vm64_vm0, %v10831_v24 }
0x12b6   :  { %8853 = vmatmul.mubr.msk.f32.gmra.mrb[100].mxu0 %vm64_vm0, %v10835_v39 }
0x1369   :  { %v11326_v33 = vpop.f32.mrb[84].mxu0 }
0x136a   :  { %v11328_v34 = vpop.f32.mrb[85].mxu0  ;;  %v4794_v61 = vsel %vm636_vm3, %v11326_v33, -inf }
0x136b   :  { %4795 = vmax.xlane.f32.xlu1 %v4794_v61  ;;  %v4791_v10 = vsel %vm636_vm3, %v11328_v34, -inf  ;;  %v7536_v61 = vld [vmem:[%s11887_s7 + $0x78] sm:$0xff] }
0x136c   :  { %4792 = vmax.xlane.f32.xlu0 %v4791_v10  ;;  %v9525_v10 = vpack.c.bf16 %v7536_v61, %v7535_v9 }
0x136d   :  { %v11334_v42 = vpop.f32.mrb[86].mxu0 }
0x136e   :  { %v11336_v28 = vpop.f32.mrb[87].mxu0  ;;  %v4800_v26 = vsel %vm636_vm3, %v11334_v42, -inf }
0x136f   :  { %4801 = vmax.xlane.f32.xlu1 %v4800_v26  ;;  %v4797_v63 = vsel %vm636_vm3, %v11336_v28, -inf }
0x1370   :  { %4798 = vmax.xlane.f32.xlu0 %v4797_v63 }
0x1371   :  { %v11342_v47 = vpop.f32.mrb[88].mxu0 }
0x1372   :  { %v11344_v30 = vpop.f32.mrb[89].mxu0  ;;  %v4806_v14 = vsel %vm636_vm3, %v11342_v47, -inf }
0x1373   :  { %4807 = vmax.xlane.f32.xlu1 %v4806_v14  ;;  %v4803_v57 = vsel %vm636_vm3, %v11344_v30, -inf }
0x1374   :  { %4804 = vmax.xlane.f32.xlu0 %v4803_v57 }
0x1375   :  { %v8831_v20 = vpop.f32.mrb[90].mxu0 }
0x1376   :  { %v5274_v15 = vpop.f32.mrb[91].mxu0  ;;  %v5280_v2 = vadd.f32 %v8831_v20, %v7453_v1 }
0x1377   :  { %v5275_v19 = vadd.f32 %v7453_v1, %v5274_v15 }
0x1379   :  { %v8834_v21 = vpop.f32.mrb[92].mxu0  ;;  %8884 = vmatprep.mubr.msk.f32.mxu0 %vm504_vm1, %v5275_v19 }
0x137a   :  { %v5284_v7 = vpop.f32.mrb[93].mxu0  ;;  %v5290_v51 = vadd.f32 %v8834_v21, %v7453_v1 }
0x137b   :  { %v5285_v38 = vadd.f32 %v7453_v1, %v5284_v7 }
0x137d   :  { %v8837_v55 = vpop.f32.mrb[94].mxu0 }
0x137e   :  { %v5294_v35 = vpop.f32.mrb[95].mxu0  ;;  %v5300_v22 = vadd.f32 %v8837_v55, %v7453_v1 }
0x137f   :  { %v5295_v6 = vadd.f32 %v7453_v1, %v5294_v35 }
0x1381   :  { %v8848_v17 = vpop.f32.mrb[96].mxu0 }
0x1382   :  { %v5386_v18 = vadd.f32 %v8848_v17, %v7465_v36  ;;  %v5380_v53 = vpop.f32.mrb[97].mxu0 }
0x1383   :  { %v5381_v56 = vadd.f32 %v7465_v36, %v5380_v53 }
0x1385   :  { %v9475_v37 = vpack.c.bf16 %v5386_v18, %v5381_v56  ;;  %v8851_v3 = vpop.f32.mrb[98].mxu0 }
0x1386   :  { %v5396_v40 = vadd.f32 %v8851_v3, %v7465_v36  ;;  %v5390_v11 = vpop.f32.mrb[99].mxu0 }
0x1387   :  { %v5391_v41 = vadd.f32 %v7465_v36, %v5390_v11  ;;  %9477 = vmatprep.subr.msk.bf16.mxu0 %vm10142_vm2, %v9475_v37 }
0x1388   :  { %9480 = vmatpush3.bf16.xpose.msk.msra.mxu0 %vm10142_vm2, %v9475_v37 }
0x1389   :  { %v9481_v60 = vpack.c.bf16 %v5396_v40, %v5391_v41  ;;  %v8854_v45 = vpop.f32.mrb[100].mxu0 }
0x138a   :  { %v5406_v25 = vadd.f32 %v8854_v45, %v7465_v36  ;;  %v5400_v44 = vpop.f32.mrb[101].mxu0 }
0x138b   :  { %v5401_v43 = vadd.f32 %v7465_v36, %v5400_v44  ;;  %9483 = vmatprep.subr.msk.bf16.mxu0 %vm10142_vm2, %v9481_v60 }
0x138d   :  { %v9487_v46 = vpack.c.bf16 %v5406_v25, %v5401_v43 }
0x1390   :  { %9486 = vmatpush3.bf16.xpose.msk.msra.mxu0 %vm10142_vm2, %v9481_v60 }
0x1391   :  { %9489 = vmatprep.subr.msk.bf16.mxu0 %vm10142_vm2, %v9487_v46 }
0x1398   :  { %9492 = vmatpush3.bf16.xpose.msk.msra.mxu0 %vm10142_vm2, %v9487_v46 }
0x1399   :  { %9506 = vmatprep.subr.bf16.mxu0 %v9505_v58 }
0x139f   :  { %8885 = vmatmul.mubr.msk.f32.vlgmr.msra.gmra.mrb[102].mxu0 %vm504_vm1, %v5280_v2 }
0x13a0   :  { %8887 = vmatprep.mubr.msk.f32.mxu0 %vm504_vm1, %v5285_v38  ;;  %9508 = vmatpush3.bf16.msra.mxu0 %v9505_v58 }
0x13a1   :  { %9510 = vmatprep.subr.bf16.mxu0 %v9509_v59 }
0x13a3   :  { %8888 = vmatmul.mubr.msk.f32.gmra.mrb[104].mxu0 %vm504_vm1, %v5290_v51 }
0x13a4   :  { %8890 = vmatprep.mubr.msk.f32.mxu0 %vm504_vm1, %v5295_v6  ;;  %9512 = vmatpush3.bf16.msra.mxu0 %v9509_v59 }
0x13a5   :  { %9522 = vmatprep.subr.bf16.mxu0 %v9521_v8 }
0x13a7   :  { %8891 = vmatmul.mubr.msk.f32.gmra.mrb[106].mxu0 %vm504_vm1, %v5300_v22 }
0x13a8   :  { %8933 = vmatprep.mubr.msk.f32.mxu0 %vm64_vm0, %v10809_v23 }
0x13ab   :  { %8934 = vmatmul.mubr.msk.f32.vlgmr.msra.gmra.mrb[108].mxu0 %vm64_vm0, %v10819_v0 }
0x13ac   :  { %8936 = vmatprep.mubr.msk.f32.mxu0 %vm64_vm0, %v10823_v16  ;;  %9524 = vmatpush3.bf16.msra.mxu0 %v9521_v8 }
0x13ad   :  { %9526 = vmatprep.subr.bf16.mxu0 %v9525_v10 }
0x13af   :  { %8937 = vmatmul.mubr.msk.f32.gmra.mrb[110].mxu0 %vm64_vm0, %v10827_v27 }
0x13b0   :  { %8939 = vmatprep.mubr.msk.f32.mxu0 %vm64_vm0, %v10831_v24  ;;  %9528 = vmatpush3.bf16.msra.mxu0 %v9525_v10 }
0x13b3   :  { %8940 = vmatmul.mubr.msk.f32.gmra.mrb[112].mxu0 %vm64_vm0, %v10835_v39 }
0x13b4   :  { %8967 = vmatprep.mubr.msk.f32.mxu0 %vm64_vm0, %v10809_v23 }
0x13b7   :  { %8968 = vmatmul.mubr.msk.f32.vlgmr.msra.gmra.mrb[114].mxu0 %vm64_vm0, %v10819_v0 }
0x13b8   :  { %8970 = vmatprep.mubr.msk.f32.mxu0 %vm64_vm0, %v10823_v16 }
0x13bb   :  { %8971 = vmatmul.mubr.msk.f32.gmra.mrb[116].mxu0 %vm64_vm0, %v10827_v27 }
0x13bc   :  { %8973 = vmatprep.mubr.msk.f32.mxu0 %vm64_vm0, %v10831_v24 }
0x13bf   :  { %8974 = vmatmul.mubr.msk.f32.gmra.mrb[118].mxu0 %vm64_vm0, %v10835_v39 }
0x13f8   :  { %v4796_v26 = vpop.xlane.xlu1 %4795 }
0x13f9   :  { %v4810_v63 = vsub.f32 %v11326_v33, %v4796_v26  ;;  %v4793_v14 = vpop.xlane.xlu0 %4792 }
0x13fa   :  { %v4809_v57 = vsub.f32 %v11328_v34, %v4793_v14 }
0x13fb   :  { %v4817_v1 = vmul.f32 1.442695, %v4810_v63 }
0x13fc   :  { %v4815_v20 = vmul.f32 1.442695, %v4809_v57  ;;  %v4802_v15 = vpop.xlane.xlu1 %4801  ;;  %v7538_v57 = vld [vmem:[%s11891_s8 + $0x3] ss:$0 sm:$0xff] }
0x13fd   :  { %9791 = vpow2.f32 %v4817_v1  ;;  %v4812_v19 = vsub.f32 %v11334_v42, %v4802_v15  ;;  %v4799_v21 = vpop.xlane.xlu0 %4798 }
0x13fe   :  { %9793 = vpow2.f32 %v4815_v20  ;;  %v4811_v7 = vsub.f32 %v11336_v28, %v4799_v21 }
0x13ff   :  { %v4821_v55 = vmul.f32 1.442695, %v4812_v19 }
0x1400   :  { %v4819_v35 = vmul.f32 1.442695, %v4811_v7  ;;  %v4808_v36 = vpop.xlane.xlu1 %4807 }
0x1401   :  { %9795 = vpow2.f32 %v4821_v55  ;;  %v4814_v17 = vsub.f32 %v11342_v47, %v4808_v36  ;;  %v4805_v33 = vpop.xlane.xlu0 %4804 }
0x1402   :  { %9797 = vpow2.f32 %v4819_v35  ;;  %v4813_v34 = vsub.f32 %v11344_v30, %v4805_v33 }
0x1403   :  { %v4825_v18 = vmul.f32 1.442695, %v4814_v17 }
0x1404   :  { %v4823_v53 = vmul.f32 1.442695, %v4813_v34 }
0x1405   :  { %9799 = vpow2.f32 %v4825_v18 }
0x1406   :  { %9801 = vpow2.f32 %v4823_v53 }
0x1407   :  { %v11428_v56 = vpop.eup %9791 }
0x1408   :  { %v11430_v42 = vpop.eup %9793  ;;  %v4830_v28 = vsel %vm636_vm3, %v11428_v56, 0.0 }
0x1409   :  { %4831 = vadd.xlane.f32.xlu1 %v4830_v28  ;;  %v4827_v37 = vsel %vm636_vm3, %v11430_v42, 0.0 }
0x140a   :  { %4828 = vadd.xlane.f32.xlu0 %v4827_v37 }
0x140b   :  { %v11436_v47 = vpop.eup %9795 }
0x140c   :  { %v11438_v3 = vpop.eup %9797  ;;  %v4836_v30 = vsel %vm636_vm3, %v11436_v47, 0.0 }
0x140d   :  { %4837 = vadd.xlane.f32.xlu1 %v4836_v30  ;;  %v4833_v40 = vsel %vm636_vm3, %v11438_v3, 0.0 }
0x140e   :  { %4834 = vadd.xlane.f32.xlu0 %v4833_v40 }
0x140f   :  { %v11444_v11 = vpop.eup %9799 }
0x1410   :  { %v11446_v41 = vpop.eup %9801  ;;  %v4842_v60 = vsel %vm636_vm3, %v11444_v11, 0.0 }
0x1411   :  { %4843 = vadd.xlane.f32.xlu1 %v4842_v60  ;;  %v4839_v45 = vsel %vm636_vm3, %v11446_v41, 0.0 }
0x1412   :  { %4840 = vadd.xlane.f32.xlu0 %v4839_v45  ;;  %v7435_v45 = vld [vmem:[%s11894_s9 + $0x8] sm:$0xff] }
0x1413   :  { %8799 = vmatprep.subr.mxu1 %v7435_v45 }
0x1472   :  { %v11452_v25 = vpop.f32.mrb[102].mxu0 }
0x1473   :  { %v11454_v44 = vpop.f32.mrb[103].mxu0  ;;  %v5649_v43 = vsel %vm636_vm3, %v11452_v25, -inf }
0x1474   :  { %5650 = vmax.xlane.f32.xlu1 %v5649_v43  ;;  %v5646_v46 = vsel %vm636_vm3, %v11454_v44, -inf }
0x1475   :  { %5647 = vmax.xlane.f32.xlu0 %v5646_v46 }
0x1476   :  { %v11460_v52 = vpop.f32.mrb[104].mxu0 }
0x1477   :  { %v11462_v54 = vpop.f32.mrb[105].mxu0  ;;  %v5655_v58 = vsel %vm636_vm3, %v11460_v52, -inf }
0x1478   :  { %5656 = vmax.xlane.f32.xlu1 %v5655_v58  ;;  %v5652_v29 = vsel %vm636_vm3, %v11462_v54, -inf }
0x1479   :  { %5653 = vmax.xlane.f32.xlu0 %v5652_v29 }
0x147a   :  { %v11468_v31 = vpop.f32.mrb[106].mxu0 }
0x147b   :  { %v11470_v2 = vpop.f32.mrb[107].mxu0  ;;  %v5661_v59 = vsel %vm636_vm3, %v11468_v31, -inf }
0x147c   :  { %5662 = vmax.xlane.f32.xlu1 %v5661_v59  ;;  %v5658_v38 = vsel %vm636_vm3, %v11470_v2, -inf }
0x147d   :  { %5659 = vmax.xlane.f32.xlu0 %v5658_v38 }
0x147e   :  { %v8935_v48 = vpop.f32.mrb[108].mxu0 }
0x147f   :  { %v11482_v51 = vadd.f32 %v8935_v48, %v11479_v4  ;;  %v11484_v8 = vpop.f32.mrb[109].mxu0 }
0x1482   :  { %v8938_v6 = vpop.f32.mrb[110].mxu0 }
0x1483   :  { %v11487_v22 = vadd.f32 %v8938_v6, %v11479_v4  ;;  %v6032_v9 = vpop.f32.mrb[111].mxu0 }
0x1484   :  { %v11490_v61 = vadd.f32 %v11479_v4, %v6032_v9 }
0x1486   :  { %v8941_v10 = vpop.f32.mrb[112].mxu0 }
0x1487   :  { %v11493_v26 = vadd.f32 %v8941_v10, %v11479_v4  ;;  %v6042_v63 = vpop.f32.mrb[113].mxu0 }
0x1488   :  { %v11496_v14 = vadd.f32 %v11479_v4, %v6042_v63 }
0x148a   :  { %v8969_v1 = vpop.f32.mrb[114].mxu0 }
0x148b   :  { %v6240_v20 = vadd.f32 %v8969_v1, %v7538_v57  ;;  %v6234_v15 = vpop.f32.mrb[115].mxu0 }
0x148c   :  { %v6235_v19 = vadd.f32 %v7538_v57, %v6234_v15 }
0x148e   :  { %v9547_v21 = vpack.c.bf16 %v6240_v20, %v6235_v19  ;;  %v8972_v7 = vpop.f32.mrb[116].mxu0 }
0x148f   :  { %v6250_v55 = vadd.f32 %v8972_v7, %v7538_v57  ;;  %v6244_v35 = vpop.f32.mrb[117].mxu0 }
0x1490   :  { %v6245_v36 = vadd.f32 %v7538_v57, %v6244_v35  ;;  %9548 = vmatprep.subr.bf16.mxu0 %v9547_v21 }
0x1491   :  { %9550 = vmatpush3.bf16.msra.mxu0 %v9547_v21 }
0x1492   :  { %v9551_v17 = vpack.c.bf16 %v6250_v55, %v6245_v36  ;;  %v8975_v33 = vpop.f32.mrb[118].mxu0 }
0x1493   :  { %v6260_v34 = vadd.f32 %v8975_v33, %v7538_v57  ;;  %v6254_v18 = vpop.f32.mrb[119].mxu0 }
0x1494   :  { %v6255_v53 = vadd.f32 %v7538_v57, %v6254_v18  ;;  %9552 = vmatprep.subr.bf16.mxu0 %v9551_v17 }
0x1495   :  { %9554 = vmatpush3.bf16.msra.mxu0 %v9551_v17 }
0x1496   :  { %v9555_v28 = vpack.c.bf16 %v6260_v34, %v6255_v53  ;;  %v4832_v37 = vpop.xlane.xlu1 %4831 }
0x1497   :  { %9803 = vrcp.f32 %v4832_v37  ;;  %v4829_v30 = vpop.xlane.xlu0 %4828 }
0x1498   :  { %9805 = vrcp.f32 %v4829_v30  ;;  %9556 = vmatprep.subr.bf16.mxu0 %v9555_v28 }
0x1499   :  { %9558 = vmatpush3.bf16.msra.mxu0 %v9555_v28 }
0x149a   :  { %v4838_v40 = vpop.xlane.xlu1 %4837 }
0x149b   :  { %9807 = vrcp.f32 %v4838_v40  ;;  %v4835_v60 = vpop.xlane.xlu0 %4834 }
0x149c   :  { %9809 = vrcp.f32 %v4835_v60 }
0x149e   :  { %v4844_v43 = vpop.xlane.xlu1 %4843 }
0x149f   :  { %9811 = vrcp.f32 %v4844_v43  ;;  %v4841_v46 = vpop.xlane.xlu0 %4840 }
0x14a0   :  { %9813 = vrcp.f32 %v4841_v46  ;;  %v7472_v46 = vld [vmem:[%s11887_s7 + $0x40] sm:$0xff] }
0x14a1   :  { %v9804_v58 = vpop.eup %9803 }
0x14a2   :  { %v9806_v29 = vpop.eup %9805  ;;  %v4852_v38 = vmul.f32 %v9804_v58, %v11428_v56  ;;  %v7473_v58 = vld [vmem:[%s11887_s7 + $0x48] sm:$0xff] }
0x14a3   :  { %v4851_v59 = vmul.f32 %v9806_v29, %v11430_v42 }
0x14a5   :  { %v9808_v48 = vpop.eup %9807  ;;  %8790 = vmatprep.mubr.msk.f32.mxu1 %vm636_vm3, %v4851_v59 }
0x14a6   :  { %v9810_v6 = vpop.eup %9809  ;;  %8791 = vmatmul.mubr.msk.f32.vlgmr.msra.gmra.mrb[102].mxu1 %vm636_vm3, %v4852_v38  ;;  %v4854_v10 = vmul.f32 %v9808_v48, %v11436_v47  ;;  %v9467_v38 = vpack.c.bf16 %v7473_v58, %v7472_v46  ;;  %v7522_v58 = vld [vmem:[%s11888_s5 + $0x68] sm:$0xff] }
0x14a7   :  { %v4853_v9 = vmul.f32 %v9810_v6, %v11438_v3  ;;  %8800 = vmatpush3.msra.mxu1 %v7435_v45  ;;  %v4341_v3 = vld [vmem:[%s11894_s9] sm:$0xff] }
0x14a8   :  { %8810 = vmatprep.subr.mxu1 %v4341_v3 }
0x14a9   :  { %v9812_v63 = vpop.eup %9811  ;;  %8793 = vmatprep.mubr.msk.f32.mxu1 %vm636_vm3, %v4853_v9 }
0x14aa   :  { %v9814_v57 = vpop.eup %9813  ;;  %8794 = vmatmul.mubr.msk.f32.gmra.mrb[104].mxu1 %vm636_vm3, %v4854_v10  ;;  %v4856_v56 = vmul.f32 %v9812_v63, %v11444_v11  ;;  %v7474_v63 = vld [vmem:[%s11887_s7 + $0x50] sm:$0xff] }
0x14ab   :  { %v4855_v42 = vmul.f32 %v9814_v57, %v11446_v41  ;;  %v7475_v57 = vld [vmem:[%s11887_s7 + $0x58] sm:$0xff] }
0x14ad   :  { %8796 = vmatprep.mubr.msk.f32.mxu1 %vm636_vm3, %v4855_v42  ;;  %v9471_v42 = vpack.c.bf16 %v7475_v57, %v7474_v63  ;;  %v6023_v63 = vadd.f32 %v11479_v4, %v11484_v8 }
0x14ae   :  { %8797 = vmatmul.mubr.msk.f32.gmra.mrb[106].mxu1 %vm636_vm3, %v4856_v56 }
0x1501   :  { %v5651_v47 = vpop.xlane.xlu1 %5650 }
0x1502   :  { %v5665_v1 = vsub.f32 %v11452_v25, %v5651_v47  ;;  %v5648_v20 = vpop.xlane.xlu0 %5647 }
0x1503   :  { %v5664_v15 = vsub.f32 %v11454_v44, %v5648_v20 }
0x1504   :  { %v5672_v19 = vmul.f32 1.442695, %v5665_v1 }
0x1505   :  { %v5670_v21 = vmul.f32 1.442695, %v5664_v15  ;;  %v5657_v41 = vpop.xlane.xlu1 %5656 }
0x1506   :  { %9815 = vpow2.f32 %v5672_v19  ;;  %v5667_v11 = vsub.f32 %v11460_v52, %v5657_v41  ;;  %v5654_v7 = vpop.xlane.xlu0 %5653 }
0x1507   :  { %9817 = vpow2.f32 %v5670_v21  ;;  %v5666_v55 = vsub.f32 %v11462_v54, %v5654_v7 }
0x1508   :  { %v5676_v35 = vmul.f32 1.442695, %v5667_v11 }
0x1509   :  { %v5674_v36 = vmul.f32 1.442695, %v5666_v55  ;;  %v5663_v17 = vpop.xlane.xlu1 %5662 }
0x150a   :  { %9819 = vpow2.f32 %v5676_v35  ;;  %v5669_v33 = vsub.f32 %v11468_v31, %v5663_v17  ;;  %v5660_v25 = vpop.xlane.xlu0 %5659 }
0x150b   :  { %9821 = vpow2.f32 %v5674_v36  ;;  %v5668_v44 = vsub.f32 %v11470_v2, %v5660_v25 }
0x150c   :  { %v5680_v34 = vmul.f32 1.442695, %v5669_v33 }
0x150d   :  { %v5678_v18 = vmul.f32 1.442695, %v5668_v44 }
0x150e   :  { %9823 = vpow2.f32 %v5680_v34 }
0x150f   :  { %9825 = vpow2.f32 %v5678_v18  ;;  %v7502_v18 = vld [vmem:[%s11894_s9 + $0x10] sm:$0xff] }
0x1510   :  { %v11525_v53 = vpop.eup %9815 }
0x1511   :  { %v9818_v52 = vpop.eup %9817  ;;  %v5685_v54 = vsel %vm636_vm3, %v11525_v53, 0.0 }
0x1512   :  { %5686 = vadd.xlane.f32.xlu1 %v5685_v54  ;;  %v5682_v28 = vsel %vm636_vm3, %v9818_v52, 0.0 }
0x1513   :  { %5683 = vadd.xlane.f32.xlu0 %v5682_v28 }
0x1514   :  { %v11530_v37 = vpop.eup %9819 }
0x1515   :  { %v11532_v31 = vpop.eup %9821  ;;  %v5691_v2 = vsel %vm636_vm3, %v11530_v37, 0.0 }
0x1516   :  { %5692 = vadd.xlane.f32.xlu1 %v5691_v2  ;;  %v5688_v30 = vsel %vm636_vm3, %v11532_v31, 0.0 }
0x1517   :  { %5689 = vadd.xlane.f32.xlu0 %v5688_v30 }
0x1518   :  { %v11538_v40 = vpop.eup %9823 }
0x1519   :  { %v11540_v60 = vpop.eup %9825  ;;  %v5697_v45 = vsel %vm636_vm3, %v11538_v40, 0.0 }
0x151a   :  { %5698 = vadd.xlane.f32.xlu1 %v5697_v45  ;;  %v5694_v43 = vsel %vm636_vm3, %v11540_v60, 0.0 }
0x151b   :  { %5695 = vadd.xlane.f32.xlu0 %v5694_v43 }
0x1579   :  { %v8792_v29 = vpop.f32.mrb[102].mxu1 }
0x157a   :  { %v4941_v59 = vpop.f32.mrb[103].mxu1 }
0x157b   :  { %8801 = vmatprep.mubr.msk.f32.mxu1 %vm504_vm1, %v4941_v59 }
0x157c   :  { %8802 = vmatmul.mubr.msk.f32.vlgmr.msra.gmra.mrb[108].mxu1 %vm504_vm1, %v8792_v29 }
0x157d   :  { %v8795_v48 = vpop.f32.mrb[104].mxu1  ;;  %8811 = vmatpush3.msra.mxu1 %v4341_v3 }
0x157e   :  { %v4951_v6 = vpop.f32.mrb[105].mxu1  ;;  %9468 = vmatprep.subr.bf16.mxu1 %v9467_v38 }
0x157f   :  { %8804 = vmatprep.mubr.msk.f32.mxu1 %vm504_vm1, %v4951_v6 }
0x1580   :  { %8805 = vmatmul.mubr.msk.f32.gmra.mrb[110].mxu1 %vm504_vm1, %v8795_v48 }
0x1581   :  { %v8798_v9 = vpop.f32.mrb[106].mxu1 }
0x1582   :  { %v4961_v10 = vpop.f32.mrb[107].mxu1 }
0x1583   :  { %8807 = vmatprep.mubr.msk.f32.mxu1 %vm504_vm1, %v4961_v10 }
0x1584   :  { %8808 = vmatmul.mubr.msk.f32.gmra.mrb[112].mxu1 %vm504_vm1, %v8798_v9 }
0x1585   :  { %8812 = vmatprep.mubr.msk.f32.mxu1 %vm504_vm1, %v11262_v32 }
0x1588   :  { %8813 = vmatmul.mubr.msk.f32.vlgmr.msra.gmra.mrb[108].mxu1 %vm504_vm1, %v11260_v13 }
0x1589   :  { %8815 = vmatprep.mubr.msk.f32.mxu1 %vm504_vm1, %v11266_v49  ;;  %9470 = vmatpush3.bf16.msra.mxu1 %v9467_v38 }
0x158a   :  { %9472 = vmatprep.subr.bf16.mxu1 %v9471_v42 }
0x158c   :  { %8816 = vmatmul.mubr.msk.f32.gmra.mrb[110].mxu1 %vm504_vm1, %v11264_v12 }
0x158d   :  { %8818 = vmatprep.mubr.msk.f32.mxu1 %vm504_vm1, %v11270_v62  ;;  %9474 = vmatpush3.bf16.msra.mxu1 %v9471_v42 }
0x1590   :  { %8819 = vmatmul.mubr.msk.f32.gmra.mrb[112].mxu1 %vm504_vm1, %v11268_v50  ;;  %v7477_v50 = vld [vmem:[%s11891_s8 + $0x2] ss:$0 sm:$0xff] }
0x1591   :  { %8863 = vmatprep.mubr.msk.f32.mxu1 %vm64_vm0, %v10809_v23 }
0x1594   :  { %8864 = vmatmul.mubr.msk.f32.vlgmr.msra.gmra.mrb[114].mxu1 %vm64_vm0, %v10819_v0 }
0x1595   :  { %8866 = vmatprep.mubr.msk.f32.mxu1 %vm64_vm0, %v10823_v16 }
0x1598   :  { %8867 = vmatmul.mubr.msk.f32.gmra.mrb[116].mxu1 %vm64_vm0, %v10827_v27 }
0x1599   :  { %8869 = vmatprep.mubr.msk.f32.mxu1 %vm64_vm0, %v10831_v24 }
0x159c   :  { %8870 = vmatmul.mubr.msk.f32.gmra.mrb[118].mxu1 %vm64_vm0, %v10835_v39 }
0x159f   :  { %v5687_v49 = vpop.xlane.xlu1 %5686 }
0x15a0   :  { %v5684_v13 = vpop.xlane.xlu0 %5683 }
0x15a1   :  { %9827 = vrcp.f32 %v5684_v13 }
0x15a2   :  { %9829 = vrcp.f32 %v5687_v49 }
0x15a3   :  { %v5693_v1 = vpop.xlane.xlu1 %5692 }
0x15a4   :  { %v5690_v62 = vpop.xlane.xlu0 %5689 }
0x15a5   :  { %9831 = vrcp.f32 %v5690_v62 }
0x15a6   :  { %9833 = vrcp.f32 %v5693_v1 }
0x15a7   :  { %v5699_v55 = vpop.xlane.xlu1 %5698 }
0x15a8   :  { %v5696_v21 = vpop.xlane.xlu0 %5695 }
0x15a9   :  { %9835 = vrcp.f32 %v5696_v21 }
0x15aa   :  { %9837 = vrcp.f32 %v5699_v55 }
0x15ab   :  { %v9828_v32 = vpop.eup %9827 }
0x15ac   :  { %v5706_v12 = vmul.f32 %v9828_v32, %v9818_v52  ;;  %v9830_v34 = vpop.eup %9829 }
0x15ad   :  { %v5707_v54 = vmul.f32 %v9830_v34, %v11525_v53 }
0x15ae   :  { %8905 = vmatprep.mubr.msk.f32.mxu1 %vm636_vm3, %v5706_v12 }
0x15af   :  { %v9832_v52 = vpop.eup %9831 }
0x15b0   :  { %v9834_v28 = vpop.eup %9833  ;;  %v5708_v2 = vmul.f32 %v9832_v52, %v11532_v31  ;;  %v7521_v31 = vld [vmem:[%s11888_s5 + $0x60] sm:$0xff] }
0x15b1   :  { %v5709_v45 = vmul.f32 %v9834_v28, %v11530_v37  ;;  %v9513_v37 = vpack.c.bf16 %v7522_v58, %v7521_v31 }
0x15b3   :  { %v9836_v30 = vpop.eup %9835 }
0x15b4   :  { %v9838_v43 = vpop.eup %9837  ;;  %v5710_v46 = vmul.f32 %v9836_v30, %v11540_v60  ;;  %v7523_v60 = vld [vmem:[%s11888_s5 + $0x70] sm:$0xff] }
0x15b5   :  { %v5711_v53 = vmul.f32 %v9838_v43, %v11538_v40  ;;  %v7524_v40 = vld [vmem:[%s11888_s5 + $0x78] sm:$0xff] }
0x15b6   :  { %v9517_v38 = vpack.c.bf16 %v7524_v40, %v7523_v60 }
0x1667   :  { %v8865_v56 = vpop.f32.mrb[114].mxu1 }
0x1668   :  { %v5492_v3 = vadd.f32 %v8865_v56, %v7477_v50  ;;  %v5486_v47 = vpop.f32.mrb[115].mxu1 }
0x1669   :  { %v5487_v20 = vadd.f32 %v7477_v50, %v5486_v47 }
0x166b   :  { %v9493_v15 = vpack.c.bf16 %v5492_v3, %v5487_v20  ;;  %v8868_v19 = vpop.f32.mrb[116].mxu1 }
0x166c   :  { %v5502_v41 = vadd.f32 %v8868_v19, %v7477_v50  ;;  %v5496_v11 = vpop.f32.mrb[117].mxu1 }
0x166d   :  { %v5497_v7 = vadd.f32 %v7477_v50, %v5496_v11  ;;  %9494 = vmatprep.subr.bf16.mxu1 %v9493_v15 }
0x166e   :  { %9496 = vmatpush3.bf16.msra.mxu1 %v9493_v15 }
0x166f   :  { %v9497_v35 = vpack.c.bf16 %v5502_v41, %v5497_v7  ;;  %v8871_v36 = vpop.f32.mrb[118].mxu1 }
0x1670   :  { %v5512_v17 = vadd.f32 %v8871_v36, %v7477_v50  ;;  %v5506_v33 = vpop.f32.mrb[119].mxu1 }
0x1671   :  { %v5507_v25 = vadd.f32 %v7477_v50, %v5506_v33  ;;  %9498 = vmatprep.subr.bf16.mxu1 %v9497_v35 }
0x1672   :  { %9500 = vmatpush3.bf16.msra.mxu1 %v9497_v35 }
0x1673   :  { %v9501_v44 = vpack.c.bf16 %v5512_v17, %v5507_v25 }
0x1675   :  { %9502 = vmatprep.subr.bf16.mxu1 %v9501_v44 }
0x1676   :  { %9504 = vmatpush3.bf16.msra.mxu1 %v9501_v44 }
0x1677   :  { %8914 = vmatprep.subr.mxu1 %v7502_v18 }
0x1679   :  { %8906 = vmatmul.mubr.msk.f32.vlgmr.msra.gmra.mrb[120].mxu1 %vm636_vm3, %v5707_v54 }
0x167a   :  { %8908 = vmatprep.mubr.msk.f32.mxu1 %vm636_vm3, %v5708_v2  ;;  %8915 = vmatpush3.msra.mxu1 %v7502_v18 }
0x167b   :  { %9514 = vmatprep.subr.bf16.mxu1 %v9513_v37 }
0x167d   :  { %8909 = vmatmul.mubr.msk.f32.gmra.mrb[122].mxu1 %vm636_vm3, %v5709_v45 }
0x167e   :  { %8911 = vmatprep.mubr.msk.f32.mxu1 %vm636_vm3, %v5710_v46 }
0x1681   :  { %8912 = vmatmul.mubr.msk.f32.gmra.mrb[124].mxu1 %vm636_vm3, %v5711_v53 }
0x174c   :  { %v8907_v29 = vpop.f32.mrb[120].mxu1 }
0x174d   :  { %v5796_v59 = vpop.f32.mrb[121].mxu1 }
0x174e   :  { %8916 = vmatprep.mubr.msk.f32.mxu1 %vm504_vm1, %v5796_v59 }
0x174f   :  { %8917 = vmatmul.mubr.msk.f32.vlgmr.msra.gmra.mrb[108].mxu1 %vm504_vm1, %v8907_v29 }
0x1750   :  { %v8910_v48 = vpop.f32.mrb[122].mxu1  ;;  %9516 = vmatpush3.bf16.msra.mxu1 %v9513_v37 }
0x1751   :  { %v5806_v6 = vpop.f32.mrb[123].mxu1  ;;  %9518 = vmatprep.subr.bf16.mxu1 %v9517_v38 }
0x1752   :  { %8919 = vmatprep.mubr.msk.f32.mxu1 %vm504_vm1, %v5806_v6 }
0x1753   :  { %8920 = vmatmul.mubr.msk.f32.gmra.mrb[110].mxu1 %vm504_vm1, %v8910_v48 }
0x1754   :  { %v8913_v9 = vpop.f32.mrb[124].mxu1  ;;  %9520 = vmatpush3.bf16.msra.mxu1 %v9517_v38  ;;  %v7563_v38 = vld [vmem:[%s11894_s9 + $0x18] sm:$0xff] }
0x1755   :  { %v5816_v10 = vpop.f32.mrb[125].mxu1 }
0x1756   :  { %8922 = vmatprep.mubr.msk.f32.mxu1 %vm504_vm1, %v5816_v10 }
0x1757   :  { %8923 = vmatmul.mubr.msk.f32.gmra.mrb[112].mxu1 %vm504_vm1, %v8913_v9 }
0x1758   :  { %8950 = vmatprep.mubr.msk.f32.mxu1 %vm64_vm0, %v10809_v23  ;;  %v7526_v23 = vld [vmem:[%s11893_s6 + $0x3] ss:$0 sm:$0xff] }
0x175b   :  { %8951 = vmatmul.mubr.msk.f32.vlgmr.msra.gmra.mrb[126].mxu1 %vm64_vm0, %v10819_v0 }
0x175c   :  { %8953 = vmatprep.mubr.msk.f32.mxu1 %vm64_vm0, %v10823_v16 }
0x175f   :  { %8954 = vmatmul.mubr.msk.f32.gmra.mrb[128].mxu1 %vm64_vm0, %v10827_v27 }
0x1760   :  { %8956 = vmatprep.mubr.msk.f32.mxu1 %vm64_vm0, %v10831_v24 }
0x1763   :  { %8957 = vmatmul.mubr.msk.f32.gmra.mrb[130].mxu1 %vm64_vm0, %v10835_v39 }
0x1764   :  { %8988 = vmatprep.mubr.msk.f32.mxu1 %vm504_vm1, %v6023_v63 }
0x182e   :  { %v8952_v0 = vpop.f32.mrb[126].mxu1 }
0x182f   :  { %v6134_v16 = vadd.f32 %v8952_v0, %v7526_v23  ;;  %v6128_v57 = vpop.f32.mrb[127].mxu1 }
0x1830   :  { %v6129_v42 = vadd.f32 %v7526_v23, %v6128_v57 }
0x1832   :  { %v9529_v27 = vpack.c.bf16 %v6134_v16, %v6129_v42  ;;  %v8955_v13 = vpop.f32.mrb[128].mxu1 }
0x1833   :  { %v6144_v32 = vadd.f32 %v8955_v13, %v7526_v23  ;;  %v6138_v24 = vpop.f32.mrb[129].mxu1 }
0x1834   :  { %v6139_v12 = vadd.f32 %v7526_v23, %v6138_v24  ;;  %9531 = vmatprep.subr.msk.bf16.mxu1 %vm10142_vm2, %v9529_v27 }
0x1835   :  { %9534 = vmatpush3.bf16.xpose.msk.msra.mxu1 %vm10142_vm2, %v9529_v27 }
0x1836   :  { %v9535_v39 = vpack.c.bf16 %v6144_v32, %v6139_v12  ;;  %v8958_v4 = vpop.f32.mrb[130].mxu1 }
0x1837   :  { %v6154_v8 = vadd.f32 %v8958_v4, %v7526_v23  ;;  %v6148_v49 = vpop.f32.mrb[131].mxu1 }
0x1838   :  { %v6149_v50 = vadd.f32 %v7526_v23, %v6148_v49  ;;  %9537 = vmatprep.subr.msk.bf16.mxu1 %vm10142_vm2, %v9535_v39 }
0x183a   :  { %v9541_v62 = vpack.c.bf16 %v6154_v8, %v6149_v50 }
0x183d   :  { %9540 = vmatpush3.bf16.xpose.msk.msra.mxu1 %vm10142_vm2, %v9535_v39 }
0x183e   :  { %9543 = vmatprep.subr.msk.bf16.mxu1 %vm10142_vm2, %v9541_v62 }
0x1845   :  { %9546 = vmatpush3.bf16.xpose.msk.msra.mxu1 %vm10142_vm2, %v9541_v62 }
0x1846   :  { %9018 = vmatprep.subr.mxu1 %v7563_v38 }
0x184c   :  { %8989 = vmatmul.mubr.msk.f32.vlgmr.msra.gmra.mrb[132].mxu1 %vm504_vm1, %v11482_v51 }
0x184d   :  { %8991 = vmatprep.mubr.msk.f32.mxu1 %vm504_vm1, %v11490_v61  ;;  %9019 = vmatpush3.msra.mxu1 %v7563_v38 }
0x1850   :  { %8992 = vmatmul.mubr.msk.f32.gmra.mrb[134].mxu1 %vm504_vm1, %v11487_v22 }
0x1851   :  { %8994 = vmatprep.mubr.msk.f32.mxu1 %vm504_vm1, %v11496_v14 }
0x1854   :  { %8995 = vmatmul.mubr.msk.f32.gmra.mrb[136].mxu1 %vm504_vm1, %v11493_v26 }
0x191f   :  { %v8990_v56 = vpop.f32.mrb[132].mxu1 }
0x1920   :  { %v6365_v3 = vpop.f32.mrb[133].mxu1  ;;  %v6397_v5 = vsel %vm636_vm3, %v8990_v56, -inf }
0x1921   :  { %6398 = vmax.xlane.f32.xlu1 %v6397_v5  ;;  %v6394_v47 = vsel %vm636_vm3, %v6365_v3, -inf }
0x1922   :  { %6395 = vmax.xlane.f32.xlu0 %v6394_v47 }
0x1923   :  { %v8993_v51 = vpop.f32.mrb[134].mxu1 }
0x1924   :  { %v6375_v1 = vpop.f32.mrb[135].mxu1  ;;  %v6403_v61 = vsel %vm636_vm3, %v8993_v51, -inf }
0x1925   :  { %6404 = vmax.xlane.f32.xlu1 %v6403_v61  ;;  %v6400_v22 = vsel %vm636_vm3, %v6375_v1, -inf }
0x1926   :  { %6401 = vmax.xlane.f32.xlu0 %v6400_v22 }
0x1927   :  { %v8996_v14 = vpop.f32.mrb[136].mxu1 }
0x1928   :  { %v6385_v20 = vpop.f32.mrb[137].mxu1  ;;  %v6409_v26 = vsel %vm636_vm3, %v8996_v14, -inf }
0x1929   :  { %6410 = vmax.xlane.f32.xlu1 %v6409_v26  ;;  %v6406_v15 = vsel %vm636_vm3, %v6385_v20, -inf }
0x192a   :  { %6407 = vmax.xlane.f32.xlu0 %v6406_v15 }
0x19ae   :  { %v6399_v19 = vpop.xlane.xlu1 %6398 }
0x19af   :  { %v6413_v21 = vsub.f32 %v8990_v56, %v6399_v19  ;;  %v6396_v41 = vpop.xlane.xlu0 %6395 }
0x19b0   :  { %v6412_v11 = vsub.f32 %v6365_v3, %v6396_v41 }
0x19b1   :  { %v6420_v7 = vmul.f32 1.442695, %v6413_v21  ;;  %v9883_v21 = vld [vmem:[%s11907_s26 + $0x48] sm:$0xff] }
0x19b2   :  { %v6418_v55 = vmul.f32 1.442695, %v6412_v11  ;;  %v6405_v35 = vpop.xlane.xlu1 %6404 }
0x19b3   :  { %9839 = vpow2.f32 %v6420_v7  ;;  %v6415_v36 = vsub.f32 %v8993_v51, %v6405_v35  ;;  %v6402_v17 = vpop.xlane.xlu0 %6401  ;;  %v7570_v51 = vld [vmem:[%s11895_s10] ss:$0 sm:$0xff] }
0x19b4   :  { %9841 = vpow2.f32 %v6418_v55  ;;  %v6414_v33 = vsub.f32 %v6375_v1, %v6402_v17  ;;  %v9881_v1 = vld [vmem:[%s11907_s26 + $0x38] sm:$0xff]  ;;  %v9884_v55 = vld [vmem:[%s11907_s26 + $0x40] sm:$0xff] }
0x19b5   :  { %v6424_v25 = vmul.f32 1.442695, %v6415_v36 }
0x19b6   :  { %v6422_v44 = vmul.f32 1.442695, %v6414_v33  ;;  %v6411_v34 = vpop.xlane.xlu1 %6410 }
0x19b7   :  { %9843 = vpow2.f32 %v6424_v25  ;;  %v6417_v18 = vsub.f32 %v8996_v14, %v6411_v34  ;;  %v6408_v52 = vpop.xlane.xlu0 %6407  ;;  %v9882_v14 = vld [vmem:[%s11907_s26 + $0x30] sm:$0xff] }
0x19b8   :  { %9845 = vpow2.f32 %v6422_v44  ;;  %v6416_v54 = vsub.f32 %v6385_v20, %v6408_v52  ;;  %v9885_v44 = vld [vmem:[%s11907_s26 + $0x58] sm:$0xff] }
0x19b9   :  { %v6428_v28 = vmul.f32 1.442695, %v6417_v18 }
0x19ba   :  { %v6426_v2 = vmul.f32 1.442695, %v6416_v54  ;;  %v9886_v54 = vld [vmem:[%s11907_s26 + $0x50] sm:$0xff] }
0x19bb   :  { %9847 = vpow2.f32 %v6428_v28 }
0x19bc   :  { %9849 = vpow2.f32 %v6426_v2 }
0x19bd   :  { %v9840_v30 = vpop.eup %9839 }
0x19be   :  { %v9842_v45 = vpop.eup %9841  ;;  %v6433_v43 = vsel %vm636_vm3, %v9840_v30, 0.0 }
0x19bf   :  { %6434 = vadd.xlane.f32.xlu1 %v6433_v43  ;;  %v6430_v46 = vsel %vm636_vm3, %v9842_v45, 0.0 }
0x19c0   :  { %6431 = vadd.xlane.f32.xlu0 %v6430_v46 }
0x19c1   :  { %v9844_v53 = vpop.eup %9843 }
0x19c2   :  { %v9846_v31 = vpop.eup %9845  ;;  %v6439_v58 = vsel %vm636_vm3, %v9844_v53, 0.0 }
0x19c3   :  { %6440 = vadd.xlane.f32.xlu1 %v6439_v58  ;;  %v6436_v37 = vsel %vm636_vm3, %v9846_v31, 0.0 }
0x19c4   :  { %6437 = vadd.xlane.f32.xlu0 %v6436_v37 }
0x19c5   :  { %v9848_v60 = vpop.eup %9847 }
0x19c6   :  { %v9850_v40 = vpop.eup %9849  ;;  %v6445_v29 = vsel %vm636_vm3, %v9848_v60, 0.0 }
0x19c7   :  { %6446 = vadd.xlane.f32.xlu1 %v6445_v29  ;;  %v6442_v59 = vsel %vm636_vm3, %v9850_v40, 0.0 }
0x19c8   :  { %6443 = vadd.xlane.f32.xlu0 %v6442_v59 }
0x1a4c   :  { %v6435_v48 = vpop.xlane.xlu1 %6434 }
0x1a4d   :  { %9851 = vrcp.f32 %v6435_v48  ;;  %v6432_v6 = vpop.xlane.xlu0 %6431 }
0x1a4e   :  { %9853 = vrcp.f32 %v6432_v6 }
0x1a50   :  { %v6441_v9 = vpop.xlane.xlu1 %6440 }
0x1a51   :  { %9855 = vrcp.f32 %v6441_v9  ;;  %v6438_v10 = vpop.xlane.xlu0 %6437 }
0x1a52   :  { %9857 = vrcp.f32 %v6438_v10 }
0x1a54   :  { %v6447_v63 = vpop.xlane.xlu1 %6446 }
0x1a55   :  { %9859 = vrcp.f32 %v6447_v63  ;;  %v6444_v23 = vpop.xlane.xlu0 %6443 }
0x1a56   :  { %9861 = vrcp.f32 %v6444_v23 }
0x1a57   :  { %v9852_v0 = vpop.eup %9851 }
0x1a58   :  { %v9854_v16 = vpop.eup %9853  ;;  %v6455_v42 = vmul.f32 %v9852_v0, %v9840_v30 }
0x1a59   :  { %v6454_v57 = vmul.f32 %v9854_v16, %v9842_v45 }
0x1a5b   :  { %v9856_v27 = vpop.eup %9855  ;;  %9009 = vmatprep.mubr.msk.f32.mxu0 %vm636_vm3, %v6454_v57 }
0x1a5c   :  { %v9858_v13 = vpop.eup %9857  ;;  %9010 = vmatmul.mubr.msk.f32.vlgmr.msra.gmra.mrb[120].mxu0 %vm636_vm3, %v6455_v42  ;;  %v6457_v24 = vmul.f32 %v9856_v27, %v9844_v53 }
0x1a5d   :  { %v6456_v32 = vmul.f32 %v9858_v13, %v9846_v31 }
0x1a5f   :  { %v9860_v12 = vpop.eup %9859  ;;  %9012 = vmatprep.mubr.msk.f32.mxu0 %vm636_vm3, %v6456_v32 }
0x1a60   :  { %v9862_v39 = vpop.eup %9861  ;;  %9013 = vmatmul.mubr.msk.f32.gmra.mrb[122].mxu0 %vm636_vm3, %v6457_v24  ;;  %v6459_v8 = vmul.f32 %v9860_v12, %v9848_v60 }
0x1a61   :  { %v6458_v4 = vmul.f32 %v9862_v39, %v9850_v40 }
0x1a63   :  { %9015 = vmatprep.mubr.msk.f32.mxu0 %vm636_vm3, %v6458_v4 }
0x1a64   :  { %9016 = vmatmul.mubr.msk.f32.gmra.mrb[124].mxu0 %vm636_vm3, %v6459_v8 }
0x1b2f   :  { %v9011_v49 = vpop.f32.mrb[120].mxu0 }
0x1b30   :  { %v6544_v50 = vpop.f32.mrb[121].mxu0 }
0x1b31   :  { %9020 = vmatprep.mubr.msk.f32.mxu1 %vm504_vm1, %v6544_v50 }
0x1b32   :  { %9021 = vmatmul.mubr.msk.f32.vlgmr.msra.gmra.mrb[108].mxu1 %vm504_vm1, %v9011_v49 }
0x1b33   :  { %v9014_v62 = vpop.f32.mrb[122].mxu0 }
0x1b34   :  { %v6554_v56 = vpop.f32.mrb[123].mxu0 }
0x1b35   :  { %9023 = vmatprep.mubr.msk.f32.mxu1 %vm504_vm1, %v6554_v56  ;;  %v6816_v56 = vld [vmem:[%s11896_s13] sm:$0xff] }
0x1b36   :  { %9024 = vmatmul.mubr.msk.f32.gmra.mrb[110].mxu1 %vm504_vm1, %v9014_v62 }
0x1b37   :  { %v9017_v3 = vpop.f32.mrb[124].mxu0 }
0x1b38   :  { %v6564_v5 = vpop.f32.mrb[125].mxu0 }
0x1b39   :  { %9026 = vmatprep.mubr.msk.f32.mxu1 %vm504_vm1, %v6564_v5 }
0x1b3a   :  { %9027 = vmatmul.mubr.msk.f32.gmra.mrb[112].mxu1 %vm504_vm1, %v9017_v3  ;;  %v6817_v3 = vld [vmem:[%s11896_s13 + $0x8] sm:$0xff] }
0x1b3b   :  { %v9559_v5 = vpack.c.bf16 %v6817_v3, %v6816_v56  ;;  %v6964_v3 = vld [vmem:[%s11897_s15 + $0x30] sm:$0xff] }
0x1b3d   :  { %9560 = vmatprep.subr.bf16.mxu0 %v9559_v5 }
0x1b3e   :  { %9562 = vmatpush3.bf16.msra.mxu0 %v9559_v5  ;;  %v6965_v5 = vld [vmem:[%s11897_s15 + $0x38] sm:$0xff] }
0x1c05   :  { %v9022_v47 = vpop.f32.mrb[108].mxu1 }
0x1c06   :  { %v6694_v61 = vadd.f32 %v9881_v1, %v9022_v47  ;;  %v6658_v22 = vpop.f32.mrb[109].mxu1  ;;  %v6818_v47 = vld [vmem:[%s11896_s13 + $0x10] sm:$0xff] }
0x1c07   :  { %v6693_v20 = vadd.f32 %v9882_v14, %v6658_v22  ;;  %v6959_v22 = vld [vmem:[%s11897_s15 + $0x8] sm:$0xff] }
0x1c08   :  { %v11699_v26 = vadd.f32 %v7570_v51, %v6694_v61  ;;  %v6958_v61 = vld [vmem:[%s11897_s15] sm:$0xff] }
0x1c09   :  { %v11701_v15 = vadd.f32 %v7570_v51, %v6693_v20  ;;  %v9025_v19 = vpop.f32.mrb[110].mxu1  ;;  %v9567_v14 = vpack.c.bf16 %v6959_v22, %v6958_v61  ;;  %v6968_v22 = vld [vmem:[%s11897_s15 + $0x50] sm:$0xff] }
0x1c0a   :  { %v6696_v41 = vadd.f32 %v9883_v21, %v9025_v19  ;;  %v6668_v11 = vpop.f32.mrb[111].mxu1  ;;  %v6717_v7 = vsel %vm64_vm0, %v11699_v26, 0.0 }
0x1c0b   :  { %v6695_v35 = vadd.f32 %v9884_v55, %v6668_v11  ;;  %6718 = vadd.xlane.f32.xlu1 %v6717_v7  ;;  %v6714_v36 = vsel %vm64_vm0, %v11701_v15, 0.0 }
0x1c0c   :  { %v11713_v17 = vadd.f32 %v7570_v51, %v6696_v41  ;;  %6715 = vadd.xlane.f32.xlu0 %v6714_v36 }
0x1c0d   :  { %v11715_v33 = vadd.f32 %v7570_v51, %v6695_v35  ;;  %v9028_v25 = vpop.f32.mrb[112].mxu1 }
0x1c0e   :  { %v6698_v34 = vadd.f32 %v9885_v44, %v9028_v25  ;;  %v6678_v18 = vpop.f32.mrb[113].mxu1  ;;  %v6723_v52 = vsel %vm64_vm0, %v11713_v17, 0.0 }
0x1c0f   :  { %v6697_v28 = vadd.f32 %v9886_v54, %v6678_v18  ;;  %6724 = vadd.xlane.f32.xlu1 %v6723_v52  ;;  %v6720_v2 = vsel %vm64_vm0, %v11715_v33, 0.0 }
0x1c10   :  { %v11727_v30 = vadd.f32 %v7570_v51, %v6698_v34  ;;  %6721 = vadd.xlane.f32.xlu0 %v6720_v2 }
0x1c11   :  { %v11729_v45 = vadd.f32 %v7570_v51, %v6697_v28  ;;  %v6819_v51 = vld [vmem:[%s11896_s13 + $0x18] sm:$0xff] }
0x1c12   :  { %v6729_v43 = vsel %vm64_vm0, %v11727_v30, 0.0  ;;  %v9563_v1 = vpack.c.bf16 %v6819_v51, %v6818_v47  ;;  %v9579_v47 = vpack.c.bf16 %v6965_v5, %v6964_v3  ;;  %v6966_v51 = vld [vmem:[%s11897_s15 + $0x40] sm:$0xff] }
0x1c13   :  { %6730 = vadd.xlane.f32.xlu1 %v6729_v43  ;;  %v6726_v46 = vsel %vm64_vm0, %v11729_v45, 0.0 }
0x1c14   :  { %6727 = vadd.xlane.f32.xlu0 %v6726_v46  ;;  %9564 = vmatprep.subr.bf16.mxu0 %v9563_v1 }
0x1c15   :  { %9566 = vmatpush3.bf16.msra.mxu0 %v9563_v1  ;;  %v6967_v1 = vld [vmem:[%s11897_s15 + $0x48] sm:$0xff] }
0x1c16   :  { %9568 = vmatprep.subr.bf16.mxu0 %v9567_v14  ;;  %v9583_v61 = vpack.c.bf16 %v6967_v1, %v6966_v51 }
0x1c98   :  { %v6719_v53 = vpop.xlane.xlu1 %6718 }
0x1c99   :  { %v6733_v31 = vmul.f32 0.03125, %v6719_v53  ;;  %v6716_v58 = vpop.xlane.xlu0 %6715  ;;  %v7571_v53 = vld [vmem:[%s11898_s11] ss:$0 sm:$0xff] }
0x1c9a   :  { %v6732_v37 = vmul.f32 0.03125, %v6716_v58 }
0x1c9b   :  { %v11736_v60 = vsub.f32 %v11699_v26, %v6733_v31 }
0x1c9c   :  { %v11739_v40 = vsub.f32 %v11701_v15, %v6732_v37  ;;  %v6725_v29 = vpop.xlane.xlu1 %6724 }
0x1c9d   :  { %v6735_v59 = vmul.f32 0.03125, %v6725_v29  ;;  %v6722_v38 = vpop.xlane.xlu0 %6721  ;;  %v6745_v48 = vmul.f32 %v11736_v60, %v11736_v60  ;;  %v7572_v29 = vld [vmem:[%s11899_s12] ss:$0 sm:$0xff] }
0x1c9e   :  { %v6734_v6 = vmul.f32 0.03125, %v6722_v38  ;;  %v6744_v9 = vmul.f32 %v11739_v40, %v11739_v40 }
0x1c9f   :  { %v11746_v10 = vsub.f32 %v11713_v17, %v6735_v59  ;;  %v6753_v63 = vsel %vm64_vm0, %v6745_v48, 0.0 }
0x1ca0   :  { %v11750_v23 = vsub.f32 %v11715_v33, %v6734_v6  ;;  %6754 = vadd.xlane.f32.xlu1 %v6753_v63  ;;  %v6731_v0 = vpop.xlane.xlu1 %6730  ;;  %v6750_v16 = vsel %vm64_vm0, %v6744_v9, 0.0  ;;  %v6960_v6 = vld [vmem:[%s11897_s15 + $0x10] sm:$0xff]  ;;  %v6961_v9 = vld [vmem:[%s11897_s15 + $0x18] sm:$0xff] }
0x1ca1   :  { %v6737_v57 = vmul.f32 0.03125, %v6731_v0  ;;  %6751 = vadd.xlane.f32.xlu0 %v6750_v16  ;;  %v6728_v42 = vpop.xlane.xlu0 %6727  ;;  %v6747_v27 = vmul.f32 %v11746_v10, %v11746_v10 }
0x1ca2   :  { %v6736_v13 = vmul.f32 0.03125, %v6728_v42  ;;  %v6746_v32 = vmul.f32 %v11750_v23, %v11750_v23  ;;  %v9571_v42 = vpack.c.bf16 %v6961_v9, %v6960_v6 }
0x1ca3   :  { %v11758_v24 = vsub.f32 %v11727_v30, %v6737_v57  ;;  %v6759_v12 = vsel %vm64_vm0, %v6747_v27, 0.0 }
0x1ca4   :  { %v11762_v39 = vsub.f32 %v11729_v45, %v6736_v13  ;;  %6760 = vadd.xlane.f32.xlu1 %v6759_v12  ;;  %v6756_v4 = vsel %vm64_vm0, %v6746_v32, 0.0  ;;  %v6962_v32 = vld [vmem:[%s11897_s15 + $0x20] sm:$0xff]  ;;  %v6963_v12 = vld [vmem:[%s11897_s15 + $0x28] sm:$0xff] }
0x1ca5   :  { %6757 = vadd.xlane.f32.xlu0 %v6756_v4  ;;  %v6749_v8 = vmul.f32 %v11758_v24, %v11758_v24 }
0x1ca6   :  { %v6748_v49 = vmul.f32 %v11762_v39, %v11762_v39 }
0x1ca7   :  { %v6765_v50 = vsel %vm64_vm0, %v6749_v8, 0.0 }
0x1ca8   :  { %6766 = vadd.xlane.f32.xlu1 %v6765_v50  ;;  %v6762_v62 = vsel %vm64_vm0, %v6748_v49, 0.0 }
0x1ca9   :  { %6763 = vadd.xlane.f32.xlu0 %v6762_v62  ;;  %v9575_v62 = vpack.c.bf16 %v6963_v12, %v6962_v32 }
0x1d2d   :  { %v6755_v20 = vpop.xlane.xlu1 %6754 }
0x1d2e   :  { %v6769_v19 = vmul.f32 0.03125, %v6755_v20  ;;  %v6752_v21 = vpop.xlane.xlu0 %6751 }
0x1d2f   :  { %v6768_v41 = vmul.f32 0.03125, %v6752_v21  ;;  %v6971_v21 = vld [vmem:[%s11897_s15 + $0x68] sm:$0xff] }
0x1d30   :  { %v6775_v11 = vadd.f32 1e-06, %v6769_v19  ;;  %v6970_v19 = vld [vmem:[%s11897_s15 + $0x60] sm:$0xff] }
0x1d31   :  { %v6774_v7 = vadd.f32 1e-06, %v6768_v41  ;;  %v6761_v55 = vpop.xlane.xlu1 %6760  ;;  %v9591_v41 = vpack.c.bf16 %v6971_v21, %v6970_v19 }
0x1d32   :  { %9863 = vrsqrt.f32 %v6775_v11  ;;  %v6771_v35 = vmul.f32 0.03125, %v6761_v55  ;;  %v6758_v36 = vpop.xlane.xlu0 %6757  ;;  %v6972_v11 = vld [vmem:[%s11897_s15 + $0x70] sm:$0xff] }
0x1d33   :  { %9865 = vrsqrt.f32 %v6774_v7  ;;  %v6770_v25 = vmul.f32 0.03125, %v6758_v36  ;;  %v6973_v7 = vld [vmem:[%s11897_s15 + $0x78] sm:$0xff] }
0x1d34   :  { %v6777_v44 = vadd.f32 1e-06, %v6771_v35  ;;  %v9595_v55 = vpack.c.bf16 %v6973_v7, %v6972_v11  ;;  %v7573_v35 = vld [vmem:[%s11900_s14] ss:$0 sm:$0xff] }
0x1d35   :  { %v6776_v34 = vadd.f32 1e-06, %v6770_v25  ;;  %v6767_v18 = vpop.xlane.xlu1 %6766 }
0x1d36   :  { %9867 = vrsqrt.f32 %v6777_v44  ;;  %v6773_v52 = vmul.f32 0.03125, %v6767_v18  ;;  %v6764_v54 = vpop.xlane.xlu0 %6763 }
0x1d37   :  { %9869 = vrsqrt.f32 %v6776_v34  ;;  %v6772_v28 = vmul.f32 0.03125, %v6764_v54 }
0x1d38   :  { %v6779_v2 = vadd.f32 1e-06, %v6773_v52 }
0x1d39   :  { %v6778_v43 = vadd.f32 1e-06, %v6772_v28 }
0x1d3a   :  { %9871 = vrsqrt.f32 %v6779_v2 }
0x1d3b   :  { %9873 = vrsqrt.f32 %v6778_v43 }
0x1d3c   :  { %v9864_v46 = vpop.eup %9863 }
0x1d3d   :  { %v9866_v31 = vpop.eup %9865  ;;  %v6787_v58 = vmul.f32 %v9864_v46, %v11736_v60 }
0x1d3e   :  { %v6786_v37 = vmul.f32 %v9866_v31, %v11739_v40 }
0x1d3f   :  { %v6799_v59 = vmul.f32 %v7571_v53, %v6787_v58 }
0x1d40   :  { %v9868_v38 = vpop.eup %9867  ;;  %v6798_v48 = vmul.f32 %v7571_v53, %v6786_v37 }
0x1d41   :  { %v9870_v63 = vpop.eup %9869  ;;  %v6789_v60 = vmul.f32 %v9868_v38, %v11746_v10  ;;  %v6811_v16 = vadd.f32 %v7572_v29, %v6799_v59 }
0x1d42   :  { %v6810_v0 = vadd.f32 %v7572_v29, %v6798_v48  ;;  %v6788_v40 = vmul.f32 %v9870_v63, %v11750_v23 }
0x1d43   :  { %v6801_v57 = vmul.f32 %v7571_v53, %v6789_v60 }
0x1d44   :  { %v9872_v27 = vpop.eup %9871  ;;  %9037 = vmatprep.mubr.msk.f32.mxu0 %vm64_vm0, %v6810_v0  ;;  %v6800_v13 = vmul.f32 %v7571_v53, %v6788_v40  ;;  %v7580_v40 = vld [vmem:[%s11901_s16] ss:$0 sm:$0xff] }
0x1d45   :  { %v9874_v4 = vpop.eup %9873  ;;  %9038 = vmatmul.mubr.msk.f32.vlgmr.msra.gmra.mrb[126].mxu0 %vm64_vm0, %v6811_v16  ;;  %v6791_v10 = vmul.f32 %v9872_v27, %v11758_v24  ;;  %v6813_v49 = vadd.f32 %v7572_v29, %v6801_v57 }
0x1d46   :  { %v6812_v23 = vadd.f32 %v7572_v29, %v6800_v13  ;;  %v6790_v8 = vmul.f32 %v9874_v4, %v11762_v39  ;;  %9570 = vmatpush3.bf16.msra.mxu0 %v9567_v14  ;;  %v6969_v14 = vld [vmem:[%s11897_s15 + $0x58] sm:$0xff] }
0x1d47   :  { %v6803_v50 = vmul.f32 %v7571_v53, %v6791_v10  ;;  %9572 = vmatprep.subr.bf16.mxu0 %v9571_v42  ;;  %v9587_v20 = vpack.c.bf16 %v6969_v14, %v6968_v22 }
0x1d48   :  { %9040 = vmatprep.mubr.msk.f32.mxu0 %vm64_vm0, %v6812_v23  ;;  %v6802_v56 = vmul.f32 %v7571_v53, %v6790_v8 }
0x1d49   :  { %9041 = vmatmul.mubr.msk.f32.gmra.mrb[128].mxu0 %vm64_vm0, %v6813_v49  ;;  %v6815_v39 = vadd.f32 %v7572_v29, %v6803_v50 }
0x1d4a   :  { %v6814_v24 = vadd.f32 %v7572_v29, %v6802_v56  ;;  %9574 = vmatpush3.bf16.msra.mxu0 %v9571_v42 }
0x1d4b   :  { %9576 = vmatprep.subr.bf16.mxu0 %v9575_v62 }
0x1d4c   :  { %9043 = vmatprep.mubr.msk.f32.mxu0 %vm64_vm0, %v6814_v24 }
0x1d4d   :  { %9044 = vmatmul.mubr.msk.f32.gmra.mrb[130].mxu0 %vm64_vm0, %v6815_v39 }
0x1d4e   :  { %9578 = vmatpush3.bf16.msra.mxu0 %v9575_v62 }
0x1d4f   :  { %9580 = vmatprep.subr.bf16.mxu0 %v9579_v47 }
0x1d52   :  { %9582 = vmatpush3.bf16.msra.mxu0 %v9579_v47 }
0x1d53   :  { %9584 = vmatprep.subr.bf16.mxu0 %v9583_v61 }
0x1d56   :  { %9586 = vmatpush3.bf16.msra.mxu0 %v9583_v61 }
0x1d57   :  { %9588 = vmatprep.subr.bf16.mxu0 %v9587_v20 }
0x1d5a   :  { %9590 = vmatpush3.bf16.msra.mxu0 %v9587_v20 }
0x1d5b   :  { %9592 = vmatprep.subr.bf16.mxu0 %v9591_v41 }
0x1d5e   :  { %9594 = vmatpush3.bf16.msra.mxu0 %v9591_v41 }
0x1d5f   :  { %9596 = vmatprep.subr.bf16.mxu0 %v9595_v55 }
0x1d62   :  { %9598 = vmatpush3.bf16.msra.mxu0 %v9595_v55 }
0x1e18   :  { %v9039_v36 = vpop.f32.mrb[126].mxu0 }
0x1e19   :  { %v6917_v25 = vadd.f32 %v9039_v36, %v7573_v35  ;;  %v6911_v44 = vpop.f32.mrb[127].mxu0 }
0x1e1a   :  { %v6912_v34 = vadd.f32 %v7573_v35, %v6911_v44 }
0x1e1b   :  { %v6947_v18 = vmul.f32 0.4, %v6917_v25  ;;  %vm6941_vm10 = vcmp.ge.f32.partialorder %v6917_v25, 0.0 }
0x1e1c   :  { %v6946_v52 = vmul.f32 0.4, %v6912_v34  ;;  %v9042_v54 = vpop.f32.mrb[128].mxu0  ;;  %vm6940_vm11 = vcmp.ge.f32.partialorder %v6912_v34, 0.0 }
0x1e1d   :  { %v6927_v28 = vadd.f32 %v9042_v54, %v7573_v35  ;;  %v6921_v2 = vpop.f32.mrb[129].mxu0  ;;  %v6953_v53 = vsel %vm6941_vm10, %v6917_v25, %v6947_v18 }
0x1e1e   :  { %v6922_v43 = vadd.f32 %v7573_v35, %v6921_v2  ;;  %v6952_v46 = vsel %vm6940_vm11, %v6912_v34, %v6946_v52 }
0x1e1f   :  { %v6949_v31 = vmul.f32 0.4, %v6927_v28  ;;  %9078 = vmatprep.mubr.f32.mxu0 %v6952_v46  ;;  %vm6943_vm13 = vcmp.ge.f32.partialorder %v6927_v28, 0.0 }
0x1e20   :  { %v6948_v58 = vmul.f32 0.4, %v6922_v43  ;;  %v9045_v37 = vpop.f32.mrb[130].mxu0  ;;  %9079 = vmatmul.mubr.f32.vlgmr.msra.gmra.mrb[132].mxu0 %v6953_v53  ;;  %vm6942_vm12 = vcmp.ge.f32.partialorder %v6922_v43, 0.0 }
0x1e21   :  { %v6937_v29 = vadd.f32 %v9045_v37, %v7573_v35  ;;  %v6931_v59 = vpop.f32.mrb[131].mxu0  ;;  %v6955_v9 = vsel %vm6943_vm13, %v6927_v28, %v6949_v31 }
0x1e22   :  { %v6932_v38 = vadd.f32 %v7573_v35, %v6931_v59  ;;  %v6954_v48 = vsel %vm6942_vm12, %v6922_v43, %v6948_v58 }
0x1e23   :  { %v6951_v6 = vmul.f32 0.4, %v6937_v29  ;;  %9081 = vmatprep.mubr.f32.mxu0 %v6954_v48  ;;  %vm6945_vm15 = vcmp.ge.f32.partialorder %v6937_v29, 0.0 }
0x1e24   :  { %v6950_v63 = vmul.f32 0.4, %v6932_v38  ;;  %9082 = vmatmul.mubr.f32.gmra.mrb[134].mxu0 %v6955_v9  ;;  %vm6944_vm14 = vcmp.ge.f32.partialorder %v6932_v38, 0.0 }
0x1e25   :  { %v6957_v0 = vsel %vm6945_vm15, %v6937_v29, %v6951_v6 }
0x1e26   :  { %v6956_v60 = vsel %vm6944_vm14, %v6932_v38, %v6950_v63 }
0x1e27   :  { %9084 = vmatprep.mubr.f32.mxu0 %v6956_v60 }
0x1e28   :  { %9085 = vmatmul.mubr.f32.gmra.mrb[136].mxu0 %v6957_v0 }
0x1ef3   :  { %v9080_v16 = vpop.f32.mrb[132].mxu0 }
0x1ef4   :  { %v7053_v57 = vadd.f32 %v9080_v16, %v7580_v40  ;;  %v7047_v42 = vpop.f32.mrb[133].mxu0 }
0x1ef5   :  { %v7048_v27 = vadd.f32 %v7580_v40, %v7047_v42 }
0x1ef6   :  { %v7077_v13 = vadd.f32 %v7053_v57, %v11699_v26 }
0x1ef7   :  { %v7076_v32 = vadd.f32 %v7048_v27, %v11701_v15  ;;  %v9083_v12 = vpop.f32.mrb[134].mxu0 }
0x1ef8   :  { %7582 = vst.msk [vmem:[%s11902_s17 + $0x38] sm:$0xff] %vm64_vm0, %v7077_v13  ;;  %v7063_v4 = vadd.f32 %v9083_v12, %v7580_v40  ;;  %v7057_v10 = vpop.f32.mrb[135].mxu0 }
0x1ef9   :  { %7581 = vst.msk [vmem:[%s11902_s17 + $0x30] sm:$0xff] %vm64_vm0, %v7076_v32  ;;  %v7058_v23 = vadd.f32 %v7580_v40, %v7057_v10 }
0x1efa   :  { %v7079_v8 = vadd.f32 %v7063_v4, %v11713_v17 }
0x1efb   :  { %v7078_v26 = vadd.f32 %v7058_v23, %v11715_v33  ;;  %v9086_v49 = vpop.f32.mrb[136].mxu0 }
0x1efc   :  { %7584 = vst.msk [vmem:[%s11902_s17 + $0x48] sm:$0xff] %vm64_vm0, %v7079_v8  ;;  %v7073_v15 = vadd.f32 %v9086_v49, %v7580_v40  ;;  %v7067_v50 = vpop.f32.mrb[137].mxu0 }
0x1efd   :  { %7583 = vst.msk [vmem:[%s11902_s17 + $0x40] sm:$0xff] %vm64_vm0, %v7078_v26  ;;  %v7068_v62 = vadd.f32 %v7580_v40, %v7067_v50 }
0x1efe   :  { %v7081_v56 = vadd.f32 %v7073_v15, %v11727_v30 }
0x1eff   :  { %v7080_v17 = vadd.f32 %v7068_v62, %v11729_v45 }
0x1f00   :  { %7586 = vst.msk [vmem:[%s11902_s17 + $0x58] sm:$0xff] %vm64_vm0, %v7081_v56 }
0x1f01   :  { %7585 = vst.msk [vmem:[%s11902_s17 + $0x50] sm:$0xff] %vm64_vm0, %v7080_v17 }

</bundles_post_ra>
